<compile_context>
chip_gen: v7x
topology: tpu7x:2x2x1
jax: 0.10.0
libtpu: 0.0.40
codegen_flags: <defaults>
</compile_context>

<pallas_src>
import jax
import jax.numpy as jnp
from jax import lax
from jax.experimental import pallas as pl
from jax.experimental.pallas import tpu as pltpu

# ----------------------- configuration (small demo shapes) -----------------
B = 2            # batch
IN_CH = 4        # input channels to the "U-Net" (last channel is the mask)
H = W = 16       # full-resolution spatial size
INTER = 32       # ssn_config['intermediate_channels'] == refine head in_channels
OUT_CH = 2       # ssn_config['out_channels']
REFINE_CH = 16   # refine_channels (intermediate channels of refine head)
RANK = 5         # ssn_config['rank'] (low-rank covariance rank)
DEC2_CH = 24     # channels of decoder scale-2 output (synthetic)
NUM_SAMPLES = 10
IN_EPS = 1e-5    # InstanceNorm eps (PyTorch default)
SSN_EPS = 1e-5   # ssn epsilon
GROUP = 4        # spatial samples processed per grid step (sample-group axis)


def _leaky(x):
    return jnp.where(x > 0, x, 0.01 * x)


def _div_const(x, d):
    # integer divide by a static constant (pow2 -> shift; generic fallback)
    if d & (d - 1) == 0:
        return jnp.right_shift(x, d.bit_length() - 1)
    return x // d


def _mod_const(x, d):
    if d & (d - 1) == 0:
        return jnp.bitwise_and(x, d - 1)
    return x % d


# =============================== Pallas kernel ==============================
def refine_kernel(feat_ref, samp_ref, wa_ref, ba_ref,
                  w1_ref, b1_ref, w2_ref, b2_ref, w3_ref, b3_ref,
                  out_ref):
    """SmallSpatialAttentionHead.forward for GROUP spatial samples of one
    batch element.  grid = (B, num_sample_groups).

    Lane-dense layout: channels on sublanes, flattened (sample, y, x) on lanes.
      feat_ref : (1, INTER, HW)            decoder features (resident over g)
      samp_ref : (1, OUT_CH, GROUP*HW)     nearest-upsampled spatial samples
      wa_ref   : (9*OUT_CH,)   SMEM f32    attention-conv weights (VPU path)
      ba_ref   : (1,)          SMEM f32    attention-conv bias
      w1/w2    : (9, Cout, Cin) bf16       3x3 conv weights, tap-major (ky,kx)
      w3       : (OUT_CH, REFINE_CH) bf16  1x1 conv weights
      b*       : (Cout, 1) f32
      out_ref  : (1, OUT_CH, GROUP*HW)     lane-dense output
    """
    hw = feat_ref.shape[2]
    n = samp_ref.shape[2]
    group = n // hw
    out_ch = samp_ref.shape[1]

    # ---- per-position validity masks for the 9 conv taps (built once) -----
    pos = lax.broadcasted_iota(jnp.int32, (1, n), 1)
    xc = _mod_const(pos, W)
    yc = _mod_const(_div_const(pos, W), H)
    masks = []
    for dy in (-1, 0, 1):
        vy = jnp.logical_and(yc + dy >= 0, yc + dy <= H - 1)
        for dx in (-1, 0, 1):
            vx = jnp.logical_and(xc + dx >= 0, xc + dx <= W - 1)
            masks.append(jnp.logical_and(vy, vx).astype(jnp.float32))

    # ---- per-sample segment matrix for InstanceNorm reduce / broadcast ----
    rr = lax.broadcasted_iota(jnp.int32, (group, n), 0)
    cc = lax.broadcasted_iota(jnp.int32, (group, n), 1)
    segmat = (_div_const(cc, hw) == rr).astype(jnp.float32)     # (group, n)

    def inorm(x):
        # InstanceNorm over each HW lane-segment (affine=False, biased var).
        nt = (((1,), (1,)), ((), ()))                            # contract lanes
        s1 = lax.dot_general(x, segmat, nt,
                             preferred_element_type=jnp.float32)  # (C, group)
        s2 = lax.dot_general(x * x, segmat, nt,
                             preferred_element_type=jnp.float32)
        mean = s1 * (1.0 / hw)
        var = s2 * (1.0 / hw) - mean * mean
        inv = lax.rsqrt(var + IN_EPS)
        mean_b = jnp.dot(mean, segmat,
                         preferred_element_type=jnp.float32)      # (C, n)
        inv_b = jnp.dot(inv, segmat,
                        preferred_element_type=jnp.float32)
        return (x - mean_b) * inv_b

    def conv3x3(x, w_ref, b_ref):
        # 3x3 'same' conv: 9 shifted-tap matmuls; bf16 MXU operands, f32 acc.
        cout = w_ref.shape[1]
        acc = jnp.zeros((cout, n), jnp.float32)
        k = 0
        for dy in (-1, 0, 1):
            for dx in (-1, 0, 1):
                shift = (-(dy * W + dx)) % n
                tap = pltpu.roll(x, shift, axis=1) if shift else x
                y = jnp.dot(w_ref[k], tap.astype(jnp.bfloat16),
                            preferred_element_type=jnp.float32)
                acc = acc + (y if k == 4 else y * masks[k])
                k += 1
        return acc + b_ref[...]

    # ---- spatial attention head: 3x3 conv (OUT_CH -> 1) on the VPU --------
    samp = samp_ref[0]                                            # (OUT_CH, n)
    rows = [samp[ci:ci + 1, :] for ci in range(out_ch)]
    a = jnp.zeros((1, n), jnp.float32)
    k = 0
    for dy in (-1, 0, 1):
        for dx in (-1, 0, 1):
            shift = (-(dy * W + dx)) % n
            contrib = None
            for ci in range(out_ch):
                t = pltpu.roll(rows[ci], shift, axis=1) if shift else rows[ci]
                term = t * wa_ref[k * out_ch + ci]
                contrib = term if contrib is None else contrib + term
            a = a + (contrib if k == 4 else contrib * masks[k])
            k += 1
    a = a + ba_ref[0]
    a = _leaky(inorm(a))
    a = 1.0 / (1.0 + jnp.exp(-a))                                 # exact sigmoid

    # ---- gate decoder features (tile over samples, broadcast over rows) ---
    feat = feat_ref[0]                                            # (INTER, hw)
    x1 = jnp.concatenate([feat] * group, axis=1) * a              # (INTER, n)

    # ---- refine: Conv3x3+IN+LReLU, Conv3x3+IN+LReLU, Conv1x1 ---------------
    h = _leaky(inorm(conv3x3(x1, w1_ref, b1_ref)))
    h = _leaky(inorm(conv3x3(h, w2_ref, b2_ref)))
    y = jnp.dot(w3_ref[...], h.astype(jnp.bfloat16),
                preferred_element_type=jnp.float32)               # (OUT_CH, n)
    out_ref[0] = y + b3_ref[...]


def refine_head_pallas(feat_nchw, spatial_sbchw, rp):
    """Apply the refine head to S spatial inputs sharing the same features.

    feat_nchw     : (B, INTER, H, W)
    spatial_sbchw : (S, B, OUT_CH, H, W)  (already nearest-resized to (H, W))
    returns       : (S, B, OUT_CH, H, W)
    """
    bsz, inter, hh, ww = feat_nchw.shape
    s_tot = spatial_sbchw.shape[0]
    out_ch = spatial_sbchw.shape[2]
    hw = hh * ww
    assert (hh, ww) == (H, W)

    n_groups = -(-s_tot // GROUP)
    s_pad = n_groups * GROUP
    npg = GROUP * hw

    # lane-dense inputs: channels on sublanes, flattened spatial on lanes
    feat = feat_nchw.reshape(bsz, inter, hw).astype(jnp.float32)
    sp = spatial_sbchw.astype(jnp.float32)
    if s_pad != s_tot:
        sp = jnp.pad(sp, ((0, s_pad - s_tot), (0, 0), (0, 0), (0, 0), (0, 0)))
    samp = jnp.transpose(sp, (1, 2, 0, 3, 4)).reshape(bsz, out_ch, s_pad * hw)

    # tap-major (k = ky*3+kx) weight layouts; bf16 MXU operands, f32 biases.
    # NOTE: HWIO weights assumed; real PyTorch OIHW weights would be permuted
    # to (kH, kW, Cin, Cout) first.
    wa_flat = rp['wa'].reshape(-1).astype(jnp.float32)                   # (9*OUT_CH,)
    ba_flat = rp['ba'].reshape(-1).astype(jnp.float32)                   # (1,)
    w1t = jnp.transpose(rp['w1'], (0, 1, 3, 2)).reshape(
        9, REFINE_CH, inter).astype(jnp.bfloat16)
    w2t = jnp.transpose(rp['w2'], (0, 1, 3, 2)).reshape(
        9, REFINE_CH, REFINE_CH).astype(jnp.bfloat16)
    w3t = rp['w3'].T.astype(jnp.bfloat16)                                # (OUT_CH, REFINE_CH)
    b1c = rp['b1'].reshape(REFINE_CH, 1).astype(jnp.float32)
    b2c = rp['b2'].reshape(REFINE_CH, 1).astype(jnp.float32)
    b3c = rp['b3'].reshape(OUT_CH, 1).astype(jnp.float32)

    const3 = lambda b, g: (0, 0, 0)
    const2 = lambda b, g: (0, 0)
    smem = pl.BlockSpec(memory_space=pltpu.MemorySpace.SMEM)

    out = pl.pallas_call(
        refine_kernel,
        out_shape=jax.ShapeDtypeStruct((bsz, out_ch, s_pad * hw), jnp.float32),
        grid=(bsz, n_groups),
        in_specs=[
            pl.BlockSpec((1, inter, hw), lambda b, g: (b, 0, 0)),    # feat (resident over g)
            pl.BlockSpec((1, out_ch, npg), lambda b, g: (b, 0, g)),  # samples (lane-dense)
            smem,                                                    # attention weights
            smem,                                                    # attention bias
            pl.BlockSpec((9, REFINE_CH, inter), const3),             # w1 (bf16)
            pl.BlockSpec((REFINE_CH, 1), const2),                    # b1
            pl.BlockSpec((9, REFINE_CH, REFINE_CH), const3),         # w2 (bf16)
            pl.BlockSpec((REFINE_CH, 1), const2),                    # b2
            pl.BlockSpec((out_ch, REFINE_CH), const2),               # w3 (bf16)
            pl.BlockSpec((out_ch, 1), const2),                       # b3
        ],
        out_specs=pl.BlockSpec((1, out_ch, npg), lambda b, g: (b, 0, g)),
        compiler_params=pltpu.CompilerParams(
            dimension_semantics=("parallel", "arbitrary")),
    )(feat, samp, wa_flat, ba_flat, w1t, b1c, w2t, b2c, w3t, b3c)

    out = out.reshape(bsz, out_ch, s_pad, hh, ww)[:, :, :s_tot]
    return jnp.transpose(out, (2, 0, 1, 3, 4))             # (S, B, OUT_CH, H, W)


# =============================== JAX glue ===================================
def nearest_resize_nchw(x, out_h, out_w):
    """F.interpolate(..., mode='nearest') on the last two dims (any rank)."""
    in_h, in_w = x.shape[-2], x.shape[-1]
    ih = (jnp.arange(out_h) * in_h) // out_h
    iw = (jnp.arange(out_w) * in_w) // out_w
    x = jnp.take(x, ih, axis=-2)
    x = jnp.take(x, iw, axis=-1)
    return x


def _proj1x1(feat, w, b):
    # 1x1 conv as channel matmul, NCHW
    return jnp.einsum('bchw,cd->bdhw', feat, w) + b[None, :, None, None]


def synthetic_base_unet(x, p):
    # TODO(synk): base_unet architecture is a constructor argument and not
    # specified; deterministic synthetic stand-in producing 3 decoder scales.
    f0 = _leaky(_proj1x1(x, p['w0'], p['b0']))                               # (B, INTER, H, W)
    f1 = _leaky(_proj1x1(nearest_resize_nchw(x, H // 2, W // 2), p['w1'], p['b1']))
    f2 = _leaky(_proj1x1(nearest_resize_nchw(x, H // 4, W // 4), p['w2'], p['b2']))
    return [f0, f1, f2]


def coarse_ssn_head(feat, mask_l, p, epsilon=SSN_EPS):
    # TODO(synk): SSN_Head source not provided; standard low-rank SSN head
    # (mean / log_cov_diag / cov_factor 1x1 convs, mask-gated) used instead.
    f = _proj1x1(feat, p['wf'], p['bf'])
    m = jnp.mean(f, axis=(2, 3), keepdims=True)
    v = jnp.mean((f - m) ** 2, axis=(2, 3), keepdims=True)
    f = _leaky((f - m) * lax.rsqrt(v + IN_EPS))

    logit_mean = _proj1x1(f, p['wm'], p['bm']) * mask_l                      # (B,OUT_CH,h2,w2)
    log_cov_diag = _proj1x1(f, p['wd'], p['bd'])
    cov_factor = _proj1x1(f, p['wc'], p['bc']) * mask_l                      # (B,OUT_CH*RANK,h2,w2)

    bsz, _, h2, w2 = logit_mean.shape
    d = OUT_CH * h2 * w2
    mean_flat = logit_mean.reshape(bsz, d)
    cov_diag = jnp.exp(log_cov_diag).reshape(bsz, d) * mask_l.reshape(
        bsz, 1, h2 * w2).repeat(OUT_CH, axis=1).reshape(bsz, d) + epsilon
    cov_fac = cov_factor.reshape(bsz, RANK, d).transpose(0, 2, 1)            # (B, D, RANK)
    return logit_mean, mean_flat, cov_fac, cov_diag


def forward(x, params, num_samples=NUM_SAMPLES, symmetric=True, rng=None):
    outputs = synthetic_base_unet(x, params['unet'])
    mask = x[:, -1:, :, :]                                                   # x[:, -1].unsqueeze(1)
    dec2 = outputs[2]
    h2, w2 = dec2.shape[2], dec2.shape[3]
    mask_l = nearest_resize_nchw(mask, h2, w2)

    logit_mean, mean_flat, cov_fac, cov_diag = coarse_ssn_head(
        dec2, mask_l, params['coarse'])
    outputs[2] = logit_mean                                                  # decoder_s2_mean

    # symmetric reparameterized sampling from the low-rank Gaussian
    assert symmetric and num_samples % 2 == 0
    half = num_samples // 2
    kz, kd = jax.random.split(rng)
    bsz, d = mean_flat.shape
    eps_z = jax.random.normal(kz, (half, bsz, RANK), jnp.float32)
    eps_d = jax.random.normal(kd, (half, bsz, d), jnp.float32)
    pert = jnp.einsum('bdr,hbr->hbd', cov_fac, eps_z) + jnp.sqrt(cov_diag)[None] * eps_d
    samples = jnp.concatenate([mean_flat[None] + pert, mean_flat[None] - pert], axis=0)
    samples = samples.reshape(num_samples, bsz, OUT_CH, h2, w2)

    # refine head, applied to the mean and every sample (Pallas hot path)
    spatial = jnp.concatenate([logit_mean[None], samples], axis=0)           # (1+S, B, OUT_CH, h2, w2)
    spatial_up = nearest_resize_nchw(spatial, H, W)                          # nearest interp in the head
    refined = refine_head_pallas(outputs[0], spatial_up, params['refine'])

    mean_head_out = refined[0]                                               # (B, OUT_CH, H, W)
    sample_outputs = refined[1:]                                             # (num_samples, B, OUT_CH, H, W)
    outputs[0] = (mean_head_out, sample_outputs)
    return outputs


def init_params(key):
    # NOTE: refine conv weights are generated directly in HWIO layout; real
    # PyTorch OIHW weights would be transposed to (kH, kW, Cin, Cout) first.
    ks = jax.random.split(key, 16)
    wn = lambda k, shape, s=0.1: (s * jax.random.normal(k, shape)).astype(jnp.float32)
    unet = dict(
        w0=wn(ks[0], (IN_CH, INTER)), b0=wn(ks[0], (INTER,), 0.01),
        w1=wn(ks[1], (IN_CH, 8)), b1=wn(ks[1], (8,), 0.01),
        w2=wn(ks[2], (IN_CH, DEC2_CH)), b2=wn(ks[2], (DEC2_CH,), 0.01),
    )
    coarse = dict(
        wf=wn(ks[3], (DEC2_CH, INTER)), bf=wn(ks[3], (INTER,), 0.01),
        wm=wn(ks[4], (INTER, OUT_CH)), bm=jnp.zeros((OUT_CH,), jnp.float32),
        wd=wn(ks[5], (INTER, OUT_CH)), bd=jnp.full((OUT_CH,), -3.0, jnp.float32),
        wc=wn(ks[6], (INTER, OUT_CH * RANK)), bc=jnp.zeros((OUT_CH * RANK,), jnp.float32),
    )
    refine = dict(
        wa=wn(ks[7], (3, 3, OUT_CH, 1)), ba=wn(ks[7], (1, 1), 0.01),
        w1=wn(ks[8], (3, 3, INTER, REFINE_CH)), b1=wn(ks[8], (1, REFINE_CH), 0.01),
        w2=wn(ks[9], (3, 3, REFINE_CH, REFINE_CH)), b2=wn(ks[9], (1, REFINE_CH), 0.01),
        w3=wn(ks[10], (REFINE_CH, OUT_CH)), b3=wn(ks[10], (1, OUT_CH), 0.01),
    )
    return dict(unet=unet, coarse=coarse, refine=refine)


if __name__ == "__main__":
    key = jax.random.PRNGKey(0)
    kx, km = jax.random.split(key)
    x_data = jax.random.normal(kx, (B, IN_CH, H, W), jnp.float32)
    mask_ch = (jax.random.uniform(km, (B, 1, H, W)) > 0.3).astype(jnp.float32)
    x_data = jnp.concatenate([x_data[:, :-1], mask_ch], axis=1)              # last channel = mask

    params = init_params(jax.random.PRNGKey(42))
    outputs = forward(x_data, params, num_samples=NUM_SAMPLES,
                      symmetric=True, rng=jax.random.PRNGKey(1))

    mean_head_out, sample_outputs = outputs[0]
    jax.block_until_ready(mean_head_out)
    jax.block_until_ready(sample_outputs)
    jax.block_until_ready(outputs[2])

    assert mean_head_out.shape == (B, OUT_CH, H, W)
    assert sample_outputs.shape == (NUM_SAMPLES, B, OUT_CH, H, W)
    assert outputs[2].shape == (B, OUT_CH, H // 4, W // 4)
    print("KERNEL_OK")
</pallas_src>

<mosaic_0001>
module attributes {stable_mosaic.version = 11 : i64} {
  func.func @refine_kernel(%arg0: i32, %arg1: i32, %arg2: memref<1x32x256xf32, #tpu.memory_space<vmem>>, %arg3: memref<1x2x1024xf32, #tpu.memory_space<vmem>>, %arg4: memref<18xf32, #tpu.memory_space<smem>>, %arg5: memref<1xf32, #tpu.memory_space<smem>>, %arg6: memref<9x16x32xbf16, #tpu.memory_space<vmem>>, %arg7: memref<16x1xf32, #tpu.memory_space<vmem>>, %arg8: memref<9x16x16xbf16, #tpu.memory_space<vmem>>, %arg9: memref<16x1xf32, #tpu.memory_space<vmem>>, %arg10: memref<2x16xbf16, #tpu.memory_space<vmem>>, %arg11: memref<2x1xf32, #tpu.memory_space<vmem>>, %arg12: memref<1x2x1024xf32, #tpu.memory_space<vmem>>) attributes {dimension_semantics = [#tpu.dimension_semantics<parallel>, #tpu.dimension_semantics<arbitrary>], iteration_bounds = array<i64: 2, 3>, scalar_prefetch = 0 : i64, scratch_operands = 0 : i64, tpu.core_type = #tpu.core_type<tc>, window_params = [{transform_indices = @transform_0, window_bounds = array<i64: 1, 32, 256>}, {transform_indices = @transform_1, window_bounds = array<i64: 1, 2, 1024>}, {transform_indices = @transform_2, window_bounds = array<i64: 18>}, {transform_indices = @transform_3, window_bounds = array<i64: 1>}, {pipeline_mode = #tpu.pipeline_mode<synchronous>, transform_indices = @transform_4, window_bounds = array<i64: 9, 16, 32>}, {pipeline_mode = #tpu.pipeline_mode<synchronous>, transform_indices = @transform_5, window_bounds = array<i64: 16, 1>}, {pipeline_mode = #tpu.pipeline_mode<synchronous>, transform_indices = @transform_6, window_bounds = array<i64: 9, 16, 16>}, {pipeline_mode = #tpu.pipeline_mode<synchronous>, transform_indices = @transform_7, window_bounds = array<i64: 16, 1>}, {pipeline_mode = #tpu.pipeline_mode<synchronous>, transform_indices = @transform_8, window_bounds = array<i64: 2, 16>}, {pipeline_mode = #tpu.pipeline_mode<synchronous>, transform_indices = @transform_9, window_bounds = array<i64: 2, 1>}, {transform_indices = @transform_10, window_bounds = array<i64: 1, 2, 1024>}]} {
    %0 = tpu.iota {dimensions = array<i32: 1>} : vector<1x1024xi32>
    %c15_i32 = arith.constant 15 : i32
    %1 = vector.broadcast %c15_i32 : i32 to vector<1x1024xi32>
    %2 = arith.andi %0, %1 : vector<1x1024xi32>
    %c4_i32 = arith.constant 4 : i32
    %3 = vector.broadcast %c4_i32 : i32 to vector<1x1024xi32>
    %4 = arith.shrsi %0, %3 : vector<1x1024xi32>
    %c15_i32_0 = arith.constant 15 : i32
    %5 = vector.broadcast %c15_i32_0 : i32 to vector<1x1024xi32>
    %6 = arith.andi %4, %5 : vector<1x1024xi32>
    %c-1_i32 = arith.constant -1 : i32
    %7 = vector.broadcast %c-1_i32 : i32 to vector<1x1024xi32>
    %8 = arith.addi %6, %7 : vector<1x1024xi32>
    %c0_i32 = arith.constant 0 : i32
    %9 = vector.broadcast %c0_i32 : i32 to vector<1x1024xi32>
    %10 = arith.cmpi sge, %8, %9 : vector<1x1024xi32>
    %c-1_i32_1 = arith.constant -1 : i32
    %11 = vector.broadcast %c-1_i32_1 : i32 to vector<1x1024xi32>
    %12 = arith.addi %6, %11 : vector<1x1024xi32>
    %c15_i32_2 = arith.constant 15 : i32
    %13 = vector.broadcast %c15_i32_2 : i32 to vector<1x1024xi32>
    %14 = arith.cmpi sle, %12, %13 : vector<1x1024xi32>
    %15 = arith.andi %10, %14 : vector<1x1024xi1>
    %c-1_i32_3 = arith.constant -1 : i32
    %16 = vector.broadcast %c-1_i32_3 : i32 to vector<1x1024xi32>
    %17 = arith.addi %2, %16 : vector<1x1024xi32>
    %c0_i32_4 = arith.constant 0 : i32
    %18 = vector.broadcast %c0_i32_4 : i32 to vector<1x1024xi32>
    %19 = arith.cmpi sge, %17, %18 : vector<1x1024xi32>
    %c-1_i32_5 = arith.constant -1 : i32
    %20 = vector.broadcast %c-1_i32_5 : i32 to vector<1x1024xi32>
    %21 = arith.addi %2, %20 : vector<1x1024xi32>
    %c15_i32_6 = arith.constant 15 : i32
    %22 = vector.broadcast %c15_i32_6 : i32 to vector<1x1024xi32>
    %23 = arith.cmpi sle, %21, %22 : vector<1x1024xi32>
    %24 = arith.andi %19, %23 : vector<1x1024xi1>
    %25 = arith.andi %15, %24 : vector<1x1024xi1>
    %26 = arith.extui %25 : vector<1x1024xi1> to vector<1x1024xi32>
    %27 = arith.sitofp %26 : vector<1x1024xi32> to vector<1x1024xf32>
    %c0_i32_7 = arith.constant 0 : i32
    %28 = vector.broadcast %c0_i32_7 : i32 to vector<1x1024xi32>
    %29 = arith.addi %2, %28 : vector<1x1024xi32>
    %c0_i32_8 = arith.constant 0 : i32
    %30 = vector.broadcast %c0_i32_8 : i32 to vector<1x1024xi32>
    %31 = arith.cmpi sge, %29, %30 : vector<1x1024xi32>
    %c0_i32_9 = arith.constant 0 : i32
    %32 = vector.broadcast %c0_i32_9 : i32 to vector<1x1024xi32>
    %33 = arith.addi %2, %32 : vector<1x1024xi32>
    %c15_i32_10 = arith.constant 15 : i32
    %34 = vector.broadcast %c15_i32_10 : i32 to vector<1x1024xi32>
    %35 = arith.cmpi sle, %33, %34 : vector<1x1024xi32>
    %36 = arith.andi %31, %35 : vector<1x1024xi1>
    %37 = arith.andi %15, %36 : vector<1x1024xi1>
    %38 = arith.extui %37 : vector<1x1024xi1> to vector<1x1024xi32>
    %39 = arith.sitofp %38 : vector<1x1024xi32> to vector<1x1024xf32>
    %c1_i32 = arith.constant 1 : i32
    %40 = vector.broadcast %c1_i32 : i32 to vector<1x1024xi32>
    %41 = arith.addi %2, %40 : vector<1x1024xi32>
    %c0_i32_11 = arith.constant 0 : i32
    %42 = vector.broadcast %c0_i32_11 : i32 to vector<1x1024xi32>
    %43 = arith.cmpi sge, %41, %42 : vector<1x1024xi32>
    %c1_i32_12 = arith.constant 1 : i32
    %44 = vector.broadcast %c1_i32_12 : i32 to vector<1x1024xi32>
    %45 = arith.addi %2, %44 : vector<1x1024xi32>
    %c15_i32_13 = arith.constant 15 : i32
    %46 = vector.broadcast %c15_i32_13 : i32 to vector<1x1024xi32>
    %47 = arith.cmpi sle, %45, %46 : vector<1x1024xi32>
    %48 = arith.andi %43, %47 : vector<1x1024xi1>
    %49 = arith.andi %15, %48 : vector<1x1024xi1>
    %50 = arith.extui %49 : vector<1x1024xi1> to vector<1x1024xi32>
    %51 = arith.sitofp %50 : vector<1x1024xi32> to vector<1x1024xf32>
    %c0_i32_14 = arith.constant 0 : i32
    %52 = vector.broadcast %c0_i32_14 : i32 to vector<1x1024xi32>
    %53 = arith.addi %6, %52 : vector<1x1024xi32>
    %c0_i32_15 = arith.constant 0 : i32
    %54 = vector.broadcast %c0_i32_15 : i32 to vector<1x1024xi32>
    %55 = arith.cmpi sge, %53, %54 : vector<1x1024xi32>
    %c0_i32_16 = arith.constant 0 : i32
    %56 = vector.broadcast %c0_i32_16 : i32 to vector<1x1024xi32>
    %57 = arith.addi %6, %56 : vector<1x1024xi32>
    %c15_i32_17 = arith.constant 15 : i32
    %58 = vector.broadcast %c15_i32_17 : i32 to vector<1x1024xi32>
    %59 = arith.cmpi sle, %57, %58 : vector<1x1024xi32>
    %60 = arith.andi %55, %59 : vector<1x1024xi1>
    %c-1_i32_18 = arith.constant -1 : i32
    %61 = vector.broadcast %c-1_i32_18 : i32 to vector<1x1024xi32>
    %62 = arith.addi %2, %61 : vector<1x1024xi32>
    %c0_i32_19 = arith.constant 0 : i32
    %63 = vector.broadcast %c0_i32_19 : i32 to vector<1x1024xi32>
    %64 = arith.cmpi sge, %62, %63 : vector<1x1024xi32>
    %c-1_i32_20 = arith.constant -1 : i32
    %65 = vector.broadcast %c-1_i32_20 : i32 to vector<1x1024xi32>
    %66 = arith.addi %2, %65 : vector<1x1024xi32>
    %c15_i32_21 = arith.constant 15 : i32
    %67 = vector.broadcast %c15_i32_21 : i32 to vector<1x1024xi32>
    %68 = arith.cmpi sle, %66, %67 : vector<1x1024xi32>
    %69 = arith.andi %64, %68 : vector<1x1024xi1>
    %70 = arith.andi %60, %69 : vector<1x1024xi1>
    %71 = arith.extui %70 : vector<1x1024xi1> to vector<1x1024xi32>
    %72 = arith.sitofp %71 : vector<1x1024xi32> to vector<1x1024xf32>
    %c1_i32_22 = arith.constant 1 : i32
    %73 = vector.broadcast %c1_i32_22 : i32 to vector<1x1024xi32>
    %74 = arith.addi %2, %73 : vector<1x1024xi32>
    %c0_i32_23 = arith.constant 0 : i32
    %75 = vector.broadcast %c0_i32_23 : i32 to vector<1x1024xi32>
    %76 = arith.cmpi sge, %74, %75 : vector<1x1024xi32>
    %c1_i32_24 = arith.constant 1 : i32
    %77 = vector.broadcast %c1_i32_24 : i32 to vector<1x1024xi32>
    %78 = arith.addi %2, %77 : vector<1x1024xi32>
    %c15_i32_25 = arith.constant 15 : i32
    %79 = vector.broadcast %c15_i32_25 : i32 to vector<1x1024xi32>
    %80 = arith.cmpi sle, %78, %79 : vector<1x1024xi32>
    %81 = arith.andi %76, %80 : vector<1x1024xi1>
    %82 = arith.andi %60, %81 : vector<1x1024xi1>
    %83 = arith.extui %82 : vector<1x1024xi1> to vector<1x1024xi32>
    %84 = arith.sitofp %83 : vector<1x1024xi32> to vector<1x1024xf32>
    %c1_i32_26 = arith.constant 1 : i32
    %85 = vector.broadcast %c1_i32_26 : i32 to vector<1x1024xi32>
    %86 = arith.addi %6, %85 : vector<1x1024xi32>
    %c0_i32_27 = arith.constant 0 : i32
    %87 = vector.broadcast %c0_i32_27 : i32 to vector<1x1024xi32>
    %88 = arith.cmpi sge, %86, %87 : vector<1x1024xi32>
    %c1_i32_28 = arith.constant 1 : i32
    %89 = vector.broadcast %c1_i32_28 : i32 to vector<1x1024xi32>
    %90 = arith.addi %6, %89 : vector<1x1024xi32>
    %c15_i32_29 = arith.constant 15 : i32
    %91 = vector.broadcast %c15_i32_29 : i32 to vector<1x1024xi32>
    %92 = arith.cmpi sle, %90, %91 : vector<1x1024xi32>
    %93 = arith.andi %88, %92 : vector<1x1024xi1>
    %c-1_i32_30 = arith.constant -1 : i32
    %94 = vector.broadcast %c-1_i32_30 : i32 to vector<1x1024xi32>
    %95 = arith.addi %2, %94 : vector<1x1024xi32>
    %c0_i32_31 = arith.constant 0 : i32
    %96 = vector.broadcast %c0_i32_31 : i32 to vector<1x1024xi32>
    %97 = arith.cmpi sge, %95, %96 : vector<1x1024xi32>
    %c-1_i32_32 = arith.constant -1 : i32
    %98 = vector.broadcast %c-1_i32_32 : i32 to vector<1x1024xi32>
    %99 = arith.addi %2, %98 : vector<1x1024xi32>
    %c15_i32_33 = arith.constant 15 : i32
    %100 = vector.broadcast %c15_i32_33 : i32 to vector<1x1024xi32>
    %101 = arith.cmpi sle, %99, %100 : vector<1x1024xi32>
    %102 = arith.andi %97, %101 : vector<1x1024xi1>
    %103 = arith.andi %93, %102 : vector<1x1024xi1>
    %104 = arith.extui %103 : vector<1x1024xi1> to vector<1x1024xi32>
    %105 = arith.sitofp %104 : vector<1x1024xi32> to vector<1x1024xf32>
    %c0_i32_34 = arith.constant 0 : i32
    %106 = vector.broadcast %c0_i32_34 : i32 to vector<1x1024xi32>
    %107 = arith.addi %2, %106 : vector<1x1024xi32>
    %c0_i32_35 = arith.constant 0 : i32
    %108 = vector.broadcast %c0_i32_35 : i32 to vector<1x1024xi32>
    %109 = arith.cmpi sge, %107, %108 : vector<1x1024xi32>
    %c0_i32_36 = arith.constant 0 : i32
    %110 = vector.broadcast %c0_i32_36 : i32 to vector<1x1024xi32>
    %111 = arith.addi %2, %110 : vector<1x1024xi32>
    %c15_i32_37 = arith.constant 15 : i32
    %112 = vector.broadcast %c15_i32_37 : i32 to vector<1x1024xi32>
    %113 = arith.cmpi sle, %111, %112 : vector<1x1024xi32>
    %114 = arith.andi %109, %113 : vector<1x1024xi1>
    %115 = arith.andi %93, %114 : vector<1x1024xi1>
    %116 = arith.extui %115 : vector<1x1024xi1> to vector<1x1024xi32>
    %117 = arith.sitofp %116 : vector<1x1024xi32> to vector<1x1024xf32>
    %c1_i32_38 = arith.constant 1 : i32
    %118 = vector.broadcast %c1_i32_38 : i32 to vector<1x1024xi32>
    %119 = arith.addi %2, %118 : vector<1x1024xi32>
    %c0_i32_39 = arith.constant 0 : i32
    %120 = vector.broadcast %c0_i32_39 : i32 to vector<1x1024xi32>
    %121 = arith.cmpi sge, %119, %120 : vector<1x1024xi32>
    %c1_i32_40 = arith.constant 1 : i32
    %122 = vector.broadcast %c1_i32_40 : i32 to vector<1x1024xi32>
    %123 = arith.addi %2, %122 : vector<1x1024xi32>
    %c15_i32_41 = arith.constant 15 : i32
    %124 = vector.broadcast %c15_i32_41 : i32 to vector<1x1024xi32>
    %125 = arith.cmpi sle, %123, %124 : vector<1x1024xi32>
    %126 = arith.andi %121, %125 : vector<1x1024xi1>
    %127 = arith.andi %93, %126 : vector<1x1024xi1>
    %128 = arith.extui %127 : vector<1x1024xi1> to vector<1x1024xi32>
    %129 = arith.sitofp %128 : vector<1x1024xi32> to vector<1x1024xf32>
    %130 = tpu.iota {dimensions = array<i32: 0>} : vector<4x1024xi32>
    %131 = tpu.iota {dimensions = array<i32: 1>} : vector<4x1024xi32>
    %c8_i32 = arith.constant 8 : i32
    %132 = vector.broadcast %c8_i32 : i32 to vector<4x1024xi32>
    %133 = arith.shrsi %131, %132 : vector<4x1024xi32>
    %134 = arith.cmpi eq, %133, %130 : vector<4x1024xi32>
    %135 = arith.extui %134 : vector<4x1024xi1> to vector<4x1024xi32>
    %136 = arith.sitofp %135 : vector<4x1024xi32> to vector<4x1024xf32>
    %c0 = arith.constant 0 : index
    %c0_42 = arith.constant 0 : index
    %c0_43 = arith.constant 0 : index
    %137 = vector.load %arg3[%c0, %c0_42, %c0_43] : memref<1x2x1024xf32, #tpu.memory_space<vmem>>, vector<1x2x1024xf32>
    %138 = vector.shape_cast %137 : vector<1x2x1024xf32> to vector<2x1024xf32>
    %139 = vector.extract_strided_slice %138 {offsets = [0, 0], sizes = [1, 1024], strides = [1, 1]} : vector<2x1024xf32> to vector<1x1024xf32>
    %140 = vector.extract_strided_slice %138 {offsets = [1, 0], sizes = [1, 1024], strides = [1, 1]} : vector<2x1024xf32> to vector<1x1024xf32>
    %cst = arith.constant 0.000000e+00 : f32
    %141 = vector.broadcast %cst : f32 to vector<1x1024xf32>
    %c17_i32 = arith.constant 17 : i32
    %142 = tpu.dynamic_rotate %139 by %c17_i32 dim 1 : vector<1x1024xf32>, i32 -> vector<1x1024xf32>
    %c0_44 = arith.constant 0 : index
    %143 = memref.load %arg4[%c0_44] : memref<18xf32, #tpu.memory_space<smem>>
    %144 = vector.broadcast %143 : f32 to vector<1x1024xf32>
    %145 = arith.mulf %142, %144 : vector<1x1024xf32>
    %c17_i32_45 = arith.constant 17 : i32
    %146 = tpu.dynamic_rotate %140 by %c17_i32_45 dim 1 : vector<1x1024xf32>, i32 -> vector<1x1024xf32>
    %c1 = arith.constant 1 : index
    %147 = memref.load %arg4[%c1] : memref<18xf32, #tpu.memory_space<smem>>
    %148 = vector.broadcast %147 : f32 to vector<1x1024xf32>
    %149 = arith.mulf %146, %148 : vector<1x1024xf32>
    %150 = arith.addf %145, %149 : vector<1x1024xf32>
    %151 = arith.mulf %150, %27 : vector<1x1024xf32>
    %152 = arith.addf %141, %151 : vector<1x1024xf32>
    %c16_i32 = arith.constant 16 : i32
    %153 = tpu.dynamic_rotate %139 by %c16_i32 dim 1 : vector<1x1024xf32>, i32 -> vector<1x1024xf32>
    %c2 = arith.constant 2 : index
    %154 = memref.load %arg4[%c2] : memref<18xf32, #tpu.memory_space<smem>>
    %155 = vector.broadcast %154 : f32 to vector<1x1024xf32>
    %156 = arith.mulf %153, %155 : vector<1x1024xf32>
    %c16_i32_46 = arith.constant 16 : i32
    %157 = tpu.dynamic_rotate %140 by %c16_i32_46 dim 1 : vector<1x1024xf32>, i32 -> vector<1x1024xf32>
    %c3 = arith.constant 3 : index
    %158 = memref.load %arg4[%c3] : memref<18xf32, #tpu.memory_space<smem>>
    %159 = vector.broadcast %158 : f32 to vector<1x1024xf32>
    %160 = arith.mulf %157, %159 : vector<1x1024xf32>
    %161 = arith.addf %156, %160 : vector<1x1024xf32>
    %162 = arith.mulf %161, %39 : vector<1x1024xf32>
    %163 = arith.addf %152, %162 : vector<1x1024xf32>
    %c15_i32_47 = arith.constant 15 : i32
    %164 = tpu.dynamic_rotate %139 by %c15_i32_47 dim 1 : vector<1x1024xf32>, i32 -> vector<1x1024xf32>
    %c4 = arith.constant 4 : index
    %165 = memref.load %arg4[%c4] : memref<18xf32, #tpu.memory_space<smem>>
    %166 = vector.broadcast %165 : f32 to vector<1x1024xf32>
    %167 = arith.mulf %164, %166 : vector<1x1024xf32>
    %c15_i32_48 = arith.constant 15 : i32
    %168 = tpu.dynamic_rotate %140 by %c15_i32_48 dim 1 : vector<1x1024xf32>, i32 -> vector<1x1024xf32>
    %c5 = arith.constant 5 : index
    %169 = memref.load %arg4[%c5] : memref<18xf32, #tpu.memory_space<smem>>
    %170 = vector.broadcast %169 : f32 to vector<1x1024xf32>
    %171 = arith.mulf %168, %170 : vector<1x1024xf32>
    %172 = arith.addf %167, %171 : vector<1x1024xf32>
    %173 = arith.mulf %172, %51 : vector<1x1024xf32>
    %174 = arith.addf %163, %173 : vector<1x1024xf32>
    %c1_i32_49 = arith.constant 1 : i32
    %175 = tpu.dynamic_rotate %139 by %c1_i32_49 dim 1 : vector<1x1024xf32>, i32 -> vector<1x1024xf32>
    %c6 = arith.constant 6 : index
    %176 = memref.load %arg4[%c6] : memref<18xf32, #tpu.memory_space<smem>>
    %177 = vector.broadcast %176 : f32 to vector<1x1024xf32>
    %178 = arith.mulf %175, %177 : vector<1x1024xf32>
    %c1_i32_50 = arith.constant 1 : i32
    %179 = tpu.dynamic_rotate %140 by %c1_i32_50 dim 1 : vector<1x1024xf32>, i32 -> vector<1x1024xf32>
    %c7 = arith.constant 7 : index
    %180 = memref.load %arg4[%c7] : memref<18xf32, #tpu.memory_space<smem>>
    %181 = vector.broadcast %180 : f32 to vector<1x1024xf32>
    %182 = arith.mulf %179, %181 : vector<1x1024xf32>
    %183 = arith.addf %178, %182 : vector<1x1024xf32>
    %184 = arith.mulf %183, %72 : vector<1x1024xf32>
    %185 = arith.addf %174, %184 : vector<1x1024xf32>
    %c8 = arith.constant 8 : index
    %186 = memref.load %arg4[%c8] : memref<18xf32, #tpu.memory_space<smem>>
    %187 = vector.broadcast %186 : f32 to vector<1x1024xf32>
    %188 = arith.mulf %139, %187 : vector<1x1024xf32>
    %c9 = arith.constant 9 : index
    %189 = memref.load %arg4[%c9] : memref<18xf32, #tpu.memory_space<smem>>
    %190 = vector.broadcast %189 : f32 to vector<1x1024xf32>
    %191 = arith.mulf %140, %190 : vector<1x1024xf32>
    %192 = arith.addf %188, %191 : vector<1x1024xf32>
    %193 = arith.addf %185, %192 : vector<1x1024xf32>
    %c1023_i32 = arith.constant 1023 : i32
    %194 = tpu.dynamic_rotate %139 by %c1023_i32 dim 1 : vector<1x1024xf32>, i32 -> vector<1x1024xf32>
    %c10 = arith.constant 10 : index
    %195 = memref.load %arg4[%c10] : memref<18xf32, #tpu.memory_space<smem>>
    %196 = vector.broadcast %195 : f32 to vector<1x1024xf32>
    %197 = arith.mulf %194, %196 : vector<1x1024xf32>
    %c1023_i32_51 = arith.constant 1023 : i32
    %198 = tpu.dynamic_rotate %140 by %c1023_i32_51 dim 1 : vector<1x1024xf32>, i32 -> vector<1x1024xf32>
    %c11 = arith.constant 11 : index
    %199 = memref.load %arg4[%c11] : memref<18xf32, #tpu.memory_space<smem>>
    %200 = vector.broadcast %199 : f32 to vector<1x1024xf32>
    %201 = arith.mulf %198, %200 : vector<1x1024xf32>
    %202 = arith.addf %197, %201 : vector<1x1024xf32>
    %203 = arith.mulf %202, %84 : vector<1x1024xf32>
    %204 = arith.addf %193, %203 : vector<1x1024xf32>
    %c1009_i32 = arith.constant 1009 : i32
    %205 = tpu.dynamic_rotate %139 by %c1009_i32 dim 1 : vector<1x1024xf32>, i32 -> vector<1x1024xf32>
    %c12 = arith.constant 12 : index
    %206 = memref.load %arg4[%c12] : memref<18xf32, #tpu.memory_space<smem>>
    %207 = vector.broadcast %206 : f32 to vector<1x1024xf32>
    %208 = arith.mulf %205, %207 : vector<1x1024xf32>
    %c1009_i32_52 = arith.constant 1009 : i32
    %209 = tpu.dynamic_rotate %140 by %c1009_i32_52 dim 1 : vector<1x1024xf32>, i32 -> vector<1x1024xf32>
    %c13 = arith.constant 13 : index
    %210 = memref.load %arg4[%c13] : memref<18xf32, #tpu.memory_space<smem>>
    %211 = vector.broadcast %210 : f32 to vector<1x1024xf32>
    %212 = arith.mulf %209, %211 : vector<1x1024xf32>
    %213 = arith.addf %208, %212 : vector<1x1024xf32>
    %214 = arith.mulf %213, %105 : vector<1x1024xf32>
    %215 = arith.addf %204, %214 : vector<1x1024xf32>
    %c1008_i32 = arith.constant 1008 : i32
    %216 = tpu.dynamic_rotate %139 by %c1008_i32 dim 1 : vector<1x1024xf32>, i32 -> vector<1x1024xf32>
    %c14 = arith.constant 14 : index
    %217 = memref.load %arg4[%c14] : memref<18xf32, #tpu.memory_space<smem>>
    %218 = vector.broadcast %217 : f32 to vector<1x1024xf32>
    %219 = arith.mulf %216, %218 : vector<1x1024xf32>
    %c1008_i32_53 = arith.constant 1008 : i32
    %220 = tpu.dynamic_rotate %140 by %c1008_i32_53 dim 1 : vector<1x1024xf32>, i32 -> vector<1x1024xf32>
    %c15 = arith.constant 15 : index
    %221 = memref.load %arg4[%c15] : memref<18xf32, #tpu.memory_space<smem>>
    %222 = vector.broadcast %221 : f32 to vector<1x1024xf32>
    %223 = arith.mulf %220, %222 : vector<1x1024xf32>
    %224 = arith.addf %219, %223 : vector<1x1024xf32>
    %225 = arith.mulf %224, %117 : vector<1x1024xf32>
    %226 = arith.addf %215, %225 : vector<1x1024xf32>
    %c1007_i32 = arith.constant 1007 : i32
    %227 = tpu.dynamic_rotate %139 by %c1007_i32 dim 1 : vector<1x1024xf32>, i32 -> vector<1x1024xf32>
    %c16 = arith.constant 16 : index
    %228 = memref.load %arg4[%c16] : memref<18xf32, #tpu.memory_space<smem>>
    %229 = vector.broadcast %228 : f32 to vector<1x1024xf32>
    %230 = arith.mulf %227, %229 : vector<1x1024xf32>
    %c1007_i32_54 = arith.constant 1007 : i32
    %231 = tpu.dynamic_rotate %140 by %c1007_i32_54 dim 1 : vector<1x1024xf32>, i32 -> vector<1x1024xf32>
    %c17 = arith.constant 17 : index
    %232 = memref.load %arg4[%c17] : memref<18xf32, #tpu.memory_space<smem>>
    %233 = vector.broadcast %232 : f32 to vector<1x1024xf32>
    %234 = arith.mulf %231, %233 : vector<1x1024xf32>
    %235 = arith.addf %230, %234 : vector<1x1024xf32>
    %236 = arith.mulf %235, %129 : vector<1x1024xf32>
    %237 = arith.addf %226, %236 : vector<1x1024xf32>
    %c0_55 = arith.constant 0 : index
    %238 = memref.load %arg5[%c0_55] : memref<1xf32, #tpu.memory_space<smem>>
    %239 = vector.broadcast %238 : f32 to vector<1x1024xf32>
    %240 = arith.addf %237, %239 : vector<1x1024xf32>
    %cst_56 = arith.constant dense<0.000000e+00> : vector<1x4xf32>
    %241 = tpu.matmul %240, %136, %cst_56 {dimension_numbers = #tpu.dot_dimension_numbers<[1], [1], [0], [0], [0, 0, 1, 0], [], []>} : vector<1x1024xf32>, vector<4x1024xf32>, vector<1x4xf32> -> vector<1x4xf32>
    %242 = arith.mulf %240, %240 : vector<1x1024xf32>
    %cst_57 = arith.constant dense<0.000000e+00> : vector<1x4xf32>
    %243 = tpu.matmul %242, %136, %cst_57 {dimension_numbers = #tpu.dot_dimension_numbers<[1], [1], [0], [0], [0, 0, 1, 0], [], []>} : vector<1x1024xf32>, vector<4x1024xf32>, vector<1x4xf32> -> vector<1x4xf32>
    %cst_58 = arith.constant 3.906250e-03 : f32
    %244 = vector.broadcast %cst_58 : f32 to vector<1x4xf32>
    %245 = arith.mulf %241, %244 : vector<1x4xf32>
    %cst_59 = arith.constant 3.906250e-03 : f32
    %246 = vector.broadcast %cst_59 : f32 to vector<1x4xf32>
    %247 = arith.mulf %243, %246 : vector<1x4xf32>
    %248 = arith.mulf %245, %245 : vector<1x4xf32>
    %249 = arith.subf %247, %248 : vector<1x4xf32>
    %cst_60 = arith.constant 9.99999974E-6 : f32
    %250 = vector.broadcast %cst_60 : f32 to vector<1x4xf32>
    %251 = arith.addf %249, %250 : vector<1x4xf32>
    %252 = math.rsqrt %251 : vector<1x4xf32>
    %cst_61 = arith.constant dense<0.000000e+00> : vector<1x1024xf32>
    %253 = tpu.matmul %245, %136, %cst_61 {dimension_numbers = #tpu.dot_dimension_numbers<[1], [0], [0], [1], [0, 0, 1, 1], [], []>} : vector<1x4xf32>, vector<4x1024xf32>, vector<1x1024xf32> -> vector<1x1024xf32>
    %cst_62 = arith.constant dense<0.000000e+00> : vector<1x1024xf32>
    %254 = tpu.matmul %252, %136, %cst_62 {dimension_numbers = #tpu.dot_dimension_numbers<[1], [0], [0], [1], [0, 0, 1, 1], [], []>} : vector<1x4xf32>, vector<4x1024xf32>, vector<1x1024xf32> -> vector<1x1024xf32>
    %255 = arith.subf %240, %253 : vector<1x1024xf32>
    %256 = arith.mulf %255, %254 : vector<1x1024xf32>
    %cst_63 = arith.constant 0.000000e+00 : f32
    %257 = vector.broadcast %cst_63 : f32 to vector<1x1024xf32>
    %258 = arith.cmpf ogt, %256, %257 : vector<1x1024xf32>
    %cst_64 = arith.constant 0.00999999977 : f32
    %259 = vector.broadcast %cst_64 : f32 to vector<1x1024xf32>
    %260 = arith.mulf %259, %256 : vector<1x1024xf32>
    %261 = arith.select %258, %256, %260 : vector<1x1024xi1>, vector<1x1024xf32>
    %cst_65 = arith.constant 0.000000e+00 : f32
    %262 = vector.broadcast %cst_65 : f32 to vector<1x1024xf32>
    %263 = arith.subf %262, %261 : vector<1x1024xf32>
    %264 = math.exp %263 : vector<1x1024xf32>
    %cst_66 = arith.constant 1.000000e+00 : f32
    %265 = vector.broadcast %cst_66 : f32 to vector<1x1024xf32>
    %266 = arith.addf %265, %264 : vector<1x1024xf32>
    %cst_67 = arith.constant 1.000000e+00 : f32
    %267 = vector.broadcast %cst_67 : f32 to vector<1x1024xf32>
    %268 = arith.divf %267, %266 : vector<1x1024xf32>
    %c0_68 = arith.constant 0 : index
    %c0_69 = arith.constant 0 : index
    %c0_70 = arith.constant 0 : index
    %269 = vector.load %arg2[%c0_68, %c0_69, %c0_70] : memref<1x32x256xf32, #tpu.memory_space<vmem>>, vector<1x32x256xf32>
    %270 = vector.shape_cast %269 : vector<1x32x256xf32> to vector<32x256xf32>
    %271 = tpu.concatenate %270, %270, %270, %270 in 1 : vector<32x256xf32>, vector<32x256xf32>, vector<32x256xf32>, vector<32x256xf32> -> vector<32x1024xf32>
    %272 = vector.broadcast %268 : vector<1x1024xf32> to vector<32x1024xf32>
    %273 = arith.mulf %271, %272 : vector<32x1024xf32>
    %cst_71 = arith.constant 0.000000e+00 : f32
    %274 = vector.broadcast %cst_71 : f32 to vector<16x1024xf32>
    %c17_i32_72 = arith.constant 17 : i32
    %275 = tpu.dynamic_rotate %273 by %c17_i32_72 dim 1 : vector<32x1024xf32>, i32 -> vector<32x1024xf32>
    %c0_73 = arith.constant 0 : index
    %c0_74 = arith.constant 0 : index
    %c0_75 = arith.constant 0 : index
    %276 = vector.load %arg6[%c0_73, %c0_74, %c0_75] : memref<9x16x32xbf16, #tpu.memory_space<vmem>>, vector<1x16x32xbf16>
    %277 = vector.shape_cast %276 : vector<1x16x32xbf16> to vector<16x32xbf16>
    %278 = arith.truncf %275 : vector<32x1024xf32> to vector<32x1024xbf16>
    %cst_76 = arith.constant dense<0.000000e+00> : vector<16x1024xf32>
    %279 = tpu.matmul %277, %278, %cst_76 {dimension_numbers = #tpu.dot_dimension_numbers<[1], [0], [0], [1], [0, 0, 1, 1], [], []>} : vector<16x32xbf16>, vector<32x1024xbf16>, vector<16x1024xf32> -> vector<16x1024xf32>
    %280 = vector.broadcast %27 : vector<1x1024xf32> to vector<16x1024xf32>
    %281 = arith.mulf %279, %280 : vector<16x1024xf32>
    %282 = arith.addf %274, %281 : vector<16x1024xf32>
    %c16_i32_77 = arith.constant 16 : i32
    %283 = tpu.dynamic_rotate %273 by %c16_i32_77 dim 1 : vector<32x1024xf32>, i32 -> vector<32x1024xf32>
    %c1_78 = arith.constant 1 : index
    %c0_79 = arith.constant 0 : index
    %c0_80 = arith.constant 0 : index
    %284 = vector.load %arg6[%c1_78, %c0_79, %c0_80] : memref<9x16x32xbf16, #tpu.memory_space<vmem>>, vector<1x16x32xbf16>
    %285 = vector.shape_cast %284 : vector<1x16x32xbf16> to vector<16x32xbf16>
    %286 = arith.truncf %283 : vector<32x1024xf32> to vector<32x1024xbf16>
    %cst_81 = arith.constant dense<0.000000e+00> : vector<16x1024xf32>
    %287 = tpu.matmul %285, %286, %cst_81 {dimension_numbers = #tpu.dot_dimension_numbers<[1], [0], [0], [1], [0, 0, 1, 1], [], []>} : vector<16x32xbf16>, vector<32x1024xbf16>, vector<16x1024xf32> -> vector<16x1024xf32>
    %288 = vector.broadcast %39 : vector<1x1024xf32> to vector<16x1024xf32>
    %289 = arith.mulf %287, %288 : vector<16x1024xf32>
    %290 = arith.addf %282, %289 : vector<16x1024xf32>
    %c15_i32_82 = arith.constant 15 : i32
    %291 = tpu.dynamic_rotate %273 by %c15_i32_82 dim 1 : vector<32x1024xf32>, i32 -> vector<32x1024xf32>
    %c2_83 = arith.constant 2 : index
    %c0_84 = arith.constant 0 : index
    %c0_85 = arith.constant 0 : index
    %292 = vector.load %arg6[%c2_83, %c0_84, %c0_85] : memref<9x16x32xbf16, #tpu.memory_space<vmem>>, vector<1x16x32xbf16>
    %293 = vector.shape_cast %292 : vector<1x16x32xbf16> to vector<16x32xbf16>
    %294 = arith.truncf %291 : vector<32x1024xf32> to vector<32x1024xbf16>
    %cst_86 = arith.constant dense<0.000000e+00> : vector<16x1024xf32>
    %295 = tpu.matmul %293, %294, %cst_86 {dimension_numbers = #tpu.dot_dimension_numbers<[1], [0], [0], [1], [0, 0, 1, 1], [], []>} : vector<16x32xbf16>, vector<32x1024xbf16>, vector<16x1024xf32> -> vector<16x1024xf32>
    %296 = vector.broadcast %51 : vector<1x1024xf32> to vector<16x1024xf32>
    %297 = arith.mulf %295, %296 : vector<16x1024xf32>
    %298 = arith.addf %290, %297 : vector<16x1024xf32>
    %c1_i32_87 = arith.constant 1 : i32
    %299 = tpu.dynamic_rotate %273 by %c1_i32_87 dim 1 : vector<32x1024xf32>, i32 -> vector<32x1024xf32>
    %c3_88 = arith.constant 3 : index
    %c0_89 = arith.constant 0 : index
    %c0_90 = arith.constant 0 : index
    %300 = vector.load %arg6[%c3_88, %c0_89, %c0_90] : memref<9x16x32xbf16, #tpu.memory_space<vmem>>, vector<1x16x32xbf16>
    %301 = vector.shape_cast %300 : vector<1x16x32xbf16> to vector<16x32xbf16>
    %302 = arith.truncf %299 : vector<32x1024xf32> to vector<32x1024xbf16>
    %cst_91 = arith.constant dense<0.000000e+00> : vector<16x1024xf32>
    %303 = tpu.matmul %301, %302, %cst_91 {dimension_numbers = #tpu.dot_dimension_numbers<[1], [0], [0], [1], [0, 0, 1, 1], [], []>} : vector<16x32xbf16>, vector<32x1024xbf16>, vector<16x1024xf32> -> vector<16x1024xf32>
    %304 = vector.broadcast %72 : vector<1x1024xf32> to vector<16x1024xf32>
    %305 = arith.mulf %303, %304 : vector<16x1024xf32>
    %306 = arith.addf %298, %305 : vector<16x1024xf32>
    %c4_92 = arith.constant 4 : index
    %c0_93 = arith.constant 0 : index
    %c0_94 = arith.constant 0 : index
    %307 = vector.load %arg6[%c4_92, %c0_93, %c0_94] : memref<9x16x32xbf16, #tpu.memory_space<vmem>>, vector<1x16x32xbf16>
    %308 = vector.shape_cast %307 : vector<1x16x32xbf16> to vector<16x32xbf16>
    %309 = arith.truncf %273 : vector<32x1024xf32> to vector<32x1024xbf16>
    %cst_95 = arith.constant dense<0.000000e+00> : vector<16x1024xf32>
    %310 = tpu.matmul %308, %309, %cst_95 {dimension_numbers = #tpu.dot_dimension_numbers<[1], [0], [0], [1], [0, 0, 1, 1], [], []>} : vector<16x32xbf16>, vector<32x1024xbf16>, vector<16x1024xf32> -> vector<16x1024xf32>
    %311 = arith.addf %306, %310 : vector<16x1024xf32>
    %c1023_i32_96 = arith.constant 1023 : i32
    %312 = tpu.dynamic_rotate %273 by %c1023_i32_96 dim 1 : vector<32x1024xf32>, i32 -> vector<32x1024xf32>
    %c5_97 = arith.constant 5 : index
    %c0_98 = arith.constant 0 : index
    %c0_99 = arith.constant 0 : index
    %313 = vector.load %arg6[%c5_97, %c0_98, %c0_99] : memref<9x16x32xbf16, #tpu.memory_space<vmem>>, vector<1x16x32xbf16>
    %314 = vector.shape_cast %313 : vector<1x16x32xbf16> to vector<16x32xbf16>
    %315 = arith.truncf %312 : vector<32x1024xf32> to vector<32x1024xbf16>
    %cst_100 = arith.constant dense<0.000000e+00> : vector<16x1024xf32>
    %316 = tpu.matmul %314, %315, %cst_100 {dimension_numbers = #tpu.dot_dimension_numbers<[1], [0], [0], [1], [0, 0, 1, 1], [], []>} : vector<16x32xbf16>, vector<32x1024xbf16>, vector<16x1024xf32> -> vector<16x1024xf32>
    %317 = vector.broadcast %84 : vector<1x1024xf32> to vector<16x1024xf32>
    %318 = arith.mulf %316, %317 : vector<16x1024xf32>
    %319 = arith.addf %311, %318 : vector<16x1024xf32>
    %c1009_i32_101 = arith.constant 1009 : i32
    %320 = tpu.dynamic_rotate %273 by %c1009_i32_101 dim 1 : vector<32x1024xf32>, i32 -> vector<32x1024xf32>
    %c6_102 = arith.constant 6 : index
    %c0_103 = arith.constant 0 : index
    %c0_104 = arith.constant 0 : index
    %321 = vector.load %arg6[%c6_102, %c0_103, %c0_104] : memref<9x16x32xbf16, #tpu.memory_space<vmem>>, vector<1x16x32xbf16>
    %322 = vector.shape_cast %321 : vector<1x16x32xbf16> to vector<16x32xbf16>
    %323 = arith.truncf %320 : vector<32x1024xf32> to vector<32x1024xbf16>
    %cst_105 = arith.constant dense<0.000000e+00> : vector<16x1024xf32>
    %324 = tpu.matmul %322, %323, %cst_105 {dimension_numbers = #tpu.dot_dimension_numbers<[1], [0], [0], [1], [0, 0, 1, 1], [], []>} : vector<16x32xbf16>, vector<32x1024xbf16>, vector<16x1024xf32> -> vector<16x1024xf32>
    %325 = vector.broadcast %105 : vector<1x1024xf32> to vector<16x1024xf32>
    %326 = arith.mulf %324, %325 : vector<16x1024xf32>
    %327 = arith.addf %319, %326 : vector<16x1024xf32>
    %c1008_i32_106 = arith.constant 1008 : i32
    %328 = tpu.dynamic_rotate %273 by %c1008_i32_106 dim 1 : vector<32x1024xf32>, i32 -> vector<32x1024xf32>
    %c7_107 = arith.constant 7 : index
    %c0_108 = arith.constant 0 : index
    %c0_109 = arith.constant 0 : index
    %329 = vector.load %arg6[%c7_107, %c0_108, %c0_109] : memref<9x16x32xbf16, #tpu.memory_space<vmem>>, vector<1x16x32xbf16>
    %330 = vector.shape_cast %329 : vector<1x16x32xbf16> to vector<16x32xbf16>
    %331 = arith.truncf %328 : vector<32x1024xf32> to vector<32x1024xbf16>
    %cst_110 = arith.constant dense<0.000000e+00> : vector<16x1024xf32>
    %332 = tpu.matmul %330, %331, %cst_110 {dimension_numbers = #tpu.dot_dimension_numbers<[1], [0], [0], [1], [0, 0, 1, 1], [], []>} : vector<16x32xbf16>, vector<32x1024xbf16>, vector<16x1024xf32> -> vector<16x1024xf32>
    %333 = vector.broadcast %117 : vector<1x1024xf32> to vector<16x1024xf32>
    %334 = arith.mulf %332, %333 : vector<16x1024xf32>
    %335 = arith.addf %327, %334 : vector<16x1024xf32>
    %c1007_i32_111 = arith.constant 1007 : i32
    %336 = tpu.dynamic_rotate %273 by %c1007_i32_111 dim 1 : vector<32x1024xf32>, i32 -> vector<32x1024xf32>
    %c8_112 = arith.constant 8 : index
    %c0_113 = arith.constant 0 : index
    %c0_114 = arith.constant 0 : index
    %337 = vector.load %arg6[%c8_112, %c0_113, %c0_114] : memref<9x16x32xbf16, #tpu.memory_space<vmem>>, vector<1x16x32xbf16>
    %338 = vector.shape_cast %337 : vector<1x16x32xbf16> to vector<16x32xbf16>
    %339 = arith.truncf %336 : vector<32x1024xf32> to vector<32x1024xbf16>
    %cst_115 = arith.constant dense<0.000000e+00> : vector<16x1024xf32>
    %340 = tpu.matmul %338, %339, %cst_115 {dimension_numbers = #tpu.dot_dimension_numbers<[1], [0], [0], [1], [0, 0, 1, 1], [], []>} : vector<16x32xbf16>, vector<32x1024xbf16>, vector<16x1024xf32> -> vector<16x1024xf32>
    %341 = vector.broadcast %129 : vector<1x1024xf32> to vector<16x1024xf32>
    %342 = arith.mulf %340, %341 : vector<16x1024xf32>
    %343 = arith.addf %335, %342 : vector<16x1024xf32>
    %c0_116 = arith.constant 0 : index
    %c0_117 = arith.constant 0 : index
    %344 = vector.load %arg7[%c0_116, %c0_117] : memref<16x1xf32, #tpu.memory_space<vmem>>, vector<16x1xf32>
    %345 = vector.broadcast %344 : vector<16x1xf32> to vector<16x1024xf32>
    %346 = arith.addf %343, %345 : vector<16x1024xf32>
    %cst_118 = arith.constant dense<0.000000e+00> : vector<16x4xf32>
    %347 = tpu.matmul %346, %136, %cst_118 {dimension_numbers = #tpu.dot_dimension_numbers<[1], [1], [0], [0], [0, 0, 1, 0], [], []>} : vector<16x1024xf32>, vector<4x1024xf32>, vector<16x4xf32> -> vector<16x4xf32>
    %348 = arith.mulf %346, %346 : vector<16x1024xf32>
    %cst_119 = arith.constant dense<0.000000e+00> : vector<16x4xf32>
    %349 = tpu.matmul %348, %136, %cst_119 {dimension_numbers = #tpu.dot_dimension_numbers<[1], [1], [0], [0], [0, 0, 1, 0], [], []>} : vector<16x1024xf32>, vector<4x1024xf32>, vector<16x4xf32> -> vector<16x4xf32>
    %cst_120 = arith.constant 3.906250e-03 : f32
    %350 = vector.broadcast %cst_120 : f32 to vector<16x4xf32>
    %351 = arith.mulf %347, %350 : vector<16x4xf32>
    %cst_121 = arith.constant 3.906250e-03 : f32
    %352 = vector.broadcast %cst_121 : f32 to vector<16x4xf32>
    %353 = arith.mulf %349, %352 : vector<16x4xf32>
    %354 = arith.mulf %351, %351 : vector<16x4xf32>
    %355 = arith.subf %353, %354 : vector<16x4xf32>
    %cst_122 = arith.constant 9.99999974E-6 : f32
    %356 = vector.broadcast %cst_122 : f32 to vector<16x4xf32>
    %357 = arith.addf %355, %356 : vector<16x4xf32>
    %358 = math.rsqrt %357 : vector<16x4xf32>
    %cst_123 = arith.constant dense<0.000000e+00> : vector<16x1024xf32>
    %359 = tpu.matmul %351, %136, %cst_123 {dimension_numbers = #tpu.dot_dimension_numbers<[1], [0], [0], [1], [0, 0, 1, 1], [], []>} : vector<16x4xf32>, vector<4x1024xf32>, vector<16x1024xf32> -> vector<16x1024xf32>
    %cst_124 = arith.constant dense<0.000000e+00> : vector<16x1024xf32>
    %360 = tpu.matmul %358, %136, %cst_124 {dimension_numbers = #tpu.dot_dimension_numbers<[1], [0], [0], [1], [0, 0, 1, 1], [], []>} : vector<16x4xf32>, vector<4x1024xf32>, vector<16x1024xf32> -> vector<16x1024xf32>
    %361 = arith.subf %346, %359 : vector<16x1024xf32>
    %362 = arith.mulf %361, %360 : vector<16x1024xf32>
    %cst_125 = arith.constant 0.000000e+00 : f32
    %363 = vector.broadcast %cst_125 : f32 to vector<16x1024xf32>
    %364 = arith.cmpf ogt, %362, %363 : vector<16x1024xf32>
    %cst_126 = arith.constant 0.00999999977 : f32
    %365 = vector.broadcast %cst_126 : f32 to vector<16x1024xf32>
    %366 = arith.mulf %365, %362 : vector<16x1024xf32>
    %367 = arith.select %364, %362, %366 : vector<16x1024xi1>, vector<16x1024xf32>
    %cst_127 = arith.constant 0.000000e+00 : f32
    %368 = vector.broadcast %cst_127 : f32 to vector<16x1024xf32>
    %c17_i32_128 = arith.constant 17 : i32
    %369 = tpu.dynamic_rotate %367 by %c17_i32_128 dim 1 : vector<16x1024xf32>, i32 -> vector<16x1024xf32>
    %c0_129 = arith.constant 0 : index
    %c0_130 = arith.constant 0 : index
    %c0_131 = arith.constant 0 : index
    %370 = vector.load %arg8[%c0_129, %c0_130, %c0_131] : memref<9x16x16xbf16, #tpu.memory_space<vmem>>, vector<1x16x16xbf16>
    %371 = vector.shape_cast %370 : vector<1x16x16xbf16> to vector<16x16xbf16>
    %372 = arith.truncf %369 : vector<16x1024xf32> to vector<16x1024xbf16>
    %cst_132 = arith.constant dense<0.000000e+00> : vector<16x1024xf32>
    %373 = tpu.matmul %371, %372, %cst_132 {dimension_numbers = #tpu.dot_dimension_numbers<[1], [0], [0], [1], [0, 0, 1, 1], [], []>} : vector<16x16xbf16>, vector<16x1024xbf16>, vector<16x1024xf32> -> vector<16x1024xf32>
    %374 = vector.broadcast %27 : vector<1x1024xf32> to vector<16x1024xf32>
    %375 = arith.mulf %373, %374 : vector<16x1024xf32>
    %376 = arith.addf %368, %375 : vector<16x1024xf32>
    %c16_i32_133 = arith.constant 16 : i32
    %377 = tpu.dynamic_rotate %367 by %c16_i32_133 dim 1 : vector<16x1024xf32>, i32 -> vector<16x1024xf32>
    %c1_134 = arith.constant 1 : index
    %c0_135 = arith.constant 0 : index
    %c0_136 = arith.constant 0 : index
    %378 = vector.load %arg8[%c1_134, %c0_135, %c0_136] : memref<9x16x16xbf16, #tpu.memory_space<vmem>>, vector<1x16x16xbf16>
    %379 = vector.shape_cast %378 : vector<1x16x16xbf16> to vector<16x16xbf16>
    %380 = arith.truncf %377 : vector<16x1024xf32> to vector<16x1024xbf16>
    %cst_137 = arith.constant dense<0.000000e+00> : vector<16x1024xf32>
    %381 = tpu.matmul %379, %380, %cst_137 {dimension_numbers = #tpu.dot_dimension_numbers<[1], [0], [0], [1], [0, 0, 1, 1], [], []>} : vector<16x16xbf16>, vector<16x1024xbf16>, vector<16x1024xf32> -> vector<16x1024xf32>
    %382 = vector.broadcast %39 : vector<1x1024xf32> to vector<16x1024xf32>
    %383 = arith.mulf %381, %382 : vector<16x1024xf32>
    %384 = arith.addf %376, %383 : vector<16x1024xf32>
    %c15_i32_138 = arith.constant 15 : i32
    %385 = tpu.dynamic_rotate %367 by %c15_i32_138 dim 1 : vector<16x1024xf32>, i32 -> vector<16x1024xf32>
    %c2_139 = arith.constant 2 : index
    %c0_140 = arith.constant 0 : index
    %c0_141 = arith.constant 0 : index
    %386 = vector.load %arg8[%c2_139, %c0_140, %c0_141] : memref<9x16x16xbf16, #tpu.memory_space<vmem>>, vector<1x16x16xbf16>
    %387 = vector.shape_cast %386 : vector<1x16x16xbf16> to vector<16x16xbf16>
    %388 = arith.truncf %385 : vector<16x1024xf32> to vector<16x1024xbf16>
    %cst_142 = arith.constant dense<0.000000e+00> : vector<16x1024xf32>
    %389 = tpu.matmul %387, %388, %cst_142 {dimension_numbers = #tpu.dot_dimension_numbers<[1], [0], [0], [1], [0, 0, 1, 1], [], []>} : vector<16x16xbf16>, vector<16x1024xbf16>, vector<16x1024xf32> -> vector<16x1024xf32>
    %390 = vector.broadcast %51 : vector<1x1024xf32> to vector<16x1024xf32>
    %391 = arith.mulf %389, %390 : vector<16x1024xf32>
    %392 = arith.addf %384, %391 : vector<16x1024xf32>
    %c1_i32_143 = arith.constant 1 : i32
    %393 = tpu.dynamic_rotate %367 by %c1_i32_143 dim 1 : vector<16x1024xf32>, i32 -> vector<16x1024xf32>
    %c3_144 = arith.constant 3 : index
    %c0_145 = arith.constant 0 : index
    %c0_146 = arith.constant 0 : index
    %394 = vector.load %arg8[%c3_144, %c0_145, %c0_146] : memref<9x16x16xbf16, #tpu.memory_space<vmem>>, vector<1x16x16xbf16>
    %395 = vector.shape_cast %394 : vector<1x16x16xbf16> to vector<16x16xbf16>
    %396 = arith.truncf %393 : vector<16x1024xf32> to vector<16x1024xbf16>
    %cst_147 = arith.constant dense<0.000000e+00> : vector<16x1024xf32>
    %397 = tpu.matmul %395, %396, %cst_147 {dimension_numbers = #tpu.dot_dimension_numbers<[1], [0], [0], [1], [0, 0, 1, 1], [], []>} : vector<16x16xbf16>, vector<16x1024xbf16>, vector<16x1024xf32> -> vector<16x1024xf32>
    %398 = vector.broadcast %72 : vector<1x1024xf32> to vector<16x1024xf32>
    %399 = arith.mulf %397, %398 : vector<16x1024xf32>
    %400 = arith.addf %392, %399 : vector<16x1024xf32>
    %c4_148 = arith.constant 4 : index
    %c0_149 = arith.constant 0 : index
    %c0_150 = arith.constant 0 : index
    %401 = vector.load %arg8[%c4_148, %c0_149, %c0_150] : memref<9x16x16xbf16, #tpu.memory_space<vmem>>, vector<1x16x16xbf16>
    %402 = vector.shape_cast %401 : vector<1x16x16xbf16> to vector<16x16xbf16>
    %403 = arith.truncf %367 : vector<16x1024xf32> to vector<16x1024xbf16>
    %cst_151 = arith.constant dense<0.000000e+00> : vector<16x1024xf32>
    %404 = tpu.matmul %402, %403, %cst_151 {dimension_numbers = #tpu.dot_dimension_numbers<[1], [0], [0], [1], [0, 0, 1, 1], [], []>} : vector<16x16xbf16>, vector<16x1024xbf16>, vector<16x1024xf32> -> vector<16x1024xf32>
    %405 = arith.addf %400, %404 : vector<16x1024xf32>
    %c1023_i32_152 = arith.constant 1023 : i32
    %406 = tpu.dynamic_rotate %367 by %c1023_i32_152 dim 1 : vector<16x1024xf32>, i32 -> vector<16x1024xf32>
    %c5_153 = arith.constant 5 : index
    %c0_154 = arith.constant 0 : index
    %c0_155 = arith.constant 0 : index
    %407 = vector.load %arg8[%c5_153, %c0_154, %c0_155] : memref<9x16x16xbf16, #tpu.memory_space<vmem>>, vector<1x16x16xbf16>
    %408 = vector.shape_cast %407 : vector<1x16x16xbf16> to vector<16x16xbf16>
    %409 = arith.truncf %406 : vector<16x1024xf32> to vector<16x1024xbf16>
    %cst_156 = arith.constant dense<0.000000e+00> : vector<16x1024xf32>
    %410 = tpu.matmul %408, %409, %cst_156 {dimension_numbers = #tpu.dot_dimension_numbers<[1], [0], [0], [1], [0, 0, 1, 1], [], []>} : vector<16x16xbf16>, vector<16x1024xbf16>, vector<16x1024xf32> -> vector<16x1024xf32>
    %411 = vector.broadcast %84 : vector<1x1024xf32> to vector<16x1024xf32>
    %412 = arith.mulf %410, %411 : vector<16x1024xf32>
    %413 = arith.addf %405, %412 : vector<16x1024xf32>
    %c1009_i32_157 = arith.constant 1009 : i32
    %414 = tpu.dynamic_rotate %367 by %c1009_i32_157 dim 1 : vector<16x1024xf32>, i32 -> vector<16x1024xf32>
    %c6_158 = arith.constant 6 : index
    %c0_159 = arith.constant 0 : index
    %c0_160 = arith.constant 0 : index
    %415 = vector.load %arg8[%c6_158, %c0_159, %c0_160] : memref<9x16x16xbf16, #tpu.memory_space<vmem>>, vector<1x16x16xbf16>
    %416 = vector.shape_cast %415 : vector<1x16x16xbf16> to vector<16x16xbf16>
    %417 = arith.truncf %414 : vector<16x1024xf32> to vector<16x1024xbf16>
    %cst_161 = arith.constant dense<0.000000e+00> : vector<16x1024xf32>
    %418 = tpu.matmul %416, %417, %cst_161 {dimension_numbers = #tpu.dot_dimension_numbers<[1], [0], [0], [1], [0, 0, 1, 1], [], []>} : vector<16x16xbf16>, vector<16x1024xbf16>, vector<16x1024xf32> -> vector<16x1024xf32>
    %419 = vector.broadcast %105 : vector<1x1024xf32> to vector<16x1024xf32>
    %420 = arith.mulf %418, %419 : vector<16x1024xf32>
    %421 = arith.addf %413, %420 : vector<16x1024xf32>
    %c1008_i32_162 = arith.constant 1008 : i32
    %422 = tpu.dynamic_rotate %367 by %c1008_i32_162 dim 1 : vector<16x1024xf32>, i32 -> vector<16x1024xf32>
    %c7_163 = arith.constant 7 : index
    %c0_164 = arith.constant 0 : index
    %c0_165 = arith.constant 0 : index
    %423 = vector.load %arg8[%c7_163, %c0_164, %c0_165] : memref<9x16x16xbf16, #tpu.memory_space<vmem>>, vector<1x16x16xbf16>
    %424 = vector.shape_cast %423 : vector<1x16x16xbf16> to vector<16x16xbf16>
    %425 = arith.truncf %422 : vector<16x1024xf32> to vector<16x1024xbf16>
    %cst_166 = arith.constant dense<0.000000e+00> : vector<16x1024xf32>
    %426 = tpu.matmul %424, %425, %cst_166 {dimension_numbers = #tpu.dot_dimension_numbers<[1], [0], [0], [1], [0, 0, 1, 1], [], []>} : vector<16x16xbf16>, vector<16x1024xbf16>, vector<16x1024xf32> -> vector<16x1024xf32>
    %427 = vector.broadcast %117 : vector<1x1024xf32> to vector<16x1024xf32>
    %428 = arith.mulf %426, %427 : vector<16x1024xf32>
    %429 = arith.addf %421, %428 : vector<16x1024xf32>
    %c1007_i32_167 = arith.constant 1007 : i32
    %430 = tpu.dynamic_rotate %367 by %c1007_i32_167 dim 1 : vector<16x1024xf32>, i32 -> vector<16x1024xf32>
    %c8_168 = arith.constant 8 : index
    %c0_169 = arith.constant 0 : index
    %c0_170 = arith.constant 0 : index
    %431 = vector.load %arg8[%c8_168, %c0_169, %c0_170] : memref<9x16x16xbf16, #tpu.memory_space<vmem>>, vector<1x16x16xbf16>
    %432 = vector.shape_cast %431 : vector<1x16x16xbf16> to vector<16x16xbf16>
    %433 = arith.truncf %430 : vector<16x1024xf32> to vector<16x1024xbf16>
    %cst_171 = arith.constant dense<0.000000e+00> : vector<16x1024xf32>
    %434 = tpu.matmul %432, %433, %cst_171 {dimension_numbers = #tpu.dot_dimension_numbers<[1], [0], [0], [1], [0, 0, 1, 1], [], []>} : vector<16x16xbf16>, vector<16x1024xbf16>, vector<16x1024xf32> -> vector<16x1024xf32>
    %435 = vector.broadcast %129 : vector<1x1024xf32> to vector<16x1024xf32>
    %436 = arith.mulf %434, %435 : vector<16x1024xf32>
    %437 = arith.addf %429, %436 : vector<16x1024xf32>
    %c0_172 = arith.constant 0 : index
    %c0_173 = arith.constant 0 : index
    %438 = vector.load %arg9[%c0_172, %c0_173] : memref<16x1xf32, #tpu.memory_space<vmem>>, vector<16x1xf32>
    %439 = vector.broadcast %438 : vector<16x1xf32> to vector<16x1024xf32>
    %440 = arith.addf %437, %439 : vector<16x1024xf32>
    %cst_174 = arith.constant dense<0.000000e+00> : vector<16x4xf32>
    %441 = tpu.matmul %440, %136, %cst_174 {dimension_numbers = #tpu.dot_dimension_numbers<[1], [1], [0], [0], [0, 0, 1, 0], [], []>} : vector<16x1024xf32>, vector<4x1024xf32>, vector<16x4xf32> -> vector<16x4xf32>
    %442 = arith.mulf %440, %440 : vector<16x1024xf32>
    %cst_175 = arith.constant dense<0.000000e+00> : vector<16x4xf32>
    %443 = tpu.matmul %442, %136, %cst_175 {dimension_numbers = #tpu.dot_dimension_numbers<[1], [1], [0], [0], [0, 0, 1, 0], [], []>} : vector<16x1024xf32>, vector<4x1024xf32>, vector<16x4xf32> -> vector<16x4xf32>
    %cst_176 = arith.constant 3.906250e-03 : f32
    %444 = vector.broadcast %cst_176 : f32 to vector<16x4xf32>
    %445 = arith.mulf %441, %444 : vector<16x4xf32>
    %cst_177 = arith.constant 3.906250e-03 : f32
    %446 = vector.broadcast %cst_177 : f32 to vector<16x4xf32>
    %447 = arith.mulf %443, %446 : vector<16x4xf32>
    %448 = arith.mulf %445, %445 : vector<16x4xf32>
    %449 = arith.subf %447, %448 : vector<16x4xf32>
    %cst_178 = arith.constant 9.99999974E-6 : f32
    %450 = vector.broadcast %cst_178 : f32 to vector<16x4xf32>
    %451 = arith.addf %449, %450 : vector<16x4xf32>
    %452 = math.rsqrt %451 : vector<16x4xf32>
    %cst_179 = arith.constant dense<0.000000e+00> : vector<16x1024xf32>
    %453 = tpu.matmul %445, %136, %cst_179 {dimension_numbers = #tpu.dot_dimension_numbers<[1], [0], [0], [1], [0, 0, 1, 1], [], []>} : vector<16x4xf32>, vector<4x1024xf32>, vector<16x1024xf32> -> vector<16x1024xf32>
    %cst_180 = arith.constant dense<0.000000e+00> : vector<16x1024xf32>
    %454 = tpu.matmul %452, %136, %cst_180 {dimension_numbers = #tpu.dot_dimension_numbers<[1], [0], [0], [1], [0, 0, 1, 1], [], []>} : vector<16x4xf32>, vector<4x1024xf32>, vector<16x1024xf32> -> vector<16x1024xf32>
    %455 = arith.subf %440, %453 : vector<16x1024xf32>
    %456 = arith.mulf %455, %454 : vector<16x1024xf32>
    %cst_181 = arith.constant 0.000000e+00 : f32
    %457 = vector.broadcast %cst_181 : f32 to vector<16x1024xf32>
    %458 = arith.cmpf ogt, %456, %457 : vector<16x1024xf32>
    %cst_182 = arith.constant 0.00999999977 : f32
    %459 = vector.broadcast %cst_182 : f32 to vector<16x1024xf32>
    %460 = arith.mulf %459, %456 : vector<16x1024xf32>
    %461 = arith.select %458, %456, %460 : vector<16x1024xi1>, vector<16x1024xf32>
    %c0_183 = arith.constant 0 : index
    %c0_184 = arith.constant 0 : index
    %462 = vector.load %arg10[%c0_183, %c0_184] : memref<2x16xbf16, #tpu.memory_space<vmem>>, vector<2x16xbf16>
    %463 = arith.truncf %461 : vector<16x1024xf32> to vector<16x1024xbf16>
    %cst_185 = arith.constant dense<0.000000e+00> : vector<2x1024xf32>
    %464 = tpu.matmul %462, %463, %cst_185 {dimension_numbers = #tpu.dot_dimension_numbers<[1], [0], [0], [1], [0, 0, 1, 1], [], []>} : vector<2x16xbf16>, vector<16x1024xbf16>, vector<2x1024xf32> -> vector<2x1024xf32>
    %c0_186 = arith.constant 0 : index
    %c0_187 = arith.constant 0 : index
    %465 = vector.load %arg11[%c0_186, %c0_187] : memref<2x1xf32, #tpu.memory_space<vmem>>, vector<2x1xf32>
    %466 = vector.broadcast %465 : vector<2x1xf32> to vector<2x1024xf32>
    %467 = arith.addf %464, %466 : vector<2x1024xf32>
    %c0_188 = arith.constant 0 : index
    %c0_189 = arith.constant 0 : index
    %c0_190 = arith.constant 0 : index
    %468 = vector.load %arg12[%c0_188, %c0_189, %c0_190] : memref<1x2x1024xf32, #tpu.memory_space<vmem>>, vector<1x2x1024xf32>
    %469 = vector.shape_cast %468 : vector<1x2x1024xf32> to vector<2x1024xf32>
    %470 = vector.shape_cast %467 : vector<2x1024xf32> to vector<1x2x1024xf32>
    tpu.vector_store %arg12[%c0_188, %c0_189, %c0_190], %470 {strides = array<i32>} : memref<1x2x1024xf32, #tpu.memory_space<vmem>>, vector<1x2x1024xf32>,
    return
  }
  func.func @transform_0(%arg0: i32, %arg1: i32) -> (i32, i32, i32) {
    %c0_i32 = arith.constant 0 : i32
    %c0_i32_0 = arith.constant 0 : i32
    %c0_i32_1 = arith.constant 0 : i32
    return %arg0, %c0_i32, %c0_i32_0 : i32, i32, i32
  }
  func.func @transform_1(%arg0: i32, %arg1: i32) -> (i32, i32, i32) {
    %c0_i32 = arith.constant 0 : i32
    %c0_i32_0 = arith.constant 0 : i32
    return %arg0, %c0_i32, %arg1 : i32, i32, i32
  }
  func.func @transform_2(%arg0: i32, %arg1: i32) -> i32 {
    %c0_i32 = arith.constant 0 : i32
    %c0_i32_0 = arith.constant 0 : i32
    return %c0_i32 : i32
  }
  func.func @transform_3(%arg0: i32, %arg1: i32) -> i32 {
    %c0_i32 = arith.constant 0 : i32
    %c0_i32_0 = arith.constant 0 : i32
    return %c0_i32 : i32
  }
  func.func @transform_4(%arg0: i32, %arg1: i32) -> (i32, i32, i32) {
    %c0_i32 = arith.constant 0 : i32
    %c0_i32_0 = arith.constant 0 : i32
    %c0_i32_1 = arith.constant 0 : i32
    %c0_i32_2 = arith.constant 0 : i32
    return %c0_i32, %c0_i32_0, %c0_i32_1 : i32, i32, i32
  }
  func.func @transform_5(%arg0: i32, %arg1: i32) -> (i32, i32) {
    %c0_i32 = arith.constant 0 : i32
    %c0_i32_0 = arith.constant 0 : i32
    %c0_i32_1 = arith.constant 0 : i32
    return %c0_i32, %c0_i32_0 : i32, i32
  }
  func.func @transform_6(%arg0: i32, %arg1: i32) -> (i32, i32, i32) {
    %c0_i32 = arith.constant 0 : i32
    %c0_i32_0 = arith.constant 0 : i32
    %c0_i32_1 = arith.constant 0 : i32
    %c0_i32_2 = arith.constant 0 : i32
    return %c0_i32, %c0_i32_0, %c0_i32_1 : i32, i32, i32
  }
  func.func @transform_7(%arg0: i32, %arg1: i32) -> (i32, i32) {
    %c0_i32 = arith.constant 0 : i32
    %c0_i32_0 = arith.constant 0 : i32
    %c0_i32_1 = arith.constant 0 : i32
    return %c0_i32, %c0_i32_0 : i32, i32
  }
  func.func @transform_8(%arg0: i32, %arg1: i32) -> (i32, i32) {
    %c0_i32 = arith.constant 0 : i32
    %c0_i32_0 = arith.constant 0 : i32
    %c0_i32_1 = arith.constant 0 : i32
    return %c0_i32, %c0_i32_0 : i32, i32
  }
  func.func @transform_9(%arg0: i32, %arg1: i32) -> (i32, i32) {
    %c0_i32 = arith.constant 0 : i32
    %c0_i32_0 = arith.constant 0 : i32
    %c0_i32_1 = arith.constant 0 : i32
    return %c0_i32, %c0_i32_0 : i32, i32
  }
  func.func @transform_10(%arg0: i32, %arg1: i32) -> (i32, i32, i32) {
    %c0_i32 = arith.constant 0 : i32
    %c0_i32_0 = arith.constant 0 : i32
    return %arg0, %c0_i32, %arg1 : i32, i32, i32
  }
}

</mosaic_0001>

<bundles_post_ra>
// kernel: tpu_custom_call.1
= control target key start
LH: loop header
LB: loop body
LE: loop exit
PB: predicated region body
PF: predicated region fallthrough
CT: control target
= control target key end

     0   :  { %s19972_s0 = inlined_call_operand.hbm [shape: f32[2,32,256], index: 0, kind: input, shape index: {}]   ;;  %s19973_s1 = inlined_call_operand.hbm [shape: f32[2,2,3072], index: 1, kind: input, shape index: {}]   ;;  %s19974_s2 = inlined_call_operand.vmem [shape: f32[18], index: 2, kind: input, shape index: {}]   ;;  %s19975_s3 = inlined_call_operand.<no memory space> [shape: f32[1], index: 3, kind: input, shape index: {}]   ;;  %s19976_s4 = inlined_call_operand.hbm [shape: bf16[9,16,32], index: 4, kind: input, shape index: {}]   ;;  %s19977_s5 = inlined_call_operand.vmem [shape: f32[16,1], index: 5, kind: input, shape index: {}]   ;;  %s19978_s6 = inlined_call_operand.hbm [shape: bf16[9,16,16], index: 6, kind: input, shape index: {}]   ;;  %s19979_s7 = inlined_call_operand.vmem [shape: f32[16,1], index: 7, kind: input, shape index: {}]   ;;  %s19980_s8 = inlined_call_operand.vmem [shape: bf16[2,16], index: 8, kind: input, shape index: {}]   ;;  %s19981_s9 = inlined_call_operand.vmem [shape: f32[2,1], index: 9, kind: input, shape index: {}]   ;;  %s19982_s10 = inlined_call_operand.hbm [shape: f32[2,2,3072], index: 10, kind: output, shape index: {}]  }
   0x1   :  { %20505 = sst [smem:[#allocation168_spill]] %s19972_s0 }
   0x2   :  { %20506 = sst [smem:[#allocation169_spill]] %s19974_s2 }
   0x3   :  { %20507 = sst [smem:[#allocation170_spill]] %s19976_s4 }
   0x4   :  { %20508 = sst [smem:[#allocation171_spill]] %s19978_s6 }
   0x5   :  { %20509 = sst [smem:[#allocation172_spill]] %s19980_s8 }
   0x6   :  { %20510 = sst [smem:[#allocation173_spill]] %s19981_s9 }
   0x7   :  { %20511 = sst [smem:[#allocation174_spill]] %s19982_s10 }
   0x8   :  { %15 = sst [smem:[#allocation2]] %s19975_s3 }
   0x9   :  { %16 = vsyncpa [#allocation4], 0 }
   0xa   :  { %18 = vsyncpa [#allocation4 + $0x1], 0 }
   0xb   :  { %19 = vsyncpa [#allocation8], 0 }
   0xc   :  { %21 = vsyncpa [#allocation8 + $0x1], 0 }
   0xd   :  { %22 = vsyncpa [#allocation6], 0 }
   0xe   :  { %23 = vsyncpa [#allocation12], 0 }
   0xf   :  { %24 = vsyncpa [#allocation5], 0 }
  0x10   :  { %26 = vsyncpa [#allocation5 + $0x1], 0  ;;  %s13413_s15 = smov 0   ;;  %s13415_s16 = smov 0  }
  0x11   :  { %s13417_s17 = smov 0   ;;  %s13419_s18 = smov 0  }
  0x12   :  { %s13421_s19 = smov 0   ;;  %s13423_s20 = smov 0  }
  0x13   :  { %s13425_s3 = smov 0   ;;  %s13427_s21 = smov 0  }
  0x14   :  { %s13429_s22 = smov 0   ;;  %s13431_s23 = smov 0  }
  0x15   :  { %s13433_s24 = smov 0  }
  0x16 LB: > { %20512 = sst [smem:[#allocation20_spill]] %s13291_s15  ;;  %s13467_s25 = sadd.s32 4294967295, %s13331_s24   ;;  %s13331_s24 = sphi %s13433_s24, %s32_s24   ;;  %s13327_s23 = sphi %s13431_s23, %s21969_s23   ;;  %s13323_s22 = sphi %s13429_s22, %s21968_s22   ;;  %s13319_s21 = sphi %s13427_s21, %s21967_s21   ;;  %s13315_s3 = sphi %s13425_s3, %s21966_s3   ;;  %s13311_s20 = sphi %s13423_s20, %s21965_s20   ;;  %s13307_s19 = sphi %s13421_s19, %s21964_s19   ;;  %s13303_s18 = sphi %s13419_s18, %s21963_s18   ;;  %s13299_s17 = sphi %s13417_s17, %s21962_s17   ;;  %s13295_s16 = sphi %s13415_s16, %s21961_s16   ;;  %s13291_s15 = sphi %s13413_s15, %s21960_s15  }
  0x17   : > { %20513 = sst [smem:[#allocation21_spill]] %s13315_s3  ;;  %p64_p0 = scmp.ne.s32.totalorder %s13307_s19, %s13303_s18 }
  0x18   : > { %20514 = sst [smem:[#allocation22_spill]] %s13319_s21  ;;  %p19984_p1 = scmp.eq.s32.totalorder %s13467_s25, 0 }
  0x19   : > { %p11478_p3 = scmp.ge.s32.totalorder %s13331_s24, 1  ;;  %p299_p4 = scmp.lt.s32.totalorder %s13331_s24, 7 }
  0x1a   : > { %p13476_p5 = por %p19984_p1, %p64_p0  ;;  %s13333_s28 = smov [#allocation10]  }
  0x1b   : > { %p13480_p6 = pnand %p11478_p3, %p299_p4  ;;  %s325_s29 = sshll.u32 %s13333_s28, 4  ;;  %s326_s29 = int_to_ptr.vmem [resolvable:$true] %s325_s29 }
  0x1c   : > { %s20515_s26 = scalar_select %p13476_p5, 1, 0 }
  0x1d   : > { %s20516_s27 = scalar_select %p13480_p6, 1, 0 }
  0x1e   : > { %p11903_p7 = pneg %p13480_p6  ;;  %s20518_s4 = sld [smem:[#allocation170_spill]] }
  0x20   : > { %p13488_p8 = pnand %p11903_p7, %p19984_p1 }
  0x22   : > { %p13500_p10 = pneg %p13488_p8 }
  0x24   : > { %s13062_s13 = scalar_lea.hbm %s20518_s4, 1152 }
  0x25   : > { %p13063_p9 = scmp.ne.s32.totalorder %s20518_s4, %s13062_s13  ;;  %p13069_p13 = scmp.lt.u32.totalorder %s13062_s13, %s20518_s4 }
  0x27   : > { %p13065_p11 = pnand %p13500_p10, %p13063_p9 }
  0x29   : > { %p13066_p12 = pneg %p13065_p11 }
  0x2b   : > { %p13071_p0 = pnand %p13069_p13, %p13066_p12 }
  0x2d   : > { %13074 = shalt.err (!%p13071_p0)
}
  0x2e   : > { %s13075_s11 = scalar_lea.vmem %s326_s29, 1152  ;;  %p13083_p2 = scmp.lt.s32.totalorder %s326_s29, %s326_s29 }
  0x2f   : > { %p13076_p3 = scmp.ne.s32.totalorder %s326_s29, %s13075_s11  ;;  %p13084_p1 = scmp.lt.s32.totalorder %s13075_s11, %s13075_s11 }
  0x31   : > { %p13078_p4 = pnand %p13076_p3, %p13500_p10  ;;  %p13085_p5 = por %p13084_p1, %p13083_p2 }
  0x33   : > { %p13079_p7 = pneg %p13078_p4 }
  0x35   : > { %p13086_p6 = pnand %p13085_p5, %p13079_p7 }
  0x37   : > { %13089 = shalt.err (!%p13086_p6)
}
  0x38   : > { %s19987_s12 = smov 64   ;;  %s19988_s14 = smov 4  }
  0x39   : > { %11909 = dma.hbm_to_vmem [thread:$0]  (!%p13488_p8), %s20518_s4, 1152, %s326_s29, [#allocation8], %s19987_s12, %s19987_s12, %s19988_s14  }
  0x3a   : > { %s20520_s2 = sld [smem:[#allocation169_spill]] }
  0x40   : > { %s312_s21 = sshll.u32 %s20520_s2, 4  ;;  %s313_s21 = int_to_ptr.vmem [resolvable:$true] %s312_s21 }
  0x41   : > { %s13090_s11 = scalar_lea.vmem %s313_s21, 16  ;;  %p13098_p6 = scmp.lt.s32.totalorder %s313_s21, %s313_s21 }
  0x42   : > { %p13091_p1 = scmp.ne.s32.totalorder %s313_s21, %s13090_s11  ;;  %p13099_p9 = scmp.lt.s32.totalorder %s13090_s11, %s13090_s11 }
  0x44   : > { %p13093_p2 = pnand %p13091_p1, %p13500_p10  ;;  %p13100_p11 = por %p13099_p9, %p13098_p6 }
  0x46   : > { %p13094_p5 = pneg %p13093_p2 }
  0x48   : > { %p13101_p12 = pnand %p13100_p11, %p13094_p5 }
  0x4a   : > { %13104 = shalt.err (!%p13101_p12)
}
  0x4b   : > { %s13336_s8 = smov [#allocation9]   ;;  %s13337_s29 = smov [#allocation11]  }
  0x4c   : > { %11906 = dma.vmem_to_smem (!%p13488_p8), %s313_s21, 16, %s13336_s8, [#allocation6]  }
  0x4d   : > { %s341_s10 = sshll.u32 %s13337_s29, 4  ;;  %s20521_s6 = sld [smem:[#allocation171_spill]]  ;;  %s342_s10 = int_to_ptr.vmem [resolvable:$true] %s341_s10 }
  0x53   : > { %s13105_s18 = scalar_lea.hbm %s20521_s6, 1152 }
  0x54   : > { %p13106_p13 = scmp.ne.s32.totalorder %s20521_s6, %s13105_s18  ;;  %p13112_p4 = scmp.lt.u32.totalorder %s13105_s18, %s20521_s6 }
  0x56   : > { %p13108_p0 = pnand %p13106_p13, %p13500_p10 }
  0x58   : > { %p13109_p3 = pneg %p13108_p0 }
  0x5a   : > { %p13114_p7 = pnand %p13112_p4, %p13109_p3 }
  0x5c   : > { %13117 = shalt.err (!%p13114_p7)
}
  0x5d   : > { %s13118_s8 = scalar_lea.vmem %s342_s10, 1152  ;;  %p13126_p6 = scmp.lt.s32.totalorder %s342_s10, %s342_s10 }
  0x5e   : > { %p13119_p1 = scmp.ne.s32.totalorder %s342_s10, %s13118_s8  ;;  %p13127_p9 = scmp.lt.s32.totalorder %s13118_s8, %s13118_s8 }
  0x60   : > { %p13121_p2 = pnand %p13119_p1, %p13500_p10  ;;  %p13128_p11 = por %p13127_p9, %p13126_p6 }
  0x62   : > { %p13122_p5 = pneg %p13121_p2 }
  0x64   : > { %p13129_p12 = pnand %p13128_p11, %p13122_p5 }
  0x66   : > { %13132 = shalt.err (!%p13129_p12)
}
  0x67   : > { %s20522_s21 = smov 4   ;;  %s20523_s12 = smov 64  }
  0x68   : > { %11912 = dma.hbm_to_vmem [thread:$0]  (!%p13488_p8), %s20521_s6, 1152, %s342_s10, [#allocation12], %s20523_s12, %s20523_s12, %s20522_s21  }
  0x69   : > { %p58_p10 = scmp.ne.s32.totalorder %s13311_s20, %s13307_s19  ;;  %p59_p13 = scmp.eq.s32.totalorder %s13331_s24, 0 }
  0x6a   : > { %p19989_p0 = scmp.lt.s32.totalorder %s13331_s24, 6  ;;  %s364_s30 = sand.u32 1, %s13311_s20  }
  0x6b   : > { %s11822_s29 = sshll.u32 %s13327_s23, 10  ;;  %p60_p3 = por %p59_p13, %p58_p10 }
  0x6c   : > { %s11483_s3 = sshll.u32 %s364_s30, 6  ;;  %s20524_s0 = sld [smem:[#allocation168_spill]] }
  0x6d   : > { %p13563_p8 = pnand %p19989_p0, %p60_p3  ;;  %s368_s8 = scalar_lea.vmem [#allocation3], %s11483_s3 }
  0x6e   : > { %s375_s21 = sshll.u32 %s368_s8, 4  ;;  %s13569_s12 = scalar_lea.sflag [#allocation4], %s364_s30  ;;  %s13567_s21 = int_to_ptr.vmem [resolvable:$true] %s375_s21 }
  0x6f   : > { %p13135_p7 = pneg %p13563_p8 }
  0x72   : > { %s13559_s11 = scalar_lea.hbm %s20524_s0, %s11822_s29  ;;  %s13138_s13 = scalar_lea.hbm %s20524_s0, 2048 }
  0x73   : > { %s13133_s2 = scalar_lea.hbm %s13559_s11, 1024  ;;  %p13139_p5 = scmp.lt.u32.totalorder %s13559_s11, %s20524_s0 }
  0x74   : > { %p13134_p4 = scmp.ne.s32.totalorder %s13559_s11, %s13133_s2  ;;  %p13140_p6 = scmp.lt.u32.totalorder %s13138_s13, %s13133_s2 }
  0x75   : > { %p13142_p11 = scmp.lt.u32.totalorder %s13133_s2, %s13559_s11 }
  0x76   : > { %p13136_p1 = pnand %p13135_p7, %p13134_p4  ;;  %p13141_p9 = por %p13140_p6, %p13139_p5 }
  0x78   : > { %p13137_p2 = pneg %p13136_p1  ;;  %p13143_p12 = por %p13142_p11, %p13141_p9 }
  0x7a   : > { %p13144_p10 = pnand %p13143_p12, %p13137_p2 }
  0x7c   : > { %13147 = shalt.err (!%p13144_p10)
}
  0x7d   : > { %s13148_s30 = scalar_lea.vmem %s13567_s21, 1024  ;;  %s13338_s3 = smov [#allocation3]  }
  0x7e   : > { %p13149_p3 = scmp.ne.s32.totalorder %s13567_s21, %s13148_s30  ;;  %s13153_s8 = sshll.u32 %s13338_s3, 4  ;;  %s13154_s8 = int_to_ptr.vmem [resolvable:$false] %s13153_s8 }
  0x7f   : > { %s13155_s28 = scalar_lea.vmem %s13154_s8, 2048  ;;  %p13156_p0 = scmp.lt.s32.totalorder %s13567_s21, %s13154_s8 }
  0x80   : > { %p13151_p4 = pnand %p13149_p3, %p13135_p7  ;;  %p13157_p5 = scmp.lt.s32.totalorder %s13155_s28, %s13148_s30 }
  0x82   : > { %p13152_p1 = pneg %p13151_p4  ;;  %p13158_p6 = por %p13157_p5, %p13156_p0 }
  0x84   : > { %p13159_p9 = pnand %p13158_p6, %p13152_p1 }
  0x86   : > { %13162 = shalt.err (!%p13159_p9)
}
  0x87   : > { %s13339_s2 = smov 256   ;;  %s13340_s14 = smov 16  }
  0x88   : > { %11916 = dma.hbm_to_vmem [thread:$0]  (!%p13563_p8), %s13559_s11, 1024, %s13567_s21, %s13569_s12, %s13339_s2, %s13339_s2, %s13340_s14  }
  0x89   : > { %s11477_s29 = sadd.s32 4294967294, %s13331_s24   ;;  %s41_s13 = sadd.s32 1, %s13323_s22 }
  0x8a   : > { %s44_s18 = sadd.s32 1, %s13327_s23  ;;  %p42_p0 = scmp.ge.s32.totalorder %s41_s13, 3 }
  0x8b   : > { %s79_s30 = sadd.s32 1, %s13299_s17  ;;  %p86_p7 = scmp.ne.s32.totalorder %s13299_s17, %s13295_s16 }
  0x8c   : > { %p92_p2 = scmp.ne.s32.totalorder %s13295_s16, %s13291_s15  ;;  %s21971_s13 = smov (%p42_p0, %s41_s13), 0 }
  0x8d   : > { %20526 = sst [smem:[#allocation23_spill]] %s21971_s13  ;;  %s21973_s18 = smov (!%p42_p0, %s44_s18), %s13327_s23 }
  0x8e   : > { %s75_s3 = ssub.s32 %s13323_s22, %s21971_s13  ;;  %p13612_p8 = por %p86_p7, %p59_p13 }
  0x8f   : > { %p46_p11 = scmp.ge.s32.totalorder %s21973_s18, 2  ;;  %p20528_p12 = scmp.eq.s32.totalorder %s13467_s25, 0 }
  0x90   : > { %p20530_p3 = scmp.eq.s32.totalorder %s13467_s25, 5  ;;  %p292_p1 = scmp.eq.s32.totalorder %s11477_s29, 5 }
  0x91   : > { %p13618_p10 = por %p92_p2, %p20528_p12  ;;  %s21975_s18 = smov (%p46_p11, %s21973_s18), 0 }
  0x92   : > { %p13624_p4 = por %p20530_p3, %p86_p7  ;;  %p13630_p13 = por %p292_p1, %p92_p2 }
  0x93   : > { %s385_s8 = sand.u32 1, %s13331_s24   ;;  %s48_s28 = ssub.s32 %s13327_s23, %s21975_s18 }
  0x94   : > { %s20531_s21 = scalar_select %p13624_p4, 1, 0 }
  0x95   : > { %s20533_s12 = scalar_select %p13630_p13, 1, 0 }
  0x96   : > { %20532 = sst [smem:[#allocation24_spill]] %s20531_s21  ;;  %p49_p5 = scmp.eq.s32.totalorder %s48_s28, 0 }
  0x97   : > { %20534 = sst [smem:[#allocation25_spill]] %s20533_s12  ;;  %s76_s2 = sor.u32 %s75_s3, %s48_s28 }
  0x98   : > { %p77_p6 = scmp.eq.s32.totalorder %s76_s2, 0  ;;  %s387_s14 = sand.u32 1, %s13299_s17  }
  0x99   : > { %s20535_s0 = sadd.s32 1, %s13311_s20  ;;  %s11486_s29 = sshll.u32 %s387_s14, 4 }
  0x9a   : > { %s13641_s4 = scalar_select %p49_p5, %s13311_s20, %s20535_s0  }
  0x9b   : > { %s13644_s6 = scalar_select %p77_p6, %s13299_s17, %s79_s30  }
  0x9c   : > { %s11487_s13 = sshll.u32 %s13323_s22, 3  ;;  %s11883_s15 = smul.u32 24, %s13327_s23 }
  0x9d   : > { %s389_s21 = scalar_lea.vmem [#allocation7], %s11486_s29  ;;  %p20536_p9 = scmp.lt.s32.totalorder %s13331_s24, 6 }
  0x9e   : > { %s399_s9 = sshll.u32 %s389_s21, 4  ;;  %s395_s3 = sadd.s32 %s11883_s15, %s11487_s13  ;;  %s13656_s9 = int_to_ptr.vmem [resolvable:$true] %s399_s9 }
  0x9f   : > { %p13652_p0 = pnand %p20536_p9, %p13612_p8  ;;  %s11488_s0 = sshll.u32 %s395_s3, 5 }
  0xa0   : > { %s13661_s2 = scalar_lea.hbm %s19973_s1, %s11488_s0  ;;  %s386_s11 = scalar_lea.sflag [#allocation8], %s385_s8 }
  0xa1   : > { %s13163_s21 = scalar_lea.hbm %s13661_s2, 256  ;;  %p13165_p2 = pneg %p13652_p0 }
  0xa2   : > { %p13164_p7 = scmp.ne.s32.totalorder %s13661_s2, %s13163_s21  ;;  %s13168_s14 = scalar_lea.hbm %s19973_s1, 1536 }
  0xa3   : > { %p13169_p12 = scmp.lt.u32.totalorder %s13661_s2, %s19973_s1  ;;  %p13170_p3 = scmp.lt.u32.totalorder %s13168_s14, %s13163_s21 }
  0xa4   : > { %p13166_p8 = pnand %p13165_p2, %p13164_p7  ;;  %p13172_p5 = scmp.lt.u32.totalorder %s13163_s21, %s13661_s2 }
  0xa5   : > { %p13171_p1 = por %p13170_p3, %p13169_p12 }
  0xa6   : > { %p13167_p11 = pneg %p13166_p8 }
  0xa7   : > { %p13173_p6 = por %p13172_p5, %p13171_p1 }
  0xa9   : > { %p13174_p9 = pnand %p13173_p6, %p13167_p11 }
  0xab   : > { %13177 = shalt.err (!%p13174_p9)
}
  0xac   : > { %s13178_s8 = scalar_lea.vmem %s13656_s9, 256  ;;  %s13341_s0 = smov [#allocation7]  }
  0xad   : > { %p13179_p7 = scmp.ne.s32.totalorder %s13656_s9, %s13178_s8  ;;  %s13183_s28 = sshll.u32 %s13341_s0, 4  ;;  %s13184_s28 = int_to_ptr.vmem [resolvable:$false] %s13183_s28 }
  0xae   : > { %s13185_s30 = scalar_lea.vmem %s13184_s28, 512  ;;  %p13186_p4 = scmp.lt.s32.totalorder %s13656_s9, %s13184_s28 }
  0xaf   : > { %p13181_p8 = pnand %p13179_p7, %p13165_p2  ;;  %p13187_p12 = scmp.lt.s32.totalorder %s13185_s30, %s13178_s8 }
  0xb1   : > { %p13182_p13 = pneg %p13181_p8  ;;  %p13188_p3 = por %p13187_p12, %p13186_p4 }
  0xb3   : > { %p13189_p1 = pnand %p13188_p3, %p13182_p13 }
  0xb5   : > { %13192 = shalt.err (!%p13189_p1)
}
  0xb6   : > { %11919 = dma.hbm_to_vmem [thread:$0]  (!%p13652_p0), %s13661_s2, 256, %s13656_s9, %s386_s11  }
  0xb7   : > { %p20538_p11 = scmp.ne.s32.totalorder %s20516_s27, 0 }
  0xb9   : > { %408 = sbr.rel (%p20538_p11) target bundleno = 3405 (0xd4d), region = 60 }
  0xc0   : > { %s410_s21 = sand.u32 1, %s13307_s19   ;;  %p20539_p2 = scmp.ne.s32.totalorder %s20515_s26, 0 }
  0xc1   : > { %s11490_s15 = sshll.u32 %s410_s21, 6  ;;  %s411_s13 = scalar_lea.sflag [#allocation4], %s410_s21 }
  0xc2   : > { %s13691_s14 = scalar_lea.vmem [#allocation3], %s11490_s15 }
  0xc3   : > { %13266 = dma.done.wait (%p20539_p2), %s411_s13, 1024  }
  0xc4   : > { %13268 = vsyncadd (%p20539_p2), %s411_s13, 4294966272  ;;  %s419_s9 = sand.u32 1, %s13467_s25   ;;  %s20009_s12 = sand.u32 1, %s13295_s16  }
  0xc5   : > { %s13701_s27 = sshll.u32 %s20009_s12, 4  ;;  %s420_s2 = scalar_lea.sflag [#allocation8], %s419_s9 }
  0xc6   : > { %s13704_s11 = scalar_lea.vmem [#allocation7], %s13701_s27 }
  0xc7   : > { %13270 = dma.done.wait (%p13618_p10), %s420_s2, 256  }
  0xc8   : > { %13272 = vsyncadd (%p13618_p10), %s420_s2, 4294967040  ;;  %p20540_p4 = scmp.eq.s32.totalorder %s13467_s25, 0 }
  0xca   : > { %13274 = dma.done.wait (%p20540_p4), [#allocation6], 16   ;;  %p20541_p13 = pmov %p20540_p4 }
  0xcb   : > { %p20542_p0 = pmov %p20540_p4 }
  0xcc   : > { %13276 = vsyncadd (%p20541_p13), [#allocation6], 4294967280 }
  0xcd   : > { %13278 = dma.done.wait (%p20542_p0), [#allocation8], 1152   ;;  %p20543_p5 = pmov %p20542_p0 }
  0xce   : > { %p20544_p6 = pmov %p20542_p0 }
  0xcf   : > { %13280 = vsyncadd (%p20543_p5), [#allocation8], 4294966144 }
  0xd0   : > { %13282 = dma.done.wait (%p20544_p6), [#allocation12], 1152   ;;  %p20545_p9 = pmov %p20542_p0 }
  0xd2   : > { %13284 = vsyncadd (%p20545_p9), [#allocation12], 4294966144 }
  0xd3   : > { %440 = sfence }
  0xd4   : > { %v481_v0 = vlaneseq  ;;  %v13726_v2 = vld [vmem:[%s13704_s11] sm:$0xff]  ;;  %s20010_s25 = smov 17   ;;  %s20031_s26 = smov 16   ;;  %v13771_v13 = vld [vmem:[%s13704_s11 + $0x8] sm:$0xff]  ;;  %v20555_v29 = vmov 0  ;;  %v19997_v31 = vmov 1.0  }
  0xd5   : > { %s13344_s10 = smov 15   ;;  %s20033_s29 = smov 1   ;;  %v20559_v34 = vmov 0 }
  0xd6   : > { %v13723_v1 = vshrl.u32 %v481_v0, 7  ;;  %s13346_s3 = smov 127   ;;  %s13347_s8 = smov 113   ;;  %v13883_v22 = vand.u32 127, %v481_v0 }
  0xd7   : > { %s20015_s0 = smov 112   ;;  %s20013_s28 = smov 111  }
  0xd8   : > { %20546 = vst [vmem:[#allocation26_spill] sm:$0xff] %v13723_v1  ;;  %v997_v3 = vsub.s32 1, %v13723_v1  ;;  %v13730_v4 = vsub.s32 0, %v13723_v1  ;;  %v1001_v5 = vsub.s32 3, %v13723_v1  ;;  %v13734_v6 = vsub.s32 2, %v13723_v1  ;;  %s14082_s30 = sld [smem:[#allocation9 + $0x9]] }
  0xd9   : > { %v1009_v11 = vsub.s32 7, %v13723_v1  ;;  %v13768_v12 = vsub.s32 6, %v13723_v1  ;;  %v13813_v16 = vsub.s32 4, %v13723_v1  ;;  %v19996_v19 = vsub.s32 5, %v13723_v1  ;;  %s14107_s21 = sld [smem:[#allocation9 + $0x8]]  ;;  %s14135_s15 = sld [smem:[#allocation9 + $0x1]] }
  0xda   : > { %20547 = vst [vmem:[#allocation27_spill] sm:$0xff] %v13730_v4  ;;  %20548 = vst [vmem:[#allocation28_spill] sm:$0xff] %v13734_v6  ;;  %v13739_v7 = vrot.slane %v13726_v2, %v997_v3  ;;  %v13743_v8 = vrot.slane %v13726_v2, %v13730_v4  ;;  %v13752_v9 = vrot.slane %v13726_v2, %v1001_v5  ;;  %v13894_v25 = vadd.s32 128, %v13883_v22  ;;  %s14137_s13 = sld [smem:[#allocation9]]  ;;  %s14146_s9 = sld [smem:[#allocation9 + $0x2]] }
  0xdb   : > { %v13756_v10 = vrot.slane %v13726_v2, %v13734_v6  ;;  %20549 = vst [vmem:[#allocation29_spill] sm:$0xff] %v13768_v12  ;;  %v13778_v14 = vrot.slane %v13771_v13, %v1009_v11  ;;  %v13782_v15 = vrot.slane %v13771_v13, %v13768_v12  ;;  %20552 = vst [vmem:[#allocation32_spill] sm:$0xff] %v13813_v16  ;;  %v884_v30 = vshra.s32 %v13883_v22, 8  ;;  %s14148_s2 = sld [smem:[#allocation9 + $0x3]]  ;;  %s14164_s12 = sld [smem:[#allocation9 + $0x4]] }
  0xdc   : > { %1035 = vrot.lane.b32.xlu1 %v13739_v7, %s20010_s25  ;;  %960 = vrot.lane.b32.xlu0 %v13743_v8, %s20010_s25  ;;  %v13821_v17 = vrot.slane %v13726_v2, %v13768_v12  ;;  %v931_v18 = vrot.slane %v13726_v2, %v13813_v16  ;;  %v13830_v20 = vrot.slane %v13726_v2, %v1009_v11  ;;  %v885_v26 = vshra.s32 %v13894_v25, 8 }
  0xdd   : > { %20550 = vst [vmem:[#allocation30_spill] sm:$0xff] %v13778_v14  ;;  %20551 = vst [vmem:[#allocation31_spill] sm:$0xff] %v13782_v15  ;;  %v1006_v21 = vrot.slane %v13726_v2, %v19996_v19  ;;  %vm13924_vm1 = vcmp.eq.s32.totalorder %v884_v30, %v13723_v1  ;;  %v13940_v35 = vrot.slane %v13771_v13, %v13734_v6  ;;  %v20583_v30 = vmov 0 }
  0xde   : > { %vm13905_vm0 = vcmp.eq.s32.totalorder %v885_v26, %v13723_v1  ;;  %v20560_v34 = vsel %vm13924_vm1, 4294967295, %v20559_v34  ;;  %v13944_v36 = vrot.slane %v13771_v13, %v13730_v4  ;;  %v13957_v39 = vrot.slane %v13771_v13, %v1001_v5 }
  0xdf   : > { %v20556_v29 = vsel %vm13905_vm0, 4294967295, %v20555_v29  ;;  %11587 = vmatprep.subr.msk.mxu0 %vm13905_vm0, %v19997_v31  ;;  %11595 = vmatprep.subr.msk.mxu1 %vm13905_vm0, %v19997_v31  ;;  %20561 = vst [vmem:[#allocation37_spill] sm:$0xff] %v20560_v34  ;;  %v13962_v40 = vrot.slane %v13771_v13, %v997_v3 }
  0xe0   : > { %1037 = vrot.lane.b32.xlu1 %v13752_v9, %s20010_s25  ;;  %962 = vrot.lane.b32.xlu0 %v13756_v10, %s20010_s25  ;;  %20557 = vst [vmem:[#allocation35_spill] sm:$0xff] %v20556_v29 }
  0xe1   : > { %11588 = vmatpush1.xpose.msk.msra.mxu0 %vm13924_vm1, %v19997_v31  ;;  %11596 = vmatpush1.xpose.msk.msra.mxu1 %vm13924_vm1, %v19997_v31 }
  0xe4   : > { %1095 = vrot.lane.b32.xlu1 %v13756_v10, %s20031_s26  ;;  %1093 = vrot.lane.b32.xlu0 %v13743_v8, %s20031_s26 }
  0xe8   : > { %1130 = vrot.lane.b32.xlu1 %v13752_v9, %s20031_s26  ;;  %1128 = vrot.lane.b32.xlu0 %v13739_v7, %s20031_s26 }
  0xec   : > { %1049 = vrot.lane.b32.xlu1 %v13778_v14, %s20010_s25  ;;  %974 = vrot.lane.b32.xlu0 %v13782_v15, %s20010_s25 }
  0xf0   : > { %1142 = vrot.lane.b32.xlu1 %v13778_v14, %s20031_s26  ;;  %1107 = vrot.lane.b32.xlu0 %v13782_v15, %s20031_s26 }
  0xf4   : > { %1188 = vrot.lane.b32.xlu1 %v13756_v10, %s13344_s10  ;;  %1186 = vrot.lane.b32.xlu0 %v13743_v8, %s13344_s10 }
  0xf8   : > { %1223 = vrot.lane.b32.xlu1 %v13752_v9, %s13344_s10  ;;  %1221 = vrot.lane.b32.xlu0 %v13739_v7, %s13344_s10 }
  0xfc   : > { %1235 = vrot.lane.b32.xlu1 %v13778_v14, %s13344_s10  ;;  %1200 = vrot.lane.b32.xlu0 %v13782_v15, %s13344_s10 }
 0x100   : > { %1281 = vrot.lane.b32.xlu1 %v13756_v10, %s20033_s29  ;;  %1279 = vrot.lane.b32.xlu0 %v13743_v8, %s20033_s29 }
 0x104   : > { %1316 = vrot.lane.b32.xlu1 %v13752_v9, %s20033_s29  ;;  %1314 = vrot.lane.b32.xlu0 %v13739_v7, %s20033_s29 }
 0x108   : > { %1328 = vrot.lane.b32.xlu1 %v13778_v14, %s20033_s29  ;;  %1293 = vrot.lane.b32.xlu0 %v13782_v15, %s20033_s29  ;;  %v20056_v14 = vmov 0.0  }
 0x10c   : > { %966 = vrot.lane.b32.xlu1 %v13821_v17, %s20010_s25  ;;  %964 = vrot.lane.b32.xlu0 %v931_v18, %s20010_s25 }
 0x110   : > { %1041 = vrot.lane.b32.xlu1 %v13830_v20, %s20010_s25  ;;  %1039 = vrot.lane.b32.xlu0 %v1006_v21, %s20010_s25 }
 0x114   : > { %1099 = vrot.lane.b32.xlu1 %v13821_v17, %s20031_s26  ;;  %1097 = vrot.lane.b32.xlu0 %v931_v18, %s20031_s26 }
 0x118   : > { %1134 = vrot.lane.b32.xlu1 %v13830_v20, %s20031_s26  ;;  %1132 = vrot.lane.b32.xlu0 %v1006_v21, %s20031_s26 }
 0x11c   : > { %1444 = vrot.lane.b32.xlu1 %v931_v18, %s13346_s3  ;;  %1442 = vrot.lane.b32.xlu0 %v13756_v10, %s13346_s3 }
 0x120   : > { %1479 = vrot.lane.b32.xlu1 %v1006_v21, %s13346_s3  ;;  %1477 = vrot.lane.b32.xlu0 %v13752_v9, %s13346_s3 }
 0x124   : > { %1475 = vrot.lane.b32.xlu1 %v13739_v7, %s13346_s3  ;;  %1440 = vrot.lane.b32.xlu0 %v13743_v8, %s13346_s3 }
 0x128   : > { %1192 = vrot.lane.b32.xlu1 %v13821_v17, %s13344_s10  ;;  %1190 = vrot.lane.b32.xlu0 %v931_v18, %s13344_s10 }
 0x12c   : > { %1227 = vrot.lane.b32.xlu1 %v13830_v20, %s13344_s10  ;;  %1225 = vrot.lane.b32.xlu0 %v1006_v21, %s13344_s10 }
 0x130   : > { %1537 = vrot.lane.b32.xlu1 %v931_v18, %s13347_s8  ;;  %1535 = vrot.lane.b32.xlu0 %v13756_v10, %s13347_s8 }
 0x134   : > { %1572 = vrot.lane.b32.xlu1 %v1006_v21, %s13347_s8  ;;  %1570 = vrot.lane.b32.xlu0 %v13752_v9, %s13347_s8 }
 0x138   : > { %1568 = vrot.lane.b32.xlu1 %v13739_v7, %s13347_s8  ;;  %1533 = vrot.lane.b32.xlu0 %v13743_v8, %s13347_s8 }
 0x13c   : > { %1285 = vrot.lane.b32.xlu1 %v13821_v17, %s20033_s29  ;;  %1283 = vrot.lane.b32.xlu0 %v931_v18, %s20033_s29 }
 0x140   : > { %1320 = vrot.lane.b32.xlu1 %v13830_v20, %s20033_s29  ;;  %1318 = vrot.lane.b32.xlu0 %v1006_v21, %s20033_s29 }
 0x144   : > { %1630 = vrot.lane.b32.xlu1 %v931_v18, %s20015_s0  ;;  %1628 = vrot.lane.b32.xlu0 %v13756_v10, %s20015_s0 }
 0x148   : > { %1665 = vrot.lane.b32.xlu1 %v1006_v21, %s20015_s0  ;;  %1663 = vrot.lane.b32.xlu0 %v13752_v9, %s20015_s0 }
 0x14c   : > { %1661 = vrot.lane.b32.xlu1 %v13739_v7, %s20015_s0  ;;  %1626 = vrot.lane.b32.xlu0 %v13743_v8, %s20015_s0 }
 0x14e   : > { %v13889_v23 = vpop.permute.xlu1 %1035  ;;  %v13891_v24 = vpop.permute.xlu0 %960 }
 0x150   : > { %1723 = vrot.lane.b32.xlu1 %v931_v18, %s20013_s28  ;;  %1721 = vrot.lane.b32.xlu0 %v13756_v10, %s20013_s28 }
 0x152   : > { %v13900_v27 = vpop.permute.xlu1 %1037  ;;  %v13902_v28 = vpop.permute.xlu0 %962 }
 0x153   : > { %20553 = vst [vmem:[#allocation33_spill] sm:$0xff] %v13900_v27  ;;  %20554 = vst [vmem:[#allocation34_spill] sm:$0xff] %v13902_v28 }
 0x154   : > { %1758 = vrot.lane.b32.xlu1 %v1006_v21, %s20013_s28  ;;  %1756 = vrot.lane.b32.xlu0 %v13752_v9, %s20013_s28  ;;  %v14069_v9 = vadd.s32 384, %v13883_v22 }
 0x156   : > { %v13919_v32 = vpop.permute.xlu1 %1095  ;;  %v13921_v33 = vpop.permute.xlu0 %1093  ;;  %20582 = vst [vmem:[#allocation58_spill] sm:$0xff] %v14069_v9  ;;  %v887_v21 = vshra.s32 %v14069_v9, 8 }
 0x157   : > { %20558 = vst [vmem:[#allocation36_spill] sm:$0xff] %v13919_v32 }
 0x158   : > { %1754 = vrot.lane.b32.xlu1 %v13739_v7, %s20013_s28  ;;  %1719 = vrot.lane.b32.xlu0 %v13743_v8, %s20013_s28  ;;  %v499_v7 = vshra.s32 %v13894_v25, 4  ;;  %v498_v8 = vshra.s32 %v13883_v22, 4  ;;  %vm14089_vm2 = vcmp.eq.s32.totalorder %v887_v21, %v13723_v1 }
 0x159   : > { %v20584_v30 = vsel %vm14089_vm2, 4294967295, %v20583_v30 }
 0x15a   : > { %v13946_v37 = vpop.permute.xlu1 %1130  ;;  %v13948_v38 = vpop.permute.xlu0 %1128  ;;  %v14077_v18 = vand.u32 15, %v499_v7  ;;  %v14080_v26 = vand.u32 15, %v498_v8  ;;  %20585 = vst [vmem:[#allocation59_spill] sm:$0xff] %v20584_v30  ;;  %v491_v7 = vand.u32 15, %v13894_v25  ;;  %v20588_v8 = vmov 1.0  }
 0x15b   : > { %20562 = vst [vmem:[#allocation38_spill] sm:$0xff] %v13946_v37  ;;  %11589 = vmatprep.subr.msk.mxu0 %vm14089_vm2, %v20588_v8  ;;  %11597 = vmatprep.subr.msk.mxu1 %vm14089_vm2, %v20588_v8  ;;  %v20589_v25 = vsub.s32 5, %v13723_v1  ;;  %v14120_v30 = vrot.slane %v13771_v13, %v13813_v16  ;;  %v14253_v8 = vadd.s32 256, %v13883_v22 }
 0x15c   : > { %970 = vrot.lane.b32.xlu1 %v13940_v35, %s20010_s25  ;;  %968 = vrot.lane.b32.xlu0 %v13944_v36, %s20010_s25  ;;  %v514_v21 = vadd.s32 4294967295, %v14080_v26  ;;  %v14122_v29 = vadd.s32 4294967295, %v491_v7  ;;  %vm707_vm13 = vcmp.ge.s32.totalorder %v14077_v18, 0  ;;  %vm715_vm14 = vcmp.le.s32.totalorder %v14077_v18, 15 }
 0x15d   : > { %v14114_v34 = vrot.slane %v13771_v13, %v20589_v25  ;;  %v14130_v25 = vadd.s32 1, %v491_v7  ;;  %20622 = vst [vmem:[#allocation76_spill] sm:$0xff] %v14253_v8  ;;  %v14352_v9 = vadd.s32 1, %v14077_v18 }
 0x15e   : > { %v13964_v41 = vpop.permute.xlu1 %1049  ;;  %v13966_v42 = vpop.permute.xlu0 %974  ;;  %20590 = vst [vmem:[#allocation62_spill] sm:$0xff] %v14122_v29  ;;  %vm522_vm5 = vcmp.ge.s32.totalorder %v514_v21, 0  ;;  %vm530_vm6 = vcmp.le.s32.totalorder %v514_v21, 15  ;;  %vm20026_vm8 = vcmp.ge.s32.totalorder %v14122_v29, 0 }
 0x15f   : > { %20563 = vst [vmem:[#allocation39_spill] sm:$0xff] %v13964_v41  ;;  %20564 = vst [vmem:[#allocation40_spill] sm:$0xff] %v13966_v42  ;;  %vm20025_vm11 = vcmp.le.s32.totalorder %v14130_v25, 15 }
 0x160   : > { %1045 = vrot.lane.b32.xlu1 %v13957_v39, %s20010_s25  ;;  %1043 = vrot.lane.b32.xlu0 %v13962_v40, %s20010_s25  ;;  %20594 = vst [vmem:[#allocation66_spill] sm:$0xff] %v14130_v25  ;;  %vm14154_vm9 = vmand %vm522_vm5, %vm530_vm6 }
 0x161   : > { %v14288_v13 = vsel %vm14154_vm9, 1.0, %v20056_v14 }
 0x162   : > { %v13972_v43 = vpop.permute.xlu1 %1142  ;;  %v13974_v44 = vpop.permute.xlu0 %1107  ;;  %20630 = vst [vmem:[#allocation83_spill] sm:$0xff] %v14288_v13 }
 0x163   : > { %20565 = vst [vmem:[#allocation41_spill] sm:$0xff] %v13972_v43  ;;  %20566 = vst [vmem:[#allocation42_spill] sm:$0xff] %v13974_v44 }
 0x164   : > { %1103 = vrot.lane.b32.xlu1 %v13940_v35, %s20031_s26  ;;  %1101 = vrot.lane.b32.xlu0 %v13944_v36, %s20031_s26 }
 0x166   : > { %v13980_v45 = vpop.permute.xlu1 %1188  ;;  %v13982_v46 = vpop.permute.xlu0 %1186 }
 0x168   : > { %1138 = vrot.lane.b32.xlu1 %v13957_v39, %s20031_s26  ;;  %1136 = vrot.lane.b32.xlu0 %v13962_v40, %s20031_s26 }
 0x16a   : > { %v13988_v47 = vpop.permute.xlu1 %1223  ;;  %v13990_v48 = vpop.permute.xlu0 %1221 }
 0x16b   : > { %20567 = vst [vmem:[#allocation43_spill] sm:$0xff] %v13988_v47 }
 0x16c   : > { %1448 = vrot.lane.b32.xlu1 %v13944_v36, %s13346_s3  ;;  %1446 = vrot.lane.b32.xlu0 %v13821_v17, %s13346_s3 }
 0x16e   : > { %v13996_v49 = vpop.permute.xlu1 %1235  ;;  %v13998_v50 = vpop.permute.xlu0 %1200 }
 0x16f   : > { %20568 = vst [vmem:[#allocation44_spill] sm:$0xff] %v13996_v49  ;;  %20569 = vst [vmem:[#allocation45_spill] sm:$0xff] %v13998_v50 }
 0x170   : > { %1483 = vrot.lane.b32.xlu1 %v13962_v40, %s13346_s3  ;;  %1481 = vrot.lane.b32.xlu0 %v13830_v20, %s13346_s3 }
 0x172   : > { %v14004_v51 = vpop.permute.xlu1 %1281  ;;  %v14006_v52 = vpop.permute.xlu0 %1279 }
 0x173   : > { %20570 = vst [vmem:[#allocation46_spill] sm:$0xff] %v14004_v51 }
 0x174   : > { %1196 = vrot.lane.b32.xlu1 %v13940_v35, %s13344_s10  ;;  %1194 = vrot.lane.b32.xlu0 %v13944_v36, %s13344_s10 }
 0x176   : > { %v14012_v53 = vpop.permute.xlu1 %1316  ;;  %v14014_v54 = vpop.permute.xlu0 %1314 }
 0x178   : > { %1231 = vrot.lane.b32.xlu1 %v13957_v39, %s13344_s10  ;;  %1229 = vrot.lane.b32.xlu0 %v13962_v40, %s13344_s10 }
 0x17a   : > { %v14020_v55 = vpop.permute.xlu1 %1328  ;;  %v14022_v56 = vpop.permute.xlu0 %1293 }
 0x17b   : > { %20571 = vst [vmem:[#allocation47_spill] sm:$0xff] %v14020_v55  ;;  %20572 = vst [vmem:[#allocation48_spill] sm:$0xff] %v14022_v56 }
 0x17c   : > { %1541 = vrot.lane.b32.xlu1 %v13944_v36, %s13347_s8  ;;  %1539 = vrot.lane.b32.xlu0 %v13821_v17, %s13347_s8 }
 0x17e   : > { %v14028_v57 = vpop.permute.xlu1 %966  ;;  %v14030_v58 = vpop.permute.xlu0 %964 }
 0x17f   : > { %20573 = vst [vmem:[#allocation49_spill] sm:$0xff] %v14028_v57  ;;  %20574 = vst [vmem:[#allocation50_spill] sm:$0xff] %v14030_v58  ;;  %v14221_v57 = vstv %s14135_s15  ;;  %s14255_s15 = sld [smem:[#allocation9 + $0xc]] }
 0x180   : > { %1576 = vrot.lane.b32.xlu1 %v13962_v40, %s13347_s8  ;;  %1574 = vrot.lane.b32.xlu0 %v13830_v20, %s13347_s8  ;;  %20614 = vst [vmem:[#allocation72_spill] sm:$0xff] %v14221_v57 }
 0x182   : > { %v14036_v59 = vpop.permute.xlu1 %1041  ;;  %v14038_v60 = vpop.permute.xlu0 %1039 }
 0x183   : > { %20575 = vst [vmem:[#allocation51_spill] sm:$0xff] %v14036_v59  ;;  %20576 = vst [vmem:[#allocation52_spill] sm:$0xff] %v14038_v60 }
 0x184   : > { %1289 = vrot.lane.b32.xlu1 %v13940_v35, %s20033_s29  ;;  %1287 = vrot.lane.b32.xlu0 %v13944_v36, %s20033_s29 }
 0x186   : > { %v14044_v61 = vpop.permute.xlu1 %1099  ;;  %v14046_v62 = vpop.permute.xlu0 %1097 }
 0x187   : > { %20577 = vst [vmem:[#allocation53_spill] sm:$0xff] %v14044_v61  ;;  %20578 = vst [vmem:[#allocation54_spill] sm:$0xff] %v14046_v62  ;;  %v20611_v62 = vstv %s14107_s21 }
 0x188   : > { %1324 = vrot.lane.b32.xlu1 %v13957_v39, %s20033_s29  ;;  %1322 = vrot.lane.b32.xlu0 %v13962_v40, %s20033_s29  ;;  %v1374_v60 = vmul.f32 %v20611_v62, %v13726_v2  ;;  %s14231_s29 = sld [smem:[#allocation9 + $0xb]]  ;;  %v14242_v62 = vstv %s14148_s2  ;;  %s14639_s2 = sld [smem:[#allocation2]] }
 0x189   : > { %20619 = vst [vmem:[#allocation75_spill] sm:$0xff] %v14242_v62 }
 0x18a   : > { %v14052_v63 = vpop.permute.xlu1 %1134  ;;  %v14054_v0 = vpop.permute.xlu0 %1132 }
 0x18b   : > { %20579 = vst [vmem:[#allocation55_spill] sm:$0xff] %v14052_v63  ;;  %20580 = vst [vmem:[#allocation56_spill] sm:$0xff] %v14054_v0 }
 0x18c   : > { %1634 = vrot.lane.b32.xlu1 %v13944_v36, %s20015_s0  ;;  %1632 = vrot.lane.b32.xlu0 %v13821_v17, %s20015_s0 }
 0x18e   : > { %v14060_v3 = vpop.permute.xlu1 %1444  ;;  %v14062_v5 = vpop.permute.xlu0 %1442 }
 0x18f   : > { %20581 = vst [vmem:[#allocation57_spill] sm:$0xff] %v14060_v3 }
 0x190   : > { %1669 = vrot.lane.b32.xlu1 %v13962_v40, %s20015_s0  ;;  %1667 = vrot.lane.b32.xlu0 %v13830_v20, %s20015_s0  ;;  %s14194_s0 = sld [smem:[#allocation9 + $0x7]] }
 0x192   : > { %v14073_v10 = vpop.permute.xlu1 %1479  ;;  %v14075_v11 = vpop.permute.xlu0 %1477 }
 0x194   : > { %1727 = vrot.lane.b32.xlu1 %v13944_v36, %s20013_s28  ;;  %1725 = vrot.lane.b32.xlu0 %v13821_v17, %s20013_s28  ;;  %v515_v17 = vadd.s32 4294967295, %v14077_v18  ;;  %v490_v36 = vand.u32 15, %v13883_v22 }
 0x196   : > { %v14094_v19 = vpop.permute.xlu1 %1475  ;;  %v14096_v31 = vpop.permute.xlu0 %1440  ;;  %vm523_vm3 = vcmp.ge.s32.totalorder %v515_v17, 0  ;;  %vm531_vm4 = vcmp.le.s32.totalorder %v515_v17, 15 }
 0x197   : > { %20586 = vst [vmem:[#allocation60_spill] sm:$0xff] %v14094_v19  ;;  %20587 = vst [vmem:[#allocation61_spill] sm:$0xff] %v14096_v31  ;;  %v14291_v19 = vstv %s14164_s12  ;;  %s14425_s12 = sld [smem:[#allocation9 + $0xe]] }
 0x198   : > { %1762 = vrot.lane.b32.xlu1 %v13962_v40, %s20013_s28  ;;  %1760 = vrot.lane.b32.xlu0 %v13830_v20, %s20013_s28  ;;  %v14128_v40 = vadd.s32 4294967295, %v490_v36  ;;  %vm14141_vm7 = vmand %vm523_vm3, %vm531_vm4  ;;  %v14159_v20 = vadd.s32 1, %v490_v36  ;;  %s14180_s28 = sld [smem:[#allocation9 + $0x6]]  ;;  %vm706_vm3 = vcmp.ge.s32.totalorder %v14080_v26, 0  ;;  %vm714_vm4 = vcmp.le.s32.totalorder %v14080_v26, 15  ;;  %20631 = vst [vmem:[#allocation84_spill] sm:$0xff] %v14291_v19 }
 0x199   : > { %vm14176_vm12 = vmand %vm14141_vm7, %vm20026_vm8  ;;  %vm20126_vm8 = vcmp.lt.s32.totalorder %v13883_v22, 16 }
 0x19a   : > { %v14124_v61 = vpop.permute.xlu1 %1192  ;;  %v14126_v0 = vpop.permute.xlu0 %1190  ;;  %20593 = vst [vmem:[#allocation65_spill] sm:$0xff] %v14128_v40  ;;  %vm20022_vm10 = vcmp.ge.s32.totalorder %v14128_v40, 0  ;;  %20601 = vst [vmem:[#allocation69_spill] sm:$0xff] %v14159_v20  ;;  %vm666_vm6 = vcmp.le.s32.totalorder %v14159_v20, 15  ;;  %v1150_v63 = vsel %vm20126_vm8, %v13948_v38, %v13946_v37  ;;  %v1116_v12 = vsel %vm20126_vm8, %v13921_v33, %v13919_v32 }
 0x19b   : > { %20591 = vst [vmem:[#allocation63_spill] sm:$0xff] %v14124_v61  ;;  %20592 = vst [vmem:[#allocation64_spill] sm:$0xff] %v14126_v0  ;;  %v20602_v0 = vstv %s14082_s30  ;;  %v14378_v20 = vstv %s14231_s29  ;;  %s20665_s29 = smov 112  }
 0x19c   : > { %1047 = vrot.lane.b32.xlu1 %v14114_v34, %s20010_s25  ;;  %972 = vrot.lane.b32.xlu0 %v14120_v30, %s20010_s25  ;;  %v1378_v61 = vmul.f32 %v20602_v0, %v13726_v2  ;;  %s14166_s25 = sld [smem:[#allocation9 + $0x5]]  ;;  %vm14190_vm15 = vmand %vm14154_vm9, %vm20022_vm10  ;;  %v14236_v2 = vstv %s14137_s13  ;;  %v14319_v0 = vstv %s14194_s0  ;;  %20644 = vst [vmem:[#allocation93_spill] sm:$0xff] %v14378_v20  ;;  %s14544_s0 = sld [smem:[#allocation9 + $0x10]] }
 0x19d   : > { %vm14206_vm5 = vmand %vm14141_vm7, %vm20025_vm11  ;;  %vm20127_vm11 = vcmp.lt.s32.totalorder %v13883_v22, 17  ;;  %20617 = vst [vmem:[#allocation73_spill] sm:$0xff] %v14236_v2  ;;  %s14259_s13 = sld [smem:[#allocation9 + $0xd]]  ;;  %v14283_v36 = vsel %vm14190_vm15, 1.0, %v20056_v14  ;;  %vm20637_vm15 = vcmp.le.s32.totalorder %v14130_v25, 15 }
 0x19e   : > { %v14150_v7 = vpop.permute.xlu1 %1227  ;;  %v14152_v17 = vpop.permute.xlu0 %1225  ;;  %v11577_v59 = vrot.slane %v1378_v61, 9  ;;  %vm14214_vm10 = vmand %vm707_vm13, %vm715_vm14  ;;  %v14239_v61 = vstv %s14146_s9  ;;  %vm20123_vm14 = vcmp.lt.s32.totalorder %v13883_v22, 15  ;;  %20629 = vst [vmem:[#allocation82_spill] sm:$0xff] %v14283_v36  ;;  %v14313_v21 = vstv %s14180_s28  ;;  %s14546_s28 = sld [smem:[#allocation9 + $0x11]]  ;;  %s20683_s9 = smov 111  }
 0x19f   : > { %20597 = vst [vmem:[#allocation67_spill] sm:$0xff] %v14150_v7  ;;  %20598 = vst [vmem:[#allocation68_spill] sm:$0xff] %v14152_v17  ;;  %v1057_v37 = vsel %vm20127_vm11, %v13889_v23, %v13900_v27  ;;  %v983_v58 = vsel %vm20127_vm11, %v13891_v24, %v13902_v28  ;;  %v1243_v18 = vsel %vm20123_vm14, %v13990_v48, %v13988_v47  ;;  %v20645_v28 = vmov 0.0  }
 0x1a0   : > { %1140 = vrot.lane.b32.xlu1 %v14114_v34, %s20031_s26  ;;  %1105 = vrot.lane.b32.xlu0 %v14120_v30, %s20031_s26  ;;  %vm14225_vm1 = vmand %vm706_vm3, %vm714_vm4  ;;  %s14229_s26 = sld [smem:[#allocation9 + $0xa]]  ;;  %20618 = vst [vmem:[#allocation74_spill] sm:$0xff] %v14239_v61  ;;  %vm20627_vm3 = vcmp.ge.s32.totalorder %v14122_v29, 0  ;;  %v14278_v31 = vadd.f32 %v11577_v59, %v1374_v60  ;;  %v14305_v59 = vsel %vm14206_vm5, 1.0, %v20056_v14  ;;  %v14393_v47 = vstv %s14255_s15 }
 0x1a1   : > { %vm14248_vm13 = vmand %vm14154_vm9, %vm666_vm6  ;;  %20633 = vst [vmem:[#allocation85_spill] sm:$0xff] %v14305_v59  ;;  %vm20122_vm9 = vcmp.lt.s32.totalorder %v13883_v22, 1  ;;  %v1062_v16 = vmul.f32 %v14221_v57, %v1057_v37  ;;  %v1117_v37 = vsel %vm20126_vm8, %v13974_v44, %v13921_v33  ;;  %v984_v33 = vsel %vm20127_vm11, %v13966_v42, %v13891_v24 }
 0x1a2   : > { %v14198_v7 = vpop.permute.xlu1 %1537  ;;  %v14200_v17 = vpop.permute.xlu0 %1535  ;;  %vm731_vm4 = vmand %vm14214_vm10, %vm20627_vm3  ;;  %20628 = vst [vmem:[#allocation81_spill] sm:$0xff] %v14278_v31  ;;  %v14310_v60 = vsel %vm14248_vm13, 1.0, %v20056_v14  ;;  %v988_v31 = vmul.f32 %v14236_v2, %v983_v58  ;;  %vm787_vm13 = vcmp.ge.s32.totalorder %v14352_v9, 0  ;;  %vm20118_vm3 = vcmp.lt.s32.totalorder %v13883_v22, 113 }
 0x1a3   : > { %20607 = vst [vmem:[#allocation70_spill] sm:$0xff] %v14198_v7  ;;  %20608 = vst [vmem:[#allocation71_spill] sm:$0xff] %v14200_v17  ;;  %v14266_v17 = vsel %vm14176_vm12, 1.0, %v20056_v14  ;;  %v14271_v7 = vsel %vm14141_vm7, 1.0, %v20056_v14  ;;  %vm20632_vm7 = vcmp.ge.s32.totalorder %v14128_v40, 0  ;;  %v14322_v40 = vsel %vm731_vm4, 1.0, %v20056_v14 }
 0x1a4   : > { %1452 = vrot.lane.b32.xlu1 %v14120_v30, %s13346_s3  ;;  %1450 = vrot.lane.b32.xlu0 %v13940_v35, %s13346_s3  ;;  %20625 = vst [vmem:[#allocation79_spill] sm:$0xff] %v14266_v17  ;;  %20626 = vst [vmem:[#allocation80_spill] sm:$0xff] %v14271_v7  ;;  %v14396_v4 = vstv %s14259_s13  ;;  %v14441_v44 = vadd.s32 1, %v14080_v26  ;;  %v1210_v24 = vsel %vm20123_vm14, %v13998_v50, %v13982_v46  ;;  %vm795_vm4 = vcmp.le.s32.totalorder %v14352_v9, 15  ;;  %v20661_v9 = vld [vmem:[#allocation60_spill] sm:$0xff]  ;;  %s21951_s13 = sld [smem:[#allocation24_spill]] }
 0x1a5   : > { %vm730_vm12 = vmand %vm14225_vm1, %vm20632_vm7  ;;  %20634 = vst [vmem:[#allocation86_spill] sm:$0xff] %v14310_v60  ;;  %v1070_v42 = vadd.f32 %v1062_v16, %v988_v31  ;;  %v987_v50 = vmul.f32 %v14236_v2, %v984_v33  ;;  %v1303_v16 = vsel %vm20122_vm9, %v14022_v56, %v14006_v52 }
 0x1a6   : > { %v14257_v1 = vpop.permute.xlu1 %1572  ;;  %v14261_v15 = vpop.permute.xlu0 %1570  ;;  %20635 = vst [vmem:[#allocation87_spill] sm:$0xff] %v14319_v0  ;;  %20636 = vst [vmem:[#allocation88_spill] sm:$0xff] %v14322_v40  ;;  %v14343_v29 = vsel %vm730_vm12, 1.0, %v20056_v14  ;;  %v14375_v27 = vstv %s14229_s26  ;;  %v1155_v14 = vmul.f32 %v14242_v62, %v1150_v63  ;;  %v1209_v63 = vsel %vm20123_vm14, %v13982_v46, %v13980_v45  ;;  %s20655_s26 = smov 1  }
 0x1a7   : > { %20623 = vst [vmem:[#allocation77_spill] sm:$0xff] %v14257_v1  ;;  %20624 = vst [vmem:[#allocation78_spill] sm:$0xff] %v14261_v15  ;;  %v14294_v15 = vstv %s14166_s25  ;;  %s14458_s25 = sld [smem:[#allocation9 + $0xf]]  ;;  %vm786_vm7 = vcmp.ge.s32.totalorder %v14441_v44, 0  ;;  %vm794_vm12 = vcmp.le.s32.totalorder %v14441_v44, 15 }
 0x1a8   : > { %1487 = vrot.lane.b32.xlu1 %v14114_v34, %s13346_s3  ;;  %1485 = vrot.lane.b32.xlu0 %v13957_v39, %s13346_s3  ;;  %vm14330_vm5 = vmand %vm14214_vm10, %vm20637_vm15  ;;  %20642 = vst [vmem:[#allocation91_spill] sm:$0xff] %v14343_v29  ;;  %v1248_v58 = vmul.f32 %v14294_v15, %v1243_v18  ;;  %v1244_v18 = vsel %vm20123_vm14, %v13996_v49, %v13990_v48  ;;  %vm20117_vm15 = vcmp.lt.s32.totalorder %v13883_v22, 112 }
 0x1a9   : > { %vm754_vm10 = vmand %vm14225_vm1, %vm666_vm6  ;;  %20643 = vst [vmem:[#allocation92_spill] sm:$0xff] %v14375_v27  ;;  %v14383_v25 = vsel %vm14330_vm5, 1.0, %v20645_v28  ;;  %vm20119_vm1 = vcmp.lt.s32.totalorder %v13883_v22, 127  ;;  %v1302_v48 = vsel %vm20122_vm9, %v14006_v52, %v14004_v51  ;;  %v1247_v51 = vmul.f32 %v14294_v15, %v1244_v18 }
 0x1aa   : > { %v14334_v60 = vpop.permute.xlu1 %1568  ;;  %v14336_v36 = vpop.permute.xlu0 %1533  ;;  %20646 = vst [vmem:[#allocation94_spill] sm:$0xff] %v14383_v25  ;;  %v14390_v32 = vsel %vm754_vm10, 1.0, %v20645_v28  ;;  %20648 = vst [vmem:[#allocation96_spill] sm:$0xff] %v14393_v47  ;;  %v1121_v25 = vmul.f32 %v14239_v61, %v1116_v12  ;;  %v1336_v12 = vsel %vm20122_vm9, %v14014_v54, %v14012_v53  ;;  %v1307_v31 = vmul.f32 %v14313_v21, %v1302_v48  ;;  %v20664_v56 = vld [vmem:[#allocation71_spill] sm:$0xff]  ;;  %p21954_p7 = scmp.ne.s32.totalorder %s21951_s13, 0 }
 0x1ab   : > { %20640 = vst [vmem:[#allocation89_spill] sm:$0xff] %v14334_v60  ;;  %20641 = vst [vmem:[#allocation90_spill] sm:$0xff] %v14336_v36  ;;  %v1496_v52 = vsel %vm20119_vm1, %v14075_v11, %v14073_v10  ;;  %v1306_v18 = vmul.f32 %v14313_v21, %v1303_v16 }
 0x1ac   : > { %1233 = vrot.lane.b32.xlu1 %v14114_v34, %s13344_s10  ;;  %1198 = vrot.lane.b32.xlu0 %v14120_v30, %s13344_s10  ;;  %20647 = vst [vmem:[#allocation95_spill] sm:$0xff] %v14390_v32  ;;  %20649 = vst [vmem:[#allocation97_spill] sm:$0xff] %v14396_v4 }
 0x1ad   : > { %vm14511_vm5 = vmand %vm787_vm13, %vm795_vm4 }
 0x1ae   : > { %v14398_v8 = vpop.permute.xlu1 %1285  ;;  %v14400_v6 = vpop.permute.xlu0 %1283  ;;  %vm14590_vm4 = vmand %vm786_vm7, %vm794_vm12  ;;  %vm20116_vm7 = vcmp.lt.s32.totalorder %v13883_v22, 111 }
 0x1af   : > { %20650 = vst [vmem:[#allocation98_spill] sm:$0xff] %v14398_v8  ;;  %20651 = vst [vmem:[#allocation99_spill] sm:$0xff] %v14400_v6  ;;  %v1151_v8 = vsel %vm20126_vm8, %v13972_v43, %v13948_v38  ;;  %v1058_v38 = vsel %vm20127_vm11, %v13964_v41, %v13889_v23  ;;  %v1163_v43 = vadd.f32 %v1155_v14, %v1121_v25 }
 0x1b0   : > { %1545 = vrot.lane.b32.xlu1 %v14120_v30, %s13347_s8  ;;  %1543 = vrot.lane.b32.xlu0 %v13940_v35, %s13347_s8  ;;  %v1214_v23 = vmul.f32 %v14291_v19, %v1209_v63  ;;  %v1154_v14 = vmul.f32 %v14242_v62, %v1151_v8  ;;  %v1120_v25 = vmul.f32 %v14239_v61, %v1117_v37 }
 0x1b1   : > { %v1341_v63 = vmul.f32 %v14319_v0, %v1336_v12  ;;  %v1061_v46 = vmul.f32 %v14221_v57, %v1058_v38  ;;  %v1213_v6 = vmul.f32 %v14291_v19, %v1210_v24  ;;  %v1337_v8 = vsel %vm20122_vm9, %v14020_v55, %v14014_v54 }
 0x1b2   : > { %v14454_v49 = vpop.permute.xlu1 %1320  ;;  %v14456_v26 = vpop.permute.xlu0 %1318  ;;  %v1256_v41 = vadd.f32 %v1248_v58, %v1214_v23  ;;  %v1171_v37 = vmul.f32 %v14271_v7, %v1163_v43  ;;  %v1162_v12 = vadd.f32 %v1154_v14, %v1120_v25  ;;  %v1078_v43 = vmul.f32 %v14266_v17, %v1070_v42  ;;  %v20663_v17 = vld [vmem:[#allocation70_spill] sm:$0xff] }
 0x1b3   : > { %20652 = vst [vmem:[#allocation100_spill] sm:$0xff] %v14454_v49  ;;  %v1349_v38 = vadd.f32 %v1341_v63, %v1307_v31  ;;  %v1340_v33 = vmul.f32 %v14319_v0, %v1337_v8  ;;  %v14495_v23 = vstv %s14425_s12  ;;  %v1069_v24 = vadd.f32 %v1061_v46, %v987_v50  ;;  %v20696_v50 = vld [vmem:[#allocation27_spill] sm:$0xff] }
 0x1b4   : > { %1580 = vrot.lane.b32.xlu1 %v14114_v34, %s13347_s8  ;;  %1578 = vrot.lane.b32.xlu0 %v13957_v39, %s13347_s8  ;;  %20654 = vst [vmem:[#allocation102_spill] sm:$0xff] %v14495_v23  ;;  %v1264_v48 = vmul.f32 %v14305_v59, %v1256_v41  ;;  %v1255_v14 = vadd.f32 %v1247_v51, %v1213_v6  ;;  %v20658_v6 = vld [vmem:[#allocation78_spill] sm:$0xff]  ;;  %v14522_v46 = vstv %s14458_s25  ;;  %s21952_s25 = sld [smem:[#allocation174_spill]] }
 0x1b5   : > { %v1462_v25 = vsel %vm20119_vm1, %v14062_v5, %v14060_v3  ;;  %v1179_v42 = vadd.f32 %v1171_v37, %v1078_v43  ;;  %v1502_v63 = vmul.f32 %v14378_v20, %v1496_v52  ;;  %v1589_v41 = vsel %vm20118_vm3, %v20658_v6, %v14257_v1  ;;  %20660 = vst [vmem:[#allocation103_spill] sm:$0xff] %v14522_v46  ;;  %v20662_v52 = vld [vmem:[#allocation61_spill] sm:$0xff]  ;;  %v20796_v3 = vld [vmem:[#allocation38_spill] sm:$0xff] }
 0x1b6   : > { %v14484_v58 = vpop.permute.xlu1 %1630  ;;  %v1629_v54 = vpop.permute.xlu0 %1628  ;;  %v1170_v8 = vmul.f32 %v14288_v13, %v1162_v12  ;;  %v1357_v16 = vmul.f32 %v14322_v40, %v1349_v38  ;;  %v1497_v37 = vsel %vm20119_vm1, %v20661_v9, %v14075_v11  ;;  %v1463_v43 = vsel %vm20119_vm1, %v20662_v52, %v14062_v5  ;;  %v20666_v5 = vld [vmem:[#allocation82_spill] sm:$0xff] }
 0x1b7   : > { %20653 = vst [vmem:[#allocation101_spill] sm:$0xff] %v14484_v58  ;;  %v1348_v59 = vadd.f32 %v1340_v33, %v1306_v18  ;;  %v1468_v7 = vmul.f32 %v14375_v27, %v1462_v25  ;;  %v1555_v12 = vsel %vm20118_vm3, %v20664_v56, %v20663_v17  ;;  %v1077_v11 = vmul.f32 %v20666_v5, %v1069_v24  ;;  %v20667_v18 = vld [vmem:[#allocation86_spill] sm:$0xff] }
 0x1b8   : > { %1326 = vrot.lane.b32.xlu1 %v14114_v34, %s20655_s26  ;;  %1291 = vrot.lane.b32.xlu0 %v14120_v30, %s20655_s26  ;;  %v1272_v33 = vadd.f32 %v1264_v48, %v1179_v42  ;;  %v1263_v25 = vmul.f32 %v20667_v18, %v1255_v14  ;;  %v20668_v40 = vld [vmem:[#allocation62_spill] sm:$0xff]  ;;  %v1595_v52 = vmul.f32 %v14396_v4, %v1589_v41  ;;  %v14623_v5 = vstv %s14544_s0 }
 0x1b9   : > { %vm20669_vm10 = vcmp.ge.s32.totalorder %v20668_v40, 0  ;;  %v1510_v9 = vadd.f32 %v1502_v63, %v1468_v7  ;;  %v1501_v55 = vmul.f32 %v14378_v20, %v1497_v37  ;;  %v1467_v24 = vmul.f32 %v14375_v27, %v1463_v43  ;;  %v20784_v27 = vld [vmem:[#allocation51_spill] sm:$0xff]  ;;  %v20794_v20 = vld [vmem:[#allocation56_spill] sm:$0xff] }
 0x1ba   : > { %v14519_v51 = vpop.permute.xlu1 %1665  ;;  %v1664_v31 = vpop.permute.xlu0 %1663  ;;  %vm14554_vm13 = vmand %vm14511_vm5, %vm20669_vm10  ;;  %v1648_v40 = vsel %vm20117_vm15, %v1629_v54, %v14484_v58  ;;  %v1561_v42 = vmul.f32 %v14393_v47, %v1555_v12  ;;  %v1590_v41 = vsel %vm20118_vm3, %v14334_v60, %v20658_v6  ;;  %v1556_v7 = vsel %vm20118_vm3, %v14336_v36, %v20664_v56 }
 0x1bb   : > { %20659 = vst [vmem:[#allocation78_spill] sm:$0xff] %v14519_v51  ;;  %v1682_v38 = vsel %vm20117_vm15, %v1664_v31, %v14519_v51  ;;  %v1178_v37 = vadd.f32 %v1170_v8, %v1077_v11  ;;  %v1365_v43 = vadd.f32 %v1357_v16, %v1272_v33  ;;  %v1356_v18 = vmul.f32 %v14343_v29, %v1348_v59  ;;  %v13061_v51 = vld [vmem:[%s13704_s11 + $0x8] sm:$0xff]  ;;  %s21217_s11 = smov 17  }
 0x1bc   : > { %1638 = vrot.lane.b32.xlu1 %v14120_v30, %s20665_s29  ;;  %1636 = vrot.lane.b32.xlu0 %v13940_v35, %s20665_s29  ;;  %v1688_v63 = vmul.f32 %v14522_v46, %v1682_v38  ;;  %v14584_v12 = vsel %vm14554_vm13, 1.0, %v20645_v28  ;;  %v1603_v56 = vadd.f32 %v1595_v52, %v1561_v42  ;;  %v1654_v8 = vmul.f32 %v14495_v23, %v1648_v40  ;;  %v20680_v42 = vld [vmem:[#allocation65_spill] sm:$0xff] }
 0x1bd   : > { %20674 = vst [vmem:[#allocation104_spill] sm:$0xff] %v14584_v12  ;;  %v1594_v44 = vmul.f32 %v14396_v4, %v1590_v41  ;;  %v1560_v16 = vmul.f32 %v14393_v47, %v1556_v7  ;;  %v14610_v52 = vsel %vm14511_vm5, 1.0, %v20645_v28  ;;  %v1271_v11 = vadd.f32 %v1263_v25, %v1178_v37  ;;  %20682 = vst [vmem:[#allocation65_spill] sm:$0xff] %v14623_v5 }
 0x1be   : > { %v14566_v48 = vpop.permute.xlu1 %1661  ;;  %v14568_v14 = vpop.permute.xlu0 %1626  ;;  %20677 = vst [vmem:[#allocation105_spill] sm:$0xff] %v14610_v52  ;;  %v1509_v40 = vadd.f32 %v1501_v55, %v1467_v24  ;;  %vm20681_vm12 = vcmp.ge.s32.totalorder %v20680_v42, 0  ;;  %v1696_v41 = vadd.f32 %v1688_v63, %v1654_v8  ;;  %v20686_v55 = vld [vmem:[#allocation28_spill] sm:$0xff]  ;;  %v1611_v42 = vmul.f32 %v14584_v12, %v1603_v56 }
 0x1bf   : > { %20672 = vst [vmem:[#allocation71_spill] sm:$0xff] %v14566_v48  ;;  %20673 = vst [vmem:[#allocation62_spill] sm:$0xff] %v14568_v14  ;;  %v1683_v13 = vsel %vm20117_vm15, %v14566_v48, %v1664_v31  ;;  %v1649_v59 = vsel %vm20117_vm15, %v14568_v14, %v1629_v54  ;;  %v20679_v54 = vld [vmem:[#allocation94_spill] sm:$0xff]  ;;  %v14628_v14 = vstv %s14546_s28  ;;  %v1364_v25 = vadd.f32 %v1356_v18, %v1271_v11  ;;  %v20688_v8 = vld [vmem:[#allocation76_spill] sm:$0xff]  ;;  %s13354_s28 = smov [#allocation13]  }
 0x1c0   : > { %1673 = vrot.lane.b32.xlu1 %v14114_v34, %s20665_s29  ;;  %1671 = vrot.lane.b32.xlu0 %v13957_v39, %s20665_s29  ;;  %v1518_v33 = vmul.f32 %v20679_v54, %v1510_v9  ;;  %vm810_vm10 = vmand %vm14590_vm4, %vm20681_vm12  ;;  %v1687_v7 = vmul.f32 %v14522_v46, %v1683_v13  ;;  %v1653_v29 = vmul.f32 %v14495_v23, %v1649_v59  ;;  %v20685_v9 = vld [vmem:[#allocation81_spill] sm:$0xff]  ;;  %v20692_v11 = vld [vmem:[#allocation66_spill] sm:$0xff]  ;;  %v20715_v60 = vmov 0 }
 0x1c1   : > { %20684 = vst [vmem:[#allocation107_spill] sm:$0xff] %v14628_v14  ;;  %v20687_v24 = vrot.slane %v20685_v9, %v20686_v55  ;;  %v14646_v18 = vsel %vm810_vm10, 1.0, %v20645_v28  ;;  %v1602_v59 = vadd.f32 %v1594_v44, %v1560_v16  ;;  %vm20693_vm13 = vcmp.le.s32.totalorder %v20692_v11, 15  ;;  %v20694_v54 = vld [vmem:[#allocation58_spill] sm:$0xff] }
 0x1c2   : > { %v14612_v38 = vpop.permute.xlu1 %1723  ;;  %v1722_v31 = vpop.permute.xlu0 %1721  ;;  %20690 = vst [vmem:[#allocation76_spill] sm:$0xff] %v14646_v18  ;;  %vm859_vm12 = vmand %vm14511_vm5, %vm20693_vm13  ;;  %v1704_v12 = vmul.f32 %v14610_v52, %v1696_v41  ;;  %v20695_v48 = vshra.s32 %v20694_v54, 4  ;;  %v1695_v16 = vadd.f32 %v1687_v7, %v1653_v29  ;;  %v14673_v41 = vsel %vm14590_vm4, 1.0, %v20645_v28 }
 0x1c3   : > { %20678 = vst [vmem:[#allocation106_spill] sm:$0xff] %v14612_v38  ;;  %v1433_v37 = vadd.f32 %v20687_v24, %v1365_v43  ;;  %v1741_v63 = vsel %vm20116_vm7, %v1722_v31, %v14612_v38  ;;  %20698 = vst [vmem:[#allocation66_spill] sm:$0xff] %v14673_v41  ;;  %v14678_v29 = vsel %vm859_vm12, 1.0, %v20645_v28  ;;  %v492_v7 = vand.u32 15, %v20688_v8 }
 0x1c4   : > { %1731 = vrot.lane.b32.xlu1 %v14120_v30, %s20683_s9  ;;  %1729 = vrot.lane.b32.xlu0 %v13940_v35, %s20683_s9  ;;  %v20689_v30 = vshra.s32 %v20688_v8, 4  ;;  %v1517_v35 = vmul.f32 %v14390_v32, %v1509_v40  ;;  %v14661_v44 = vand.u32 15, %v20695_v48  ;;  %v1747_v36 = vmul.f32 %v14623_v5, %v1741_v63  ;;  %20699 = vst [vmem:[#allocation58_spill] sm:$0xff] %v14678_v29  ;;  %vm858_vm5 = vmand %vm14590_vm4, %vm666_vm6 }
 0x1c5   : > { %v1526_v24 = vadd.f32 %v1518_v33, %v1433_v37  ;;  %v20697_v33 = vrot.slane %v20685_v9, %v20696_v50  ;;  %v20783_v4 = vstv %s14082_s30  ;;  %s21220_s30 = smov 16  }
 0x1c6   : > { %v14643_v13 = vand.u32 15, %v20689_v30  ;;  %v14648_v43 = vpop.permute.xlu1 %1758  ;;  %v1757_v56 = vpop.permute.xlu0 %1756  ;;  %vm709_vm11 = vcmp.ge.s32.totalorder %v14661_v44, 0  ;;  %v15010_v17 = vmul.f32 %v13061_v51, %v20783_v4  ;;  %v20793_v4 = vld [vmem:[#allocation55_spill] sm:$0xff] }
 0x1c7   : > { %20691 = vst [vmem:[#allocation108_spill] sm:$0xff] %v14648_v43  ;;  %v1775_v30 = vsel %vm20116_vm7, %v1757_v56, %v14648_v43  ;;  %v1432_v40 = vadd.f32 %v20697_v33, %v1364_v25  ;;  %v1619_v48 = vadd.f32 %v1611_v42, %v1526_v24  ;;  %v1703_v24 = vmul.f32 %v14673_v41, %v1695_v16  ;;  %v20704_v33 = vld [vmem:[#allocation30_spill] sm:$0xff] }
 0x1c8   : > { %v1781_v11 = vmul.f32 %v14628_v14, %v1775_v30  ;;  %1766 = vrot.lane.b32.xlu1 %v14114_v34, %s20683_s9  ;;  %1764 = vrot.lane.b32.xlu0 %v13957_v39, %s20683_s9  ;;  %v1610_v34 = vmul.f32 %v14646_v18, %v1602_v59  ;;  %v14687_v30 = vadd.s32 512, %v13883_v22  ;;  %v516_v16 = vadd.s32 4294967295, %v14643_v13 }
 0x1c9   : > { %v1525_v39 = vadd.f32 %v1517_v35, %v1432_v40  ;;  %v1712_v59 = vadd.f32 %v1704_v12, %v1619_v48  ;;  %v493_v35 = vand.u32 15, %v20694_v54  ;;  %v14709_v40 = vadd.s32 640, %v13883_v22 }
 0x1ca   : > { %v1789_v37 = vadd.f32 %v1781_v11, %v1747_v36  ;;  %v14682_v63 = vpop.permute.xlu1 %1754  ;;  %v14684_v25 = vpop.permute.xlu0 %1719  ;;  %20702 = vst [vmem:[#allocation111_spill] sm:$0xff] %v14687_v30  ;;  %v14712_v12 = vstv %s14639_s2  ;;  %v502_v41 = vshra.s32 %v14687_v30, 4  ;;  %vm524_vm6 = vcmp.ge.s32.totalorder %v516_v16, 0  ;;  %s21948_s2 = sld [smem:[#allocation22_spill]] }
 0x1cb   : > { %20700 = vst [vmem:[#allocation109_spill] sm:$0xff] %v14682_v63  ;;  %20701 = vst [vmem:[#allocation110_spill] sm:$0xff] %v14684_v25  ;;  %v1776_v42 = vsel %vm20116_vm7, %v14682_v63, %v1757_v56  ;;  %v1742_v36 = vsel %vm20116_vm7, %v14684_v25, %v1722_v31  ;;  %v20705_v56 = vld [vmem:[#allocation31_spill] sm:$0xff]  ;;  %v14715_v31 = vsel %vm858_vm5, 1.0, %v20645_v28  ;;  %v1618_v54 = vadd.f32 %v1610_v34, %v1525_v39 }
 0x1cc   : > { %v1780_v11 = vmul.f32 %v14628_v14, %v1776_v42  ;;  %v1746_v52 = vmul.f32 %v14623_v5, %v1742_v36  ;;  %1489 = vrot.lane.b32.xlu1 %v20704_v33, %s13346_s3  ;;  %v1797_v6 = vmul.f32 %v14678_v29, %v1789_v37  ;;  %1454 = vrot.lane.b32.xlu0 %v20705_v56, %s13346_s3  ;;  %v517_v29 = vadd.s32 4294967295, %v14661_v44 }
 0x1cd   : > { %20706 = vst [vmem:[#allocation69_spill] sm:$0xff] %v14712_v12  ;;  %20707 = vst [vmem:[#allocation30_spill] sm:$0xff] %v14715_v31  ;;  %v1711_v32 = vadd.f32 %v1703_v24, %v1618_v54  ;;  %v14733_v63 = vadd.s32 4294967295, %v493_v35  ;;  %v503_v34 = vshra.s32 %v14709_v40, 4  ;;  %vm532_vm4 = vcmp.le.s32.totalorder %v516_v16, 15 }
 0x1ce   : > { %v1788_v48 = vadd.f32 %v1780_v11, %v1746_v52  ;;  %v14718_v42 = vpop.permute.xlu1 %970  ;;  %v14720_v36 = vpop.permute.xlu0 %968  ;;  %v1805_v37 = vadd.f32 %v1797_v6, %v1712_v59  ;;  %v886_v52 = vshra.s32 %v20688_v8, 8  ;;  %v14731_v11 = vadd.s32 4294967295, %v492_v7  ;;  %vm14762_vm5 = vmand %vm524_vm6, %vm532_vm4 }
 0x1cf   : > { %20708 = vst [vmem:[#allocation31_spill] sm:$0xff] %v14718_v42  ;;  %20709 = vst [vmem:[#allocation112_spill] sm:$0xff] %v14720_v36  ;;  %vm525_vm10 = vcmp.ge.s32.totalorder %v517_v29, 0  ;;  %vm533_vm13 = vcmp.le.s32.totalorder %v517_v29, 15  ;;  %v14745_v6 = vadd.s32 1, %v492_v7  ;;  %v14769_v29 = vand.u32 15, %v503_v34 }
 0x1d0   : > { %1582 = vrot.lane.b32.xlu1 %v20704_v33, %s13347_s8  ;;  %v14727_v18 = vadd.f32 %v14712_v12, %v1805_v37  ;;  %v1796_v25 = vmul.f32 %v14715_v31, %v1788_v48  ;;  %1547 = vrot.lane.b32.xlu0 %v20705_v56, %s13347_s8  ;;  %v889_v48 = vshra.s32 %v14709_v40, 8  ;;  %v14748_v37 = vand.u32 15, %v502_v41  ;;  %v20714_v31 = vld [vmem:[#allocation26_spill] sm:$0xff]  ;;  %vm14773_vm15 = vmand %vm525_vm10, %vm533_vm13 }
 0x1d1   : > { %vm14756_vm12 = vcmp.eq.s32.totalorder %v886_v52, %v20714_v31  ;;  %vm20131_vm7 = vcmp.ge.s32.totalorder %v14731_v11, 0  ;;  %v14767_v41 = vadd.s32 1, %v493_v35  ;;  %vm20128_vm3 = vcmp.ge.s32.totalorder %v14733_v63, 0  ;;  %v20904_v55 = vld [vmem:[#allocation111_spill] sm:$0xff] }
 0x1d2   : > { %20710 = vst [vmem:[#allocation113_spill] sm:$0xff] %v14727_v18  ;;  %v14738_v39 = vpop.permute.xlu1 %1045  ;;  %v14740_v59 = vpop.permute.xlu0 %1043  ;;  %1886 = vmatprep.mubr.f32.mxu0 %v14727_v18  ;;  %v2103_v8 = vmul.f32 %v14727_v18, %v14727_v18  ;;  %v1804_v24 = vadd.f32 %v1796_v25, %v1711_v32  ;;  %v20716_v60 = vsel %vm14756_vm12, 4294967295, %v20715_v60  ;;  %vm20130_vm6 = vcmp.le.s32.totalorder %v14745_v6, 15  ;;  %vm14799_vm10 = vmand %vm14762_vm5, %vm20131_vm7 }
 0x1d3   : > { %20711 = vst [vmem:[#allocation114_spill] sm:$0xff] %v14738_v39  ;;  %20712 = vst [vmem:[#allocation115_spill] sm:$0xff] %v14740_v59  ;;  %v494_v52 = vand.u32 15, %v14687_v30  ;;  %v20724_v34 = vmov 1.0   ;;  %vm14791_vm4 = vcmp.eq.s32.totalorder %v889_v48, %v20714_v31  ;;  %vm708_vm13 = vcmp.ge.s32.totalorder %v14643_v13, 0  ;;  %v20785_v30 = vld [vmem:[#allocation52_spill] sm:$0xff] }
 0x1d4   : > { %1675 = vrot.lane.b32.xlu1 %v20704_v33, %s20665_s29  ;;  %2174 = vmatprep.mubr.f32.mxu1 %v2103_v8  ;;  %v14753_v54 = vadd.f32 %v14712_v12, %v1804_v24  ;;  %20717 = vst [vmem:[#allocation117_spill] sm:$0xff] %v20716_v60  ;;  %v20725_v8 = vmov 0  ;;  %vm716_vm1 = vcmp.le.s32.totalorder %v14643_v13, 15  ;;  %v495_v18 = vand.u32 15, %v14709_v40  ;;  %vm14813_vm9 = vmand %vm14773_vm15, %vm20128_vm3 }
 0x1d5   : > { %1640 = vrot.lane.b32.xlu0 %v20705_v56, %s20665_s29  ;;  %v20726_v8 = vsel %vm14791_vm4, 4294967295, %v20725_v8  ;;  %vm20148_vm14 = vcmp.le.s32.totalorder %v14767_v41, 15  ;;  %v519_v12 = vadd.s32 4294967295, %v14769_v29  ;;  %vm14825_vm8 = vmand %vm14762_vm5, %vm20130_vm6  ;;  %vm717_vm3 = vcmp.le.s32.totalorder %v14661_v44, 15 }
 0x1d6   : > { %20713 = vst [vmem:[#allocation116_spill] sm:$0xff] %v14753_v54  ;;  %v14778_v25 = vpop.permute.xlu1 %1103  ;;  %v14780_v16 = vpop.permute.xlu0 %1101  ;;  %1887 = vmatmul.mubr.f32.vlgmr.msra.gmra.mrb[0].mxu0 %v14753_v54  ;;  %v2102_v35 = vmul.f32 %v14753_v54, %v14753_v54  ;;  %20727 = vst [vmem:[#allocation120_spill] sm:$0xff] %v20726_v8  ;;  %v518_v54 = vadd.s32 4294967295, %v14748_v37  ;;  %v20738_v60 = vmov 0  ;;  %v14901_v14 = vsel %vm14799_vm10, 1.0, %v20645_v28 }
 0x1d7   : > { %20722 = vst [vmem:[#allocation118_spill] sm:$0xff] %v14778_v25  ;;  %20723 = vst [vmem:[#allocation119_spill] sm:$0xff] %v14780_v16  ;;  %11590 = vmatpush1.xpose.msk.msra.mxu0 %vm14756_vm12, %v20724_v34  ;;  %v14862_v16 = vadd.s32 4294967295, %v495_v18  ;;  %vm535_vm0 = vcmp.le.s32.totalorder %v519_v12, 15  ;;  %v14906_v5 = vsel %vm14813_vm9, 1.0, %v20645_v28  ;;  %v14911_v43 = vsel %vm14762_vm5, 1.0, %v20645_v28 }
 0x1d8   : > { %1768 = vrot.lane.b32.xlu1 %v20704_v33, %s20683_s9  ;;  %2175 = vmatmul.mubr.f32.vlgmr.msra.gmra.mrb[0].mxu1 %v2102_v35  ;;  %v20732_v33 = vmov 0  ;;  %vm14845_vm6 = vmand %vm708_vm13, %vm716_vm1  ;;  %v14849_v35 = vadd.s32 4294967295, %v494_v52  ;;  %vm534_vm2 = vcmp.le.s32.totalorder %v518_v54, 15  ;;  %vm527_vm13 = vcmp.ge.s32.totalorder %v519_v12, 0  ;;  %20754 = vst [vmem:[#allocation125_spill] sm:$0xff] %v14901_v14 }
 0x1d9   : > { %1733 = vrot.lane.b32.xlu0 %v20705_v56, %s20683_s9  ;;  %v20733_v33 = vsel %vm14825_vm8, 4294967295, %v20732_v33  ;;  %11598 = vmatpush1.xpose.msk.msra.mxu1 %vm14756_vm12, %v20724_v34  ;;  %v20736_v56 = vmov 0  ;;  %vm14858_vm7 = vmand %vm14773_vm15, %vm20148_vm14  ;;  %vm526_vm12 = vcmp.ge.s32.totalorder %v518_v54, 0  ;;  %20755 = vst [vmem:[#allocation126_spill] sm:$0xff] %v14906_v5  ;;  %v14929_v32 = vadd.s32 1, %v494_v52 }
 0x1da   : > { %v14831_v40 = vpop.permute.xlu1 %1138  ;;  %v14833_v31 = vpop.permute.xlu0 %1136  ;;  %11591 = vmatprep.subr.msk.mxu0 %vm14791_vm4, %v20724_v34  ;;  %v20737_v56 = vsel %vm14845_vm6, 4294967295, %v20736_v56  ;;  %11599 = vmatprep.subr.msk.mxu1 %vm14791_vm4, %v20724_v34  ;;  %v20739_v60 = vsel %vm14858_vm7, 4294967295, %v20738_v60  ;;  %vm14864_vm1 = vmand %vm709_vm11, %vm717_vm3  ;;  %vm20742_vm4 = vcmp.ge.s32.totalorder %v14731_v11, 0  ;;  %vm20184_vm11 = vcmp.ge.s32.totalorder %v14849_v35, 0  ;;  %20756 = vst [vmem:[#allocation127_spill] sm:$0xff] %v14911_v43 }
 0x1db   : > { %20734 = vst [vmem:[#allocation121_spill] sm:$0xff] %v14831_v40  ;;  %20735 = vst [vmem:[#allocation122_spill] sm:$0xff] %v14833_v31  ;;  %vm20180_vm7 = vcmp.ge.s32.totalorder %v14862_v16, 0  ;;  %v14931_v48 = vadd.s32 1, %v495_v18  ;;  %v780_v46 = vadd.s32 1, %v14643_v13  ;;  %v14935_v59 = vadd.s32 768, %v13883_v22 }
 0x1dc   : > { %vm14872_vm8 = vmand %vm14845_vm6, %vm20742_vm4  ;;  %vm20751_vm4 = vcmp.ge.s32.totalorder %v14733_v63, 0  ;;  %20760 = vst [vmem:[#allocation129_spill] sm:$0xff] %v14929_v32  ;;  %v14940_v39 = vsel %vm14773_vm15, 1.0, %v20645_v28  ;;  %vm20764_vm9 = vnez %v20733_v33  ;;  %v14953_v13 = vadd.s32 1, %v14661_v44  ;;  %v20787_v33 = vld [vmem:[#allocation33_spill] sm:$0xff] }
 0x1dd   : > { %vm14880_vm14 = vmand %vm526_vm12, %vm534_vm2  ;;  %20761 = vst [vmem:[#allocation130_spill] sm:$0xff] %v14931_v48  ;;  %v14945_v58 = vsel %vm20764_vm9, 1.0, %v20645_v28  ;;  %vm20766_vm12 = vnez %v20739_v60  ;;  %v14958_v52 = vsel %vm14872_vm8, 1.0, %v20645_v28  ;;  %vm20271_vm8 = vcmp.le.s32.totalorder %v14929_v32, 15  ;;  %v20819_v32 = vld [vmem:[#allocation63_spill] sm:$0xff] }
 0x1de   : > { %v14876_v34 = vpop.permute.xlu1 %1448  ;;  %v14878_v31 = vpop.permute.xlu0 %1446  ;;  %vm14885_vm3 = vmand %vm527_vm13, %vm535_vm0  ;;  %20762 = vst [vmem:[#allocation131_spill] sm:$0xff] %v14935_v59  ;;  %v14950_v18 = vsel %vm20766_vm12, 1.0, %v20645_v28  ;;  %v14980_v40 = vsel %vm14880_vm14, 1.0, %v20645_v28  ;;  %vm20207_vm15 = vcmp.le.s32.totalorder %v14931_v48, 15  ;;  %vm788_vm5 = vcmp.ge.s32.totalorder %v780_v46, 0  ;;  %v20830_v48 = vld [vmem:[#allocation99_spill] sm:$0xff] }
 0x1df   : > { %20745 = vst [vmem:[#allocation123_spill] sm:$0xff] %v14876_v34  ;;  %20746 = vst [vmem:[#allocation124_spill] sm:$0xff] %v14878_v31  ;;  %v14985_v47 = vsel %vm14885_vm3, 1.0, %v20645_v28  ;;  %vm796_vm10 = vcmp.le.s32.totalorder %v780_v46, 15  ;;  %vm797_vm13 = vcmp.le.s32.totalorder %v14953_v13, 15  ;;  %vm718_vm12 = vcmp.le.s32.totalorder %v14748_v37, 15 }
 0x1e0   : > { %vm14894_vm6 = vmand %vm14864_vm1, %vm20751_vm4  ;;  %20763 = vst [vmem:[#allocation132_spill] sm:$0xff] %v14940_v39  ;;  %vm710_vm4 = vcmp.ge.s32.totalorder %v14748_v37, 0  ;;  %v20799_v31 = vld [vmem:[#allocation53_spill] sm:$0xff]  ;;  %vm20802_vm9 = vnez %v20737_v56  ;;  %v11578_v56 = vrot.slane %v15010_v17, 9 }
 0x1e1   : > { %vm14917_vm0 = vmand %vm14880_vm14, %vm20184_vm11  ;;  %20765 = vst [vmem:[#allocation133_spill] sm:$0xff] %v14945_v58  ;;  %v14963_v7 = vsel %vm14894_vm6, 1.0, %v20645_v28  ;;  %vm789_vm6 = vcmp.ge.s32.totalorder %v14953_v13, 0 }
 0x1e2   : > { %v14921_v24 = vpop.permute.xlu1 %1483  ;;  %v14923_v23 = vpop.permute.xlu0 %1481  ;;  %vm583_vm2 = vmand %vm14885_vm3, %vm20180_vm7  ;;  %20767 = vst [vmem:[#allocation134_spill] sm:$0xff] %v14950_v18  ;;  %v14972_v44 = vsel %vm14917_vm0, 1.0, %v20645_v28  ;;  %vm20780_vm0 = vcmp.lt.s32.totalorder %v13883_v22, 17 }
 0x1e3   : > { %20759 = vst [vmem:[#allocation128_spill] sm:$0xff] %v14921_v24  ;;  %20768 = vst [vmem:[#allocation135_spill] sm:$0xff] %v14958_v52  ;;  %v14975_v8 = vsel %vm583_vm2, 1.0, %v20645_v28  ;;  %v1056_v9 = vsel %vm20780_vm0, %v20787_v33, %v20785_v30  ;;  %v15038_v33 = vadd.s32 896, %v13883_v22 }
 0x1e4   : > { %20769 = vst [vmem:[#allocation136_spill] sm:$0xff] %v14963_v7  ;;  %20772 = vst [vmem:[#allocation137_spill] sm:$0xff] %v14972_v44  ;;  %v20778_v44 = vld [vmem:[#allocation49_spill] sm:$0xff] }
 0x1e5   : > { %20773 = vst [vmem:[#allocation138_spill] sm:$0xff] %v14975_v8  ;;  %20774 = vst [vmem:[#allocation139_spill] sm:$0xff] %v14980_v40  ;;  %v504_v8 = vshra.s32 %v14935_v59, 4  ;;  %v505_v54 = vshra.s32 %v15038_v33, 4 }
 0x1e6   : > { %20775 = vst [vmem:[#allocation140_spill] sm:$0xff] %v14985_v47  ;;  %v14987_v60 = vpop.permute.xlu1 %1196  ;;  %v14989_v38 = vpop.permute.xlu0 %1194  ;;  %v20779_v47 = vld [vmem:[#allocation50_spill] sm:$0xff]  ;;  %vm20782_vm2 = vmmov %vm20780_vm0 }
 0x1e7   : > { %20776 = vst [vmem:[#allocation141_spill] sm:$0xff] %v14987_v60  ;;  %20777 = vst [vmem:[#allocation142_spill] sm:$0xff] %v14989_v38  ;;  %v981_v40 = vsel %vm20780_vm0, %v20779_v47, %v20778_v44  ;;  %v20781_v38 = vld [vmem:[#allocation34_spill] sm:$0xff] }
 0x1e8   : > { %v982_v60 = vsel %vm20782_vm2, %v20781_v38, %v20779_v47  ;;  %vm20786_vm7 = vmmov %vm20780_vm0  ;;  %v20788_v47 = vld [vmem:[#allocation54_spill] sm:$0xff]  ;;  %v20789_v38 = vld [vmem:[#allocation36_spill] sm:$0xff]  ;;  %vm20790_vm2 = vcmp.lt.s32.totalorder %v13883_v22, 16 }
 0x1e9   : > { %v1055_v42 = vsel %vm20786_vm7, %v20785_v30, %v20784_v27  ;;  %v1115_v44 = vsel %vm20790_vm2, %v20789_v38, %v20788_v47  ;;  %vm20795_vm7 = vmmov %vm20790_vm2  ;;  %v15040_v38 = vand.u32 15, %v504_v8 }
 0x1ea   : > { %v15024_v36 = vpop.permute.xlu1 %1231  ;;  %v15026_v1 = vpop.permute.xlu0 %1229  ;;  %v1148_v27 = vsel %vm20795_vm7, %v20794_v20, %v20793_v4  ;;  %vm20797_vm0 = vmmov %vm20790_vm2  ;;  %vm20801_vm7 = vcmp.le.s32.totalorder %v14745_v6, 15  ;;  %v1122_v4 = vmul.f32 %v14239_v61, %v1115_v44  ;;  %v20812_v44 = vld [vmem:[#allocation43_spill] sm:$0xff] }
 0x1eb   : > { %20791 = vst [vmem:[#allocation50_spill] sm:$0xff] %v15024_v36  ;;  %20792 = vst [vmem:[#allocation34_spill] sm:$0xff] %v15026_v1  ;;  %v1149_v30 = vsel %vm20797_vm0, %v20796_v3, %v20794_v20  ;;  %v989_v36 = vmul.f32 %v14236_v2, %v982_v60  ;;  %v990_v1 = vmul.f32 %v14236_v2, %v981_v40  ;;  %v20805_v20 = vstv %s14107_s21  ;;  %s477_s21 = scalar_lea.vmem [#allocation13], %s13701_s27  ;;  %s21953_s27 = sand.u32 1, %s13295_s16  }
 0x1ec   : > { %20798 = vst [vmem:[#allocation52_spill] sm:$0xff] %v15040_v38  ;;  %vm20800_vm2 = vmmov %vm20797_vm0  ;;  %v15058_v8 = vmul.f32 %v13061_v51, %v20805_v20  ;;  %v1063_v60 = vmul.f32 %v14221_v57, %v1056_v9  ;;  %v1064_v40 = vmul.f32 %v14221_v57, %v1055_v42  ;;  %vm20806_vm0 = vcmp.le.s32.totalorder %v14767_v41, 15  ;;  %v20809_v20 = vld [vmem:[#allocation67_spill] sm:$0xff]  ;;  %v20810_v9 = vld [vmem:[#allocation68_spill] sm:$0xff] }
 0x1ed   : > { %v1114_v34 = vsel %vm20800_vm2, %v20788_v47, %v20799_v31  ;;  %vm15052_vm11 = vmand %vm20802_vm9, %vm20801_vm7  ;;  %v1156_v31 = vmul.f32 %v14242_v62, %v1149_v30  ;;  %v1157_v51 = vmul.f32 %v14242_v62, %v1148_v27  ;;  %vm20811_vm9 = vcmp.lt.s32.totalorder %v13883_v22, 15  ;;  %v20820_v57 = vld [vmem:[#allocation64_spill] sm:$0xff] }
 0x1ee   : > { %vm15067_vm2 = vmand %vm14864_vm1, %vm20806_vm0  ;;  %v1241_v42 = vsel %vm20811_vm9, %v20810_v9, %v20809_v20  ;;  %v15090_v30 = vpop.permute.xlu1 %1541  ;;  %v15092_v27 = vpop.permute.xlu0 %1539  ;;  %v1123_v62 = vmul.f32 %v14239_v61, %v1114_v34  ;;  %v1071_v61 = vadd.f32 %v1063_v60, %v989_v36 }
 0x1ef   : > { %vm20813_vm7 = vmmov %vm20811_vm9  ;;  %20816 = vst [vmem:[#allocation33_spill] sm:$0xff] %v15090_v30 }
 0x1f0   : > { %v1242_v25 = vsel %vm20813_vm7, %v20812_v44, %v20810_v9  ;;  %vm15086_vm1 = vmand %vm14880_vm14, %vm20271_vm8  ;;  %v520_v44 = vadd.s32 4294967295, %v15040_v38  ;;  %v1250_v38 = vmul.f32 %v14294_v15, %v1241_v42  ;;  %v1165_v12 = vadd.f32 %v1157_v51, %v1123_v62 }
 0x1f1   : > { %vm15097_vm0 = vmand %vm788_vm5, %vm796_vm10  ;;  %vm20823_vm5 = vcmp.lt.s32.totalorder %v13883_v22, 1 }
 0x1f2   : > { %vm20821_vm14 = vmmov %vm20813_vm7  ;;  %v1334_v34 = vsel %vm20823_vm5, %v14456_v26, %v14454_v49  ;;  %v20829_v49 = vld [vmem:[#allocation98_spill] sm:$0xff]  ;;  %v15148_v42 = vpop.permute.xlu0 %1574 }
 0x1f3   : > { %v1207_v2 = vsel %vm20821_vm14, %v20820_v57, %v20819_v32  ;;  %vm20822_vm9 = vmmov %vm20813_vm7 }
 0x1f4   : > { %v1208_v46 = vsel %vm20822_vm9, %v13980_v45, %v20820_v57  ;;  %vm20824_vm10 = vmmov %vm20823_vm5  ;;  %v1072_v45 = vadd.f32 %v1064_v40, %v990_v1  ;;  %v1249_v57 = vmul.f32 %v14294_v15, %v1242_v25  ;;  %v20832_v1 = vld [vmem:[#allocation46_spill] sm:$0xff]  ;;  %v15146_v40 = vpop.permute.xlu1 %1576  ;;  %v1216_v13 = vmul.f32 %v14291_v19, %v1207_v2 }
 0x1f5   : > { %v1335_v9 = vsel %vm20824_vm10, %v14012_v53, %v14456_v26  ;;  %vm15124_vm7 = vmand %vm14885_vm3, %vm20207_vm15  ;;  %v1164_v26 = vadd.f32 %v1156_v31, %v1122_v4  ;;  %20834 = vst [vmem:[#allocation54_spill] sm:$0xff] %v15146_v40  ;;  %v1215_v31 = vmul.f32 %v14291_v19, %v1208_v46  ;;  %vm20840_vm10 = vcmp.le.s32.totalorder %v14769_v29, 15 }
 0x1f6   : > { %vm15134_vm14 = vmand %vm789_vm6, %vm797_vm13  ;;  %vm20835_vm6 = vcmp.ge.s32.totalorder %v14731_v11, 0  ;;  %v1342_v4 = vmul.f32 %v14319_v0, %v1335_v9  ;;  %v15178_v2 = vand.u32 15, %v505_v54  ;;  %vm536_vm15 = vcmp.le.s32.totalorder %v520_v44, 15  ;;  %v15216_v3 = vpop.permute.xlu0 %1287  ;;  %v20968_v11 = vld [vmem:[#allocation130_spill] sm:$0xff] }
 0x1f7   : > { %vm20831_vm3 = vmmov %vm20823_vm5  ;;  %v20844_v25 = vand.u32 15, %v14935_v59  ;;  %v1257_v46 = vadd.f32 %v1249_v57, %v1215_v31  ;;  %v15197_v54 = vsel %vm15052_vm11, 1.0, %v20645_v28  ;;  %v15212_v57 = vsel %vm15124_vm7, 1.0, %v20645_v28 }
 0x1f8   : > { %v1300_v36 = vsel %vm20831_vm3, %v20830_v48, %v20829_v49  ;;  %vm20833_vm9 = vmmov %vm20831_vm3  ;;  %vm20841_vm3 = vcmp.ge.s32.totalorder %v14769_v29, 0  ;;  %20849 = vst [vmem:[#allocation56_spill] sm:$0xff] %v15197_v54  ;;  %vm20853_vm11 = vcmp.ge.s32.totalorder %v14849_v35, 0  ;;  %v1172_v17 = vmul.f32 %v14911_v43, %v1164_v26 }
 0x1f9   : > { %v1301_v60 = vsel %vm20833_vm9, %v20832_v1, %v20830_v48  ;;  %vm15154_vm13 = vmand %vm15097_vm0, %vm20835_vm6  ;;  %v1343_v48 = vmul.f32 %v14319_v0, %v1334_v34  ;;  %vm528_vm6 = vcmp.ge.s32.totalorder %v520_v44, 0  ;;  %v15182_v9 = vadd.s32 4294967295, %v20844_v25  ;;  %20852 = vst [vmem:[#allocation43_spill] sm:$0xff] %v15212_v57 }
 0x1fa   : > { %vm15166_vm5 = vmand %vm710_vm4, %vm718_vm12  ;;  %v1258_v34 = vadd.f32 %v1250_v38, %v1216_v13  ;;  %v1308_v1 = vmul.f32 %v14313_v21, %v1301_v60  ;;  %v1309_v0 = vmul.f32 %v14313_v21, %v1300_v36  ;;  %vm20846_vm4 = vcmp.ge.s32.totalorder %v14733_v63, 0  ;;  %v15214_v36 = vpop.permute.xlu1 %1289 }
 0x1fb   : > { %vm15174_vm9 = vmand %vm20841_vm3, %vm20840_vm10  ;;  %20845 = vst [vmem:[#allocation36_spill] sm:$0xff] %v15182_v9  ;;  %v15202_v38 = vsel %vm15067_vm2, 1.0, %v20645_v28  ;;  %v15207_v63 = vsel %vm15086_vm1, 1.0, %v20645_v28  ;;  %v1173_v60 = vmul.f32 %v14940_v39, %v1165_v12  ;;  %vm20856_vm1 = vcmp.ge.s32.totalorder %v14862_v16, 0 }
 0x1fc   : > { %vm15190_vm12 = vmand %vm15134_vm14, %vm20846_vm4  ;;  %20850 = vst [vmem:[#allocation38_spill] sm:$0xff] %v15202_v38  ;;  %v1350_v31 = vadd.f32 %v1342_v4, %v1308_v1  ;;  %v1351_v32 = vadd.f32 %v1343_v48, %v1309_v0  ;;  %v15235_v13 = vsel %vm15154_vm13, 1.0, %v20645_v28  ;;  %v521_v25 = vadd.s32 4294967295, %v15178_v2 }
 0x1fd   : > { %20851 = vst [vmem:[#allocation68_spill] sm:$0xff] %v15207_v63  ;;  %vm15222_vm2 = vmand %vm15166_vm5, %vm20853_vm11  ;;  %vm20261_vm3 = vcmp.ge.s32.totalorder %v15182_v9, 0  ;;  %v15246_v0 = vadd.f32 %v11578_v56, %v15058_v8  ;;  %v1079_v12 = vmul.f32 %v14901_v14, %v1071_v61  ;;  %v1080_v4 = vmul.f32 %v14906_v5, %v1072_v45 }
 0x1fe   : > { %vm735_vm7 = vmand %vm15174_vm9, %vm20856_vm1  ;;  %20857 = vst [vmem:[#allocation64_spill] sm:$0xff] %v15235_v13  ;;  %v1265_v62 = vmul.f32 %v14945_v58, %v1257_v46  ;;  %v1266_v48 = vmul.f32 %v14950_v18, %v1258_v34  ;;  %vm20861_vm13 = vcmp.le.s32.totalorder %v14745_v6, 15  ;;  %v15263_v8 = vsel %vm15190_vm12, 1.0, %v20645_v28  ;;  %v15265_v61 = vpop.permute.xlu1 %1324  ;;  %v15286_v18 = vpop.permute.xlu0 %1322 }
 0x1ff   : > { %vm15240_vm10 = vmand %vm528_vm6, %vm536_vm15  ;;  %20860 = vst [vmem:[#allocation98_spill] sm:$0xff] %v15246_v0  ;;  %v15270_v56 = vsel %vm15222_vm2, 1.0, %v20645_v28  ;;  %v15273_v6 = vsel %vm735_vm7, 1.0, %v20645_v28  ;;  %v497_v45 = vand.u32 15, %v15038_v33  ;;  %vm20868_vm6 = vcmp.le.s32.totalorder %v14767_v41, 15 }
 0x200   : > { %vm15256_vm15 = vmand %vm15097_vm0, %vm20861_vm13  ;;  %20864 = vst [vmem:[#allocation99_spill] sm:$0xff] %v15263_v8  ;;  %v1180_v46 = vadd.f32 %v1172_v17, %v1079_v12  ;;  %v1181_v34 = vadd.f32 %v1173_v60, %v1080_v4  ;;  %v1358_v1 = vmul.f32 %v14958_v52, %v1350_v31  ;;  %v1359_v47 = vmul.f32 %v14963_v7, %v1351_v32  ;;  %v20889_v52 = vld [vmem:[#allocation57_spill] sm:$0xff] }
 0x201   : > { %20865 = vst [vmem:[#allocation46_spill] sm:$0xff] %v15265_v61  ;;  %20866 = vst [vmem:[#allocation143_spill] sm:$0xff] %v15270_v56  ;;  %v15295_v41 = vsel %vm15097_vm0, 1.0, %v20645_v28  ;;  %v15300_v17 = vsel %vm15134_vm14, 1.0, %v20645_v28  ;;  %vm529_vm11 = vcmp.ge.s32.totalorder %v521_v25, 0  ;;  %vm537_vm2 = vcmp.le.s32.totalorder %v521_v25, 15 }
 0x202   : > { %20867 = vst [vmem:[#allocation144_spill] sm:$0xff] %v15273_v6  ;;  %vm15280_vm4 = vmand %vm15134_vm14, %vm20868_vm6  ;;  %v1273_v60 = vadd.f32 %v1265_v62, %v1180_v46  ;;  %v1274_v31 = vadd.f32 %v1266_v48, %v1181_v34  ;;  %v15306_v4 = vpop.permute.xlu1 %1634  ;;  %v15311_v20 = vsel %vm15256_vm15, 1.0, %v20645_v28  ;;  %v15313_v53 = vadd.s32 4294967295, %v497_v45  ;;  %v1633_v12 = vpop.permute.xlu0 %1632  ;;  %v20886_v25 = vld [vmem:[#allocation123_spill] sm:$0xff]  ;;  %v20926_v56 = vld [vmem:[#allocation102_spill] sm:$0xff] }
 0x203   : > { %vm584_vm12 = vmand %vm15240_vm10, %vm20261_vm3  ;;  %20871 = vst [vmem:[#allocation145_spill] sm:$0xff] %v15295_v41  ;;  %v15321_v62 = vsel %vm15280_vm4, 1.0, %v20645_v28  ;;  %vm20877_vm0 = vcmp.lt.s32.totalorder %v13883_v22, 127  ;;  %v15340_v19 = vsel %vm15240_vm10, 1.0, %v20645_v28  ;;  %v15362_v39 = vadd.s32 1, %v14748_v37  ;;  %v20896_v37 = vld [vmem:[#allocation112_spill] sm:$0xff] }
 0x204   : > { %20872 = vst [vmem:[#allocation146_spill] sm:$0xff] %v15300_v17  ;;  %20873 = vst [vmem:[#allocation147_spill] sm:$0xff] %v15306_v4  ;;  %v15316_v7 = vsel %vm584_vm12, 1.0, %v20645_v28  ;;  %v1366_v48 = vadd.f32 %v1358_v1, %v1273_v60  ;;  %v1367_v46 = vadd.f32 %v1359_v47, %v1274_v31  ;;  %v1494_v34 = vsel %vm20877_vm0, %v14923_v23, %v14921_v24  ;;  %v20887_v60 = vld [vmem:[#allocation124_spill] sm:$0xff] }
 0x205   : > { %20874 = vst [vmem:[#allocation148_spill] sm:$0xff] %v15311_v20  ;;  %20875 = vst [vmem:[#allocation149_spill] sm:$0xff] %v15316_v7  ;;  %v20883_v47 = vand.u32 15, %v14935_v59  ;;  %v15365_v43 = vadd.s32 1, %v14769_v29  ;;  %vm20892_vm15 = vcmp.lt.s32.totalorder %v13883_v22, 113  ;;  %v20893_v7 = vld [vmem:[#allocation77_spill] sm:$0xff] }
 0x206   : > { %20876 = vst [vmem:[#allocation150_spill] sm:$0xff] %v15321_v62  ;;  %vm20878_vm14 = vmmov %vm20877_vm0  ;;  %v1587_v14 = vsel %vm20892_vm15, %v15148_v42, %v15146_v40  ;;  %vm20898_vm4 = vcmp.lt.s32.totalorder %v13883_v22, 17  ;;  %v1668_v59 = vpop.permute.xlu0 %1667 }
 0x207   : > { %v1495_v44 = vsel %vm20878_vm14, %v14073_v10, %v14923_v23  ;;  %vm15333_vm1 = vmand %vm529_vm11, %vm537_vm2  ;;  %20881 = vst [vmem:[#allocation151_spill] sm:$0xff] %v15340_v19  ;;  %v15349_v10 = vadd.s32 1, %v20883_v47  ;;  %v15351_v23 = vadd.s32 1, %v497_v45  ;;  %v20891_v47 = vld [vmem:[#allocation93_spill] sm:$0xff]  ;;  %v20900_v19 = vld [vmem:[#allocation32_spill] sm:$0xff]  ;;  %vm20910_vm2 = vcmp.lt.s32.totalorder %v13883_v22, 112 }
 0x208   : > { %v15345_v1 = vsel %vm15333_vm1, 1.0, %v20645_v28  ;;  %vm20888_vm7 = vmmov %vm20877_vm0  ;;  %v1503_v5 = vmul.f32 %v20891_v47, %v1495_v44  ;;  %v1504_v45 = vmul.f32 %v20891_v47, %v1494_v34  ;;  %v20899_v44 = vld [vmem:[#allocation81_spill] sm:$0xff] }
 0x209   : > { %20882 = vst [vmem:[#allocation152_spill] sm:$0xff] %v15345_v1  ;;  %20884 = vst [vmem:[#allocation153_spill] sm:$0xff] %v15349_v10  ;;  %v1460_v31 = vsel %vm20888_vm7, %v20887_v60, %v20886_v25  ;;  %v20897_v1 = vld [vmem:[#allocation49_spill] sm:$0xff]  ;;  %v20901_v34 = vrot.slane %v20899_v44, %v20900_v19  ;;  %vm20270_vm7 = vcmp.ge.s32.totalorder %v15313_v53, 0 }
 0x20a   : > { %20885 = vst [vmem:[#allocation154_spill] sm:$0xff] %v15351_v23  ;;  %vm20890_vm13 = vmmov %vm20877_vm0  ;;  %v980_v29 = vsel %vm20898_vm4, %v20897_v1, %v20896_v37  ;;  %v20902_v25 = vld [vmem:[#allocation29_spill] sm:$0xff] }
 0x20b   : > { %v1461_v58 = vsel %vm20890_vm13, %v20889_v52, %v20887_v60  ;;  %vm20894_vm6 = vmmov %vm20892_vm15  ;;  %v15377_v60 = vpop.permute.xlu1 %1669  ;;  %v15386_v47 = vadd.f32 %v20901_v34, %v1366_v48  ;;  %v20903_v40 = vrot.slane %v20899_v44, %v20902_v25  ;;  %v20907_v48 = vld [vmem:[#allocation70_spill] sm:$0xff]  ;;  %v20909_v44 = vld [vmem:[#allocation97_spill] sm:$0xff] }
 0x20c   : > { %v1588_v52 = vsel %vm20894_vm6, %v20893_v7, %v15148_v42  ;;  %20895 = vst [vmem:[#allocation124_spill] sm:$0xff] %v15377_v60  ;;  %v20905_v42 = vld [vmem:[#allocation92_spill] sm:$0xff]  ;;  %vm20906_vm12 = vmmov %vm20894_vm6  ;;  %v20911_v7 = vld [vmem:[#allocation78_spill] sm:$0xff] }
 0x20d   : > { %v15391_v24 = vadd.f32 %v20903_v40, %v1367_v46  ;;  %v1469_v50 = vmul.f32 %v20905_v42, %v1461_v58  ;;  %v1470_v0 = vmul.f32 %v20905_v42, %v1460_v31  ;;  %v1553_v1 = vsel %vm20906_vm12, %v15092_v27, %v15090_v30  ;;  %vm20908_vm11 = vmmov %vm20894_vm6  ;;  %v20913_v42 = vld [vmem:[#allocation31_spill] sm:$0xff]  ;;  %v20915_v25 = vld [vmem:[#allocation73_spill] sm:$0xff] }
 0x20e   : > { %v1554_v34 = vsel %vm20908_vm11, %v20907_v48, %v15092_v27  ;;  %v1596_v40 = vmul.f32 %v20909_v44, %v1588_v52  ;;  %v1597_v46 = vmul.f32 %v20909_v44, %v1587_v14  ;;  %v1680_v58 = vsel %vm20910_vm2, %v1668_v59, %v15377_v60  ;;  %vm20912_vm0 = vmmov %vm20910_vm2  ;;  %v20917_v14 = vld [vmem:[#allocation96_spill] sm:$0xff] }
 0x20f   : > { %v1681_v31 = vsel %vm20912_vm0, %v20911_v7, %v1668_v59  ;;  %vm20914_vm14 = vmmov %vm20898_vm4  ;;  %v15417_v19 = vmul.f32 %v20915_v25, %v980_v29  ;;  %v1511_v27 = vadd.f32 %v1503_v5, %v1469_v50  ;;  %v1512_v52 = vadd.f32 %v1504_v45, %v1470_v0  ;;  %v15419_v48 = vpop.permute.xlu1 %1727  ;;  %v20919_v7 = vld [vmem:[#allocation101_spill] sm:$0xff]  ;;  %v1726_v29 = vpop.permute.xlu0 %1725  ;;  %v20922_v5 = vld [vmem:[#allocation115_spill] sm:$0xff] }
 0x210   : > { %v979_v30 = vsel %vm20914_vm14, %v20896_v37, %v20913_v42  ;;  %20916 = vst [vmem:[#allocation57_spill] sm:$0xff] %v15419_v48  ;;  %v1562_v60 = vmul.f32 %v20917_v14, %v1554_v34  ;;  %v1563_v44 = vmul.f32 %v20917_v14, %v1553_v1  ;;  %vm20918_vm13 = vmmov %vm20912_vm0  ;;  %v20921_v42 = vld [vmem:[#allocation114_spill] sm:$0xff]  ;;  %v20924_v0 = vld [vmem:[#allocation51_spill] sm:$0xff]  ;;  %vm672_vm12 = vcmp.le.s32.totalorder %v15349_v10, 15 }
 0x211   : > { %v1646_v59 = vsel %vm20918_vm13, %v1633_v12, %v15306_v4  ;;  %vm20920_vm15 = vmmov %vm20912_vm0  ;;  %v1054_v45 = vsel %vm20898_vm4, %v20924_v0, %v20922_v5  ;;  %v20925_v1 = vld [vmem:[#allocation103_spill] sm:$0xff]  ;;  %v15441_v4 = vmul.f32 %v20915_v25, %v979_v30  ;;  %vm20927_vm11 = vcmp.lt.s32.totalorder %v13883_v22, 111 }
 0x212   : > { %v1647_v37 = vsel %vm20920_vm15, %v20919_v7, %v1633_v12  ;;  %vm20923_vm6 = vmmov %vm20898_vm4  ;;  %v1689_v34 = vmul.f32 %v20925_v1, %v1681_v31  ;;  %v1690_v14 = vmul.f32 %v20925_v1, %v1680_v58  ;;  %v1604_v6 = vadd.f32 %v1596_v40, %v1562_v60  ;;  %v20928_v31 = vld [vmem:[#allocation106_spill] sm:$0xff]  ;;  %v20931_v60 = vld [vmem:[#allocation72_spill] sm:$0xff] }
 0x213   : > { %v1053_v50 = vsel %vm20923_vm6, %v20922_v5, %v20921_v42  ;;  %v1605_v12 = vadd.f32 %v1597_v46, %v1563_v44  ;;  %v1655_v42 = vmul.f32 %v20926_v56, %v1647_v37  ;;  %v1656_v9 = vmul.f32 %v20926_v56, %v1646_v59  ;;  %vm20929_vm2 = vmmov %vm20927_vm11  ;;  %v15453_v30 = vpop.permute.xlu1 %1762  ;;  %v1761_v37 = vpop.permute.xlu0 %1760 }
 0x214   : > { %v1739_v5 = vsel %vm20927_vm11, %v1726_v29, %v15419_v48  ;;  %v1740_v58 = vsel %vm20929_vm2, %v20928_v31, %v1726_v29  ;;  %20930 = vst [vmem:[#allocation77_spill] sm:$0xff] %v15453_v30  ;;  %vm790_vm0 = vcmp.ge.s32.totalorder %v15362_v39, 0  ;;  %vm798_vm14 = vcmp.le.s32.totalorder %v15362_v39, 15  ;;  %vm20932_vm6 = vmmov %vm20929_vm2  ;;  %v21053_v39 = vld [vmem:[#allocation41_spill] sm:$0xff] }
 0x215   : > { %v15458_v44 = vmul.f32 %v20931_v60, %v1054_v45  ;;  %v15461_v40 = vmul.f32 %v20931_v60, %v1053_v50  ;;  %v1519_v46 = vmul.f32 %v15197_v54, %v1511_v27  ;;  %v1520_v59 = vmul.f32 %v15202_v38, %v1512_v52  ;;  %v20933_v45 = vld [vmem:[#allocation108_spill] sm:$0xff]  ;;  %vm20934_vm4 = vmmov %vm20929_vm2  ;;  %v20935_v27 = vld [vmem:[#allocation65_spill] sm:$0xff] }
 0x216   : > { %vm791_vm13 = vcmp.ge.s32.totalorder %v15365_v43, 0  ;;  %vm799_vm15 = vcmp.le.s32.totalorder %v15365_v43, 15  ;;  %v1697_v29 = vadd.f32 %v1689_v34, %v1655_v42  ;;  %v1698_v0 = vadd.f32 %v1690_v14, %v1656_v9  ;;  %v20936_v38 = vld [vmem:[#allocation107_spill] sm:$0xff]  ;;  %v20937_v42 = vld [vmem:[#allocation121_spill] sm:$0xff]  ;;  %v20938_v9 = vld [vmem:[#allocation122_spill] sm:$0xff] }
 0x217   : > { %v1773_v31 = vsel %vm20932_vm6, %v1761_v37, %v15453_v30  ;;  %v1774_v50 = vsel %vm20934_vm4, %v20933_v45, %v1761_v37  ;;  %v1748_v7 = vmul.f32 %v20935_v27, %v1740_v58  ;;  %v1749_v52 = vmul.f32 %v20935_v27, %v1739_v5  ;;  %v20940_v34 = vld [vmem:[#allocation55_spill] sm:$0xff]  ;;  %v15488_v30 = vpop.permute.xlu1 %1047  ;;  %v20942_v5 = vld [vmem:[#allocation118_spill] sm:$0xff]  ;;  %v15498_v25 = vpop.permute.xlu0 %972 }
 0x218   : > { %v1782_v54 = vmul.f32 %v20936_v38, %v1774_v50  ;;  %v1783_v48 = vmul.f32 %v20936_v38, %v1773_v31  ;;  %vm20939_vm2 = vcmp.lt.s32.totalorder %v13883_v22, 16  ;;  %v1612_v45 = vmul.f32 %v15235_v13, %v1604_v6  ;;  %v20943_v50 = vld [vmem:[#allocation119_spill] sm:$0xff]  ;;  %v20945_v38 = vld [vmem:[#allocation53_spill] sm:$0xff] }
 0x219   : > { %v1146_v14 = vsel %vm20939_vm2, %v20938_v9, %v20937_v42  ;;  %vm20941_vm6 = vmmov %vm20939_vm2  ;;  %v1613_v58 = vmul.f32 %v15263_v8, %v1605_v12  ;;  %v1113_v27 = vsel %vm20939_vm2, %v20945_v38, %v20943_v50  ;;  %v1527_v6 = vadd.f32 %v1519_v46, %v15386_v47  ;;  %v20951_v47 = vld [vmem:[#allocation67_spill] sm:$0xff] }
 0x21a   : > { %v1147_v37 = vsel %vm20941_vm6, %v20940_v34, %v20938_v9  ;;  %vm20944_vm4 = vmmov %vm20939_vm2  ;;  %v1790_v56 = vadd.f32 %v1782_v54, %v1748_v7  ;;  %v1791_v1 = vadd.f32 %v1783_v48, %v1749_v52  ;;  %v20946_v9 = vld [vmem:[#allocation52_spill] sm:$0xff]  ;;  %v1528_v12 = vadd.f32 %v1520_v59, %v15391_v24  ;;  %v20947_v54 = vld [vmem:[#allocation75_spill] sm:$0xff] }
 0x21b   : > { %v1112_v31 = vsel %vm20944_vm4, %v20943_v50, %v20942_v5  ;;  %v1705_v34 = vmul.f32 %v15295_v41, %v1697_v29  ;;  %v1706_v8 = vmul.f32 %v15300_v17, %v1698_v0  ;;  %v1158_v38 = vmul.f32 %v20947_v54, %v1147_v37  ;;  %v20948_v7 = vld [vmem:[#allocation50_spill] sm:$0xff]  ;;  %vm15522_vm4 = vmand %vm15333_vm1, %vm20270_vm7  ;;  %v15534_v17 = vpop.permute.xlu1 %1140  ;;  %v20960_v41 = vld [vmem:[#allocation129_spill] sm:$0xff] }
 0x21c   : > { %v1159_v48 = vmul.f32 %v20947_v54, %v1146_v14  ;;  %v20949_v52 = vld [vmem:[#allocation34_spill] sm:$0xff]  ;;  %vm20950_vm6 = vcmp.lt.s32.totalorder %v13883_v22, 15  ;;  %v20956_v29 = vshra.s32 %v20904_v55, 8  ;;  %v20957_v0 = vmov 0 }
 0x21d   : > { %v1239_v50 = vsel %vm20950_vm6, %v20949_v52, %v20948_v7  ;;  %vm20952_vm3 = vmmov %vm20950_vm6  ;;  %v20955_v59 = vld [vmem:[#allocation26_spill] sm:$0xff]  ;;  %v1620_v14 = vadd.f32 %v1612_v45, %v1527_v6  ;;  %v1798_v37 = vmul.f32 %v15311_v20, %v1790_v56  ;;  %v20964_v45 = vld [vmem:[#allocation141_spill] sm:$0xff]  ;;  %vm20972_vm11 = vcmp.lt.s32.totalorder %v13883_v22, 1 }
 0x21e   : > { %v1240_v24 = vsel %vm20952_vm3, %v20951_v47, %v20949_v52  ;;  %vm15529_vm2 = vcmp.eq.s32.totalorder %v20956_v29, %v20955_v59  ;;  %v1621_v52 = vadd.f32 %v1613_v58, %v1528_v12  ;;  %v1799_v47 = vmul.f32 %v15321_v62, %v1791_v1  ;;  %vm15541_vm3 = vmand %vm15166_vm5, %vm20271_vm8  ;;  %v20963_v55 = vld [vmem:[#allocation74_spill] sm:$0xff]  ;;  %v20966_v58 = vld [vmem:[#allocation63_spill] sm:$0xff]  ;;  %v15555_v12 = vpop.permute.xlu0 %1105 }
 0x21f   : > { %v20958_v0 = vsel %vm15529_vm2, 4294967295, %v20957_v0  ;;  %v1124_v29 = vmul.f32 %v20963_v55, %v1113_v27  ;;  %v1125_v7 = vmul.f32 %v20963_v55, %v1112_v31  ;;  %v20965_v6 = vld [vmem:[#allocation142_spill] sm:$0xff]  ;;  %vm20967_vm7 = vmmov %vm20950_vm6  ;;  %vm20969_vm5 = vcmp.le.s32.totalorder %v20968_v11, 15  ;;  %v20973_v62 = vld [vmem:[#allocation100_spill] sm:$0xff] }
 0x220   : > { %20959 = vst [vmem:[#allocation112_spill] sm:$0xff] %v20958_v0  ;;  %v1205_v56 = vsel %vm20950_vm6, %v20965_v6, %v20964_v45  ;;  %v1206_v1 = vsel %vm20967_vm7, %v20966_v58, %v20965_v6  ;;  %vm15561_vm8 = vmand %vm15174_vm9, %vm20969_vm5  ;;  %v1332_v31 = vsel %vm20972_vm11, %v15286_v18, %v15265_v61  ;;  %v1713_v58 = vadd.f32 %v1705_v34, %v1620_v14  ;;  %v21018_v27 = vld [vmem:[#allocation36_spill] sm:$0xff] }
 0x221   : > { %vm20974_vm6 = vmmov %vm20972_vm11  ;;  %v1714_v20 = vadd.f32 %v1706_v8, %v1621_v52  ;;  %v1166_v45 = vadd.f32 %v1158_v38, %v1124_v29  ;;  %v1167_v60 = vadd.f32 %v1159_v48, %v1125_v7  ;;  %v1251_v55 = vmul.f32 %v14294_v15, %v1240_v24  ;;  %v20983_v48 = vld [vmem:[#allocation84_spill] sm:$0xff]  ;;  %v20984_v24 = vld [vmem:[#allocation87_spill] sm:$0xff] }
 0x222   : > { %v1333_v6 = vsel %vm20974_vm6, %v20973_v62, %v15286_v18  ;;  %vm15577_vm9 = vmand %vm15240_vm10, %vm672_vm12  ;;  %v1252_v61 = vmul.f32 %v14294_v15, %v1239_v50  ;;  %v15599_v62 = vpop.permute.xlu1 %1452  ;;  %v1806_v38 = vadd.f32 %v1798_v37, %v1713_v58  ;;  %v1217_v7 = vmul.f32 %v20983_v48, %v1206_v1  ;;  %v20988_v52 = vld [vmem:[#allocation69_spill] sm:$0xff]  ;;  %v21075_v0 = vld [vmem:[#allocation72_spill] sm:$0xff] }
 0x223   : > { %vm15587_vm7 = vmand %vm790_vm0, %vm798_vm14  ;;  %v1807_v34 = vadd.f32 %v1799_v47, %v1714_v20  ;;  %v1218_v50 = vmul.f32 %v20983_v48, %v1205_v56  ;;  %v1344_v14 = vmul.f32 %v20984_v24, %v1333_v6  ;;  %vm20985_vm14 = vcmp.le.s32.totalorder %v15351_v23, 15  ;;  %v21006_v6 = vld [vmem:[#allocation139_spill] sm:$0xff] }
 0x224   : > { %vm20979_vm10 = vmmov %vm20974_vm6  ;;  %v1073_v20 = vadd.f32 %v15458_v44, %v15417_v19  ;;  %v1074_v37 = vadd.f32 %v15461_v40, %v15441_v4  ;;  %v15631_v29 = vadd.f32 %v20988_v52, %v1806_v38  ;;  %v1259_v56 = vadd.f32 %v1251_v55, %v1217_v7 }
 0x225   : > { %v1298_v26 = vsel %vm20979_vm10, %v15216_v3, %v15214_v36  ;;  %vm20980_vm11 = vmmov %vm20974_vm6  ;;  %v15628_v47 = vadd.f32 %v20988_v52, %v1807_v34  ;;  %v1260_v1 = vadd.f32 %v1252_v61, %v1218_v50  ;;  %vm20998_vm10 = vcmp.le.s32.totalorder %v20946_v9, 15  ;;  %v21012_v50 = vld [vmem:[#allocation137_spill] sm:$0xff] }
 0x226   : > { %v1299_v8 = vsel %vm20980_vm11, %v20829_v49, %v15216_v3  ;;  %vm15605_vm0 = vmand %vm791_vm13, %vm799_vm15  ;;  %v1345_v49 = vmul.f32 %v20984_v24, %v1332_v31  ;;  %v15613_v3 = vpop.permute.xlu0 %1450  ;;  %20990 = vst [vmem:[#allocation81_spill] sm:$0xff] %v15631_v29  ;;  %vm20991_vm13 = vcmp.ge.s32.totalorder %v14849_v35, 0  ;;  %v1311_v4 = vmul.f32 %v14313_v21, %v1298_v26  ;;  %v21007_v26 = vld [vmem:[#allocation140_spill] sm:$0xff] }
 0x227   : > { %vm15619_vm5 = vmand %vm15333_vm1, %vm20985_vm14  ;;  %20989 = vst [vmem:[#allocation49_spill] sm:$0xff] %v15628_v47  ;;  %v1310_v19 = vmul.f32 %v14313_v21, %v1299_v8  ;;  %vm20994_vm15 = vcmp.ge.s32.totalorder %v14862_v16, 0  ;;  %v15654_v35 = vsel %vm15522_vm4, 1.0, %v20645_v28  ;;  %1956 = vmatprep.mubr.f32.mxu0 %v15628_v47  ;;  %v2105_v61 = vmul.f32 %v15628_v47, %v15628_v47  ;;  %v15661_v16 = vpop.permute.xlu1 %1487 }
 0x228   : > { %vm15637_vm1 = vmand %vm15587_vm7, %vm20991_vm13  ;;  %20997 = vst [vmem:[#allocation111_spill] sm:$0xff] %v15654_v35  ;;  %v2104_v40 = vmul.f32 %v15631_v29, %v15631_v29  ;;  %vm20999_vm11 = vcmp.ge.s32.totalorder %v20946_v9, 0  ;;  %v21002_v46 = vshra.s32 %v15038_v33, 8  ;;  %v21003_v31 = vmov 0  ;;  %1957 = vmatmul.mubr.f32.vlgmr.msra.gmra.mrb[0].mxu0 %v15631_v29  ;;  %v21077_v33 = vld [vmem:[#allocation27_spill] sm:$0xff] }
 0x229   : > { %vm15647_vm6 = vmand %vm15605_vm0, %vm20994_vm15  ;;  %v1174_v58 = vmul.f32 %v21006_v6, %v1166_v45  ;;  %v1175_v8 = vmul.f32 %v21007_v26, %v1167_v60  ;;  %v1352_v34 = vadd.f32 %v1344_v14, %v1310_v19  ;;  %v1353_v38 = vadd.f32 %v1345_v49, %v1311_v4  ;;  %2244 = vmatprep.mubr.f32.mxu1 %v2105_v61  ;;  %v21016_v19 = vld [vmem:[#allocation138_spill] sm:$0xff]  ;;  %v21029_v26 = vld [vmem:[#allocation144_spill] sm:$0xff] }
 0x22a   : > { %vm15667_vm14 = vmand %vm20999_vm11, %vm20998_vm10  ;;  %vm15674_vm4 = vcmp.eq.s32.totalorder %v21002_v46, %v20955_v59  ;;  %v15681_v7 = vpop.permute.xlu0 %1485  ;;  %vm21008_vm13 = vcmp.le.s32.totalorder %v15178_v2, 15  ;;  %vm21009_vm15 = vcmp.ge.s32.totalorder %v15178_v2, 0  ;;  %v1081_v46 = vmul.f32 %v21012_v50, %v1073_v20  ;;  %2245 = vmatmul.mubr.f32.vlgmr.msra.gmra.mrb[0].mxu1 %v2104_v40 }
 0x22b   : > { %v21004_v31 = vsel %vm15674_vm4, 4294967295, %v21003_v31  ;;  %vm15687_vm10 = vmand %vm21009_vm15, %vm21008_vm13  ;;  %v15695_v60 = vsel %vm15541_vm3, 1.0, %v20645_v28  ;;  %v15700_v45 = vsel %vm15561_vm8, 1.0, %v20645_v28  ;;  %v784_v14 = vadd.s32 1, %v20946_v9 }
 0x22c   : > { %21005 = vst [vmem:[#allocation70_spill] sm:$0xff] %v21004_v31  ;;  %21013 = vst [vmem:[#allocation78_spill] sm:$0xff] %v15695_v60  ;;  %v21015_v49 = vmov 1.0   ;;  %v1082_v4 = vmul.f32 %v21016_v19, %v1074_v37  ;;  %v1267_v20 = vmul.f32 %v15207_v63, %v1259_v56  ;;  %v1268_v61 = vmul.f32 %v15212_v57, %v1260_v1  ;;  %v15725_v37 = vpop.permute.xlu1 %1233  ;;  %v21028_v63 = vld [vmem:[#allocation143_spill] sm:$0xff] }
 0x22d   : > { %21014 = vst [vmem:[#allocation101_spill] sm:$0xff] %v15700_v45  ;;  %11592 = vmatpush1.xpose.msk.msra.mxu0 %vm15529_vm2, %v21015_v49  ;;  %v15712_v13 = vsel %vm15577_vm9, 1.0, %v20645_v28  ;;  %vm21019_vm8 = vcmp.ge.s32.totalorder %v21018_v27, 0  ;;  %v15730_v51 = vsel %vm15619_vm5, 1.0, %v20645_v28  ;;  %v15735_v56 = vsel %vm15637_vm1, 1.0, %v20645_v28  ;;  %11600 = vmatpush1.xpose.msk.msra.mxu1 %vm15529_vm2, %v21015_v49 }
 0x22e   : > { %21017 = vst [vmem:[#allocation115_spill] sm:$0xff] %v15712_v13  ;;  %vm15718_vm3 = vmand %vm15667_vm14, %vm21019_vm8  ;;  %11593 = vmatprep.subr.msk.mxu0 %vm15674_vm4, %v21015_v49  ;;  %v15740_v1 = vsel %vm15647_vm6, 1.0, %v20645_v28  ;;  %vm21025_vm9 = vcmp.ge.s32.totalorder %v15313_v53, 0  ;;  %v785_v43 = vadd.s32 1, %v15178_v2  ;;  %v1182_v32 = vadd.f32 %v1174_v58, %v1081_v46  ;;  %v1199_v19 = vpop.permute.xlu0 %1198  ;;  %11601 = vmatprep.subr.msk.mxu1 %vm15674_vm4, %v21015_v49 }
 0x22f   : > { %21022 = vst [vmem:[#allocation51_spill] sm:$0xff] %v15730_v51  ;;  %21023 = vst [vmem:[#allocation106_spill] sm:$0xff] %v15735_v56  ;;  %v1183_v57 = vadd.f32 %v1175_v8, %v1082_v4  ;;  %v1360_v44 = vmul.f32 %v21028_v63, %v1352_v34  ;;  %v1361_v6 = vmul.f32 %v21029_v26, %v1353_v38  ;;  %vm21030_vm5 = vcmp.le.s32.totalorder %v20960_v41, 15  ;;  %v21043_v4 = vld [vmem:[#allocation98_spill] sm:$0xff]  ;;  %v21065_v63 = vld [vmem:[#allocation31_spill] sm:$0xff] }
 0x230   : > { %21024 = vst [vmem:[#allocation108_spill] sm:$0xff] %v15740_v1  ;;  %vm15746_vm11 = vmand %vm15687_vm10, %vm21025_vm9  ;;  %v15770_v2 = vsel %vm15587_vm7, 1.0, %v20645_v28  ;;  %v15775_v58 = vsel %vm15605_vm0, 1.0, %v20645_v28  ;;  %vm792_vm13 = vcmp.ge.s32.totalorder %v784_v14, 0  ;;  %vm800_vm15 = vcmp.le.s32.totalorder %v784_v14, 15  ;;  %v15803_v46 = vpop.permute.xlu1 %1545 }
 0x231   : > { %vm15760_vm1 = vmand %vm15587_vm7, %vm21030_vm5  ;;  %21033 = vst [vmem:[#allocation121_spill] sm:$0xff] %v15770_v2  ;;  %v1275_v8 = vadd.f32 %v1267_v20, %v1182_v32  ;;  %v1276_v34 = vadd.f32 %v1268_v61, %v1183_v57  ;;  %v15788_v18 = vsel %vm15718_vm3, 1.0, %v20645_v28  ;;  %v15793_v38 = vsel %vm15746_vm11, 1.0, %v20645_v28 }
 0x232   : > { %21034 = vst [vmem:[#allocation122_spill] sm:$0xff] %v15775_v58  ;;  %vm15781_vm6 = vmand %vm15667_vm14, %vm672_vm12  ;;  %vm21039_vm7 = vcmp.le.s32.totalorder %v15351_v23, 15  ;;  %vm793_vm8 = vcmp.ge.s32.totalorder %v785_v43, 0  ;;  %vm801_vm3 = vcmp.le.s32.totalorder %v785_v43, 15  ;;  %vm21045_vm9 = vcmp.le.s32.totalorder %v20968_v11, 15  ;;  %v1544_v26 = vpop.permute.xlu0 %1543 }
 0x233   : > { %21037 = vst [vmem:[#allocation55_spill] sm:$0xff] %v15788_v18  ;;  %21038 = vst [vmem:[#allocation118_spill] sm:$0xff] %v15793_v38  ;;  %v1368_v40 = vadd.f32 %v1360_v44, %v1275_v8  ;;  %v1369_v32 = vadd.f32 %v1361_v6, %v1276_v34  ;;  %v15820_v20 = vsel %vm15760_vm1, 1.0, %v20645_v28  ;;  %v15825_v9 = vsel %vm15781_vm6, 1.0, %v20645_v28  ;;  %v21056_v44 = vld [vmem:[#allocation42_spill] sm:$0xff]  ;;  %v21059_v8 = vld [vmem:[#allocation39_spill] sm:$0xff] }
 0x234   : > { %vm15799_vm14 = vmand %vm15687_vm10, %vm21039_vm7  ;;  %21048 = vst [vmem:[#allocation119_spill] sm:$0xff] %v15820_v20  ;;  %v21050_v11 = vmov 0 }
 0x235   : > { %vm15813_vm11 = vmand %vm15605_vm0, %vm21045_vm9  ;;  %21049 = vst [vmem:[#allocation53_spill] sm:$0xff] %v15825_v9  ;;  %vm21054_vm0 = vcmp.lt.s32.totalorder %v13883_v22, 16 }
 0x236   : > { %vm15829_vm10 = vmand %vm792_vm13, %vm800_vm15  ;;  %v1144_v6 = vsel %vm21054_vm0, %v15534_v17, %v21053_v39  ;;  %vm21060_vm13 = vcmp.lt.s32.totalorder %v13883_v22, 17  ;;  %v21061_v39 = vld [vmem:[#allocation114_spill] sm:$0xff]  ;;  %v15895_v43 = vsel %vm15813_vm11, 1.0, %v20645_v28  ;;  %v1579_v29 = vpop.permute.xlu0 %1578 }
 0x237   : > { %v21051_v11 = vsel %vm15829_vm10, 4294967295, %v21050_v11  ;;  %vm21055_vm5 = vmmov %vm21054_vm0  ;;  %v1051_v34 = vsel %vm21060_vm13, %v15488_v30, %v21059_v8  ;;  %v15871_v8 = vpop.permute.xlu1 %1580  ;;  %21073 = vst [vmem:[#allocation129_spill] sm:$0xff] %v15895_v43  ;;  %v1161_v55 = vmul.f32 %v20947_v54, %v1144_v6 }
 0x238   : > { %21052 = vst [vmem:[#allocation52_spill] sm:$0xff] %v21051_v11  ;;  %v1145_v50 = vsel %vm21055_vm5, %v20937_v42, %v15534_v17  ;;  %vm21057_vm1 = vmmov %vm21054_vm0  ;;  %v21063_v42 = vld [vmem:[#allocation40_spill] sm:$0xff]  ;;  %vm21070_vm5 = vcmp.ge.s32.totalorder %v21018_v27, 0  ;;  %v1068_v49 = vmul.f32 %v21075_v0, %v1051_v34  ;;  %v21078_v11 = vrot.slane %v21043_v4, %v21077_v33  ;;  %v21092_v33 = vld [vmem:[#allocation141_spill] sm:$0xff] }
 0x239   : > { %v1110_v41 = vsel %vm21057_vm1, %v15555_v12, %v21056_v44  ;;  %vm21058_vm6 = vmmov %vm21054_vm0  ;;  %v1160_v27 = vmul.f32 %v20947_v54, %v1145_v50  ;;  %v21079_v54 = vld [vmem:[#allocation28_spill] sm:$0xff] }
 0x23a   : > { %v1111_v14 = vsel %vm21058_vm6, %v20942_v5, %v15555_v12  ;;  %vm21062_vm15 = vmmov %vm21060_vm13  ;;  %v15908_v10 = vadd.f32 %v21078_v11, %v1368_v40  ;;  %v21080_v6 = vrot.slane %v21043_v4, %v21079_v54  ;;  %v21084_v34 = vld [vmem:[#allocation128_spill] sm:$0xff] }
 0x23b   : > { %v1052_v17 = vsel %vm21062_vm15, %v21061_v39, %v15488_v30  ;;  %vm21064_vm7 = vmmov %vm21060_vm13  ;;  %v15876_v30 = vsel %vm15799_vm14, 1.0, %v20645_v28  ;;  %v21074_v39 = vld [vmem:[#allocation74_spill] sm:$0xff]  ;;  %vm21083_vm14 = vcmp.lt.s32.totalorder %v13883_v22, 127  ;;  %v21086_v11 = vld [vmem:[#allocation44_spill] sm:$0xff] }
 0x23c   : > { %v977_v44 = vsel %vm21064_vm7, %v15498_v25, %v21063_v42  ;;  %vm21066_vm9 = vmmov %vm21064_vm7  ;;  %21069 = vst [vmem:[#allocation75_spill] sm:$0xff] %v15876_v30  ;;  %v1126_v42 = vmul.f32 %v21074_v39, %v1111_v14  ;;  %v1127_v47 = vmul.f32 %v21074_v39, %v1110_v41  ;;  %v1067_v31 = vmul.f32 %v21075_v0, %v1052_v17 }
 0x23d   : > { %v978_v5 = vsel %vm21066_vm9, %v21065_v63, %v15498_v25  ;;  %vm15867_vm0 = vmand %vm793_vm8, %vm801_vm3  ;;  %v15885_v63 = vsel %vm15829_vm10, 1.0, %v20645_v28  ;;  %v15913_v50 = vadd.f32 %v21080_v6, %v1369_v32  ;;  %v1492_v0 = vsel %vm21083_vm14, %v15681_v7, %v15661_v16  ;;  %v21090_v6 = vld [vmem:[#allocation45_spill] sm:$0xff] }
 0x23e   : > { %vm816_vm1 = vmand %vm15829_vm10, %vm21070_vm5  ;;  %21071 = vst [vmem:[#allocation34_spill] sm:$0xff] %v15885_v63  ;;  %v15890_v25 = vsel %vm15867_vm0, 1.0, %v20645_v28  ;;  %v21076_v63 = vld [vmem:[#allocation73_spill] sm:$0xff]  ;;  %vm21087_vm3 = vcmp.lt.s32.totalorder %v13883_v22, 15  ;;  %v1168_v39 = vadd.f32 %v1160_v27, %v1126_v42  ;;  %v1169_v54 = vadd.f32 %v1161_v55, %v1127_v47 }
 0x23f   : > { %21072 = vst [vmem:[#allocation67_spill] sm:$0xff] %v15890_v25  ;;  %v993_v25 = vmul.f32 %v21076_v63, %v978_v5  ;;  %v994_v23 = vmul.f32 %v21076_v63, %v977_v44  ;;  %v15916_v41 = vsel %vm816_vm1, 1.0, %v20645_v28  ;;  %vm21085_vm8 = vmmov %vm21083_vm14  ;;  %v1237_v32 = vsel %vm21087_vm3, %v15725_v37, %v21086_v11  ;;  %v21088_v44 = vld [vmem:[#allocation50_spill] sm:$0xff]  ;;  %v1327_v63 = vpop.permute.xlu1 %1326  ;;  %v21097_v27 = vld [vmem:[#allocation93_spill] sm:$0xff] }
 0x240   : > { %21081 = vst [vmem:[#allocation142_spill] sm:$0xff] %v15916_v41  ;;  %v1493_v40 = vsel %vm21085_vm8, %v21084_v34, %v15681_v7  ;;  %vm21089_vm11 = vmmov %vm21087_vm3  ;;  %v1292_v34 = vpop.permute.xlu0 %1291  ;;  %v1506_v42 = vmul.f32 %v21097_v27, %v1492_v0  ;;  %vm21098_vm9 = vcmp.lt.s32.totalorder %v13883_v22, 113  ;;  %v21115_v28 = vld [vmem:[#allocation96_spill] sm:$0xff] }
 0x241   : > { %v1238_v5 = vsel %vm21089_vm11, %v21088_v44, %v15725_v37  ;;  %vm21091_vm6 = vmmov %vm21087_vm3  ;;  %v1075_v41 = vadd.f32 %v1067_v31, %v993_v25  ;;  %v1076_v52 = vadd.f32 %v1068_v49, %v994_v23  ;;  %v21095_v37 = vld [vmem:[#allocation123_spill] sm:$0xff]  ;;  %v1505_v55 = vmul.f32 %v21097_v27, %v1493_v40  ;;  %v21099_v25 = vld [vmem:[#allocation54_spill] sm:$0xff] }
 0x242   : > { %v1203_v17 = vsel %vm21091_vm6, %v1199_v19, %v21090_v6  ;;  %vm21093_vm13 = vmmov %vm21087_vm3  ;;  %v1253_v44 = vmul.f32 %v14294_v15, %v1238_v5  ;;  %v1585_v49 = vsel %vm21098_vm9, %v1579_v29, %v15871_v8  ;;  %v21101_v40 = vld [vmem:[#allocation151_spill] sm:$0xff]  ;;  %v21102_v6 = vld [vmem:[#allocation152_spill] sm:$0xff] }
 0x243   : > { %v1204_v7 = vsel %vm21093_vm13, %v21092_v33, %v1199_v19  ;;  %vm21094_vm15 = vmmov %vm21085_vm8  ;;  %v1254_v19 = vmul.f32 %v14294_v15, %v1237_v32  ;;  %v1220_v31 = vmul.f32 %v20983_v48, %v1203_v17  ;;  %v15961_v33 = vpop.permute.xlu1 %1638  ;;  %v1176_v0 = vmul.f32 %v21101_v40, %v1168_v39  ;;  %v21105_v17 = vld [vmem:[#allocation33_spill] sm:$0xff]  ;;  %v21109_v39 = vld [vmem:[#allocation46_spill] sm:$0xff] }
 0x244   : > { %v1458_v11 = vsel %vm21094_vm15, %v15613_v3, %v15599_v62  ;;  %vm21096_vm7 = vmmov %vm21085_vm8  ;;  %v1219_v23 = vmul.f32 %v20983_v48, %v1204_v7  ;;  %v1177_v5 = vmul.f32 %v21102_v6, %v1169_v54  ;;  %v1637_v7 = vpop.permute.xlu0 %1636  ;;  %vm21108_vm8 = vcmp.lt.s32.totalorder %v13883_v22, 1  ;;  %v21112_v40 = vld [vmem:[#allocation48_spill] sm:$0xff] }
 0x245   : > { %v1459_v47 = vsel %vm21096_vm7, %v21095_v37, %v15613_v3  ;;  %vm21100_vm5 = vmmov %vm21098_vm9  ;;  %v21103_v37 = vld [vmem:[#allocation92_spill] sm:$0xff]  ;;  %vm21116_vm13 = vcmp.lt.s32.totalorder %v13883_v22, 112 }
 0x246   : > { %v1586_v3 = vsel %vm21100_vm5, %v21099_v25, %v1579_v29  ;;  %v1471_v15 = vmul.f32 %v21103_v37, %v1459_v47  ;;  %v1472_v32 = vmul.f32 %v21103_v37, %v1458_v11  ;;  %vm21104_vm1 = vmmov %vm21100_vm5  ;;  %v21107_v29 = vld [vmem:[#allocation47_spill] sm:$0xff]  ;;  %v21111_v47 = vld [vmem:[#allocation97_spill] sm:$0xff]  ;;  %v1261_v14 = vadd.f32 %v1253_v44, %v1219_v23 }
 0x247   : > { %v1551_v48 = vsel %vm21104_vm1, %v1544_v26, %v15803_v46  ;;  %vm21106_vm14 = vmmov %vm21104_vm1  ;;  %v1330_v25 = vsel %vm21108_vm8, %v1327_v63, %v21107_v29  ;;  %v1598_v6 = vmul.f32 %v21111_v47, %v1586_v3  ;;  %v1599_v11 = vmul.f32 %v21111_v47, %v1585_v49  ;;  %v15987_v59 = vpop.permute.xlu1 %1673  ;;  %v21122_v23 = vld [vmem:[#allocation149_spill] sm:$0xff] }
 0x248   : > { %v1552_v61 = vsel %vm21106_vm14, %v21105_v17, %v1544_v26  ;;  %vm21110_vm3 = vmmov %vm21108_vm8  ;;  %v1513_v17 = vadd.f32 %v1505_v55, %v1471_v15  ;;  %v1514_v4 = vadd.f32 %v1506_v42, %v1472_v32  ;;  %v1262_v29 = vadd.f32 %v1254_v19, %v1220_v31  ;;  %v1672_v30 = vpop.permute.xlu0 %1671  ;;  %v21123_v31 = vld [vmem:[#allocation103_spill] sm:$0xff] }
 0x249   : > { %v1331_v54 = vsel %vm21110_vm3, %v21109_v39, %v1327_v63  ;;  %vm21113_vm11 = vmmov %vm21110_vm3  ;;  %v1564_v63 = vmul.f32 %v21115_v28, %v1552_v61  ;;  %v1565_v3 = vmul.f32 %v21115_v28, %v1551_v48  ;;  %v1347_v39 = vmul.f32 %v20984_v24, %v1330_v25 }
 0x24a   : > { %v1296_v57 = vsel %vm21113_vm11, %v1292_v34, %v21112_v40  ;;  %vm21114_vm6 = vmmov %vm21110_vm3  ;;  %v1346_v49 = vmul.f32 %v20984_v24, %v1331_v54  ;;  %v21120_v24 = vld [vmem:[#allocation147_spill] sm:$0xff]  ;;  %v1269_v25 = vmul.f32 %v15712_v13, %v1261_v14  ;;  %v1270_v54 = vmul.f32 %v15730_v51, %v1262_v29  ;;  %v21126_v14 = vld [vmem:[#allocation57_spill] sm:$0xff] }
 0x24b   : > { %v1297_v26 = vsel %vm21114_vm6, %v15214_v36, %v1292_v34  ;;  %v1313_v9 = vmul.f32 %v14313_v21, %v1296_v57  ;;  %v1678_v36 = vsel %vm21116_vm13, %v1672_v30, %v15987_v59  ;;  %v21117_v34 = vld [vmem:[#allocation124_spill] sm:$0xff]  ;;  %vm21118_vm15 = vmmov %vm21116_vm13  ;;  %v1606_v61 = vadd.f32 %v1598_v6, %v1564_v63  ;;  %v16011_v48 = vpop.permute.xlu1 %1731 }
 0x24c   : > { %v1312_v40 = vmul.f32 %v14313_v21, %v1297_v26  ;;  %v1679_v55 = vsel %vm21118_vm15, %v21117_v34, %v1672_v30  ;;  %v1607_v42 = vadd.f32 %v1599_v11, %v1565_v3  ;;  %vm21119_vm7 = vmmov %vm21116_vm13  ;;  %v1083_v21 = vmul.f32 %v21122_v23, %v1075_v41  ;;  %v1730_v11 = vpop.permute.xlu0 %1729  ;;  %v21124_v41 = vld [vmem:[#allocation102_spill] sm:$0xff] }
 0x24d   : > { %v1644_v44 = vsel %vm21119_vm7, %v1637_v7, %v15961_v33  ;;  %vm21121_vm9 = vmmov %vm21119_vm7  ;;  %v1084_v57 = vmul.f32 %v15654_v35, %v1076_v52  ;;  %v1691_v15 = vmul.f32 %v21123_v31, %v1679_v55  ;;  %v1692_v32 = vmul.f32 %v21123_v31, %v1678_v36 }
 0x24e   : > { %v1645_v19 = vsel %vm21121_vm9, %v21120_v24, %v1637_v7  ;;  %v1521_v30 = vmul.f32 %v15695_v60, %v1513_v17  ;;  %v1522_v6 = vmul.f32 %v15700_v45, %v1514_v4  ;;  %v1354_v7 = vadd.f32 %v1346_v49, %v1312_v40 }
 0x24f   : > { %v1355_v26 = vadd.f32 %v1347_v39, %v1313_v9  ;;  %v1657_v63 = vmul.f32 %v21124_v41, %v1645_v19  ;;  %v1658_v52 = vmul.f32 %v21124_v41, %v1644_v44  ;;  %v1184_v3 = vadd.f32 %v1176_v0, %v1083_v21  ;;  %v16027_v29 = vpop.permute.xlu1 %1766  ;;  %v21129_v19 = vld [vmem:[#allocation77_spill] sm:$0xff] }
 0x250   : > { %v1185_v34 = vadd.f32 %v1177_v5, %v1084_v57  ;;  %v1614_v36 = vmul.f32 %v15735_v56, %v1606_v61  ;;  %v1615_v55 = vmul.f32 %v15740_v1, %v1607_v42  ;;  %vm21125_vm5 = vcmp.lt.s32.totalorder %v13883_v22, 111  ;;  %v1765_v40 = vpop.permute.xlu0 %1764  ;;  %v21131_v57 = vld [vmem:[#allocation65_spill] sm:$0xff] }
 0x251   : > { %v1699_v17 = vadd.f32 %v1691_v15, %v1657_v63  ;;  %v1700_v24 = vadd.f32 %v1692_v32, %v1658_v52  ;;  %v1737_v4 = vsel %vm21125_vm5, %v1730_v11, %v16011_v48  ;;  %vm21127_vm1 = vmmov %vm21125_vm5  ;;  %v1529_v49 = vadd.f32 %v1521_v30, %v15908_v10 }
 0x252   : > { %v1738_v9 = vsel %vm21127_vm1, %v21126_v14, %v1730_v11  ;;  %v1530_v0 = vadd.f32 %v1522_v6, %v15913_v50  ;;  %v1277_v5 = vadd.f32 %v1269_v25, %v1184_v3  ;;  %v1278_v39 = vadd.f32 %v1270_v54, %v1185_v34  ;;  %vm21128_vm14 = vmmov %vm21127_vm1  ;;  %v21132_v50 = vld [vmem:[#allocation107_spill] sm:$0xff]  ;;  %v21134_v3 = vld [vmem:[#allocation60_spill] sm:$0xff] }
 0x253   : > { %v1362_v61 = vmul.f32 %v15788_v18, %v1354_v7  ;;  %v1363_v42 = vmul.f32 %v15793_v38, %v1355_v26  ;;  %v1771_v44 = vsel %vm21128_vm14, %v1765_v40, %v16027_v29  ;;  %vm21130_vm8 = vmmov %vm21127_vm1  ;;  %v1750_v15 = vmul.f32 %v21131_v57, %v1738_v9  ;;  %v1490_v11 = vpop.permute.xlu1 %1489 }
 0x254   : > { %v1772_v21 = vsel %vm21130_vm8, %v21129_v19, %v1765_v40  ;;  %v1751_v10 = vmul.f32 %v21131_v57, %v1737_v4  ;;  %v1785_v30 = vmul.f32 %v21132_v50, %v1771_v44  ;;  %v1622_v6 = vadd.f32 %v1614_v36, %v1529_v49  ;;  %v1455_v4 = vpop.permute.xlu0 %1454 }
 0x255   : > { %v1784_v32 = vmul.f32 %v21132_v50, %v1772_v21  ;;  %v1707_v25 = vmul.f32 %v15770_v2, %v1699_v17  ;;  %v1708_v54 = vmul.f32 %v15775_v58, %v1700_v24  ;;  %v1623_v7 = vadd.f32 %v1615_v55, %v1530_v0  ;;  %v21137_v55 = vld [vmem:[#allocation61_spill] sm:$0xff] }
 0x256   : > { %v1793_v63 = vadd.f32 %v1785_v30, %v1751_v10  ;;  %vm21133_vm3 = vcmp.lt.s32.totalorder %v13883_v22, 127  ;;  %v1370_v9 = vadd.f32 %v1362_v61, %v1277_v5  ;;  %v1371_v49 = vadd.f32 %v1363_v42, %v1278_v39  ;;  %v21144_v30 = vld [vmem:[#allocation90_spill] sm:$0xff] }
 0x257   : > { %v1792_v26 = vadd.f32 %v1784_v32, %v1750_v15  ;;  %v1491_v52 = vsel %vm21133_vm3, %v15661_v16, %v1490_v11  ;;  %vm21135_vm11 = vmmov %vm21133_vm3  ;;  %v1715_v40 = vadd.f32 %v1707_v25, %v1622_v6  ;;  %v1583_v19 = vpop.permute.xlu1 %1582  ;;  %v1716_v21 = vadd.f32 %v1708_v54, %v1623_v7  ;;  %v21140_v32 = vld [vmem:[#allocation89_spill] sm:$0xff]  ;;  %v21147_v54 = vld [vmem:[#allocation75_spill] sm:$0xff] }
 0x258   : > { %v1498_v34 = vsel %vm21135_vm11, %v1490_v11, %v21134_v3  ;;  %v1507_v14 = vmul.f32 %v21097_v27, %v1491_v52  ;;  %vm21136_vm6 = vmmov %vm21133_vm3  ;;  %vm21139_vm15 = vcmp.lt.s32.totalorder %v13883_v22, 113  ;;  %v1548_v39 = vpop.permute.xlu0 %1547  ;;  %vm21142_vm9 = vcmp.ge.s32.totalorder %v15313_v53, 0  ;;  %v21146_v6 = vld [vmem:[#allocation53_spill] sm:$0xff] }
 0x259   : > { %v1508_v36 = vmul.f32 %v21097_v27, %v1498_v34  ;;  %v1457_v17 = vsel %vm21136_vm6, %v15599_v62, %v1455_v4  ;;  %vm21138_vm13 = vmmov %vm21133_vm3  ;;  %v1800_v44 = vmul.f32 %v15820_v20, %v1792_v26  ;;  %v1801_v27 = vmul.f32 %v15895_v43, %v1793_v63  ;;  %v21150_v34 = vld [vmem:[#allocation26_spill] sm:$0xff] }
 0x25a   : > { %v1464_v24 = vsel %vm21138_vm13, %v1455_v4, %v21137_v55  ;;  %v1473_v16 = vmul.f32 %v21103_v37, %v1457_v17  ;;  %v1584_v62 = vsel %vm21139_vm15, %v15871_v8, %v1583_v19  ;;  %vm21141_vm7 = vmmov %vm21139_vm15  ;;  %v21148_v26 = vmov 0.0   ;;  %v21157_v17 = vld [vmem:[#allocation32_spill] sm:$0xff] }
 0x25b   : > { %v1474_v0 = vmul.f32 %v21103_v37, %v1464_v24  ;;  %v1591_v5 = vsel %vm21141_vm7, %v1583_v19, %v21140_v32  ;;  %vm817_vm5 = vmand %vm15867_vm0, %vm21142_vm9  ;;  %v1600_v37 = vmul.f32 %v21111_v47, %v1584_v62  ;;  %v1809_v52 = vadd.f32 %v1801_v27, %v1716_v21 }
 0x25c   : > { %v1515_v15 = vadd.f32 %v1507_v14, %v1473_v16  ;;  %v1601_v61 = vmul.f32 %v21111_v47, %v1591_v5  ;;  %vm21143_vm1 = vmmov %vm21141_vm7  ;;  %v16086_v63 = vsel %vm817_vm5, 1.0, %v21148_v26  ;;  %v1676_v47 = vpop.permute.xlu1 %1675  ;;  %v1808_v3 = vadd.f32 %v1800_v44, %v1715_v40  ;;  %v21159_v16 = vld [vmem:[#allocation29_spill] sm:$0xff]  ;;  %v21162_v44 = vld [vmem:[#allocation71_spill] sm:$0xff] }
 0x25d   : > { %v1516_v10 = vadd.f32 %v1508_v36, %v1474_v0  ;;  %v1550_v42 = vsel %vm21143_vm1, %v15803_v46, %v1548_v39  ;;  %vm21145_vm14 = vmmov %vm21143_vm1  ;;  %21149 = vst [vmem:[#allocation63_spill] sm:$0xff] %v16086_v63  ;;  %v21151_v46 = vld [vmem:[#allocation131_spill] sm:$0xff]  ;;  %v21153_v14 = vmov 0  ;;  %v21156_v36 = vld [vmem:[#allocation98_spill] sm:$0xff]  ;;  %vm21161_vm3 = vcmp.lt.s32.totalorder %v13883_v22, 112 }
 0x25e   : > { %v1557_v8 = vsel %vm21145_vm14, %v1548_v39, %v21144_v30  ;;  %v1523_v25 = vmul.f32 %v21146_v6, %v1515_v15  ;;  %v1566_v53 = vmul.f32 %v21115_v28, %v1550_v42  ;;  %v21152_v4 = vshra.s32 %v21151_v46, 8  ;;  %vm21163_vm11 = vmmov %vm21161_vm3 }
 0x25f   : > { %v1524_v11 = vmul.f32 %v21147_v54, %v1516_v10  ;;  %v1567_v7 = vmul.f32 %v21115_v28, %v1557_v8  ;;  %v21158_v55 = vrot.slane %v21156_v36, %v21157_v17  ;;  %v21160_v28 = vrot.slane %v21156_v36, %v21159_v16  ;;  %v1641_v10 = vpop.permute.xlu0 %1640  ;;  %vm21164_vm6 = vmmov %vm21161_vm3  ;;  %v21168_v8 = vld [vmem:[#allocation142_spill] sm:$0xff] }
 0x260   : > { %vm16091_vm8 = vcmp.eq.s32.totalorder %v21152_v4, %v21150_v34  ;;  %v1608_v19 = vadd.f32 %v1600_v37, %v1566_v53  ;;  %v1677_v40 = vsel %vm21161_vm3, %v15987_v59, %v1676_v47  ;;  %v1684_v21 = vsel %vm21163_vm11, %v1676_v47, %v21162_v44  ;;  %vm21166_vm13 = vmmov %vm21161_vm3  ;;  %v21176_v17 = vld [vmem:[#allocation154_spill] sm:$0xff]  ;;  %v21192_v47 = vld [vmem:[#allocation37_spill] sm:$0xff] }
 0x261   : > { %v21154_v14 = vsel %vm16091_vm8, 4294967295, %v21153_v14  ;;  %v1438_v24 = vadd.f32 %v21158_v55, %v1370_v9  ;;  %v1439_v0 = vadd.f32 %v21160_v28, %v1371_v49  ;;  %v1609_v15 = vadd.f32 %v1601_v61, %v1567_v7  ;;  %v21165_v9 = vld [vmem:[#allocation62_spill] sm:$0xff]  ;;  %v21167_v61 = vld [vmem:[#allocation69_spill] sm:$0xff]  ;;  %vm16135_vm9 = vmand %vm15829_vm10, %vm672_vm12 }
 0x262   : > { %21155 = vst [vmem:[#allocation130_spill] sm:$0xff] %v21154_v14  ;;  %v1643_v27 = vsel %vm21164_vm6, %v15961_v33, %v1641_v10  ;;  %v1650_v62 = vsel %vm21166_vm13, %v1641_v10, %v21165_v9  ;;  %v1693_v5 = vmul.f32 %v21123_v31, %v1677_v40  ;;  %v1694_v39 = vmul.f32 %v21123_v31, %v1684_v21  ;;  %v1769_v33 = vpop.permute.xlu1 %1768  ;;  %v21170_v31 = vld [vmem:[#allocation109_spill] sm:$0xff]  ;;  %v21179_v28 = vld [vmem:[#allocation110_spill] sm:$0xff]  ;;  %v21182_v10 = vld [vmem:[#allocation67_spill] sm:$0xff] }
 0x263   : > { %v1531_v49 = vadd.f32 %v1523_v25, %v1438_v24  ;;  %v1532_v32 = vadd.f32 %v1524_v11, %v1439_v0  ;;  %v1659_v59 = vmul.f32 %v21124_v41, %v1643_v27  ;;  %v1660_v37 = vmul.f32 %v21124_v41, %v1650_v62  ;;  %v1734_v41 = vpop.permute.xlu0 %1733 }
 0x264   : > { %v16118_v42 = vadd.f32 %v21167_v61, %v1809_v52  ;;  %v16121_v30 = vadd.f32 %v21167_v61, %v1808_v3  ;;  %v1616_v53 = vmul.f32 %v21168_v8, %v1608_v19  ;;  %v1617_v25 = vmul.f32 %v16086_v63, %v1609_v15  ;;  %v21181_v19 = vld [vmem:[#allocation34_spill] sm:$0xff]  ;;  %v21195_v3 = vld [vmem:[#allocation117_spill] sm:$0xff] }
 0x265   : > { %vm21169_vm15 = vcmp.lt.s32.totalorder %v13883_v22, 111  ;;  %v1701_v46 = vadd.f32 %v1693_v5, %v1659_v59  ;;  %v1702_v4 = vadd.f32 %v1694_v39, %v1660_v37  ;;  %vm21177_vm5 = vcmp.le.s32.totalorder %v21176_v17, 15 }
 0x266   : > { %v1770_v11 = vsel %vm21169_vm15, %v16027_v29, %v1769_v33  ;;  %vm21171_vm7 = vmmov %vm21169_vm15  ;;  %2026 = vmatprep.mubr.f32.mxu0 %v16118_v42  ;;  %v2107_v29 = vmul.f32 %v16118_v42, %v16118_v42  ;;  %v2106_v36 = vmul.f32 %v16121_v30, %v16121_v30  ;;  %v1624_v27 = vadd.f32 %v1616_v53, %v1531_v49 }
 0x267   : > { %v1777_v7 = vsel %vm21171_vm7, %v1769_v33, %v21170_v31  ;;  %vm865_vm1 = vmand %vm15867_vm0, %vm21177_vm5  ;;  %2027 = vmatmul.mubr.f32.vlgmr.msra.gmra.mrb[0].mxu0 %v16121_v30  ;;  %v1786_v55 = vmul.f32 %v21132_v50, %v1770_v11  ;;  %v1709_v15 = vmul.f32 %v21181_v19, %v1701_v46  ;;  %v1710_v40 = vmul.f32 %v21182_v10, %v1702_v4  ;;  %v21198_v4 = vld [vmem:[#allocation120_spill] sm:$0xff] }
 0x268   : > { %v1787_v24 = vmul.f32 %v21132_v50, %v1777_v7  ;;  %vm21178_vm12 = vmmov %vm21171_vm7  ;;  %2314 = vmatprep.mubr.f32.mxu1 %v2107_v29  ;;  %v16164_v50 = vsel %vm16135_vm9, 1.0, %v21148_v26  ;;  %v16170_v21 = vsel %vm865_vm1, 1.0, %v21148_v26  ;;  %v1625_v5 = vadd.f32 %v1617_v25, %v1532_v32  ;;  %v21186_v25 = vld [vmem:[#allocation35_spill] sm:$0xff] }
 0x269   : > { %v1736_v16 = vsel %vm21178_vm12, %v16011_v48, %v1734_v41  ;;  %vm21180_vm10 = vmmov %vm21171_vm7  ;;  %2315 = vmatmul.mubr.f32.vlgmr.msra.gmra.mrb[0].mxu1 %v2106_v36  ;;  %21183 = vst [vmem:[#allocation100_spill] sm:$0xff] %v16164_v50  ;;  %v21184_v48 = vmov 1.0   ;;  %vm21187_vm0 = vnez %v21186_v25  ;;  %vm20504_vm14 = vcmask 1043456   ;;  %v21189_v7 = vld [vmem:[#allocation59_spill] sm:$0xff] }
 0x26a   : > { %v1743_v0 = vsel %vm21180_vm10, %v1734_v41, %v21179_v28  ;;  %v1752_v12 = vmul.f32 %v21131_v57, %v1736_v16  ;;  %11594 = vmatpush1.xpose.msk.msra.mxu0 %vm16091_vm8, %v21184_v48  ;;  %21185 = vst [vmem:[#allocation84_spill] sm:$0xff] %v16170_v21  ;;  %11602 = vmatpush1.xpose.msk.msra.mxu1 %vm16091_vm8, %v21184_v48  ;;  %vm21190_vm3 = vnez %v21189_v7  ;;  %v16227_v17 = vsel %vm15674_vm4, 1.0, %v21148_v26 }
 0x26b   : > { %v1753_v44 = vmul.f32 %v21131_v57, %v1743_v0  ;;  %v1717_v57 = vadd.f32 %v1709_v15, %v1624_v27  ;;  %v1718_v59 = vadd.f32 %v1710_v40, %v1625_v5  ;;  %v16199_v41 = vsel %vm21190_vm3, 1.0, %v21148_v26  ;;  %21202 = vst [vmem:[#allocation114_spill] sm:$0xff] %v16227_v17 }
 0x26c   : > { %v1794_v9 = vadd.f32 %v1786_v55, %v1752_v12  ;;  %21191 = vst [vmem:[#allocation36_spill] sm:$0xff] %v16199_v41  ;;  %11606 = vmatprep.subr.msk.mxu1 %vm20504_vm14, %v16199_v41  ;;  %vm21193_vm11 = vnez %v21192_v47  ;;  %vm21196_vm6 = vnez %v21195_v3  ;;  %vm21199_vm13 = vnez %v21198_v4 }
 0x26d   : > { %v1795_v62 = vadd.f32 %v1787_v24, %v1753_v44  ;;  %v16208_v52 = vsel %vm21193_vm11, 1.0, %v21148_v26  ;;  %v16213_v46 = vsel %vm21196_vm6, 1.0, %v21148_v26  ;;  %v16222_v29 = vsel %vm21199_vm13, 1.0, %v21148_v26 }
 0x26e   : > { %v1802_v39 = vmul.f32 %v16164_v50, %v1794_v9  ;;  %21194 = vst [vmem:[#allocation41_spill] sm:$0xff] %v16208_v52  ;;  %21197 = vst [vmem:[#allocation42_spill] sm:$0xff] %v16213_v46  ;;  %vm20429_vm15 = vcmask 31744   ;;  %v16236_v0 = vsel %vm15529_vm2, 1.0, %v21148_v26  ;;  %v16241_v40 = vsel %vm16091_vm8, 1.0, %v21148_v26 }
 0x26f   : > { %v1803_v37 = vmul.f32 %v16170_v21, %v1795_v62  ;;  %21200 = vst [vmem:[#allocation39_spill] sm:$0xff] %v16222_v29  ;;  %21204 = vst [vmem:[#allocation40_spill] sm:$0xff] %v16236_v0  ;;  %v20347_v54 = vmov 0  }
 0x270   : > { %v1810_v11 = vadd.f32 %v1802_v39, %v1717_v57  ;;  %21205 = vst [vmem:[#allocation31_spill] sm:$0xff] %v16241_v40  ;;  %12679 = vset.pattern.permute.xlu0 %v20347_v54  ;;  %12680 = vset.pattern.permute.xlu1 %v20347_v54 }
 0x271   : > { %v1811_v33 = vadd.f32 %v1803_v37, %v1718_v59 }
 0x272   : > { %v16181_v49 = vadd.f32 %v21167_v61, %v1810_v11 }
 0x273   : > { %v16178_v31 = vadd.f32 %v21167_v61, %v1811_v33  ;;  %v16194_v61 = vsel %vm21187_vm0, 1.0, %v21148_v26 }
 0x274   : > { %v2108_v53 = vmul.f32 %v16181_v49, %v16181_v49  ;;  %21188 = vst [vmem:[#allocation87_spill] sm:$0xff] %v16194_v61  ;;  %11603 = vmatprep.subr.msk.mxu0 %vm20504_vm14, %v16194_v61 }
 0x275   : > { %2096 = vmatprep.mubr.f32.mxu0 %v16178_v31  ;;  %v2109_v32 = vmul.f32 %v16178_v31, %v16178_v31 }
 0x276   : > { %2097 = vmatmul.mubr.f32.vlgmr.msra.gmra.mrb[0].mxu0 %v16181_v49 }
 0x277   : > { %2384 = vmatprep.mubr.f32.mxu1 %v2109_v32  ;;  %2489 = vmatprep.mubr.f32.mxu0 %v21148_v26 }
 0x278   : > { %2385 = vmatmul.mubr.f32.vlgmr.msra.gmra.mrb[0].mxu1 %v2108_v53  ;;  %11604 = vmatpush1.msk.msra.mxu0 %vm20504_vm14, %v16208_v52 }
 0x279   : > { %2560 = vmatprep.mubr.f32.mxu1 %v21148_v26  ;;  %11607 = vmatpush1.msk.msra.mxu1 %vm20504_vm14, %v16213_v46 }
 0x27a   : > { %11609 = vmatprep.subr.msk.mxu0 %vm20504_vm14, %v16222_v29  ;;  %11612 = vmatprep.subr.msk.mxu1 %vm20504_vm14, %v16227_v17 }
 0x349   : > { %v2098_v55 = vpop.f32.mrb[0].mxu0 }
 0x34a   : > { %v2390_v24 = vmul.f32 0.00390625, %v2098_v55  ;;  %v2100_v16 = vpop.f32.mrb[1].mxu0  ;;  %v21206_v55 = vld [vmem:[#allocation116_spill] sm:$0xff] }
 0x34b   : > { %v2386_v15 = vpop.f32.mrb[0].mxu1  ;;  %v21207_v16 = vld [vmem:[#allocation81_spill] sm:$0xff] }
 0x34c   : > { %v2391_v12 = vmul.f32 0.00390625, %v2386_v15  ;;  %v2392_v44 = vmul.f32 %v2390_v24, %v2390_v24  ;;  %v2388_v27 = vpop.f32.mrb[1].mxu1  ;;  %11605 = vmatmul.mubr.msk.f32.vlgmr.msra.gmra.mrb[2].mxu0 %vm20429_vm15, %v2390_v24  ;;  %11608 = vmatmul.mubr.msk.f32.vlgmr.msra.gmra.mrb[2].mxu1 %vm20429_vm15, %v2390_v24 }
 0x34d   : > { %11610 = vmatpush1.msk.msra.mxu0 %vm20504_vm14, %v16236_v0  ;;  %2631 = vmatprep.mubr.f32.mxu0 %v21148_v26  ;;  %v21209_v27 = vld [vmem:[#allocation49_spill] sm:$0xff] }
 0x34e   : > { %v2393_v9 = vsub.f32 %v2391_v12, %v2392_v44  ;;  %11613 = vmatpush1.msk.msra.mxu1 %vm20504_vm14, %v16241_v40  ;;  %2702 = vmatprep.mubr.f32.mxu1 %v21148_v26  ;;  %v21208_v12 = vld [vmem:[#allocation113_spill] sm:$0xff] }
 0x34f   : > { %11615 = vmatprep.subr.msk.mxu0 %vm20504_vm14, %v16194_v61  ;;  %11618 = vmatprep.subr.msk.mxu1 %vm20504_vm14, %v16199_v41 }
 0x350   : > { %v2394_v62 = vadd.f32 1e-05, %v2393_v9  ;;  %11611 = vmatmul.mubr.msk.f32.vlgmr.msra.gmra.mrb[4].mxu0 %vm20429_vm15, %v2390_v24  ;;  %11614 = vmatmul.mubr.msk.f32.vlgmr.msra.gmra.mrb[4].mxu1 %vm20429_vm15, %v2390_v24 }
 0x351   : > { %11616 = vmatpush1.msk.msra.mxu0 %vm20504_vm14, %v16208_v52  ;;  %2776 = vmatprep.mubr.f32.mxu0 %v21148_v26 }
 0x352   : > { %13019 = vrsqrt.f32 %v2394_v62  ;;  %11619 = vmatpush1.msk.msra.mxu1 %vm20504_vm14, %v16213_v46  ;;  %2847 = vmatprep.mubr.f32.mxu1 %v21148_v26 }
 0x353   : > { %11621 = vmatprep.subr.msk.mxu0 %vm20504_vm14, %v16222_v29  ;;  %11624 = vmatprep.subr.msk.mxu1 %vm20504_vm14, %v16227_v17 }
 0x35c   : > { %v13020_v5 = vpop.eup %13019 }
 0x35d   : > { %11617 = vmatmul.mubr.msk.f32.vlgmr.msra.gmra.mrb[6].mxu0 %vm20429_vm15, %v13020_v5  ;;  %11620 = vmatmul.mubr.msk.f32.vlgmr.msra.gmra.mrb[6].mxu1 %vm20429_vm15, %v13020_v5 }
 0x35e   : > { %11622 = vmatpush1.msk.msra.mxu0 %vm20504_vm14, %v16236_v0  ;;  %2918 = vmatprep.mubr.f32.mxu0 %v21148_v26 }
 0x35f   : > { %11625 = vmatpush1.msk.msra.mxu1 %vm20504_vm14, %v16241_v40  ;;  %2989 = vmatprep.mubr.f32.mxu1 %v21148_v26 }
 0x361   : > { %11623 = vmatmul.mubr.msk.f32.vlgmr.msra.gmra.mrb[8].mxu0 %vm20429_vm15, %v13020_v5  ;;  %11626 = vmatmul.mubr.msk.f32.vlgmr.msra.gmra.mrb[8].mxu1 %vm20429_vm15, %v13020_v5 }
 0x362   : > { %3311 = vmatprep.mubr.bf16.mxu0 %v20347_v54  ;;  %3354 = vmatprep.mubr.bf16.mxu1 %v20347_v54 }
 0x41f   : > { %v2491_v57 = vpop.f32.mrb[2].mxu0  ;;  %v2562_v39 = vpop.f32.mrb[2].mxu1 }
 0x420   : > { %v2493_v59 = vpop.f32.mrb[3].mxu0  ;;  %v2564_v37 = vpop.f32.mrb[3].mxu1  ;;  %v2996_v24 = vsub.f32 %v21206_v55, %v2491_v57  ;;  %v2998_v15 = vsub.f32 %v21207_v16, %v2562_v39 }
 0x421   : > { %v2997_v44 = vsub.f32 %v21208_v12, %v2493_v59  ;;  %v2999_v9 = vsub.f32 %v21209_v27, %v2564_v37 }
 0x423   : > { %v2633_v33 = vpop.f32.mrb[4].mxu0  ;;  %v2704_v11 = vpop.f32.mrb[4].mxu1 }
 0x424   : > { %v2635_v32 = vpop.f32.mrb[5].mxu0  ;;  %v2706_v53 = vpop.f32.mrb[5].mxu1  ;;  %v3000_v17 = vsub.f32 %v16121_v30, %v2633_v33  ;;  %v3002_v46 = vsub.f32 %v16181_v49, %v2704_v11 }
 0x425   : > { %v3001_v55 = vsub.f32 %v16118_v42, %v2635_v32 }
 0x430   : > { %v2778_v62 = vpop.f32.mrb[6].mxu0  ;;  %v2849_v34 = vpop.f32.mrb[6].mxu1 }
 0x431   : > { %v3004_v0 = vmul.f32 %v2996_v24, %v2778_v62  ;;  %v3006_v5 = vmul.f32 %v2998_v15, %v2849_v34  ;;  %v2780_v40 = vpop.f32.mrb[7].mxu0  ;;  %v2851_v26 = vpop.f32.mrb[7].mxu1  ;;  %v3003_v34 = vsub.f32 %v16178_v31, %v2706_v53 }
 0x432   : > { %v3005_v29 = vmul.f32 %v2997_v44, %v2780_v40  ;;  %v3007_v52 = vmul.f32 %v2999_v9, %v2851_v26 }
 0x433   : > { %vm3012_vm7 = vcmp.gt.f32.partialorder %v3004_v0, 0.0  ;;  %v3020_v57 = vmul.f32 0.01, %v3004_v0  ;;  %vm3014_vm9 = vcmp.gt.f32.partialorder %v3006_v5, 0.0  ;;  %v3022_v39 = vmul.f32 0.01, %v3006_v5 }
 0x434   : > { %vm3013_vm5 = vcmp.gt.f32.partialorder %v3005_v29, 0.0  ;;  %v3021_v59 = vmul.f32 0.01, %v3005_v29  ;;  %vm3015_vm1 = vcmp.gt.f32.partialorder %v3007_v52, 0.0  ;;  %v3023_v37 = vmul.f32 0.01, %v3007_v52 }
 0x435   : > { %v3028_v24 = vsel %vm3012_vm7, %v3004_v0, %v3020_v57  ;;  %v3030_v16 = vsel %vm3014_vm9, %v3006_v5, %v3022_v39  ;;  %v2920_v15 = vpop.f32.mrb[8].mxu0  ;;  %v2991_v30 = vpop.f32.mrb[8].mxu1 }
 0x436   : > { %v3036_v33 = vsub.f32 0.0, %v3028_v24  ;;  %v3038_v49 = vsub.f32 0.0, %v3030_v16  ;;  %v3029_v40 = vsel %vm3013_vm5, %v3005_v29, %v3021_v59  ;;  %v3031_v26 = vsel %vm3015_vm1, %v3007_v52, %v3023_v37  ;;  %v2922_v11 = vpop.f32.mrb[9].mxu0  ;;  %v2993_v12 = vpop.f32.mrb[9].mxu1 }
 0x437   : > { %v3037_v44 = vsub.f32 0.0, %v3029_v40  ;;  %v3039_v27 = vsub.f32 0.0, %v3031_v26  ;;  %v3008_v9 = vmul.f32 %v3000_v17, %v2920_v15  ;;  %v3010_v62 = vmul.f32 %v3002_v46, %v2991_v30 }
 0x438   : > { %v3044_v61 = vmul.f32 1.442695, %v3036_v33  ;;  %v3048_v41 = vmul.f32 1.442695, %v3038_v49  ;;  %v3009_v14 = vmul.f32 %v3001_v55, %v2922_v11  ;;  %v3011_v42 = vmul.f32 %v3003_v34, %v2993_v12 }
 0x439   : > { %v3046_v32 = vmul.f32 1.442695, %v3037_v44  ;;  %v3050_v31 = vmul.f32 1.442695, %v3039_v27  ;;  %vm3016_vm12 = vcmp.gt.f32.partialorder %v3008_v9, 0.0  ;;  %vm3018_vm10 = vcmp.gt.f32.partialorder %v3010_v62, 0.0 }
 0x43a   : > { %13021 = vpow2.f32 %v3044_v61  ;;  %v3024_v0 = vmul.f32 0.01, %v3008_v9  ;;  %v3026_v53 = vmul.f32 0.01, %v3010_v62  ;;  %vm3017_vm7 = vcmp.gt.f32.partialorder %v3009_v14, 0.0 }
 0x43b   : > { %13023 = vpow2.f32 %v3048_v41  ;;  %v3025_v52 = vmul.f32 0.01, %v3009_v14  ;;  %vm3019_vm9 = vcmp.gt.f32.partialorder %v3011_v42, 0.0  ;;  %v3027_v29 = vmul.f32 0.01, %v3011_v42 }
 0x43c   : > { %13025 = vpow2.f32 %v3046_v32  ;;  %v3032_v5 = vsel %vm3016_vm12, %v3008_v9, %v3024_v0  ;;  %v3034_v17 = vsel %vm3018_vm10, %v3010_v62, %v3026_v53  ;;  %v16289_v53 = vld [vmem:[%s13691_s14 + $0x10] sm:$0xff]  ;;  %vm21252_vm5 = vcmp.lt.s32.totalorder %v13883_v22, 17 }
 0x43d   : > { %13027 = vpow2.f32 %v3050_v31  ;;  %v3040_v46 = vsub.f32 0.0, %v3032_v5  ;;  %v3042_v57 = vsub.f32 0.0, %v3034_v17  ;;  %v3033_v39 = vsel %vm3017_vm7, %v3009_v14, %v3025_v52  ;;  %v16286_v31 = vld [vmem:[%s13691_s14] sm:$0xff]  ;;  %v21210_v17 = vld [vmem:[#allocation27_spill] sm:$0xff]  ;;  %vm21254_vm1 = vmmov %vm21252_vm5 }
 0x43e   : > { %v3041_v59 = vsub.f32 0.0, %v3033_v39  ;;  %v3035_v37 = vsel %vm3019_vm9, %v3011_v42, %v3027_v29  ;;  %v3088_v52 = vld [vmem:[%s13691_s14 + $0x20] sm:$0xff]  ;;  %v3090_v29 = vld [vmem:[%s13691_s14 + $0x30] sm:$0xff]  ;;  %vm21256_vm12 = vmmov %vm21254_vm1 }
 0x43f   : > { %v3052_v55 = vmul.f32 1.442695, %v3040_v46  ;;  %v3056_v34 = vmul.f32 1.442695, %v3042_v57  ;;  %v3043_v24 = vsub.f32 0.0, %v3035_v37  ;;  %vm21257_vm10 = vmmov %vm21254_vm1 }
 0x440   : > { %v3054_v61 = vmul.f32 1.442695, %v3041_v59  ;;  %vm21258_vm7 = vmmov %vm21254_vm1 }
 0x441   : > { %13029 = vpow2.f32 %v3052_v55  ;;  %v3058_v16 = vmul.f32 1.442695, %v3043_v24  ;;  %vm21259_vm9 = vmmov %vm21254_vm1 }
 0x442   : > { %13031 = vpow2.f32 %v3056_v34 }
 0x443   : > { %13033 = vpow2.f32 %v3054_v61 }
 0x444   : > { %v13022_v41 = vpop.eup %13021  ;;  %13035 = vpow2.f32 %v3058_v16 }
 0x445   : > { %v13024_v15 = vpop.eup %13023  ;;  %v3060_v30 = vadd.f32 1.0, %v13022_v41 }
 0x446   : > { %v13026_v33 = vpop.eup %13025  ;;  %v3062_v49 = vadd.f32 1.0, %v13024_v15 }
 0x447   : > { %v13028_v40 = vpop.eup %13027  ;;  %13037 = vrcp.f32 %v3060_v30  ;;  %v3061_v14 = vadd.f32 1.0, %v13026_v33 }
 0x448   : > { %13039 = vrcp.f32 %v3062_v49  ;;  %v3063_v26 = vadd.f32 1.0, %v13028_v40 }
 0x449   : > { %13041 = vrcp.f32 %v3061_v14 }
 0x44a   : > { %13043 = vrcp.f32 %v3063_v26 }
 0x44b   : > { %v13030_v11 = vpop.eup %13029 }
 0x44c   : > { %v13032_v12 = vpop.eup %13031  ;;  %v3064_v42 = vadd.f32 1.0, %v13030_v11 }
 0x44d   : > { %v13034_v44 = vpop.eup %13033  ;;  %v3066_v27 = vadd.f32 1.0, %v13032_v12 }
 0x44e   : > { %v13036_v9 = vpop.eup %13035  ;;  %v3065_v62 = vadd.f32 1.0, %v13034_v44 }
 0x44f   : > { %13045 = vrcp.f32 %v3066_v27  ;;  %v3067_v32 = vadd.f32 1.0, %v13036_v9  ;;  %v3085_v27 = vld [vmem:[%s13691_s14 + $0x8] sm:$0xff]  ;;  %v3087_v9 = vld [vmem:[%s13691_s14 + $0x18] sm:$0xff] }
 0x450   : > { %13047 = vrcp.f32 %v3065_v62 }
 0x451   : > { %v13038_v0 = vpop.eup %13037  ;;  %13049 = vrcp.f32 %v3067_v32  ;;  %v3089_v32 = vld [vmem:[%s13691_s14 + $0x28] sm:$0xff] }
 0x452   : > { %v13040_v5 = vpop.eup %13039  ;;  %v3095_v46 = vrot.slane %v13038_v0, %v21210_v17  ;;  %13051 = vrcp.f32 %v3064_v42  ;;  %v3091_v0 = vld [vmem:[%s13691_s14 + $0x38] sm:$0xff] }
 0x453   : > { %v3103_v57 = vrot.slane %v13040_v5, %v21210_v17  ;;  %v13042_v61 = vpop.eup %13041 }
 0x454   : > { %v16296_v39 = vmul.f32 %v3095_v46, %v16286_v31  ;;  %v16299_v59 = vmul.f32 %v3095_v46, %v16289_v53  ;;  %v16301_v37 = vmul.f32 %v3095_v46, %v3088_v52  ;;  %v16303_v55 = vmul.f32 %v3095_v46, %v3090_v29  ;;  %v13044_v15 = vpop.eup %13043 }
 0x455   : > { %v16314_v16 = vmul.f32 %v3103_v57, %v16286_v31  ;;  %v16317_v41 = vmul.f32 %v3103_v57, %v16289_v53  ;;  %v16323_v49 = vmul.f32 %v3103_v57, %v3088_v52  ;;  %v16326_v14 = vmul.f32 %v3103_v57, %v3090_v29 }
 0x456   : > { %21211 = vst [vmem:[#allocation74_spill] sm:$0xff] %v16296_v39  ;;  %21212 = vst [vmem:[#allocation72_spill] sm:$0xff] %v16299_v59  ;;  %v16307_v34 = vpack.i.bf16 %v16303_v55, %v16301_v37  ;;  %v16311_v24 = vpack.i.bf16 %v16299_v59, %v16296_v39  ;;  %v3099_v26 = vrot.slane %v13042_v61, %v21210_v17 }
 0x457   : > { %21213 = vst [vmem:[#allocation73_spill] sm:$0xff] %v16301_v37  ;;  %21214 = vst [vmem:[#allocation28_spill] sm:$0xff] %v16303_v55  ;;  %v16332_v12 = vpack.i.bf16 %v16317_v41, %v16314_v16  ;;  %v3107_v62 = vrot.slane %v13044_v15, %v21210_v17  ;;  %v16362_v36 = vpack.i.bf16 %v16326_v14, %v16323_v49 }
 0x458   : > { %21215 = vst [vmem:[#allocation128_spill] sm:$0xff] %v16314_v16  ;;  %21216 = vst [vmem:[#allocation44_spill] sm:$0xff] %v16317_v41  ;;  %12045 = vrot.lane.b32.xlu1 %v16307_v34, %s21217_s11  ;;  %12040 = vrot.lane.b32.xlu0 %v16311_v24, %s21217_s11  ;;  %v16357_v21 = vmul.f32 %v3099_v26, %v3087_v9  ;;  %v16364_v28 = vmul.f32 %v3099_v26, %v3089_v32 }
 0x459   : > { %v13046_v30 = vpop.eup %13045  ;;  %21218 = vst [vmem:[#allocation50_spill] sm:$0xff] %v16323_v49  ;;  %21219 = vst [vmem:[#allocation45_spill] sm:$0xff] %v16326_v14  ;;  %v16366_v43 = vmul.f32 %v3099_v26, %v3091_v0  ;;  %v16368_v20 = vmul.f32 %v3107_v62, %v3085_v27  ;;  %v16385_v19 = vmul.f32 %v3107_v62, %v3089_v32 }
 0x45a   : > { %v13048_v33 = vpop.eup %13047  ;;  %v3119_v40 = vrot.slane %v13046_v30, %v21210_v17  ;;  %21228 = vst [vmem:[#allocation46_spill] sm:$0xff] %v16357_v21  ;;  %21229 = vst [vmem:[#allocation97_spill] sm:$0xff] %v16364_v28  ;;  %v16387_v58 = vmul.f32 %v3107_v62, %v3091_v0 }
 0x45b   : > { %v3115_v11 = vrot.slane %v13048_v33, %v21210_v17  ;;  %v13050_v44 = vpop.eup %13049  ;;  %v16355_v33 = vmul.f32 %v3099_v26, %v3085_v27  ;;  %21230 = vst [vmem:[#allocation48_spill] sm:$0xff] %v16366_v43  ;;  %21231 = vst [vmem:[#allocation96_spill] sm:$0xff] %v16368_v20  ;;  %v16383_v26 = vmul.f32 %v3107_v62, %v3087_v9 }
 0x45c   : > { %12060 = vrot.lane.b32.xlu1 %v16311_v24, %s21220_s30  ;;  %v13052_v42 = vpop.eup %13051  ;;  %v16341_v5 = vmul.f32 %v3119_v40, %v3088_v52  ;;  %v16343_v46 = vmul.f32 %v3119_v40, %v3090_v29  ;;  %12050 = vrot.lane.b32.xlu0 %v16332_v12, %s21217_s11  ;;  %v3123_v50 = vrot.slane %v13050_v44, %v21210_v17 }
 0x45d   : > { %v16347_v57 = vmul.f32 %v3115_v11, %v3085_v27  ;;  %v16349_v61 = vmul.f32 %v3115_v11, %v3087_v9  ;;  %v16351_v30 = vmul.f32 %v3115_v11, %v3089_v32  ;;  %v16353_v15 = vmul.f32 %v3115_v11, %v3091_v0  ;;  %21227 = vst [vmem:[#allocation47_spill] sm:$0xff] %v16355_v33 }
 0x45e   : > { %21221 = vst [vmem:[#allocation141_spill] sm:$0xff] %v16341_v5  ;;  %21222 = vst [vmem:[#allocation123_spill] sm:$0xff] %v16343_v46  ;;  %v3111_v4 = vrot.slane %v13052_v42, %v21210_v17  ;;  %v16373_v11 = vmul.f32 %v3123_v50, %v3085_v27  ;;  %v16375_v3 = vmul.f32 %v3123_v50, %v3087_v9 }
 0x45f   : > { %21223 = vst [vmem:[#allocation93_spill] sm:$0xff] %v16347_v57  ;;  %21224 = vst [vmem:[#allocation54_spill] sm:$0xff] %v16349_v61  ;;  %v16377_v44 = vmul.f32 %v3123_v50, %v3089_v32  ;;  %v16379_v10 = vmul.f32 %v3123_v50, %v3091_v0  ;;  %v16402_v50 = vmul.f32 %v3119_v40, %v16286_v31 }
 0x460   : > { %21225 = vst [vmem:[#allocation92_spill] sm:$0xff] %v16351_v30  ;;  %21226 = vst [vmem:[#allocation33_spill] sm:$0xff] %v16353_v15  ;;  %12065 = vrot.lane.b32.xlu1 %v16307_v34, %s21220_s30  ;;  %12055 = vrot.lane.b32.xlu0 %v16362_v36, %s21217_s11  ;;  %v16390_v17 = vmul.f32 %v3111_v4, %v16286_v31  ;;  %v16393_v27 = vmul.f32 %v3111_v4, %v16289_v53 }
 0x461   : > { %21232 = vst [vmem:[#allocation124_spill] sm:$0xff] %v16373_v11  ;;  %21233 = vst [vmem:[#allocation147_spill] sm:$0xff] %v16375_v3  ;;  %v16395_v42 = vmul.f32 %v3111_v4, %v3088_v52  ;;  %v16397_v2 = vmul.f32 %v3111_v4, %v3090_v29  ;;  %v16405_v9 = vmul.f32 %v3119_v40, %v16289_v53 }
 0x462   : > { %21234 = vst [vmem:[#allocation103_spill] sm:$0xff] %v16377_v44  ;;  %21235 = vst [vmem:[#allocation102_spill] sm:$0xff] %v16379_v10  ;;  %v16411_v62 = vpack.i.bf16 %v16343_v46, %v16341_v5  ;;  %v16415_v4 = vpack.i.bf16 %v16366_v43, %v16364_v28  ;;  %v16419_v52 = vpack.i.bf16 %v16357_v21, %v16355_v33 }
 0x463   : > { %21236 = vst [vmem:[#allocation57_spill] sm:$0xff] %v16383_v26  ;;  %21237 = vst [vmem:[#allocation77_spill] sm:$0xff] %v16385_v19  ;;  %v16425_v31 = vpack.i.bf16 %v16383_v26, %v16368_v20  ;;  %v16429_v53 = vpack.i.bf16 %v16387_v58, %v16385_v19  ;;  %v16435_v29 = vpack.i.bf16 %v16375_v3, %v16373_v11 }
 0x464   : > { %21238 = vst [vmem:[#allocation65_spill] sm:$0xff] %v16387_v58  ;;  %21239 = vst [vmem:[#allocation107_spill] sm:$0xff] %v16390_v17  ;;  %12080 = vrot.lane.b32.xlu1 %v16311_v24, %s13344_s10  ;;  %12070 = vrot.lane.b32.xlu0 %v16332_v12, %s21220_s30  ;;  %v16439_v40 = vpack.i.bf16 %v16379_v10, %v16377_v44  ;;  %v16443_v32 = vpack.i.bf16 %v16349_v61, %v16347_v57 }
 0x465   : > { %21240 = vst [vmem:[#allocation60_spill] sm:$0xff] %v16393_v27  ;;  %21241 = vst [vmem:[#allocation61_spill] sm:$0xff] %v16395_v42  ;;  %v16447_v0 = vpack.i.bf16 %v16353_v15, %v16351_v30  ;;  %v16453_v63 = vpack.i.bf16 %v16397_v2, %v16395_v42  ;;  %v16459_v8 = vpack.i.bf16 %v16405_v9, %v16402_v50 }
 0x466   : > { %21242 = vst [vmem:[#allocation89_spill] sm:$0xff] %v16397_v2  ;;  %21243 = vst [vmem:[#allocation90_spill] sm:$0xff] %v16402_v50  ;;  %v16467_v1 = vpack.i.bf16 %v16393_v27, %v16390_v17 }
 0x467   : > { %21244 = vst [vmem:[#allocation131_spill] sm:$0xff] %v16405_v9  ;;  %21245 = vst [vmem:[#allocation98_spill] sm:$0xff] %v16411_v62 }
 0x468   : > { %12085 = vrot.lane.b32.xlu1 %v16307_v34, %s13344_s10  ;;  %21246 = vst [vmem:[#allocation32_spill] sm:$0xff] %v16425_v31  ;;  %21247 = vst [vmem:[#allocation29_spill] sm:$0xff] %v16429_v53  ;;  %12075 = vrot.lane.b32.xlu0 %v16362_v36, %s21220_s30 }
 0x469   : > { %21248 = vst [vmem:[#allocation71_spill] sm:$0xff] %v16443_v32  ;;  %21249 = vst [vmem:[#allocation62_spill] sm:$0xff] %v16453_v63 }
 0x46a   : > { %21250 = vst [vmem:[#allocation69_spill] sm:$0xff] %v16459_v8 }
 0x46c   : > { %12100 = vrot.lane.b32.xlu1 %v16311_v24, %s20655_s26  ;;  %12090 = vrot.lane.b32.xlu0 %v16332_v12, %s13344_s10 }
 0x470   : > { %12105 = vrot.lane.b32.xlu1 %v16307_v34, %s20655_s26  ;;  %12095 = vrot.lane.b32.xlu0 %v16362_v36, %s13344_s10 }
 0x474   : > { %12110 = vrot.lane.b32.xlu1 %v16419_v52, %s21217_s11  ;;  %12115 = vrot.lane.b32.xlu0 %v16415_v4, %s21217_s11 }
 0x478   : > { %12120 = vrot.lane.b32.xlu1 %v16425_v31, %s21217_s11  ;;  %12130 = vrot.lane.b32.xlu0 %v16419_v52, %s21220_s30 }
 0x47c   : > { %12125 = vrot.lane.b32.xlu1 %v16429_v53, %s21217_s11  ;;  %12135 = vrot.lane.b32.xlu0 %v16415_v4, %s21220_s30 }
 0x480   : > { %12140 = vrot.lane.b32.xlu1 %v16425_v31, %s21220_s30  ;;  %12150 = vrot.lane.b32.xlu0 %v16419_v52, %s13344_s10 }
 0x484   : > { %12145 = vrot.lane.b32.xlu1 %v16429_v53, %s21220_s30  ;;  %12155 = vrot.lane.b32.xlu0 %v16415_v4, %s13344_s10 }
 0x488   : > { %12160 = vrot.lane.b32.xlu1 %v16425_v31, %s13344_s10  ;;  %12170 = vrot.lane.b32.xlu0 %v16419_v52, %s20655_s26 }
 0x48c   : > { %12165 = vrot.lane.b32.xlu1 %v16429_v53, %s13344_s10  ;;  %12175 = vrot.lane.b32.xlu0 %v16467_v1, %s21217_s11 }
 0x490   : > { %12250 = vrot.lane.b32.xlu1 %v16425_v31, %s20655_s26  ;;  %12180 = vrot.lane.b32.xlu0 %v16453_v63, %s21217_s11 }
 0x494   : > { %12265 = vrot.lane.b32.xlu1 %v16429_v53, %s20655_s26  ;;  %12185 = vrot.lane.b32.xlu0 %v16459_v8, %s21217_s11 }
 0x498   : > { %12280 = vrot.lane.b32.xlu1 %v16411_v62, %s20655_s26  ;;  %12190 = vrot.lane.b32.xlu0 %v16411_v62, %s21217_s11 }
 0x49c   : > { %12290 = vrot.lane.b32.xlu1 %v16332_v12, %s13346_s3  ;;  %12195 = vrot.lane.b32.xlu0 %v16467_v1, %s21220_s30 }
 0x4a0   : > { %12300 = vrot.lane.b32.xlu1 %v16415_v4, %s13346_s3  ;;  %12200 = vrot.lane.b32.xlu0 %v16453_v63, %s21220_s30 }
 0x4a4   : > { %12310 = vrot.lane.b32.xlu1 %v16307_v34, %s13346_s3  ;;  %12205 = vrot.lane.b32.xlu0 %v16459_v8, %s21220_s30 }
 0x4a8   : > { %12320 = vrot.lane.b32.xlu1 %v16467_v1, %s13346_s3  ;;  %12210 = vrot.lane.b32.xlu0 %v16411_v62, %s21220_s30 }
 0x4ac   : > { %12325 = vrot.lane.b32.xlu1 %v16459_v8, %s13346_s3  ;;  %12215 = vrot.lane.b32.xlu0 %v16467_v1, %s13344_s10 }
 0x4b0   : > { %12335 = vrot.lane.b32.xlu1 %v16453_v63, %s13346_s3  ;;  %12220 = vrot.lane.b32.xlu0 %v16453_v63, %s13344_s10 }
 0x4b4   : > { %12340 = vrot.lane.b32.xlu1 %v16411_v62, %s13346_s3  ;;  %12225 = vrot.lane.b32.xlu0 %v16459_v8, %s13344_s10 }
 0x4b8   : > { %12345 = vrot.lane.b32.xlu1 %v16419_v52, %s13347_s8  ;;  %12230 = vrot.lane.b32.xlu0 %v16411_v62, %s13344_s10 }
 0x4bc   : > { %12355 = vrot.lane.b32.xlu1 %v16311_v24, %s13347_s8  ;;  %12235 = vrot.lane.b32.xlu0 %v16435_v29, %s21217_s11 }
 0x4c0   : > { %12360 = vrot.lane.b32.xlu1 %v16439_v40, %s21217_s11  ;;  %12240 = vrot.lane.b32.xlu0 %v16415_v4, %s20655_s26 }
 0x4c4   : > { %12365 = vrot.lane.b32.xlu1 %v16443_v32, %s21217_s11  ;;  %12245 = vrot.lane.b32.xlu0 %v16332_v12, %s20655_s26 }
 0x4c8   : > { %12370 = vrot.lane.b32.xlu1 %v16447_v0, %s21217_s11  ;;  %12255 = vrot.lane.b32.xlu0 %v16467_v1, %s20655_s26 }
 0x4ca   : > { %v16593_v6 = vpop.permute.xlu1 %12045  ;;  %v16595_v56 = vpop.permute.xlu0 %12040 }
 0x4cb   : > { %v20372_v2 = vunpack.i.l.bf16 %v16595_v56  ;;  %v21253_v17 = vunpack.i.h.bf16 %v16595_v56  ;;  %v21255_v3 = vunpack.i.l.bf16 %v16593_v6 }
 0x4cc   : > { %12375 = vrot.lane.b32.xlu1 %v16435_v29, %s21220_s30  ;;  %12260 = vrot.lane.b32.xlu0 %v16362_v36, %s20655_s26 }
 0x4ce   : > { %v16601_v18 = vpop.permute.xlu1 %12060  ;;  %v12051_v38 = vpop.permute.xlu0 %12050 }
 0x4cf   : > { %v12053_v27 = vunpack.i.h.bf16 %v12051_v38  ;;  %v12052_v50 = vunpack.i.l.bf16 %v12051_v38 }
 0x4d0   : > { %12380 = vrot.lane.b32.xlu1 %v16439_v40, %s21220_s30  ;;  %12270 = vrot.lane.b32.xlu0 %v16453_v63, %s20655_s26 }
 0x4d2   : > { %v16607_v60 = vpop.permute.xlu1 %12065  ;;  %v16609_v45 = vpop.permute.xlu0 %12055 }
 0x4d4   : > { %12385 = vrot.lane.b32.xlu1 %v16443_v32, %s21220_s30  ;;  %12275 = vrot.lane.b32.xlu0 %v16459_v8, %s20655_s26 }
 0x4d6   : > { %v16615_v54 = vpop.permute.xlu1 %12080  ;;  %v16617_v51 = vpop.permute.xlu0 %12070 }
 0x4d8   : > { %12390 = vrot.lane.b32.xlu1 %v16447_v0, %s21220_s30  ;;  %12285 = vrot.lane.b32.xlu0 %v16419_v52, %s13346_s3 }
 0x4da   : > { %v16623_v13 = vpop.permute.xlu1 %12085  ;;  %v16625_v35 = vpop.permute.xlu0 %12075 }
 0x4dc   : > { %12395 = vrot.lane.b32.xlu1 %v16435_v29, %s13344_s10  ;;  %12295 = vrot.lane.b32.xlu0 %v16311_v24, %s13346_s3 }
 0x4de   : > { %v16631_v23 = vpop.permute.xlu1 %12100  ;;  %v16633_v7 = vpop.permute.xlu0 %12090 }
 0x4e0   : > { %12400 = vrot.lane.b32.xlu1 %v16439_v40, %s13344_s10  ;;  %12305 = vrot.lane.b32.xlu0 %v16362_v36, %s13346_s3 }
 0x4e2   : > { %v16639_v47 = vpop.permute.xlu1 %12105  ;;  %v16641_v25 = vpop.permute.xlu0 %12095 }
 0x4e3   : > { %21251 = vst [vmem:[#allocation109_spill] sm:$0xff] %v16639_v47 }
 0x4e4   : > { %12405 = vrot.lane.b32.xlu1 %v16443_v32, %s13344_s10  ;;  %12315 = vrot.lane.b32.xlu0 %v16425_v31, %s13346_s3 }
 0x4e6   : > { %v12111_v48 = vpop.permute.xlu1 %12110  ;;  %v12116_v5 = vpop.permute.xlu0 %12115 }
 0x4e7   : > { %v12113_v46 = vunpack.i.h.bf16 %v12111_v48  ;;  %v12112_v30 = vunpack.i.l.bf16 %v12111_v48  ;;  %v12118_v15 = vunpack.i.h.bf16 %v12116_v5  ;;  %v12117_v44 = vunpack.i.l.bf16 %v12116_v5 }
 0x4e8   : > { %12410 = vrot.lane.b32.xlu1 %v16447_v0, %s13344_s10  ;;  %12330 = vrot.lane.b32.xlu0 %v16429_v53, %s13346_s3  ;;  %v20374_v5 = vunpack.i.h.bf16 %v16593_v6 }
 0x4e9   : > { %v3244_v42 = vsel %vm21252_vm5, %v20372_v2, %v12112_v30  ;;  %v3245_v48 = vsel %vm21254_vm1, %v21253_v17, %v12113_v46  ;;  %v16669_v2 = vsel %vm21256_vm12, %v21255_v3, %v12117_v44  ;;  %v3241_v37 = vsel %vm21257_vm10, %v12113_v46, %v12053_v27  ;;  %vm21260_vm5 = vmmov %vm21254_vm1 }
 0x4ea   : > { %v12121_v9 = vpop.permute.xlu1 %12120  ;;  %v3255_v57 = vpack.c.bf16 %v3245_v48, %v3244_v42  ;;  %v16663_v10 = vpop.permute.xlu0 %12130  ;;  %v3240_v17 = vsel %vm21258_vm7, %v12112_v30, %v12052_v50  ;;  %v16681_v38 = vsel %vm21259_vm9, %v20374_v5, %v12118_v15  ;;  %v12058_v30 = vunpack.i.h.bf16 %v16609_v45  ;;  %vm21261_vm12 = vmmov %vm21254_vm1 }
 0x4eb   : > { %v12123_v61 = vunpack.i.h.bf16 %v12121_v9  ;;  %v12122_v11 = vunpack.i.l.bf16 %v12121_v9  ;;  %v12057_v42 = vunpack.i.l.bf16 %v16609_v45  ;;  %v3256_v14 = vpack.c.bf16 %v3241_v37, %v3240_v17  ;;  %vm21262_vm10 = vmmov %vm21254_vm1 }
 0x4ec   : > { %3279 = vmatprep.subr.bf16.mxu0 %v3255_v57  ;;  %12415 = vrot.lane.b32.xlu1 %v16435_v29, %s20655_s26  ;;  %vm21263_vm7 = vmmov %vm21254_vm1  ;;  %v12132_v21 = vunpack.i.l.bf16 %v16663_v10 }
 0x4ed   : > { %12350 = vrot.lane.b32.xlu0 %v16332_v12, %s13347_s8  ;;  %v3236_v3 = vsel %vm21260_vm5, %v12052_v50, %v12122_v11  ;;  %v3237_v46 = vsel %vm21254_vm1, %v12053_v27, %v12123_v61  ;;  %v3243_v50 = vsel %vm21261_vm12, %v12118_v15, %v12058_v30  ;;  %v3242_v27 = vsel %vm21262_vm10, %v12117_v44, %v12057_v42  ;;  %vm21264_vm9 = vmmov %vm21254_vm1 }
 0x4ee   : > { %v12126_v9 = vpop.permute.xlu1 %12125  ;;  %v3257_v48 = vpack.c.bf16 %v3237_v46, %v3236_v3  ;;  %v16693_v5 = vpop.permute.xlu0 %12135  ;;  %v3264_v44 = vpack.c.bf16 %v3243_v50, %v3242_v27  ;;  %v16713_v46 = vld [vmem:[#allocation10] sm:$0xff]   ;;  %vm3275_vm5 = vcmask 261120   ;;  %vm21268_vm12 = vmmov %vm21254_vm1 }
 0x4ef   : > { %v12128_v55 = vunpack.i.h.bf16 %v12126_v9  ;;  %v12127_v49 = vunpack.i.l.bf16 %v12126_v9  ;;  %vm21270_vm10 = vmmov %vm21254_vm1 }
 0x4f0   : > { %3322 = vmatprep.subr.bf16.mxu1 %v3257_v48  ;;  %12420 = vrot.lane.b32.xlu1 %v16439_v40, %s20655_s26 }
 0x4f1   : > { %12440 = vrot.lane.b32.xlu0 %v16362_v36, %s13347_s8  ;;  %3323 = vmatpush1.bf16.msra.mxu1 %v3256_v14  ;;  %v3238_v45 = vsel %vm21263_vm7, %v12057_v42, %v12127_v49  ;;  %v3239_v37 = vsel %vm21264_vm9, %v12058_v30, %v12128_v55  ;;  %v21266_v42 = vmov 0   ;;  %vm21271_vm7 = vmmov %vm21254_vm1  ;;  %vm21286_vm9 = vcmp.lt.s32.totalorder %v13883_v22, 16 }
 0x4f2   : > { %v16707_v17 = vpop.permute.xlu1 %12140  ;;  %v3265_v15 = vpack.c.bf16 %v3239_v37, %v3238_v45  ;;  %v16709_v3 = vpop.permute.xlu0 %12150 }
 0x4f3   : > { %21265 = vst [vmem:[#allocation153_spill] sm:$0xff] %v16707_v17 }
 0x4f4   : > { %3324 = vmatprep.subr.bf16.mxu1 %v3265_v15  ;;  %12425 = vrot.lane.b32.xlu1 %v16443_v32, %s20655_s26 }
 0x4f5   : > { %12450 = vrot.lane.b32.xlu0 %v16425_v31, %s13347_s8  ;;  %3325 = vmatpush1.bf16.msra.mxu1 %v3264_v44 }
 0x4f6   : > { %v16717_v14 = vpop.permute.xlu1 %12145  ;;  %v16719_v30 = vpop.permute.xlu0 %12155 }
 0x4f8   : > { %12430 = vrot.lane.b32.xlu1 %v16447_v0, %s20655_s26  ;;  %11629 = vmatmul.mubr.msk.bf16.vlgmr.msra.gmra.mrb[12].mxu1 %vm3275_vm5, %v16713_v46 }
 0x4f9   : > { %12465 = vrot.lane.b32.xlu0 %v16429_v53, %s13347_s8  ;;  %3440 = vmatprep.mubr.bf16.mxu1 %v21266_v42 }
 0x4fa   : > { %v16728_v9 = vpop.permute.xlu1 %12160  ;;  %v16730_v48 = vpop.permute.xlu0 %12170 }
 0x4fc   : > { %12435 = vrot.lane.b32.xlu1 %v16415_v4, %s13347_s8 }
 0x4fd   : > { %12485 = vrot.lane.b32.xlu0 %v16332_v12, %s20665_s29 }
 0x4fe   : > { %v16736_v50 = vpop.permute.xlu1 %12165  ;;  %v16738_v27 = vpop.permute.xlu0 %12175 }
 0x4ff   : > { %21267 = vst [vmem:[#allocation52_spill] sm:$0xff] %v16736_v50  ;;  %v20382_v45 = vunpack.i.h.bf16 %v16738_v27  ;;  %v20383_v37 = vunpack.i.l.bf16 %v16738_v27 }
 0x500   : > { %12445 = vrot.lane.b32.xlu1 %v16307_v34, %s13347_s8 }
 0x501   : > { %12500 = vrot.lane.b32.xlu0 %v16362_v36, %s20665_s29  ;;  %v16750_v15 = vsel %vm21254_vm1, %v12123_v61, %v20382_v45  ;;  %v16756_v44 = vsel %vm21268_vm12, %v12122_v11, %v20383_v37  ;;  %vm21287_vm1 = vmmov %vm21286_vm9 }
 0x502   : > { %v16758_v57 = vpop.permute.xlu1 %12250  ;;  %v16760_v28 = vpop.permute.xlu0 %12180  ;;  %vm21291_vm12 = vmmov %vm21287_vm1 }
 0x503   : > { %21269 = vst [vmem:[#allocation154_spill] sm:$0xff] %v16758_v57  ;;  %v20384_v19 = vunpack.i.h.bf16 %v16760_v28  ;;  %v20385_v58 = vunpack.i.l.bf16 %v16760_v28  ;;  %v21292_v57 = vunpack.i.h.bf16 %v16601_v18 }
 0x504   : > { %12455 = vrot.lane.b32.xlu1 %v16467_v1, %s13347_s8 }
 0x505   : > { %12510 = vrot.lane.b32.xlu0 %v16425_v31, %s20665_s29  ;;  %v16774_v61 = vsel %vm21270_vm10, %v12128_v55, %v20384_v19  ;;  %v16780_v11 = vsel %vm21271_vm7, %v12127_v49, %v20385_v58  ;;  %vm21293_vm10 = vmmov %vm21287_vm1 }
 0x506   : > { %v16782_v43 = vpop.permute.xlu1 %12265  ;;  %v16784_v45 = vpop.permute.xlu0 %12185  ;;  %vm21295_vm7 = vmmov %vm21287_vm1 }
 0x507   : > { %21272 = vst [vmem:[#allocation110_spill] sm:$0xff] %v16782_v43 }
 0x508   : > { %12460 = vrot.lane.b32.xlu1 %v16459_v8, %s13347_s8 }
 0x509   : > { %12525 = vrot.lane.b32.xlu0 %v16429_v53, %s20665_s29 }
 0x50a   : > { %v16792_v55 = vpop.permute.xlu1 %12280  ;;  %v16794_v19 = vpop.permute.xlu0 %12190 }
 0x50b   : > { %21273 = vst [vmem:[#allocation116_spill] sm:$0xff] %v16792_v55  ;;  %v20410_v55 = vunpack.i.l.bf16 %v16601_v18 }
 0x50c   : > { %12470 = vrot.lane.b32.xlu1 %v16453_v63, %s13347_s8 }
 0x50d   : > { %12545 = vrot.lane.b32.xlu0 %v16332_v12, %s20683_s9 }
 0x50e   : > { %v16800_v49 = vpop.permute.xlu1 %12290  ;;  %v16802_v58 = vpop.permute.xlu0 %12195 }
 0x50f   : > { %21274 = vst [vmem:[#allocation81_spill] sm:$0xff] %v16800_v49 }
 0x510   : > { %12475 = vrot.lane.b32.xlu1 %v16411_v62, %s13347_s8 }
 0x511   : > { %12560 = vrot.lane.b32.xlu0 %v16362_v36, %s20683_s9 }
 0x512   : > { %v16808_v37 = vpop.permute.xlu1 %12300  ;;  %v16810_v39 = vpop.permute.xlu0 %12200 }
 0x513   : > { %21275 = vst [vmem:[#allocation113_spill] sm:$0xff] %v16808_v37  ;;  %21276 = vst [vmem:[#allocation49_spill] sm:$0xff] %v16810_v39  ;;  %v12073_v37 = vunpack.i.h.bf16 %v16617_v51 }
 0x514   : > { %12480 = vrot.lane.b32.xlu1 %v16419_v52, %s20665_s29 }
 0x515   : > { %12570 = vrot.lane.b32.xlu0 %v16443_v32, %s13346_s3 }
 0x516   : > { %v16816_v12 = vpop.permute.xlu1 %12310  ;;  %v16818_v59 = vpop.permute.xlu0 %12205 }
 0x517   : > { %21277 = vst [vmem:[#allocation27_spill] sm:$0xff] %v16816_v12 }
 0x518   : > { %12490 = vrot.lane.b32.xlu1 %v16311_v24, %s20665_s29 }
 0x519   : > { %12575 = vrot.lane.b32.xlu0 %v16447_v0, %s13346_s3 }
 0x51a   : > { %v16824_v36 = vpop.permute.xlu1 %12320  ;;  %v16826_v16 = vpop.permute.xlu0 %12210 }
 0x51b   : > { %21278 = vst [vmem:[#allocation155_spill] sm:$0xff] %v16824_v36  ;;  %21279 = vst [vmem:[#allocation156_spill] sm:$0xff] %v16826_v16 }
 0x51c   : > { %12495 = vrot.lane.b32.xlu1 %v16415_v4, %s20665_s29 }
 0x51d   : > { %12580 = vrot.lane.b32.xlu0 %v16435_v29, %s13346_s3 }
 0x51e   : > { %v16832_v41 = vpop.permute.xlu1 %12325  ;;  %v16834_v49 = vpop.permute.xlu0 %12215 }
 0x51f   : > { %21280 = vst [vmem:[#allocation157_spill] sm:$0xff] %v16832_v41  ;;  %21281 = vst [vmem:[#allocation158_spill] sm:$0xff] %v16834_v49  ;;  %v12133_v41 = vunpack.i.h.bf16 %v16663_v10  ;;  %v12187_v49 = vunpack.i.l.bf16 %v16784_v45 }
 0x520   : > { %12505 = vrot.lane.b32.xlu1 %v16307_v34, %s20665_s29 }
 0x521   : > { %12585 = vrot.lane.b32.xlu0 %v16439_v40, %s13346_s3  ;;  %v16864_v10 = vsel %vm21286_vm9, %v12133_v41, %v12073_v37  ;;  %v16886_v47 = vsel %vm21293_vm10, %v21292_v57, %v12133_v41  ;;  %vm21296_vm9 = vmmov %vm21287_vm1  ;;  %v12152_v41 = vunpack.i.l.bf16 %v16709_v3 }
 0x522   : > { %v16840_v33 = vpop.permute.xlu1 %12335  ;;  %v16842_v36 = vpop.permute.xlu0 %12220  ;;  %vm21301_vm10 = vmmov %vm21287_vm1 }
 0x523   : > { %21282 = vst [vmem:[#allocation159_spill] sm:$0xff] %v16840_v33  ;;  %21283 = vst [vmem:[#allocation160_spill] sm:$0xff] %v16842_v36  ;;  %v12072_v33 = vunpack.i.l.bf16 %v16617_v51  ;;  %v12138_v51 = vunpack.i.h.bf16 %v16693_v5  ;;  %v16880_v36 = vsel %vm21291_vm12, %v20410_v55, %v12132_v21  ;;  %v20416_v55 = vunpack.i.l.bf16 %v16625_v35 }
 0x524   : > { %12515 = vrot.lane.b32.xlu1 %v16467_v1, %s20665_s29  ;;  %vm21299_vm12 = vmmov %vm21287_vm1 }
 0x525   : > { %12590 = vrot.lane.b32.xlu0 %v16443_v32, %s13347_s8 }
 0x526   : > { %v16850_v20 = vpop.permute.xlu1 %12340  ;;  %v16852_v26 = vpop.permute.xlu0 %12225 }
 0x527   : > { %21284 = vst [vmem:[#allocation161_spill] sm:$0xff] %v16850_v20  ;;  %21285 = vst [vmem:[#allocation162_spill] sm:$0xff] %v16852_v26  ;;  %v16868_v20 = vsel %vm21287_vm1, %v12132_v21, %v12072_v33  ;;  %v12137_v26 = vunpack.i.l.bf16 %v16693_v5  ;;  %v20415_v21 = vunpack.i.h.bf16 %v16625_v35  ;;  %v12153_v5 = vunpack.i.h.bf16 %v16709_v3 }
 0x528   : > { %12520 = vrot.lane.b32.xlu1 %v16459_v8, %s20665_s29  ;;  %21288 = vst [vmem:[#allocation163_spill] sm:$0xff] %v16868_v20  ;;  %v21298_v3 = vunpack.i.h.bf16 %v16707_v17 }
 0x529   : > { %12595 = vrot.lane.b32.xlu0 %v16447_v0, %s13347_s8  ;;  %v16912_v8 = vsel %vm21295_vm7, %v12138_v51, %v20415_v21  ;;  %v16918_v57 = vsel %vm21296_vm9, %v12137_v26, %v20416_v55  ;;  %v21297_v21 = vunpack.i.l.bf16 %v16707_v17  ;;  %vm21303_vm7 = vmmov %vm21287_vm1  ;;  %vm21305_vm9 = vcmp.lt.s32.totalorder %v13883_v22, 17 }
 0x52a   : > { %v16870_v43 = vpop.permute.xlu1 %12345  ;;  %v16874_v12 = vpop.permute.xlu0 %12230 }
 0x52b   : > { %21289 = vst [vmem:[#allocation164_spill] sm:$0xff] %v16870_v43  ;;  %21290 = vst [vmem:[#allocation165_spill] sm:$0xff] %v16874_v12  ;;  %v16932_v55 = vsel %vm21287_vm1, %v12072_v33, %v21297_v21  ;;  %v21304_v33 = vunpack.i.h.bf16 %v16595_v56 }
 0x52c   : > { %12530 = vrot.lane.b32.xlu1 %v16453_v63, %s20665_s29  ;;  %v16938_v63 = vsel %vm21299_vm12, %v12073_v37, %v21298_v3  ;;  %v21306_v37 = vunpack.i.l.bf16 %v16595_v56  ;;  %vm21307_vm1 = vmmov %vm21305_vm9 }
 0x52d   : > { %12600 = vrot.lane.b32.xlu0 %v16435_v29, %s13347_s8  ;;  %vm21308_vm12 = vmmov %vm21307_vm1 }
 0x52e   : > { %v16902_v43 = vpop.permute.xlu1 %12355  ;;  %v12236_v12 = vpop.permute.xlu0 %12235 }
 0x52f   : > { %21294 = vst [vmem:[#allocation166_spill] sm:$0xff] %v16902_v43  ;;  %v12188_v43 = vunpack.i.h.bf16 %v16784_v45  ;;  %v12238_v50 = vunpack.i.h.bf16 %v12236_v12  ;;  %v12237_v53 = vunpack.i.l.bf16 %v12236_v12  ;;  %v21300_v45 = vunpack.i.l.bf16 %v16607_v60 }
 0x530   : > { %12535 = vrot.lane.b32.xlu1 %v16411_v62, %s20665_s29  ;;  %v21302_v62 = vunpack.i.h.bf16 %v16607_v60 }
 0x531   : > { %12605 = vrot.lane.b32.xlu0 %v16439_v40, %s13347_s8  ;;  %v16944_v12 = vsel %vm21301_vm10, %v21300_v45, %v12137_v26  ;;  %v3249_v21 = vsel %vm21305_vm9, %v12238_v50, %v21304_v33  ;;  %v3248_v3 = vsel %vm21307_vm1, %v12237_v53, %v21306_v37  ;;  %v3220_v26 = vsel %vm21308_vm12, %v12187_v49, %v12237_v53  ;;  %vm21309_vm10 = vmmov %vm21307_vm1 }
 0x532   : > { %v16950_v39 = vsel %vm21303_vm7, %v21302_v62, %v12138_v51  ;;  %v12361_v17 = vpop.permute.xlu1 %12360  ;;  %v3221_v45 = vsel %vm21309_vm10, %v12188_v43, %v12238_v50  ;;  %v16964_v51 = vpop.permute.xlu0 %12240  ;;  %v3254_v16 = vpack.c.bf16 %v3249_v21, %v3248_v3  ;;  %v21311_v33 = vunpack.i.h.bf16 %v16633_v7  ;;  %vm21317_vm12 = vmmov %vm21307_vm1 }
 0x533   : > { %v12363_v31 = vunpack.i.h.bf16 %v12361_v17  ;;  %v12362_v62 = vunpack.i.l.bf16 %v12361_v17  ;;  %21310 = vst [vmem:[#allocation167_spill] sm:$0xff] %v16964_v51  ;;  %v3261_v20 = vpack.c.bf16 %v3221_v45, %v3220_v26  ;;  %vm21312_vm7 = vcmp.lt.s32.totalorder %v13883_v22, 15 }
 0x534   : > { %v16970_v56 = vsel %vm21312_vm7, %v12153_v5, %v21311_v33  ;;  %v21313_v37 = vunpack.i.l.bf16 %v16633_v7  ;;  %vm21314_vm9 = vmmov %vm21312_vm7  ;;  %12540 = vrot.lane.b32.xlu1 %v16419_v52, %s20683_s9  ;;  %v21315_v3 = vunpack.i.h.bf16 %v16593_v6  ;;  %v21316_v45 = vunpack.i.l.bf16 %v16593_v6  ;;  %3280 = vmatpush1.bf16.msra.mxu0 %v3254_v16 }
 0x535   : > { %3408 = vmatprep.subr.bf16.mxu1 %v3261_v20  ;;  %v12192_v50 = vunpack.i.l.bf16 %v16794_v19  ;;  %12610 = vrot.lane.b32.xlu0 %v16443_v32, %s20665_s29  ;;  %vm21320_vm10 = vmmov %vm21312_vm7  ;;  %v12147_v52 = vunpack.i.l.bf16 %v16717_v14  ;;  %v12158_v32 = vunpack.i.h.bf16 %v16719_v30 }
 0x536   : > { %v16976_v53 = vsel %vm21314_vm9, %v12152_v41, %v21313_v37  ;;  %v3251_v26 = vsel %vm21307_vm1, %v12363_v31, %v21315_v3  ;;  %v3250_v33 = vsel %vm21317_vm12, %v12362_v62, %v21316_v45  ;;  %v12193_v37 = vunpack.i.h.bf16 %v16794_v19  ;;  %v12366_v6 = vpop.permute.xlu1 %12365  ;;  %v17010_v19 = vpop.permute.xlu0 %12245  ;;  %vm21321_vm7 = vmmov %vm21307_vm1 }
 0x537   : > { %v21318_v3 = vpack.c.bf16 %v16681_v38, %v16669_v2  ;;  %v3262_v17 = vpack.c.bf16 %v3251_v26, %v3250_v33  ;;  %v21319_v45 = vunpack.i.l.bf16 %v16615_v54  ;;  %v12368_v21 = vunpack.i.h.bf16 %v12366_v6  ;;  %vm21322_vm9 = vmmov %vm21307_vm1 }
 0x538   : > { %v12367_v51 = vunpack.i.l.bf16 %v12366_v6  ;;  %12550 = vrot.lane.b32.xlu1 %v16311_v24, %s20683_s9  ;;  %v3222_v2 = vsel %vm21321_vm7, %v12192_v50, %v12362_v62  ;;  %v3223_v38 = vsel %vm21322_vm9, %v12193_v37, %v12363_v31  ;;  %vm21324_vm1 = vmmov %vm21320_vm10  ;;  %v21327_v24 = vunpack.i.l.bf16 %v16738_v27 }
 0x539   : > { %3281 = vmatprep.subr.bf16.mxu0 %v21318_v3  ;;  %v17006_v20 = vsel %vm21320_vm10, %v21319_v45, %v12152_v41  ;;  %v21323_v41 = vunpack.i.h.bf16 %v16615_v54  ;;  %vm21325_vm12 = vmmov %vm21321_vm7  ;;  %v21328_v31 = vunpack.i.h.bf16 %v16738_v27  ;;  %12615 = vrot.lane.b32.xlu0 %v16447_v0, %s20665_s29  ;;  %v21330_v27 = vunpack.i.l.bf16 %v16625_v35 }
 0x53a   : > { %v3225_v33 = vsel %vm21325_vm12, %v12368_v21, %v12188_v43  ;;  %vm21326_vm10 = vmmov %vm21321_vm7  ;;  %3282 = vmatpush1.bf16.msra.mxu0 %v3262_v17  ;;  %v3228_v62 = vsel %vm21321_vm7, %v21327_v24, %v12367_v51  ;;  %v12371_v43 = vpop.permute.xlu1 %12370  ;;  %v17042_v17 = vpop.permute.xlu0 %12255  ;;  %v21333_v24 = vunpack.i.h.bf16 %v16625_v35 }
 0x53b   : > { %v17023_v26 = vsel %vm21324_vm1, %v21323_v41, %v12153_v5  ;;  %v3224_v3 = vsel %vm21326_vm10, %v12367_v51, %v12187_v49  ;;  %vm21329_vm9 = vmmov %vm21321_vm7  ;;  %v12157_v5 = vunpack.i.l.bf16 %v16719_v30  ;;  %v12373_v16 = vunpack.i.h.bf16 %v12371_v43 }
 0x53c   : > { %v3229_v6 = vsel %vm21329_vm9, %v21328_v31, %v12368_v21  ;;  %v3260_v41 = vpack.c.bf16 %v3225_v33, %v3224_v3  ;;  %v12372_v51 = vunpack.i.l.bf16 %v12371_v43  ;;  %vm21331_vm1 = vcmp.lt.s32.totalorder %v13883_v22, 16  ;;  %12555 = vrot.lane.b32.xlu1 %v16415_v4, %s20683_s9  ;;  %vm21337_vm9 = vmmov %vm21321_vm7 }
 0x53d   : > { %v3259_v45 = vpack.c.bf16 %v3229_v6, %v3228_v62  ;;  %v17050_v30 = vsel %vm21331_vm1, %v21330_v27, %v12147_v52  ;;  %v21332_v21 = vunpack.i.h.bf16 %v16717_v14  ;;  %vm21334_vm12 = vmmov %vm21331_vm1  ;;  %v20427_v3 = vunpack.i.l.bf16 %v16641_v25  ;;  %11628 = vmatmul.mubr.msk.bf16.vlgmr.msra.gmra.mrb[12].mxu0 %vm3275_vm5, %v16713_v46  ;;  %12620 = vrot.lane.b32.xlu0 %v16435_v29, %s20665_s29 }
 0x53e   : > { %v21335_v62 = vunpack.i.h.bf16 %v16641_v25  ;;  %vm21336_vm10 = vcmp.lt.s32.totalorder %v13883_v22, 15  ;;  %v3269_v6 = vpack.c.bf16 %v3223_v38, %v3222_v2  ;;  %v12088_v43 = vunpack.i.h.bf16 %v16623_v13  ;;  %3409 = vmatpush1.bf16.msra.mxu1 %v3260_v41  ;;  %vm21339_vm1 = vmmov %vm21321_vm7  ;;  %3397 = vmatprep.mubr.bf16.mxu0 %v21266_v42 }
 0x53f   : > { %v17058_v33 = vsel %vm21334_vm12, %v21333_v24, %v21332_v21  ;;  %v3227_v27 = vsel %vm21321_vm7, %v12373_v16, %v12193_v37  ;;  %v3226_v21 = vsel %vm21337_vm9, %v12372_v51, %v12192_v50  ;;  %3365 = vmatprep.subr.bf16.mxu0 %v3259_v45  ;;  %v21338_v24 = vunpack.i.l.bf16 %v16760_v28  ;;  %vm21340_vm12 = vmmov %vm21336_vm10  ;;  %v12376_v37 = vpop.permute.xlu1 %12375 }
 0x540   : > { %v17065_v31 = vsel %vm21336_vm10, %v12158_v32, %v21335_v62  ;;  %v12087_v4 = vunpack.i.l.bf16 %v16623_v13  ;;  %v17087_v2 = vsel %vm21340_vm12, %v12157_v5, %v20427_v3  ;;  %v21341_v50 = vpack.c.bf16 %v16750_v15, %v16756_v44  ;;  %vm21343_vm10 = vmmov %vm21339_vm1  ;;  %3410 = vmatprep.subr.bf16.mxu1 %v3269_v6  ;;  %12565 = vrot.lane.b32.xlu1 %v16307_v34, %s20683_s9 }
 0x541   : > { %v3230_v62 = vsel %vm21339_vm1, %v21338_v24, %v12372_v51  ;;  %v21342_v38 = vunpack.i.h.bf16 %v16760_v28  ;;  %v3593_v41 = vpack.c.bf16 %v17058_v33, %v17050_v30  ;;  %v17100_v51 = vpop.permute.xlu0 %12260  ;;  %v12378_v24 = vunpack.i.h.bf16 %v12376_v37  ;;  %vm21344_vm7 = vmmov %vm21340_vm12  ;;  %12625 = vrot.lane.b32.xlu0 %v16439_v40, %s20665_s29 }
 0x542   : > { %3366 = vmatpush1.bf16.msra.mxu0 %v21341_v50  ;;  %v12377_v49 = vunpack.i.l.bf16 %v12376_v37  ;;  %v3268_v3 = vpack.c.bf16 %v3227_v27, %v3226_v21  ;;  %v12163_v15 = vunpack.i.h.bf16 %v16728_v9  ;;  %v12162_v44 = vunpack.i.l.bf16 %v16728_v9  ;;  %vm21345_vm9 = vmmov %vm21344_vm7 }
 0x543   : > { %v3231_v45 = vsel %vm21343_vm10, %v21342_v38, %v12373_v16  ;;  %v17111_v28 = vsel %vm21344_vm7, %v12087_v4, %v12157_v5  ;;  %v17117_v16 = vsel %vm21345_vm9, %v12088_v43, %v12158_v32  ;;  %v12103_v30 = vunpack.i.h.bf16 %v16631_v23  ;;  %v12381_v50 = vpop.permute.xlu1 %12380  ;;  %vm21356_vm9 = vmmov %vm21344_vm7 }
 0x544   : > { %v3267_v35 = vpack.c.bf16 %v3231_v45, %v3230_v62  ;;  %v21346_v33 = vunpack.i.h.bf16 %v16601_v18  ;;  %vm21347_vm1 = vcmp.lt.s32.totalorder %v13883_v22, 16  ;;  %v21348_v34 = vunpack.i.l.bf16 %v16601_v18  ;;  %3411 = vmatpush1.bf16.msra.mxu1 %v3268_v3  ;;  %12635 = vrot.lane.b32.xlu1 %v16467_v1, %s20683_s9 }
 0x545   : > { %vm21349_vm12 = vmmov %vm21347_vm1  ;;  %v12172_v32 = vunpack.i.l.bf16 %v16730_v48  ;;  %v12198_v21 = vunpack.i.h.bf16 %v16802_v58  ;;  %v12207_v62 = vunpack.i.l.bf16 %v16818_v59  ;;  %v21350_v18 = vpack.c.bf16 %v16774_v61, %v16780_v11  ;;  %v17143_v45 = vpop.permute.xlu0 %12270 }
 0x546   : > { %v3576_v6 = vsel %vm21347_vm1, %v12378_v24, %v21346_v33  ;;  %v3575_v27 = vsel %vm21349_vm12, %v12377_v49, %v21348_v34  ;;  %3367 = vmatprep.subr.bf16.mxu0 %v3267_v35  ;;  %v12197_v3 = vunpack.i.l.bf16 %v16802_v58  ;;  %v12208_v35 = vunpack.i.h.bf16 %v16818_v59  ;;  %vm21353_vm10 = vmmov %vm21347_vm1 }
 0x547   : > { %3368 = vmatpush1.bf16.msra.mxu0 %v21350_v18  ;;  %v3582_v37 = vpack.c.bf16 %v3576_v6, %v3575_v27  ;;  %v21351_v38 = vpack.c.bf16 %v16938_v63, %v16932_v55  ;;  %v12383_v33 = vunpack.i.h.bf16 %v12381_v50  ;;  %v12382_v34 = vunpack.i.l.bf16 %v12381_v50  ;;  %11631 = vmatmul.mubr.msk.bf16.vlgmr.msra.gmra.mrb[16].mxu1 %vm3275_vm5, %v16713_v46  ;;  %vm21359_vm12 = vmmov %vm21347_vm1  ;;  %v21363_v18 = vld [vmem:[#allocation156_spill] sm:$0xff] }
 0x548   : > { %v21352_v5 = vpack.c.bf16 %v16886_v47, %v16880_v36  ;;  %v20428_v61 = vunpack.i.l.bf16 %v16631_v23  ;;  %v3547_v58 = vsel %vm21353_vm10, %v12207_v62, %v12377_v49  ;;  %v21354_v63 = vunpack.i.l.bf16 %v16633_v7  ;;  %vm21362_vm10 = vmmov %vm21347_vm1  ;;  %3681 = vmatprep.mubr.bf16.mxu1 %v21266_v42 }
 0x549   : > { %3649 = vmatprep.subr.bf16.mxu1 %v21351_v38  ;;  %v21355_v47 = vunpack.i.h.bf16 %v16633_v7  ;;  %v12173_v1 = vunpack.i.h.bf16 %v16730_v48  ;;  %v21357_v55 = vunpack.i.h.bf16 %v16607_v60  ;;  %v21358_v49 = vunpack.i.l.bf16 %v16607_v60  ;;  %v21360_v7 = vld [vmem:[#allocation163_spill] sm:$0xff]  ;;  %v12386_v60 = vpop.permute.xlu1 %12385 }
 0x54a   : > { %3606 = vmatprep.subr.bf16.mxu0 %v21352_v5  ;;  %v17161_v59 = vsel %vm21344_vm7, %v21354_v63, %v12162_v44  ;;  %11630 = vmatmul.mubr.msk.bf16.vlgmr.msra.gmra.mrb[16].mxu0 %vm3275_vm5, %v16713_v46  ;;  %v21361_v27 = vpack.c.bf16 %v16864_v10, %v21360_v7  ;;  %v3548_v5 = vsel %vm21362_vm10, %v12208_v35, %v12378_v24  ;;  %v12213_v50 = vunpack.i.h.bf16 %v21363_v18  ;;  %v21364_v63 = vld [vmem:[#allocation32_spill] sm:$0xff]  ;;  %v21366_v10 = vld [vmem:[#allocation153_spill] sm:$0xff]  ;;  %vm21374_vm10 = vmmov %vm21347_vm1 }
 0x54b   : > { %v17169_v11 = vsel %vm21356_vm9, %v21355_v47, %v12163_v15  ;;  %v3578_v36 = vsel %vm21347_vm1, %v12383_v33, %v21357_v55  ;;  %v3577_v6 = vsel %vm21359_vm12, %v12382_v34, %v21358_v49  ;;  %v12212_v38 = vunpack.i.l.bf16 %v21363_v18  ;;  %12630 = vrot.lane.b32.xlu0 %v21364_v63, %s20683_s9  ;;  %3607 = vmatpush1.bf16.msra.mxu0 %v3582_v37  ;;  %vm21368_vm9 = vmmov %vm21347_vm1  ;;  %v21371_v18 = vld [vmem:[#allocation49_spill] sm:$0xff] }
 0x54c   : > { %3650 = vmatpush1.bf16.msra.mxu1 %v21361_v27  ;;  %v3590_v47 = vpack.c.bf16 %v3578_v36, %v3577_v6  ;;  %vm21365_vm7 = vcmp.lt.s32.totalorder %v13883_v22, 1  ;;  %v21367_v24 = vunpack.i.h.bf16 %v21366_v10  ;;  %v21369_v49 = vunpack.i.l.bf16 %v21366_v10  ;;  %v17207_v36 = vpop.permute.xlu0 %12275  ;;  %v17216_v10 = vld [vmem:[#allocation10 + $0x8] sm:$0xff]   ;;  %vm21373_vm12 = vmmov %vm21347_vm1  ;;  %3638 = vmatprep.mubr.bf16.mxu0 %v21266_v42 }
 0x54d   : > { %v17197_v46 = vsel %vm21365_vm7, %v20428_v61, %v12172_v32  ;;  %3651 = vmatprep.subr.bf16.mxu1 %v3593_v41  ;;  %v12388_v6 = vunpack.i.h.bf16 %v12386_v60  ;;  %v12387_v7 = vunpack.i.l.bf16 %v12386_v60  ;;  %v21370_v27 = vpack.c.bf16 %v16950_v39, %v16944_v12  ;;  %v21372_v61 = vld [vmem:[#allocation62_spill] sm:$0xff]  ;;  %vm21375_vm7 = vmmov %vm21347_vm1 }
 0x54e   : > { %v3560_v55 = vsel %vm21368_vm9, %v21367_v24, %v12198_v21  ;;  %v3559_v37 = vsel %vm21347_vm1, %v21369_v49, %v12197_v3  ;;  %v12203_v63 = vunpack.i.h.bf16 %v21371_v18  ;;  %12645 = vrot.lane.b32.xlu1 %v21372_v61, %s20683_s9  ;;  %v3589_v24 = vpack.c.bf16 %v3548_v5, %v3547_v58  ;;  %vm21376_vm9 = vmmov %vm21347_vm1  ;;  %v21378_v5 = vld [vmem:[#allocation29_spill] sm:$0xff] }
 0x54f   : > { %3608 = vmatprep.subr.bf16.mxu0 %v21370_v27  ;;  %v3549_v41 = vsel %vm21373_vm12, %v12212_v38, %v12382_v34  ;;  %v3550_v60 = vsel %vm21374_vm10, %v12213_v50, %v12383_v33  ;;  %v3552_v39 = vsel %vm21375_vm7, %v12388_v6, %v12208_v35  ;;  %v3551_v12 = vsel %vm21376_vm9, %v12387_v7, %v12207_v62  ;;  %v12391_v33 = vpop.permute.xlu1 %12390  ;;  %vm21379_vm12 = vmmov %vm21347_vm1 }
 0x550   : > { %v21377_v61 = vpack.c.bf16 %v16912_v8, %v16918_v57  ;;  %v3555_v58 = vsel %vm21347_vm1, %v12197_v3, %v12387_v7  ;;  %v12202_v34 = vunpack.i.l.bf16 %v21371_v18  ;;  %12640 = vrot.lane.b32.xlu0 %v21378_v5, %s20683_s9  ;;  %3609 = vmatpush1.bf16.msra.mxu0 %v3590_v47  ;;  %v3556_v35 = vsel %vm21379_vm12, %v12198_v21, %v12388_v6  ;;  %v21381_v57 = vld [vmem:[#allocation52_spill] sm:$0xff]  ;;  %v17246_v49 = vpop.permute.xlu0 %12285  ;;  %vm21383_vm7 = vmmov %vm21347_vm1 }
 0x551   : > { %v3588_v62 = vpack.c.bf16 %v3552_v39, %v3551_v12  ;;  %vm21380_vm10 = vcmp.lt.s32.totalorder %v13883_v22, 1  ;;  %v12168_v3 = vunpack.i.h.bf16 %v21381_v57  ;;  %v12393_v7 = vunpack.i.h.bf16 %v12391_v33  ;;  %v21384_v39 = vld [vmem:[#allocation69_spill] sm:$0xff]  ;;  %vm21385_vm9 = vmmov %vm21347_vm1 }
 0x552   : > { %3652 = vmatpush1.bf16.msra.mxu1 %v21377_v61  ;;  %v17243_v8 = vsel %vm21380_vm10, %v12103_v30, %v12173_v1  ;;  %v12392_v47 = vunpack.i.l.bf16 %v12391_v33  ;;  %v3587_v27 = vpack.c.bf16 %v3556_v35, %v3555_v58  ;;  %v12167_v18 = vunpack.i.l.bf16 %v21381_v57  ;;  %12650 = vrot.lane.b32.xlu1 %v21384_v39, %s20683_s9  ;;  %vm21386_vm12 = vmmov %vm21347_vm1 }
 0x553   : > { %3735 = vmatprep.subr.bf16.mxu1 %v3589_v24  ;;  %v21382_v21 = vunpack.i.h.bf16 %v16717_v14  ;;  %v3586_v12 = vpack.c.bf16 %v3560_v55, %v3559_v37  ;;  %v3597_v24 = vpack.c.bf16 %v3550_v60, %v3549_v41  ;;  %v3554_v61 = vsel %vm21385_vm9, %v12393_v7, %v12213_v50  ;;  %11633 = vmatmul.mubr.msk.bf16.vlgmr.msra.gmra.mrb[20].mxu0 %vm3275_vm5, %v17216_v10  ;;  %vm21387_vm10 = vmmov %vm21347_vm1  ;;  %v21388_v55 = vld [vmem:[#allocation158_spill] sm:$0xff]  ;;  %v21389_v41 = vld [vmem:[#allocation71_spill] sm:$0xff]  ;;  %v12396_v50 = vpop.permute.xlu1 %12395 }
 0x554   : > { %v3553_v58 = vsel %vm21347_vm1, %v12392_v47, %v12212_v38  ;;  %3692 = vmatprep.subr.bf16.mxu0 %v3587_v27  ;;  %v3557_v5 = vsel %vm21386_vm12, %v12202_v34, %v12392_v47  ;;  %v3561_v33 = vsel %vm21387_vm10, %v12147_v52, %v12202_v34  ;;  %v12218_v37 = vunpack.i.h.bf16 %v21388_v55  ;;  %12660 = vrot.lane.b32.xlu0 %v21389_v41, %s20683_s9  ;;  %v17275_v47 = vpop.permute.xlu0 %12295  ;;  %v21391_v34 = vld [vmem:[#allocation98_spill] sm:$0xff] }
 0x555   : > { %v3562_v6 = vsel %vm21383_vm7, %v21382_v21, %v12203_v63  ;;  %11634 = vmatmul.mubr.msk.bf16.vlgmr.msra.gmra.mrb[20].mxu1 %vm3275_vm5, %v17216_v10  ;;  %vm21390_vm7 = vmmov %vm21347_vm1  ;;  %v3596_v60 = vpack.c.bf16 %v3554_v61, %v3553_v58  ;;  %v12217_v35 = vunpack.i.l.bf16 %v21388_v55  ;;  %3693 = vmatpush1.bf16.msra.mxu0 %v3586_v12  ;;  %v12398_v14 = vunpack.i.h.bf16 %v12396_v50  ;;  %v21396_v12 = vld [vmem:[#allocation109_spill] sm:$0xff] }
 0x556   : > { %3736 = vmatpush1.bf16.msra.mxu1 %v3588_v62  ;;  %v3558_v38 = vsel %vm21390_vm7, %v12203_v63, %v12393_v7  ;;  %v12397_v27 = vunpack.i.l.bf16 %v12396_v50  ;;  %12655 = vrot.lane.b32.xlu1 %v21391_v34, %s20683_s9  ;;  %v3912_v62 = vpack.c.bf16 %v17169_v11, %v17161_v59  ;;  %v21392_v63 = vunpack.i.l.bf16 %v16641_v25 }
 0x557   : > { %3737 = vmatprep.subr.bf16.mxu1 %v3597_v24  ;;  %v3595_v52 = vpack.c.bf16 %v3558_v38, %v3557_v5  ;;  %3767 = vmatprep.mubr.bf16.mxu1 %v21266_v42  ;;  %vm21393_vm9 = vcmp.lt.s32.totalorder %v13883_v22, 15  ;;  %v21394_v21 = vunpack.i.h.bf16 %v16641_v25  ;;  %v12108_v24 = vunpack.i.h.bf16 %v21396_v12 }
 0x558   : > { %v3892_v7 = vsel %vm21393_vm9, %v21392_v63, %v12167_v18  ;;  %vm21395_vm1 = vmmov %vm21393_vm9  ;;  %v21397_v59 = vunpack.i.h.bf16 %v16615_v54  ;;  %v21399_v61 = vunpack.i.l.bf16 %v16615_v54  ;;  %v3594_v5 = vpack.c.bf16 %v3562_v6, %v3561_v33  ;;  %3724 = vmatprep.mubr.bf16.mxu0 %v21266_v42  ;;  %12665 = vrot.lane.b32.xlu0 %v16447_v0, %s20683_s9  ;;  %v12401_v54 = vpop.permute.xlu1 %12400  ;;  %v21405_v63 = vld [vmem:[#allocation162_spill] sm:$0xff] }
 0x559   : > { %v3893_v39 = vsel %vm21395_vm1, %v21394_v21, %v12168_v3  ;;  %vm21398_vm12 = vmmov %vm21395_vm1  ;;  %3694 = vmatprep.subr.bf16.mxu0 %v3595_v52  ;;  %v12107_v25 = vunpack.i.l.bf16 %v21396_v12  ;;  %v3918_v6 = vpack.c.bf16 %v17117_v16, %v17111_v28  ;;  %v4237_v33 = vpack.c.bf16 %v17243_v8, %v17197_v46  ;;  %v21403_v52 = vld [vmem:[#allocation154_spill] sm:$0xff]  ;;  %v21404_v16 = vld [vmem:[#allocation160_spill] sm:$0xff] }
 0x55a   : > { %v3903_v11 = vsel %vm21398_vm12, %v12398_v14, %v21397_v59  ;;  %vm21400_vm10 = vmmov %vm21395_vm1  ;;  %3738 = vmatpush1.bf16.msra.mxu1 %v3596_v60  ;;  %3695 = vmatpush1.bf16.msra.mxu0 %v3594_v5  ;;  %v12403_v0 = vunpack.i.h.bf16 %v12401_v54  ;;  %v12402_v38 = vunpack.i.l.bf16 %v12401_v54  ;;  %v12253_v28 = vunpack.i.h.bf16 %v21403_v52 }
 0x55b   : > { %v3902_v58 = vsel %vm21400_vm10, %v12397_v27, %v21399_v61  ;;  %vm21401_vm7 = vmmov %vm21395_vm1  ;;  %3976 = vmatprep.subr.bf16.mxu1 %v3912_v62  ;;  %v12223_v34 = vunpack.i.h.bf16 %v21404_v16  ;;  %v12227_v21 = vunpack.i.l.bf16 %v21405_v63  ;;  %v21406_v9 = vpack.c.bf16 %v17023_v26, %v17006_v20  ;;  %12675 = vrot.lane.b32.xlu1 %v16439_v40, %s20683_s9  ;;  %v21408_v20 = vld [vmem:[#allocation110_spill] sm:$0xff] }
 0x55c   : > { %v17311_v41 = vsel %vm21401_vm7, %v12163_v15, %v12218_v37  ;;  %vm21402_vm9 = vmmov %vm21395_vm1  ;;  %v17327_v15 = vpop.permute.xlu0 %12305  ;;  %v3909_v60 = vpack.c.bf16 %v3903_v11, %v3902_v58  ;;  %v12252_v62 = vunpack.i.l.bf16 %v21403_v52  ;;  %v12228_v59 = vunpack.i.h.bf16 %v21405_v63  ;;  %12670 = vrot.lane.b32.xlu0 %v16435_v29, %s20683_s9 }
 0x55d   : > { %v17325_v50 = vsel %vm21402_vm9, %v12162_v44, %v12217_v35  ;;  %3933 = vmatprep.subr.bf16.mxu0 %v21406_v9  ;;  %v3920_v44 = vpack.c.bf16 %v3893_v39, %v3892_v7  ;;  %v3905_v11 = vsel %vm21395_vm1, %v12403_v0, %v12088_v43  ;;  %vm21407_vm12 = vmmov %vm21395_vm1  ;;  %11636 = vmatmul.mubr.msk.bf16.vlgmr.msra.gmra.mrb[24].mxu1 %vm3275_vm5, %v17216_v10  ;;  %v12268_v40 = vunpack.i.h.bf16 %v21408_v20  ;;  %v12406_v7 = vpop.permute.xlu1 %12405 }
 0x55e   : > { %v3904_v61 = vsel %vm21407_vm12, %v12402_v38, %v12087_v4  ;;  %v12222_v26 = vunpack.i.l.bf16 %v21404_v16  ;;  %11635 = vmatmul.mubr.msk.bf16.vlgmr.msra.gmra.mrb[24].mxu0 %vm3275_vm5, %v17216_v10  ;;  %vm21409_vm10 = vmmov %vm21395_vm1  ;;  %v3913_v43 = vpack.c.bf16 %v17311_v41, %v17325_v50  ;;  %v21410_v4 = vpack.c.bf16 %v16970_v56, %v16976_v53  ;;  %v21413_v41 = vld [vmem:[#allocation165_spill] sm:$0xff]  ;;  %4008 = vmatprep.mubr.bf16.mxu1 %v21266_v42 }
 0x55f   : > { %v3874_v13 = vsel %vm21409_vm10, %v12227_v21, %v12397_v27  ;;  %3934 = vmatpush1.bf16.msra.mxu0 %v3909_v60  ;;  %v12408_v58 = vunpack.i.h.bf16 %v12406_v7  ;;  %v12407_v5 = vunpack.i.l.bf16 %v12406_v7  ;;  %v3917_v29 = vpack.c.bf16 %v3905_v11, %v3904_v61  ;;  %vm21411_vm7 = vmmov %vm21395_vm1  ;;  %3965 = vmatprep.mubr.bf16.mxu0 %v21266_v42 }
 0x560   : > { %3977 = vmatpush1.bf16.msra.mxu1 %v21410_v4  ;;  %v17362_v39 = vpop.permute.xlu0 %12315  ;;  %v3875_v10 = vsel %vm21411_vm7, %v12228_v59, %v12398_v14  ;;  %vm21412_vm9 = vmmov %vm21395_vm1  ;;  %v12233_v54 = vunpack.i.h.bf16 %v21413_v41  ;;  %v12232_v56 = vunpack.i.l.bf16 %v21413_v41  ;;  %v12247_v53 = vunpack.i.l.bf16 %v17010_v19  ;;  %3935 = vmatprep.subr.bf16.mxu0 %v3918_v6  ;;  %v17386_v6 = vld [vmem:[#allocation10 + $0x10] sm:$0xff]  }
 0x561   : > { %v17370_v27 = vsel %vm21412_vm9, %v12168_v3, %v12223_v34  ;;  %3978 = vmatprep.subr.bf16.mxu1 %v3920_v44  ;;  %v12248_v50 = vunpack.i.h.bf16 %v17010_v19  ;;  %v3879_v60 = vsel %vm21395_vm1, %v12408_v58, %v12228_v59  ;;  %vm21414_vm12 = vmmov %vm21395_vm1  ;;  %v3916_v16 = vpack.c.bf16 %v3875_v10, %v3874_v13  ;;  %v12411_v63 = vpop.permute.xlu1 %12410 }
 0x562   : > { %v3878_v14 = vsel %vm21414_vm12, %v12407_v5, %v12227_v21  ;;  %vm21415_vm10 = vmmov %vm21395_vm1  ;;  %v3877_v9 = vsel %vm21395_vm1, %v12233_v54, %v12403_v0  ;;  %v21418_v44 = vpack.c.bf16 %v17065_v31, %v17087_v2  ;;  %v12413_v59 = vunpack.i.h.bf16 %v12411_v63 }
 0x563   : > { %v3882_v3 = vsel %vm21415_vm10, %v12217_v35, %v12407_v5  ;;  %vm21416_vm7 = vmmov %vm21395_vm1  ;;  %3936 = vmatpush1.bf16.msra.mxu0 %v3917_v29  ;;  %v12412_v11 = vunpack.i.l.bf16 %v12411_v63  ;;  %v3915_v55 = vpack.c.bf16 %v3879_v60, %v3878_v14  ;;  %vm21421_vm10 = vcmp.lt.s32.totalorder %v13883_v22, 1 }
 0x564   : > { %v3883_v19 = vsel %vm21416_vm7, %v12218_v37, %v12408_v58  ;;  %vm21417_vm9 = vmmov %vm21395_vm1  ;;  %3979 = vmatpush1.bf16.msra.mxu1 %v21418_v44  ;;  %v17399_v35 = vpop.permute.xlu0 %12330  ;;  %v4217_v31 = vsel %vm21421_vm10, %v12247_v53, %v12252_v62  ;;  %v12262_v4 = vunpack.i.l.bf16 %v17100_v51  ;;  %v4218_v10 = vsel %vm21421_vm10, %v12248_v50, %v12253_v28 }
 0x565   : > { %v3876_v21 = vsel %vm21417_vm9, %v12232_v56, %v12402_v38  ;;  %v3914_v61 = vpack.c.bf16 %v3883_v19, %v3882_v3  ;;  %vm21419_vm12 = vmmov %vm21395_vm1  ;;  %v21420_v38 = vld [vmem:[#allocation167_spill] sm:$0xff]  ;;  %4062 = vmatprep.subr.bf16.mxu1 %v3916_v16  ;;  %v3884_v57 = vsel %vm21395_vm1, %v12222_v26, %v12412_v11  ;;  %v12416_v5 = vpop.permute.xlu1 %12415  ;;  %v12267_v60 = vunpack.i.l.bf16 %v21408_v20 }
 0x566   : > { %v3888_v37 = vsel %vm21419_vm12, %v12167_v18, %v12222_v26  ;;  %v12243_v7 = vunpack.i.h.bf16 %v21420_v38  ;;  %v12242_v0 = vunpack.i.l.bf16 %v21420_v38  ;;  %vm21422_vm7 = vmmov %vm21395_vm1  ;;  %11638 = vmatmul.mubr.msk.bf16.vlgmr.msra.gmra.mrb[28].mxu0 %vm3275_vm5, %v17386_v6  ;;  %v3924_v58 = vpack.c.bf16 %v3877_v9, %v3876_v21 }
 0x567   : > { %v3881_v2 = vsel %vm21422_vm7, %v12413_v59, %v12233_v54  ;;  %vm21423_vm9 = vmmov %vm21395_vm1  ;;  %4019 = vmatprep.subr.bf16.mxu0 %v3914_v61  ;;  %11639 = vmatmul.mubr.msk.bf16.vlgmr.msra.gmra.mrb[28].mxu1 %vm3275_vm5, %v17386_v6  ;;  %v12263_v26 = vunpack.i.h.bf16 %v17100_v51  ;;  %v12418_v41 = vunpack.i.h.bf16 %v12416_v5  ;;  %v12417_v54 = vunpack.i.l.bf16 %v12416_v5 }
 0x568   : > { %v3880_v13 = vsel %vm21423_vm9, %v12412_v11, %v12232_v56  ;;  %vm21424_vm12 = vmmov %vm21395_vm1  ;;  %4063 = vmatpush1.bf16.msra.mxu1 %v3915_v55  ;;  %4020 = vmatpush1.bf16.msra.mxu0 %v3913_v43  ;;  %v3921_v3 = vpack.c.bf16 %v17370_v27, %v3888_v37  ;;  %v21427_v43 = vld [vmem:[#allocation116_spill] sm:$0xff]  ;;  %v12258_v19 = vunpack.i.h.bf16 %v17042_v17  ;;  %v4239_v48 = vpack.c.bf16 %v4218_v10, %v4217_v31  ;;  %v13004_v10 = vld [vmem:[#allocation10 + $0x18] sm:$0xff]  }
 0x569   : > { %v3885_v18 = vsel %vm21424_vm12, %v12223_v34, %v12413_v59  ;;  %v17429_v34 = vpop.permute.xlu0 %12350  ;;  %v3923_v56 = vpack.c.bf16 %v3881_v2, %v3880_v13  ;;  %vm21425_vm7 = vmmov %vm21421_vm10  ;;  %4064 = vmatprep.subr.bf16.mxu1 %v3924_v58  ;;  %v12283_v16 = vunpack.i.h.bf16 %v21427_v43  ;;  %4094 = vmatprep.mubr.bf16.mxu1 %v21266_v42  ;;  %v12421_v21 = vpop.permute.xlu1 %12420  ;;  %v12257_v11 = vunpack.i.l.bf16 %v17042_v17 }
 0x56a   : > { %v3922_v29 = vpack.c.bf16 %v3885_v18, %v3884_v57  ;;  %v4222_v14 = vsel %vm21425_vm7, %v12173_v1, %v12248_v50  ;;  %vm21426_vm9 = vmmov %vm21425_vm7  ;;  %v21430_v50 = vunpack.i.l.bf16 %v16631_v23  ;;  %4051 = vmatprep.mubr.bf16.mxu0 %v21266_v42  ;;  %v12422_v9 = vunpack.i.l.bf16 %v12421_v21 }
 0x56b   : > { %v4227_v51 = vsel %vm21426_vm9, %v12107_v25, %v12242_v0  ;;  %vm21428_vm1 = vmmov %vm21425_vm7  ;;  %v12277_v55 = vunpack.i.l.bf16 %v17207_v36  ;;  %v12278_v31 = vunpack.i.h.bf16 %v17207_v36  ;;  %v12282_v2 = vunpack.i.l.bf16 %v21427_v43 }
 0x56c   : > { %4021 = vmatprep.subr.bf16.mxu0 %v3922_v29  ;;  %v4221_v63 = vsel %vm21428_vm1, %v12172_v32, %v12247_v53  ;;  %vm21429_vm12 = vmmov %vm21428_vm1  ;;  %4065 = vmatpush1.bf16.msra.mxu1 %v3923_v56  ;;  %v12423_v53 = vunpack.i.h.bf16 %v12421_v21  ;;  %v4220_v59 = vsel %vm21428_vm1, %v12263_v26, %v12268_v40  ;;  %v12273_v18 = vunpack.i.h.bf16 %v17143_v45 }
 0x56d   : > { %v4230_v1 = vsel %vm21429_vm12, %v12418_v41, %v12103_v30  ;;  %vm21431_vm10 = vmmov %vm21428_vm1  ;;  %4022 = vmatpush1.bf16.msra.mxu0 %v3921_v3  ;;  %v17465_v30 = vpop.permute.xlu0 %12440  ;;  %4303 = vmatprep.subr.bf16.mxu1 %v4239_v48  ;;  %v4238_v37 = vpack.c.bf16 %v4222_v14, %v4221_v63  ;;  %v12426_v36 = vpop.permute.xlu1 %12425  ;;  %v12272_v58 = vunpack.i.l.bf16 %v17143_v45 }
 0x56e   : > { %v4229_v27 = vsel %vm21431_vm10, %v12417_v54, %v21430_v50  ;;  %vm21432_vm7 = vmmov %vm21428_vm1  ;;  %4260 = vmatprep.subr.bf16.mxu0 %v4237_v33  ;;  %v4201_v33 = vsel %vm21428_vm1, %v12277_v55, %v12417_v54  ;;  %v4216_v63 = vsel %vm21428_vm1, %v12268_v40, %v12273_v18 }
 0x56f   : > { %v4219_v32 = vsel %vm21432_vm7, %v12262_v4, %v12267_v60  ;;  %vm21433_vm9 = vmmov %vm21428_vm1  ;;  %v4236_v44 = vpack.c.bf16 %v4230_v1, %v4229_v27  ;;  %11641 = vmatmul.mubr.msk.bf16.vlgmr.msra.gmra.mrb[32].mxu1 %vm3275_vm5, %v17386_v6  ;;  %v4215_v40 = vsel %vm21428_vm1, %v12267_v60, %v12272_v58 }
 0x570   : > { %v4228_v23 = vsel %vm21433_vm9, %v12108_v24, %v12243_v7  ;;  %vm21434_vm12 = vmmov %vm21428_vm1  ;;  %11640 = vmatmul.mubr.msk.bf16.vlgmr.msra.gmra.mrb[32].mxu0 %vm3275_vm5, %v17386_v6  ;;  %v4247_v46 = vpack.c.bf16 %v4220_v59, %v4219_v32  ;;  %4304 = vmatpush1.bf16.msra.mxu1 %v4238_v37  ;;  %v4248_v60 = vpack.c.bf16 %v4216_v63, %v4215_v40  ;;  %v21451_v59 = vld [vmem:[#allocation113_spill] sm:$0xff]  ;;  %v12307_v63 = vunpack.i.l.bf16 %v17327_v15 }
 0x571   : > { %v4223_v61 = vsel %vm21434_vm12, %v12242_v0, %v12262_v4  ;;  %vm21435_vm10 = vmmov %vm21428_vm1  ;;  %v4245_v8 = vpack.c.bf16 %v4228_v23, %v4227_v51  ;;  %4261 = vmatpush1.bf16.msra.mxu0 %v4236_v44  ;;  %v17496_v12 = vpop.permute.xlu0 %12450  ;;  %4335 = vmatprep.mubr.bf16.mxu1 %v21266_v42  ;;  %v21452_v37 = vld [vmem:[#allocation57_spill] sm:$0xff] }
 0x572   : > { %v4224_v38 = vsel %vm21435_vm10, %v12243_v7, %v12263_v26  ;;  %vm21436_vm7 = vmmov %vm21428_vm1  ;;  %4305 = vmatprep.subr.bf16.mxu1 %v4247_v46  ;;  %4292 = vmatprep.mubr.bf16.mxu0 %v21266_v42 }
 0x573   : > { %v4232_v17 = vsel %vm21436_vm7, %v12423_v53, %v12108_v24  ;;  %vm21437_vm9 = vmmov %vm21428_vm1  ;;  %v12428_v24 = vunpack.i.h.bf16 %v12426_v36  ;;  %4262 = vmatprep.subr.bf16.mxu0 %v4245_v8  ;;  %v4246_v4 = vpack.c.bf16 %v4224_v38, %v4223_v61  ;;  %v12302_v61 = vunpack.i.l.bf16 %v21451_v59  ;;  %v21453_v38 = vld [vmem:[#allocation96_spill] sm:$0xff] }
 0x574   : > { %v4231_v0 = vsel %vm21437_vm9, %v12422_v9, %v12107_v25  ;;  %v12427_v25 = vunpack.i.l.bf16 %v12426_v36  ;;  %vm21438_vm12 = vmmov %vm21428_vm1 }
 0x575   : > { %v4244_v7 = vpack.c.bf16 %v4232_v17, %v4231_v0  ;;  %v4202_v13 = vsel %vm21438_vm12, %v12278_v31, %v12418_v41  ;;  %vm21439_vm10 = vmmov %vm21428_vm1  ;;  %4306 = vmatpush1.bf16.msra.mxu1 %v4246_v4  ;;  %v17526_v54 = vpop.permute.xlu0 %12465  ;;  %v21455_v17 = vld [vmem:[#allocation46_spill] sm:$0xff]  ;;  %v21456_v0 = vld [vmem:[#allocation47_spill] sm:$0xff] }
 0x576   : > { %v4214_v6 = vsel %vm21439_vm10, %v12253_v28, %v12258_v19  ;;  %vm21440_vm7 = vmmov %vm21428_vm1  ;;  %v4205_v29 = vsel %vm21428_vm1, %v12427_v25, %v12277_v55  ;;  %v4243_v28 = vpack.c.bf16 %v4202_v13, %v4201_v33  ;;  %v21460_v33 = vld [vmem:[#allocation81_spill] sm:$0xff] }
 0x577   : > { %v4213_v57 = vsel %vm21440_vm7, %v12252_v62, %v12257_v11  ;;  %vm21441_vm9 = vmmov %vm21428_vm1  ;;  %v12431_v62 = vpop.permute.xlu1 %12430  ;;  %4263 = vmatpush1.bf16.msra.mxu0 %v4244_v7  ;;  %v21462_v7 = vld [vmem:[#allocation128_spill] sm:$0xff] }
 0x578   : > { %v4206_v5 = vsel %vm21441_vm9, %v12428_v24, %v12278_v31  ;;  %vm21442_vm12 = vmmov %vm21428_vm1  ;;  %v12433_v56 = vunpack.i.h.bf16 %v12431_v62  ;;  %v12432_v14 = vunpack.i.l.bf16 %v12431_v62  ;;  %4389 = vmatprep.subr.bf16.mxu1 %v4243_v28  ;;  %v4240_v1 = vpack.c.bf16 %v4214_v6, %v4213_v57  ;;  %11644 = vmatmul.mubr.msk.bf16.vlgmr.msra.gmra.mrb[36].mxu1 %vm3275_vm5, %v13004_v10  ;;  %v21464_v6 = vld [vmem:[#allocation72_spill] sm:$0xff]  ;;  %v21465_v57 = vld [vmem:[#allocation74_spill] sm:$0xff] }
 0x579   : > { %v4209_v52 = vsel %vm21442_vm12, %v12257_v11, %v12427_v25  ;;  %vm21443_vm10 = vmmov %vm21428_vm1  ;;  %v4242_v51 = vpack.c.bf16 %v4206_v5, %v4205_v29  ;;  %v17550_v32 = vpop.permute.xlu0 %12485  ;;  %4421 = vmatprep.mubr.bf16.mxu1 %v21266_v42  ;;  %v12303_v11 = vunpack.i.h.bf16 %v21451_v59  ;;  %v21454_v31 = vpack.c.bf16 %v21452_v37, %v21453_v38  ;;  %v21461_v25 = vld [vmem:[#allocation44_spill] sm:$0xff]  ;;  %v21467_v5 = vld [vmem:[#allocation166_spill] sm:$0xff] }
 0x57a   : > { %v4210_v26 = vsel %vm21443_vm10, %v12258_v19, %v12428_v24  ;;  %vm21444_vm7 = vmmov %vm21428_vm1  ;;  %11643 = vmatmul.mubr.msk.bf16.vlgmr.msra.gmra.mrb[36].mxu0 %vm3275_vm5, %v13004_v10  ;;  %v12293_v24 = vunpack.i.h.bf16 %v21460_v33  ;;  %v21463_v13 = vpack.c.bf16 %v21461_v25, %v21462_v7  ;;  %v20431_v29 = vunpack.i.l.bf16 %v21467_v5  ;;  %v21468_v28 = vld [vmem:[#allocation65_spill] sm:$0xff] }
 0x57b   : > { %v4203_v45 = vsel %vm21444_vm7, %v12282_v2, %v12422_v9  ;;  %vm21445_vm9 = vmmov %vm21428_vm1  ;;  %v4241_v3 = vpack.c.bf16 %v4210_v26, %v4209_v52  ;;  %4390 = vmatpush1.bf16.msra.mxu1 %v4242_v51  ;;  %4378 = vmatprep.mubr.bf16.mxu0 %v21266_v42  ;;  %v12287_v52 = vunpack.i.l.bf16 %v17246_v49  ;;  %v21469_v62 = vld [vmem:[#allocation77_spill] sm:$0xff]  ;;  %v21471_v26 = vld [vmem:[#allocation48_spill] sm:$0xff]  ;;  %v20437_v51 = vunpack.i.l.bf16 %v17275_v47 }
 0x57c   : > { %v4204_v41 = vsel %vm21445_vm9, %v12283_v16, %v12423_v53  ;;  %vm21446_vm12 = vmmov %vm21428_vm1  ;;  %v21450_v53 = vld [vmem:[#allocation27_spill] sm:$0xff]  ;;  %v20430_v37 = vunpack.i.h.bf16 %v21467_v5  ;;  %v21477_v38 = vld [vmem:[#allocation45_spill] sm:$0xff] }
 0x57d   : > { %v4208_v50 = vsel %vm21446_vm12, %v12433_v56, %v12283_v16  ;;  %vm21447_vm10 = vmmov %vm21428_vm1  ;;  %4346 = vmatprep.subr.bf16.mxu0 %v4241_v3  ;;  %v4251_v43 = vpack.c.bf16 %v4204_v41, %v4203_v45  ;;  %v17548_v16 = vpop.permute.xlu1 %12435  ;;  %v20432_v20 = vunpack.i.h.bf16 %v21450_v53  ;;  %v20433_v9 = vunpack.i.l.bf16 %v21450_v53  ;;  %v17560_v55 = vpop.permute.xlu0 %12500  ;;  %v21472_v45 = vld [vmem:[#allocation97_spill] sm:$0xff] }
 0x57e   : > { %v4207_v27 = vsel %vm21447_vm10, %v12432_v14, %v12282_v2  ;;  %vm21448_vm7 = vmmov %vm21428_vm1  ;;  %4347 = vmatpush1.bf16.msra.mxu0 %v4240_v1  ;;  %v21457_v2 = vpack.c.bf16 %v21455_v17, %v21456_v0  ;;  %vm21458_vm12 = vcmp.lt.s32.totalorder %v13883_v22, 127  ;;  %v21473_v41 = vpack.c.bf16 %v21471_v26, %v21472_v45  ;;  %v21474_v1 = vld [vmem:[#allocation164_spill] sm:$0xff]  ;;  %v21481_v0 = vld [vmem:[#allocation73_spill] sm:$0xff] }
 0x57f   : > { %v4211_v19 = vsel %vm21448_vm7, %v12272_v58, %v12432_v14  ;;  %vm21449_vm9 = vmmov %vm21428_vm1  ;;  %v4250_v23 = vpack.c.bf16 %v4208_v50, %v4207_v27  ;;  %4391 = vmatprep.subr.bf16.mxu1 %v4251_v43  ;;  %v17572_v46 = vsel %vm21458_vm12, %v20433_v9, %v12302_v61  ;;  %v12292_v58 = vunpack.i.l.bf16 %v21460_v33  ;;  %v21475_v43 = vld [vmem:[#allocation155_spill] sm:$0xff] }
 0x580   : > { %v4212_v48 = vsel %vm21449_vm9, %v12273_v18, %v12433_v56  ;;  %vm21459_vm10 = vmmov %vm21458_vm12  ;;  %v21466_v18 = vpack.c.bf16 %v21464_v6, %v21465_v57  ;;  %v12288_v14 = vunpack.i.h.bf16 %v17246_v49  ;;  %v20436_v3 = vunpack.i.h.bf16 %v17275_v47  ;;  %v17616_v49 = vld [vmem:[#allocation10 + $0x20] sm:$0xff]  }
 0x581   : > { %v4249_v21 = vpack.c.bf16 %v4212_v48, %v4211_v19  ;;  %v17556_v44 = vpop.permute.xlu1 %12445  ;;  %4392 = vmatpush1.bf16.msra.mxu1 %v4250_v23  ;;  %v17578_v36 = vsel %vm21459_vm10, %v20432_v20, %v12303_v11  ;;  %v17591_v4 = vpop.permute.xlu0 %12510  ;;  %v12347_v50 = vunpack.i.l.bf16 %v21474_v1  ;;  %v12308_v27 = vunpack.i.h.bf16 %v17327_v15  ;;  %v21480_v15 = vld [vmem:[#allocation28_spill] sm:$0xff]  ;;  %vm21490_vm9 = vmmov %vm21459_vm10 }
 0x582   : > { %4534 = vmatprep.subr.bf16.mxu1 %v21454_v31  ;;  %v4786_v56 = vpack.c.bf16 %v17578_v36, %v17572_v46  ;;  %v12318_v19 = vunpack.i.h.bf16 %v17362_v39  ;;  %v12317_v48 = vunpack.i.l.bf16 %v17362_v39  ;;  %v12322_v23 = vunpack.i.l.bf16 %v21475_v43  ;;  %v21478_v31 = vld [vmem:[#allocation50_spill] sm:$0xff]  ;;  %v21485_v6 = vld [vmem:[#allocation124_spill] sm:$0xff]  ;;  %vm21491_vm1 = vmmov %vm21490_vm9 }
 0x583   : > { %4348 = vmatprep.subr.bf16.mxu0 %v4249_v21  ;;  %v12323_v21 = vunpack.i.h.bf16 %v21475_v43  ;;  %v21479_v17 = vpack.c.bf16 %v21477_v38, %v21478_v31  ;;  %v12348_v25 = vunpack.i.h.bf16 %v21474_v1  ;;  %vm21483_vm7 = vcmp.lt.s32.totalorder %v13883_v22, 113  ;;  %vm21492_vm12 = vmmov %vm21491_vm1 }
 0x584   : > { %4349 = vmatpush1.bf16.msra.mxu0 %v4248_v60  ;;  %11646 = vmatmul.mubr.msk.bf16.vlgmr.msra.gmra.mrb[40].mxu1 %vm3275_vm5, %v13004_v10  ;;  %v21476_v60 = vld [vmem:[#allocation159_spill] sm:$0xff]  ;;  %v17638_v7 = vsel %vm21483_vm7, %v20431_v29, %v12347_v50  ;;  %v4767_v26 = vsel %vm21491_vm1, %v20437_v51, %v12287_v52  ;;  %v4768_v45 = vsel %vm21492_vm12, %v20436_v3, %v12288_v14  ;;  %vm21493_vm10 = vmmov %vm21491_vm1  ;;  %v12452_v20 = vunpack.i.l.bf16 %v17496_v12 }
 0x585   : > { %4491 = vmatprep.subr.bf16.mxu0 %v21457_v2  ;;  %v17582_v8 = vpop.permute.xlu1 %12455  ;;  %4535 = vmatpush1.bf16.msra.mxu1 %v21463_v13  ;;  %v12338_v59 = vunpack.i.h.bf16 %v21476_v60  ;;  %v21482_v2 = vpack.c.bf16 %v21480_v15, %v21481_v0  ;;  %v17628_v39 = vpop.permute.xlu0 %12525  ;;  %v12337_v33 = vunpack.i.l.bf16 %v21476_v60  ;;  %v21484_v13 = vld [vmem:[#allocation147_spill] sm:$0xff]  ;;  %vm21494_vm7 = vmmov %vm21491_vm1  ;;  %v21499_v0 = vld [vmem:[#allocation90_spill] sm:$0xff]  ;;  %v4778_v29 = vpack.c.bf16 %v4768_v45, %v4767_v26 }
 0x586   : > { %4566 = vmatprep.mubr.bf16.mxu1 %v21266_v42  ;;  %v21486_v57 = vpack.c.bf16 %v21484_v13, %v21485_v6  ;;  %v17660_v38 = vsel %vm21494_vm7, %v12302_v61, %v12307_v63  ;;  %vm21495_vm15 = vmmov %vm21491_vm1  ;;  %v4766_v61 = vsel %vm21491_vm1, %v12303_v11, %v12308_v27  ;;  %v21501_v13 = vld [vmem:[#allocation60_spill] sm:$0xff]  ;;  %v21502_v6 = vld [vmem:[#allocation107_spill] sm:$0xff]  ;;  %v12438_v1 = vunpack.i.h.bf16 %v17548_v16 }
 0x587   : > { %11645 = vmatmul.mubr.msk.bf16.vlgmr.msra.gmra.mrb[40].mxu0 %vm3275_vm5, %v13004_v10  ;;  %v21470_v10 = vpack.c.bf16 %v21468_v28, %v21469_v62  ;;  %v21488_v28 = vld [vmem:[#allocation93_spill] sm:$0xff]  ;;  %v4760_v31 = vsel %vm21495_vm15, %v12293_v24, %v12318_v19  ;;  %vm21497_vm15 = vcmp.lt.s32.totalorder %v13883_v22, 113  ;;  %vm21504_vm12 = vmmov %vm21491_vm1  ;;  %v12487_v43 = vunpack.i.l.bf16 %v17550_v32 }
 0x588   : > { %4492 = vmatpush1.bf16.msra.mxu0 %v21466_v18  ;;  %4523 = vmatprep.mubr.bf16.mxu0 %v21266_v42  ;;  %v21487_v18 = vld [vmem:[#allocation54_spill] sm:$0xff]  ;;  %v4755_v11 = vsel %vm21504_vm12, %v12317_v48, %v12322_v23  ;;  %vm21512_vm7 = vmmov %vm21491_vm1  ;;  %v21513_v45 = vld [vmem:[#allocation157_spill] sm:$0xff]  ;;  %vm21522_vm12 = vcmp.lt.s32.totalorder %v13883_v22, 113  ;;  %v12458_v46 = vunpack.i.h.bf16 %v17582_v8  ;;  %v12457_v36 = vunpack.i.l.bf16 %v17582_v8 }
 0x589   : > { %4536 = vmatprep.subr.bf16.mxu1 %v21470_v10  ;;  %4493 = vmatprep.subr.bf16.mxu0 %v21473_v41  ;;  %v17614_v40 = vpop.permute.xlu1 %12460  ;;  %v21489_v62 = vpack.c.bf16 %v21487_v18, %v21488_v28  ;;  %v4763_v10 = vsel %vm21490_vm9, %v12287_v52, %v12292_v58  ;;  %v4764_v41 = vsel %vm21493_vm10, %v12288_v14, %v12293_v24  ;;  %vm21496_vm9 = vmmov %vm21491_vm1  ;;  %v12332_v52 = vunpack.i.l.bf16 %v17399_v35  ;;  %v21498_v14 = vld [vmem:[#allocation131_spill] sm:$0xff]  ;;  %v17688_v18 = vpop.permute.xlu0 %12545 }
 0x58a   : > { %4537 = vmatpush1.bf16.msra.mxu1 %v21479_v17  ;;  %v4759_v17 = vsel %vm21496_vm9, %v12292_v58, %v12317_v48  ;;  %v17679_v24 = vsel %vm21497_vm15, %v20430_v37, %v12348_v25  ;;  %v12333_v58 = vunpack.i.h.bf16 %v17399_v35  ;;  %vm21505_vm10 = vmmov %vm21491_vm1  ;;  %v12353_v28 = vunpack.i.h.bf16 %v17429_v34 }
 0x58b   : > { %4620 = vmatprep.subr.bf16.mxu1 %v21486_v57  ;;  %v21503_v57 = vpack.c.bf16 %v21501_v13, %v21502_v6  ;;  %v4756_v35 = vsel %vm21505_vm10, %v12318_v19, %v12323_v21  ;;  %v21509_v13 = vld [vmem:[#allocation33_spill] sm:$0xff]  ;;  %v21510_v6 = vld [vmem:[#allocation92_spill] sm:$0xff]  ;;  %v4779_v37 = vpack.c.bf16 %v4764_v41, %v4763_v10  ;;  %v12453_v48 = vunpack.i.h.bf16 %v17496_v12  ;;  %vm21514_vm9 = vmmov %vm21491_vm1 }
 0x58c   : > { %4494 = vmatpush1.bf16.msra.mxu0 %v21482_v2  ;;  %v21500_v2 = vpack.c.bf16 %v21498_v14, %v21499_v0  ;;  %v21506_v14 = vld [vmem:[#allocation102_spill] sm:$0xff]  ;;  %v21507_v0 = vld [vmem:[#allocation103_spill] sm:$0xff]  ;;  %v4780_v19 = vpack.c.bf16 %v4760_v31, %v4759_v17  ;;  %v4781_v10 = vpack.c.bf16 %v4756_v35, %v4755_v11  ;;  %v12328_v41 = vunpack.i.h.bf16 %v21513_v45  ;;  %v21519_v17 = vld [vmem:[#allocation61_spill] sm:$0xff] }
 0x58d   : > { %4577 = vmatprep.subr.bf16.mxu0 %v21489_v62  ;;  %11649 = vmatmul.mubr.msk.bf16.vlgmr.msra.gmra.mrb[44].mxu1 %vm3275_vm5, %v17616_v49  ;;  %v17671_v15 = vpop.permute.xlu1 %12470  ;;  %v12352_v62 = vunpack.i.l.bf16 %v17429_v34  ;;  %v4787_v34 = vpack.c.bf16 %v4766_v61, %v17660_v38  ;;  %v21518_v38 = vld [vmem:[#allocation89_spill] sm:$0xff]  ;;  %v4757_v11 = vsel %vm21491_vm1, %v12332_v52, %v12337_v33  ;;  %vm21521_vm15 = vmmov %vm21491_vm1  ;;  %v12443_v35 = vunpack.i.h.bf16 %v17465_v30 }
 0x58e   : > { %4621 = vmatpush1.bf16.msra.mxu1 %v21500_v2  ;;  %v21508_v2 = vpack.c.bf16 %v21506_v14, %v21507_v0  ;;  %4652 = vmatprep.mubr.bf16.mxu1 %v21266_v42  ;;  %v4761_v14 = vsel %vm21512_vm7, %v12307_v63, %v12332_v52  ;;  %v20434_v0 = vunpack.i.h.bf16 %v17526_v54  ;;  %v21520_v61 = vpack.c.bf16 %v21518_v38, %v21519_v17  ;;  %v17726_v63 = vpop.permute.xlu0 %12560  ;;  %vm21523_vm10 = vmmov %vm21522_vm12 }
 0x58f   : > { %11648 = vmatmul.mubr.msk.bf16.vlgmr.msra.gmra.mrb[44].mxu0 %vm3275_vm5, %v17616_v49  ;;  %v17746_v52 = vsel %vm21523_vm10, %v12348_v25, %v12353_v28  ;;  %vm21524_vm7 = vmmov %vm21523_vm10  ;;  %v12473_v60 = vunpack.i.h.bf16 %v17671_v15 }
 0x590   : > { %4578 = vmatpush1.bf16.msra.mxu0 %v21503_v57  ;;  %4622 = vmatprep.subr.bf16.mxu1 %v21508_v2  ;;  %v21511_v57 = vpack.c.bf16 %v21509_v13, %v21510_v6  ;;  %v20435_v2 = vunpack.i.l.bf16 %v17526_v54  ;;  %v4762_v13 = vsel %vm21514_vm9, %v12308_v27, %v12333_v58  ;;  %v21515_v6 = vld [vmem:[#allocation123_spill] sm:$0xff]  ;;  %v4758_v27 = vsel %vm21521_vm15, %v12333_v58, %v12338_v59  ;;  %vm21525_vm9 = vmmov %vm21524_vm7 }
 0x591   : > { %4609 = vmatprep.mubr.bf16.mxu0 %v21266_v42  ;;  %v17715_v26 = vpop.permute.xlu1 %12475  ;;  %v17752_v58 = vsel %vm21524_vm7, %v12352_v62, %v12452_v20  ;;  %vm21526_vm1 = vmmov %vm21524_vm7  ;;  %v4788_v9 = vpack.c.bf16 %v4762_v13, %v4761_v14  ;;  %vm21531_vm7 = vcmp.lt.s32.totalorder %v13883_v22, 127 }
 0x592   : > { %4579 = vmatprep.subr.bf16.mxu0 %v21511_v57  ;;  %v21516_v57 = vld [vmem:[#allocation141_spill] sm:$0xff]  ;;  %vm21527_vm15 = vmmov %vm21526_vm1 }
 0x593   : > { %v21517_v31 = vpack.c.bf16 %v21515_v6, %v21516_v57  ;;  %v12442_v6 = vunpack.i.l.bf16 %v17465_v30  ;;  %v17742_v57 = vsel %vm21522_vm12, %v12347_v50, %v12352_v62  ;;  %v17758_v30 = vsel %vm21525_vm9, %v12353_v28, %v12453_v48  ;;  %vm21529_vm12 = vmmov %vm21526_vm1 }
 0x594   : > { %4580 = vmatpush1.bf16.msra.mxu0 %v21520_v61  ;;  %v12437_v50 = vunpack.i.l.bf16 %v17548_v16  ;;  %v17773_v62 = vsel %vm21527_vm15, %v12443_v35, %v20434_v0  ;;  %v4789_v28 = vpack.c.bf16 %v4758_v27, %v4757_v11  ;;  %v12571_v61 = vpop.permute.xlu0 %12570  ;;  %v20438_v27 = vunpack.i.l.bf16 %v17556_v44  ;;  %vm21530_vm10 = vmmov %vm21526_vm1 }
 0x595   : > { %4623 = vmatpush1.bf16.msra.mxu1 %v21517_v31  ;;  %4802 = vmatprep.subr.bf16.mxu0 %v4779_v37  ;;  %v12327_v37 = vunpack.i.l.bf16 %v21513_v45  ;;  %v17767_v25 = vsel %vm21526_vm1, %v12442_v6, %v20435_v2  ;;  %v21528_v31 = vld [vmem:[#allocation161_spill] sm:$0xff]  ;;  %v12573_v2 = vunpack.i.h.bf16 %v12571_v61  ;;  %v12572_v3 = vunpack.i.l.bf16 %v12571_v61  ;;  %vm21532_vm9 = vmmov %vm21531_vm7 }
 0x596   : > { %4845 = vmatprep.subr.bf16.mxu1 %v4781_v10  ;;  %v17779_v10 = vpop.permute.xlu1 %12480  ;;  %v12343_v38 = vunpack.i.h.bf16 %v21528_v31  ;;  %v12342_v17 = vunpack.i.l.bf16 %v21528_v31  ;;  %vm21533_vm1 = vmmov %vm21531_vm7  ;;  %v12448_v0 = vunpack.i.h.bf16 %v17556_v44  ;;  %v12478_v31 = vunpack.i.h.bf16 %v17715_v26 }
 0x597   : > { %11650 = vmatmul.mubr.msk.bf16.vlgmr.msra.gmra.mrb[48].mxu0 %vm3275_vm5, %v17616_v49  ;;  %v4752_v14 = vsel %vm21531_vm7, %v12323_v21, %v12573_v2  ;;  %v4751_v13 = vsel %vm21532_vm9, %v12322_v23, %v12572_v3  ;;  %vm21534_vm15 = vmmov %vm21533_vm1  ;;  %v12488_v21 = vunpack.i.h.bf16 %v17550_v32 }
 0x598   : > { %11651 = vmatmul.mubr.msk.bf16.vlgmr.msra.gmra.mrb[48].mxu1 %vm3275_vm5, %v17616_v49  ;;  %4803 = vmatpush1.bf16.msra.mxu0 %v4778_v29  ;;  %v17794_v29 = vsel %vm21529_vm12, %v12437_v50, %v12442_v6  ;;  %v4748_v61 = vsel %vm21534_vm15, %v12573_v2, %v12328_v41  ;;  %v12576_v23 = vpop.permute.xlu0 %12575  ;;  %v4782_v11 = vpack.c.bf16 %v4752_v14, %v4751_v13  ;;  %vm21535_vm12 = vmmov %vm21530_vm10 }
 0x599   : > { %4846 = vmatpush1.bf16.msra.mxu1 %v4780_v19  ;;  %4804 = vmatprep.subr.bf16.mxu0 %v4787_v34  ;;  %v17800_v19 = vsel %vm21530_vm10, %v12438_v1, %v12443_v35  ;;  %v4747_v35 = vsel %vm21533_vm1, %v12572_v3, %v12327_v37  ;;  %v12578_v3 = vunpack.i.h.bf16 %v12576_v23  ;;  %v12577_v49 = vunpack.i.l.bf16 %v12576_v23  ;;  %vm21536_vm10 = vmmov %vm21533_vm1 }
 0x59a   : > { %4847 = vmatprep.subr.bf16.mxu1 %v4789_v28  ;;  %4877 = vmatprep.mubr.bf16.mxu1 %v21266_v42  ;;  %v17812_v6 = vpop.permute.xlu1 %12490  ;;  %v17814_v28 = vld [vmem:[#allocation10 + $0x28] sm:$0xff]   ;;  %v4783_v34 = vpack.c.bf16 %v4748_v61, %v4747_v35  ;;  %v17836_v2 = vsel %vm21535_vm12, %v20438_v27, %v12437_v50  ;;  %vm21537_vm7 = vmmov %vm21533_vm1  ;;  %v12472_v23 = vunpack.i.l.bf16 %v17671_v15 }
 0x59b   : > { %4834 = vmatprep.mubr.bf16.mxu0 %v21266_v42  ;;  %v4754_v14 = vsel %vm21536_vm10, %v12338_v59, %v12578_v3  ;;  %v4753_v50 = vsel %vm21537_vm7, %v12337_v33, %v12577_v49  ;;  %vm21538_vm9 = vmmov %vm21533_vm1  ;;  %v12513_v59 = vunpack.i.h.bf16 %v17591_v4  ;;  %v4750_v33 = vsel %vm21533_vm1, %v12578_v3, %v12343_v38 }
 0x59c   : > { %4805 = vmatpush1.bf16.msra.mxu0 %v4786_v56  ;;  %v12581_v35 = vpop.permute.xlu0 %12580  ;;  %v4790_v61 = vpack.c.bf16 %v4754_v14, %v4753_v50  ;;  %vm21539_vm15 = vmmov %vm21535_vm12  ;;  %vm21540_vm12 = vcmp.lt.s32.totalorder %v13883_v22, 112  ;;  %v21544_v50 = vunpack.i.l.bf16 %v17275_v47  ;;  %v12493_v8 = vunpack.i.h.bf16 %v17812_v6 }
 0x59d   : > { %4848 = vmatpush1.bf16.msra.mxu1 %v4788_v9  ;;  %v12512_v9 = vunpack.i.l.bf16 %v17591_v4  ;;  %4888 = vmatprep.subr.bf16.mxu0 %v4783_v34  ;;  %v4749_v34 = vsel %vm21538_vm9, %v12577_v49, %v12342_v17  ;;  %v12583_v27 = vunpack.i.h.bf16 %v12581_v35  ;;  %v12582_v56 = vunpack.i.l.bf16 %v12581_v35  ;;  %vm21541_vm10 = vmmov %vm21539_vm15  ;;  %v18164_v4 = vld [vmem:[#allocation10 + $0x38] sm:$0xff]  }
 0x59e   : > { %v17854_v13 = vpop.permute.xlu1 %12495  ;;  %v4791_v51 = vpack.c.bf16 %v4750_v33, %v4749_v34  ;;  %v17875_v49 = vsel %vm21539_vm15, %v12448_v0, %v12438_v1  ;;  %v17891_v16 = vsel %vm21541_vm10, %v12452_v20, %v12457_v36  ;;  %vm21542_vm7 = vmmov %vm21541_vm10  ;;  %vm21548_vm10 = vcmp.lt.s32.totalorder %v13883_v22, 112 }
 0x59f   : > { %11653 = vmatmul.mubr.msk.bf16.vlgmr.msra.gmra.mrb[52].mxu0 %vm3275_vm5, %v17814_v28  ;;  %v17899_v1 = vsel %vm21542_vm7, %v12453_v48, %v12458_v46  ;;  %vm21543_vm9 = vmmov %vm21533_vm1  ;;  %v4743_v14 = vsel %vm21533_vm1, %v12327_v37, %v12582_v56  ;;  %v21546_v48 = vunpack.i.h.bf16 %v17275_v47  ;;  %v17925_v45 = vsel %vm21548_vm10, %v12488_v21, %v12513_v59  ;;  %v5987_v47 = vld [vmem:[%s19977_s5] sm:$0xff] }
 0x5a0   : > { %11654 = vmatmul.mubr.msk.bf16.vlgmr.msra.gmra.mrb[52].mxu1 %vm3275_vm5, %v17814_v28  ;;  %4889 = vmatpush1.bf16.msra.mxu0 %v4782_v11  ;;  %v17883_v11 = vsel %vm21540_vm12, %v12487_v43, %v12512_v9  ;;  %v4744_v3 = vsel %vm21543_vm9, %v12328_v41, %v12583_v27  ;;  %vm21545_vm15 = vmmov %vm21533_vm1  ;;  %v12586_v37 = vpop.permute.xlu0 %12585 }
 0x5a1   : > { %4920 = vmatprep.mubr.bf16.mxu0 %v21266_v42  ;;  %4963 = vmatprep.mubr.bf16.mxu1 %v21266_v42  ;;  %v4771_v12 = vsel %vm21545_vm15, %v12582_v56, %v21544_v50  ;;  %vm21547_vm12 = vmmov %vm21533_vm1  ;;  %v4784_v41 = vpack.c.bf16 %v4744_v3, %v4743_v14  ;;  %v12588_v56 = vunpack.i.h.bf16 %v12586_v37  ;;  %v12587_v33 = vunpack.i.l.bf16 %v12586_v37 }
 0x5a2   : > { %4890 = vmatprep.subr.bf16.mxu0 %v4791_v51  ;;  %v17909_v20 = vpop.permute.xlu1 %12505  ;;  %v4772_v34 = vsel %vm21547_vm12, %v12583_v27, %v21546_v48  ;;  %v12527_v51 = vunpack.i.l.bf16 %v17628_v39  ;;  %v5988_v27 = vld [vmem:[%s19977_s5 + $0x8] sm:$0xff]  ;;  %v21549_v50 = vpack.c.bf16 %v17746_v52, %v17742_v57  ;;  %v21551_v14 = vunpack.i.h.bf16 %v17526_v54  ;;  %vm21552_vm9 = vmmov %vm21542_vm7  ;;  %5991 = vperm.xlu0 %12679, %v5987_v47  }
 0x5a3   : > { %v4785_v35 = vpack.c.bf16 %v4772_v34, %v4771_v12  ;;  %v12502_v57 = vunpack.i.l.bf16 %v17560_v55  ;;  %v12463_v52 = vunpack.i.h.bf16 %v17614_v40  ;;  %v5113_v48 = vpack.c.bf16 %v17875_v49, %v17836_v2  ;;  %5996 = vperm.xlu1 %12680, %v5988_v27   ;;  %vm21553_vm15 = vmmov %vm21533_vm1 }
 0x5a4   : > { %4891 = vmatpush1.bf16.msra.mxu0 %v4790_v61  ;;  %v21550_v61 = vunpack.i.l.bf16 %v17526_v54  ;;  %v17951_v12 = vsel %vm21552_vm9, %v21551_v14, %v12473_v60  ;;  %v5108_v34 = vpack.c.bf16 %v17899_v1, %v17891_v16  ;;  %v12462_v37 = vunpack.i.l.bf16 %v17614_v40  ;;  %vm21554_vm12 = vmmov %vm21548_vm10  ;;  %v12591_v16 = vpop.permute.xlu0 %12590 }
 0x5a5   : > { %5129 = vmatprep.subr.bf16.mxu0 %v21549_v50  ;;  %4931 = vmatprep.subr.bf16.mxu1 %v4785_v35  ;;  %v4746_v54 = vsel %vm21533_vm1, %v12343_v38, %v12588_v56  ;;  %v4745_v47 = vsel %vm21553_vm15, %v12342_v17, %v12587_v33  ;;  %v17980_v38 = vsel %vm21554_vm12, %v12502_v57, %v12527_v51  ;;  %v21556_v1 = vunpack.i.l.bf16 %v21450_v53  ;;  %vm21557_vm10 = vmmov %vm21533_vm1 }
 0x5a6   : > { %v17943_v3 = vsel %vm21542_vm7, %v21550_v61, %v12472_v23  ;;  %4932 = vmatpush1.bf16.msra.mxu1 %v4784_v41  ;;  %v17970_v2 = vpop.permute.xlu1 %12515  ;;  %v21555_v17 = vpack.c.bf16 %v17679_v24, %v17638_v7  ;;  %v4792_v27 = vpack.c.bf16 %v4746_v54, %v4745_v47  ;;  %v12593_v50 = vunpack.i.h.bf16 %v12591_v16  ;;  %vm21560_vm7 = vmmov %vm21533_vm1 }
 0x5a7   : > { %11655 = vmatmul.mubr.msk.bf16.vlgmr.msra.gmra.mrb[56].mxu0 %vm3275_vm5, %v17814_v28  ;;  %v4773_v41 = vsel %vm21557_vm10, %v12587_v33, %v21556_v1  ;;  %v5116_v35 = vpack.c.bf16 %v17951_v12, %v17943_v3  ;;  %v12592_v61 = vunpack.i.l.bf16 %v12591_v16  ;;  %v21558_v14 = vpack.c.bf16 %v17800_v19, %v17794_v29  ;;  %vm21561_vm1 = vmmov %vm21552_vm9  ;;  %v18013_v19 = vld [vmem:[#allocation10 + $0x30] sm:$0xff]  }
 0x5a8   : > { %5130 = vmatpush1.bf16.msra.mxu0 %v21555_v17  ;;  %5161 = vmatprep.mubr.bf16.mxu0 %v21266_v42  ;;  %v21559_v7 = vunpack.i.h.bf16 %v21450_v53  ;;  %v12483_v17 = vunpack.i.h.bf16 %v17779_v10  ;;  %v12482_v33 = vunpack.i.l.bf16 %v17779_v10  ;;  %v12492_v1 = vunpack.i.l.bf16 %v17812_v6  ;;  %vm21562_vm15 = vmmov %vm21561_vm1 }
 0x5a9   : > { %5131 = vmatprep.subr.bf16.mxu0 %v21558_v14  ;;  %v5078_v3 = vsel %vm21552_vm9, %v12457_v36, %v12592_v61  ;;  %v5079_v53 = vsel %vm21561_vm1, %v12458_v46, %v12593_v50  ;;  %v5074_v10 = vsel %vm21562_vm15, %v12592_v61, %v12462_v37  ;;  %vm21563_vm12 = vmmov %vm21561_vm1  ;;  %v12477_v36 = vunpack.i.l.bf16 %v17715_v26  ;;  %v12596_v46 = vpop.permute.xlu0 %12595 }
 0x5aa   : > { %v4774_v24 = vsel %vm21560_vm7, %v12588_v56, %v21559_v7  ;;  %v18011_v29 = vpop.permute.xlu1 %12520  ;;  %v5075_v56 = vsel %vm21563_vm12, %v12593_v50, %v12463_v52  ;;  %v5109_v12 = vpack.c.bf16 %v5079_v53, %v5078_v3  ;;  %v12498_v47 = vunpack.i.h.bf16 %v17854_v13  ;;  %vm21567_vm15 = vmmov %vm21561_vm1 }
 0x5ab   : > { %v4793_v49 = vpack.c.bf16 %v4774_v24, %v4773_v41  ;;  %v5110_v54 = vpack.c.bf16 %v5075_v56, %v5074_v10  ;;  %v12497_v16 = vunpack.i.l.bf16 %v17854_v13  ;;  %v12598_v41 = vunpack.i.h.bf16 %v12596_v46  ;;  %vm21568_vm12 = vmmov %vm21561_vm1 }
 0x5ac   : > { %5132 = vmatpush1.bf16.msra.mxu0 %v5113_v48  ;;  %v12597_v61 = vunpack.i.l.bf16 %v12596_v46  ;;  %v12528_v14 = vunpack.i.h.bf16 %v17628_v39  ;;  %vm21564_vm10 = vcmp.lt.s32.totalorder %v13883_v22, 112  ;;  %v21570_v7 = vpack.c.bf16 %v17758_v30, %v17752_v58 }
 0x5ad   : > { %4933 = vmatprep.subr.bf16.mxu1 %v4793_v49  ;;  %v5421_v50 = vsel %vm21564_vm10, %v12492_v1, %v12482_v33  ;;  %5215 = vmatprep.subr.bf16.mxu0 %v5110_v54  ;;  %vm21565_vm7 = vmmov %vm21564_vm10  ;;  %v21572_v3 = vunpack.i.h.bf16 %v17560_v55  ;;  %v12508_v30 = vunpack.i.h.bf16 %v17909_v20  ;;  %v12507_v10 = vunpack.i.l.bf16 %v17909_v20 }
 0x5ae   : > { %4934 = vmatpush1.bf16.msra.mxu1 %v4792_v27  ;;  %v5417_v48 = vsel %vm21565_vm7, %v12482_v33, %v12487_v43  ;;  %vm21566_vm9 = vmmov %vm21565_vm7  ;;  %v5080_v49 = vsel %vm21561_vm1, %v12472_v23, %v12597_v61  ;;  %v18050_v27 = vpop.permute.xlu1 %12530  ;;  %v5076_v32 = vsel %vm21568_vm12, %v12597_v61, %v12477_v36  ;;  %v5422_v15 = vsel %vm21565_vm7, %v12493_v8, %v12483_v17 }
 0x5af   : > { %5172 = vmatprep.subr.bf16.mxu1 %v5108_v34  ;;  %v5418_v13 = vsel %vm21566_vm9, %v12483_v17, %v12488_v21  ;;  %v5081_v34 = vsel %vm21567_vm15, %v12473_v60, %v12598_v41  ;;  %11658 = vmatmul.mubr.msk.bf16.vlgmr.msra.gmra.mrb[60].mxu0 %vm3275_vm5, %v18013_v19  ;;  %vm21569_vm10 = vmmov %vm21561_vm1  ;;  %v12601_v60 = vpop.permute.xlu0 %12600  ;;  %v21574_v53 = vmov %v21572_v3  ;;  %v21577_v46 = vunpack.i.l.bf16 %v21467_v5 }
 0x5b0   : > { %v5077_v21 = vsel %vm21569_vm10, %v12598_v41, %v12478_v31  ;;  %v5117_v43 = vpack.c.bf16 %v5081_v34, %v5080_v49  ;;  %5216 = vmatpush1.bf16.msra.mxu0 %v5109_v12  ;;  %v12603_v24 = vunpack.i.h.bf16 %v12601_v60  ;;  %v12602_v33 = vunpack.i.l.bf16 %v12601_v60  ;;  %vm21571_vm9 = vmmov %vm21565_vm7  ;;  %5247 = vmatprep.mubr.bf16.mxu0 %v21266_v42 }
 0x5b1   : > { %11656 = vmatmul.mubr.msk.bf16.vlgmr.msra.gmra.mrb[56].mxu1 %vm3275_vm5, %v17814_v28  ;;  %v5118_v23 = vpack.c.bf16 %v5077_v21, %v5076_v32  ;;  %v5419_v17 = vsel %vm21571_vm9, %v12497_v16, %v12502_v57  ;;  %vm21573_vm1 = vmmov %vm21565_vm7  ;;  %v5433_v57 = vpack.c.bf16 %v5418_v13, %v5417_v48  ;;  %v21579_v54 = vunpack.i.h.bf16 %v21467_v5 }
 0x5b2   : > { %5173 = vmatpush1.bf16.msra.mxu1 %v21570_v7  ;;  %5204 = vmatprep.mubr.bf16.mxu1 %v21266_v42  ;;  %v5420_v28 = vsel %vm21573_vm1, %v12498_v47, %v21572_v3  ;;  %vm21575_vm15 = vmmov %vm21573_vm1  ;;  %v5071_v55 = vsel %vm21569_vm10, %v12463_v52, %v12603_v24  ;;  %v18096_v12 = vpop.permute.xlu1 %12535  ;;  %v5432_v52 = vpack.c.bf16 %v5422_v15, %v5421_v50  ;;  %v12517_v13 = vunpack.i.l.bf16 %v17970_v2 }
 0x5b3   : > { %v18084_v58 = vsel %vm21575_vm15, %v21574_v53, %v12528_v14  ;;  %5174 = vmatprep.subr.bf16.mxu1 %v5116_v35  ;;  %5217 = vmatprep.subr.bf16.mxu0 %v5118_v23  ;;  %vm21576_vm12 = vmmov %vm21569_vm10  ;;  %v12606_v40 = vpop.permute.xlu0 %12605  ;;  %v5441_v48 = vpack.c.bf16 %v5420_v28, %v5419_v17  ;;  %v21581_v34 = vpack.c.bf16 %v17773_v62, %v17767_v25  ;;  %v12532_v15 = vunpack.i.l.bf16 %v18050_v27 }
 0x5b4   : > { %v5070_v56 = vsel %vm21576_vm12, %v12462_v37, %v12602_v33  ;;  %vm21578_vm7 = vmmov %vm21569_vm10  ;;  %v12518_v37 = vunpack.i.h.bf16 %v17970_v2  ;;  %5218 = vmatpush1.bf16.msra.mxu0 %v5117_v43  ;;  %v12608_v32 = vunpack.i.h.bf16 %v12606_v40  ;;  %v12607_v21 = vunpack.i.l.bf16 %v12606_v40 }
 0x5b5   : > { %v5098_v35 = vsel %vm21578_vm7, %v12602_v33, %v21577_v46  ;;  %vm21580_vm9 = vmmov %vm21578_vm7  ;;  %v5111_v49 = vpack.c.bf16 %v5071_v55, %v5070_v56  ;;  %5456 = vmatprep.subr.bf16.mxu0 %v5433_v57  ;;  %v5423_v5 = vsel %vm21573_vm1, %v12507_v10, %v12497_v16  ;;  %v12533_v2 = vunpack.i.h.bf16 %v18050_v27 }
 0x5b6   : > { %v5099_v41 = vsel %vm21580_vm9, %v12603_v24, %v21579_v54  ;;  %5175 = vmatpush1.bf16.msra.mxu1 %v21581_v34  ;;  %vm21582_vm15 = vmmov %vm21573_vm1  ;;  %v18132_v16 = vpop.permute.xlu1 %12540  ;;  %v12548_v26 = vunpack.i.h.bf16 %v17688_v18  ;;  %v12547_v43 = vunpack.i.l.bf16 %v17688_v18  ;;  %v5442_v60 = vpack.c.bf16 %v18084_v58, %v17980_v38 }
 0x5b7   : > { %v5112_v61 = vpack.c.bf16 %v5099_v41, %v5098_v35  ;;  %v5424_v50 = vsel %vm21582_vm15, %v12508_v30, %v12498_v47  ;;  %vm21583_vm12 = vmmov %vm21578_vm7  ;;  %11660 = vmatmul.mubr.msk.bf16.vlgmr.msra.gmra.mrb[64].mxu0 %vm3275_vm5, %v18013_v19  ;;  %v21585_v47 = vunpack.i.l.bf16 %v17556_v44  ;;  %v12563_v23 = vunpack.i.h.bf16 %v17726_v63  ;;  %v12611_v44 = vpop.permute.xlu0 %12610 }
 0x5b8   : > { %v5072_v25 = vsel %vm21583_vm12, %v12477_v36, %v12607_v21  ;;  %vm21584_vm10 = vmmov %vm21578_vm7  ;;  %5457 = vmatpush1.bf16.msra.mxu0 %v5432_v52  ;;  %v5440_v33 = vpack.c.bf16 %v5424_v50, %v5423_v5  ;;  %v12523_v17 = vunpack.i.h.bf16 %v18011_v29  ;;  %v12613_v3 = vunpack.i.h.bf16 %v12611_v44  ;;  %5488 = vmatprep.mubr.bf16.mxu0 %v21266_v42 }
 0x5b9   : > { %5258 = vmatprep.subr.bf16.mxu1 %v5112_v61  ;;  %v5073_v62 = vsel %vm21584_vm10, %v12478_v31, %v12608_v32  ;;  %v5100_v27 = vsel %vm21578_vm7, %v12607_v21, %v21585_v47  ;;  %vm21586_vm9 = vmmov %vm21578_vm7  ;;  %11659 = vmatmul.mubr.msk.bf16.vlgmr.msra.gmra.mrb[60].mxu1 %vm3275_vm5, %v18013_v19  ;;  %v12612_v28 = vunpack.i.l.bf16 %v12611_v44  ;;  %v12522_v53 = vunpack.i.l.bf16 %v18011_v29 }
 0x5ba   : > { %v5101_v36 = vsel %vm21586_vm9, %v12608_v32, %v12448_v0  ;;  %v5119_v7 = vpack.c.bf16 %v5073_v62, %v5072_v25  ;;  %5259 = vmatpush1.bf16.msra.mxu1 %v5111_v49  ;;  %5458 = vmatprep.subr.bf16.mxu0 %v5441_v48  ;;  %v5409_v0 = vsel %vm21573_vm1, %v12512_v9, %v12517_v13  ;;  %vm21587_vm15 = vmmov %vm21573_vm1  ;;  %v12542_v57 = vunpack.i.l.bf16 %v18132_v16  ;;  %v18161_v56 = vpop.permute.xlu1 %12550 }
 0x5bb   : > { %v5120_v31 = vpack.c.bf16 %v5101_v36, %v5100_v27  ;;  %v5410_v24 = vsel %vm21587_vm15, %v12513_v59, %v12518_v37  ;;  %5290 = vmatprep.mubr.bf16.mxu1 %v21266_v42  ;;  %vm21588_vm12 = vmmov %vm21573_vm1  ;;  %v12543_v46 = vunpack.i.h.bf16 %v18132_v16  ;;  %v12538_v54 = vunpack.i.h.bf16 %v18096_v12 }
 0x5bc   : > { %v5411_v9 = vsel %vm21588_vm12, %v12527_v51, %v12532_v15  ;;  %vm21589_vm10 = vmmov %vm21573_vm1  ;;  %5459 = vmatpush1.bf16.msra.mxu0 %v5440_v33  ;;  %v5435_v35 = vpack.c.bf16 %v5410_v24, %v5409_v0  ;;  %v12537_v41 = vunpack.i.l.bf16 %v18096_v12  ;;  %v12616_v51 = vpop.permute.xlu0 %12615  ;;  %v5401_v39 = vsel %vm21573_vm1, %v12612_v28, %v12522_v53 }
 0x5bd   : > { %5260 = vmatprep.subr.bf16.mxu1 %v5120_v31  ;;  %v5412_v59 = vsel %vm21589_vm10, %v12528_v14, %v12533_v2  ;;  %vm21590_vm7 = vmmov %vm21573_vm1  ;;  %v12618_v61 = vunpack.i.h.bf16 %v12616_v51  ;;  %v12617_v52 = vunpack.i.l.bf16 %v12616_v51  ;;  %v12553_v48 = vunpack.i.h.bf16 %v18161_v56 }
 0x5be   : > { %v5405_v29 = vsel %vm21590_vm7, %v12517_v13, %v12612_v28  ;;  %vm21591_vm9 = vmmov %vm21573_vm1  ;;  %5261 = vmatpush1.bf16.msra.mxu1 %v5119_v7  ;;  %v12552_v13 = vunpack.i.l.bf16 %v18161_v56  ;;  %v12556_v34 = vpop.permute.xlu1 %12555  ;;  %vm21593_vm12 = vcmp.lt.s32.totalorder %v13883_v22, 111  ;;  %v12562_v62 = vunpack.i.l.bf16 %v17726_v63 }
 0x5bf   : > { %v5406_v55 = vsel %vm21591_vm9, %v12518_v37, %v12613_v3  ;;  %vm21592_vm15 = vmmov %vm21573_vm1  ;;  %5499 = vmatprep.subr.bf16.mxu1 %v5435_v35  ;;  %v5443_v37 = vpack.c.bf16 %v5412_v59, %v5411_v9  ;;  %11663 = vmatmul.mubr.msk.bf16.vlgmr.msra.gmra.mrb[68].mxu0 %vm3275_vm5, %v18164_v4  ;;  %v5744_v32 = vsel %vm21593_vm12, %v12542_v57, %v12547_v43  ;;  %v12557_v50 = vunpack.i.l.bf16 %v12556_v34 }
 0x5c0   : > { %v5402_v14 = vsel %vm21592_vm15, %v12613_v3, %v12523_v17  ;;  %v5436_v40 = vpack.c.bf16 %v5406_v55, %v5405_v29  ;;  %vm21594_vm10 = vmmov %vm21573_vm1  ;;  %5574 = vmatprep.mubr.bf16.mxu0 %v21266_v42  ;;  %v12621_v16 = vpop.permute.xlu0 %12620  ;;  %v21630_v56 = vmov 1.0  }
 0x5c1   : > { %v5437_v49 = vpack.c.bf16 %v5402_v14, %v5401_v39  ;;  %v5407_v21 = vsel %vm21594_vm10, %v12532_v15, %v12617_v52  ;;  %vm21595_vm7 = vmmov %vm21573_vm1  ;;  %11661 = vmatmul.mubr.msk.bf16.vlgmr.msra.gmra.mrb[64].mxu1 %vm3275_vm5, %v18013_v19  ;;  %v21597_v15 = vpack.c.bf16 %v17925_v45, %v17883_v11  ;;  %v5403_v19 = vsel %vm21573_vm1, %v12617_v52, %v12537_v41 }
 0x5c2   : > { %v5408_v5 = vsel %vm21595_vm7, %v12533_v2, %v12618_v61  ;;  %vm21596_vm9 = vmmov %vm21593_vm12  ;;  %v12558_v2 = vunpack.i.h.bf16 %v12556_v34  ;;  %v12623_v36 = vunpack.i.h.bf16 %v12621_v16  ;;  %v12622_v31 = vunpack.i.l.bf16 %v12621_v16  ;;  %v18222_v44 = vpop.permute.xlu1 %12565  ;;  %5531 = vmatprep.mubr.bf16.mxu1 %v21266_v42 }
 0x5c3   : > { %v5745_v25 = vsel %vm21596_vm9, %v12543_v46, %v12548_v26  ;;  %5542 = vmatprep.subr.bf16.mxu0 %v5437_v49  ;;  %5500 = vmatpush1.bf16.msra.mxu1 %v21597_v15  ;;  %vm21598_vm15 = vmmov %vm21573_vm1  ;;  %v5444_v27 = vpack.c.bf16 %v5408_v5, %v5407_v21  ;;  %v12568_v28 = vunpack.i.h.bf16 %v18222_v44  ;;  %v18286_v5 = vld [vmem:[#allocation10 + $0x40] sm:$0xff]  }
 0x5c4   : > { %v5404_v47 = vsel %vm21598_vm15, %v12618_v61, %v12538_v54  ;;  %5543 = vmatpush1.bf16.msra.mxu0 %v5436_v40  ;;  %5501 = vmatprep.subr.bf16.mxu1 %v5443_v37  ;;  %vm21599_vm12 = vmmov %vm21596_vm9  ;;  %v5760_v0 = vpack.c.bf16 %v5745_v25, %v5744_v32  ;;  %v5398_v3 = vsel %vm21573_vm1, %v12523_v17, %v12623_v36  ;;  %v12626_v59 = vpop.permute.xlu0 %12625 }
 0x5c5   : > { %v5445_v7 = vpack.c.bf16 %v5404_v47, %v5403_v19  ;;  %v5748_v11 = vsel %vm21599_vm12, %v12552_v13, %v12542_v57  ;;  %vm21600_vm10 = vmmov %vm21596_vm9  ;;  %v12567_v57 = vunpack.i.l.bf16 %v18222_v44  ;;  %v12628_v55 = vunpack.i.h.bf16 %v12626_v59 }
 0x5c6   : > { %v5749_v45 = vsel %vm21600_vm10, %v12553_v48, %v12543_v46  ;;  %vm21601_vm7 = vmmov %vm21596_vm9  ;;  %v12627_v38 = vunpack.i.l.bf16 %v12626_v59 }
 0x5c7   : > { %v5746_v24 = vsel %vm21601_vm7, %v12557_v50, %v12562_v62  ;;  %vm21602_vm9 = vmmov %vm21573_vm1  ;;  %5544 = vmatprep.subr.bf16.mxu0 %v5445_v7  ;;  %5502 = vmatpush1.bf16.msra.mxu1 %v5442_v60  ;;  %v5750_v58 = vsel %vm21601_vm7, %v12567_v57, %v12557_v50  ;;  %v12636_v60 = vpop.permute.xlu1 %12635 }
 0x5c8   : > { %v5397_v33 = vsel %vm21602_vm9, %v12522_v53, %v12622_v31  ;;  %vm21603_vm15 = vmmov %vm21573_vm1  ;;  %5545 = vmatpush1.bf16.msra.mxu0 %v5444_v27  ;;  %v5399_v46 = vsel %vm21573_vm1, %v12537_v41, %v12627_v38  ;;  %v12631_v14 = vpop.permute.xlu0 %12630  ;;  %v12638_v40 = vunpack.i.h.bf16 %v12636_v60  ;;  %v12637_v61 = vunpack.i.l.bf16 %v12636_v60 }
 0x5c9   : > { %v5438_v9 = vpack.c.bf16 %v5398_v3, %v5397_v33  ;;  %v5425_v29 = vsel %vm21603_vm15, %v12622_v31, %v12492_v1  ;;  %vm21604_vm12 = vmmov %vm21573_vm1  ;;  %v5759_v1 = vpack.c.bf16 %v5749_v45, %v5748_v11  ;;  %5783 = vmatprep.subr.bf16.mxu0 %v5760_v0  ;;  %v12633_v52 = vunpack.i.h.bf16 %v12631_v14 }
 0x5ca   : > { %v5426_v17 = vsel %vm21604_vm12, %v12623_v36, %v12493_v8  ;;  %vm21605_vm10 = vmmov %vm21601_vm7  ;;  %11664 = vmatmul.mubr.msk.bf16.vlgmr.msra.gmra.mrb[68].mxu1 %vm3275_vm5, %v18164_v4  ;;  %v12632_v37 = vunpack.i.l.bf16 %v12631_v14 }
 0x5cb   : > { %v5747_v53 = vsel %vm21605_vm10, %v12558_v2, %v12563_v23  ;;  %vm21606_vm9 = vmmov %vm21601_vm7  ;;  %v5439_v8 = vpack.c.bf16 %v5426_v17, %v5425_v29  ;;  %11665 = vmatmul.mubr.msk.bf16.vlgmr.msra.gmra.mrb[72].mxu0 %vm3275_vm5, %v18164_v4  ;;  %v12646_v34 = vpop.permute.xlu1 %12645  ;;  %5617 = vmatprep.mubr.bf16.mxu1 %v21266_v42  ;;  %v3356_v44 = vpop.f32.mrb[12].mxu1 }
 0x5cc   : > { %v5751_v6 = vsel %vm21606_vm9, %v12568_v28, %v12558_v2  ;;  %vm21607_vm15 = vmmov %vm21573_vm1  ;;  %v5768_v39 = vpack.c.bf16 %v5747_v53, %v5746_v24  ;;  %5784 = vmatpush1.bf16.msra.mxu0 %v5759_v1  ;;  %5815 = vmatprep.mubr.bf16.mxu0 %v21266_v42  ;;  %v12648_v32 = vunpack.i.h.bf16 %v12646_v34  ;;  %v12647_v21 = vunpack.i.l.bf16 %v12646_v34 }
 0x5cd   : > { %v5400_v35 = vsel %vm21607_vm15, %v12538_v54, %v12628_v55  ;;  %v5767_v51 = vpack.c.bf16 %v5751_v6, %v5750_v58  ;;  %5585 = vmatprep.subr.bf16.mxu1 %v5439_v8  ;;  %vm21608_vm12 = vmmov %vm21573_vm1 }
 0x5ce   : > { %v5427_v12 = vsel %vm21608_vm12, %v12627_v38, %v12507_v10  ;;  %vm21609_vm10 = vmmov %vm21573_vm1  ;;  %v5446_v41 = vpack.c.bf16 %v5400_v35, %v5399_v46  ;;  %5586 = vmatpush1.bf16.msra.mxu1 %v5438_v9  ;;  %5785 = vmatprep.subr.bf16.mxu0 %v5768_v39  ;;  %v5741_v10 = vsel %vm21601_vm7, %v12548_v26, %v12633_v52 }
 0x5cf   : > { %v5428_v54 = vsel %vm21609_vm10, %v12628_v55, %v12508_v30  ;;  %vm21610_vm9 = vmmov %vm21601_vm7  ;;  %v12641_v30 = vpop.permute.xlu0 %12640  ;;  %v12651_v16 = vpop.permute.xlu1 %12650 }
 0x5d0   : > { %v5447_v49 = vpack.c.bf16 %v5428_v54, %v5427_v12  ;;  %v5740_v20 = vsel %vm21610_vm9, %v12547_v43, %v12632_v37  ;;  %vm21611_vm1 = vmmov %vm21601_vm7  ;;  %5786 = vmatpush1.bf16.msra.mxu0 %v5767_v51  ;;  %v12643_v18 = vunpack.i.h.bf16 %v12641_v30  ;;  %v12642_v15 = vunpack.i.l.bf16 %v12641_v30 }
 0x5d1   : > { %v5736_v50 = vsel %vm21611_vm1, %v12632_v37, %v12637_v61  ;;  %vm21612_vm15 = vmmov %vm21611_vm1  ;;  %v5761_v26 = vpack.c.bf16 %v5741_v10, %v5740_v20  ;;  %v12653_v27 = vunpack.i.h.bf16 %v12651_v16  ;;  %v12652_v36 = vunpack.i.l.bf16 %v12651_v16 }
 0x5d2   : > { %5587 = vmatprep.subr.bf16.mxu1 %v5447_v49  ;;  %v5737_v25 = vsel %vm21612_vm15, %v12633_v52, %v12638_v40  ;;  %vm21613_vm12 = vmmov %vm21611_vm1  ;;  %v3358_v49 = vpop.f32.mrb[13].mxu1 }
 0x5d3   : > { %5588 = vmatpush1.bf16.msra.mxu1 %v5446_v41  ;;  %v5762_v43 = vpack.c.bf16 %v5737_v25, %v5736_v50  ;;  %v5743_v2 = vsel %vm21613_vm12, %v12563_v23, %v12643_v18  ;;  %vm21614_vm10 = vmmov %vm21611_vm1  ;;  %11668 = vmatmul.mubr.msk.bf16.vlgmr.msra.gmra.mrb[76].mxu0 %vm3275_vm5, %v18286_v5  ;;  %v12661_v47 = vpop.permute.xlu0 %12660  ;;  %v3360_v34 = vpop.f32.mrb[14].mxu1 }
 0x5d4   : > { %v5742_v19 = vsel %vm21614_vm10, %v12562_v62, %v12642_v15  ;;  %vm21615_vm7 = vmmov %vm21611_vm1  ;;  %v12663_v7 = vunpack.i.h.bf16 %v12661_v47  ;;  %v12662_v62 = vunpack.i.l.bf16 %v12661_v47  ;;  %5901 = vmatprep.mubr.bf16.mxu0 %v21266_v42  ;;  %v3362_v30 = vpop.f32.mrb[15].mxu1 }
 0x5d5   : > { %5826 = vmatprep.subr.bf16.mxu1 %v5762_v43  ;;  %v5738_v31 = vsel %vm21615_vm7, %v12642_v15, %v12647_v21  ;;  %vm21616_vm9 = vmmov %vm21611_vm1  ;;  %v5769_v63 = vpack.c.bf16 %v5743_v2, %v5742_v19 }
 0x5d6   : > { %11666 = vmatmul.mubr.msk.bf16.vlgmr.msra.gmra.mrb[72].mxu1 %vm3275_vm5, %v18164_v4  ;;  %v5739_v23 = vsel %vm21616_vm9, %v12643_v18, %v12648_v32  ;;  %v12656_v4 = vpop.permute.xlu1 %12655  ;;  %v5732_v45 = vsel %vm21611_vm1, %v12637_v61, %v12662_v62  ;;  %vm21617_vm15 = vmmov %vm21611_vm1 }
 0x5d7   : > { %5827 = vmatpush1.bf16.msra.mxu1 %v5761_v26  ;;  %v5770_v11 = vpack.c.bf16 %v5739_v23, %v5738_v31  ;;  %5858 = vmatprep.mubr.bf16.mxu1 %v21266_v42  ;;  %v5733_v0 = vsel %vm21617_vm15, %v12638_v40, %v12663_v7  ;;  %v12658_v24 = vunpack.i.h.bf16 %v12656_v4  ;;  %v12666_v3 = vpop.permute.xlu0 %12665  ;;  %v12657_v9 = vunpack.i.l.bf16 %v12656_v4  ;;  %vm21618_vm12 = vmmov %vm21611_vm1  ;;  %v21634_v31 = vld [vmem:[#allocation125_spill] sm:$0xff] }
 0x5d8   : > { %v5763_v33 = vpack.c.bf16 %v5733_v0, %v5732_v45  ;;  %v5728_v59 = vsel %vm21618_vm12, %v12662_v62, %v12652_v36  ;;  %vm21619_vm10 = vmmov %vm21611_vm1  ;;  %v12668_v17 = vunpack.i.h.bf16 %v12666_v3  ;;  %v12667_v53 = vunpack.i.l.bf16 %v12666_v3  ;;  %v21636_v45 = vld [vmem:[#allocation127_spill] sm:$0xff]  ;;  %v21637_v3 = vld [vmem:[#allocation82_spill] sm:$0xff] }
 0x5d9   : > { %5828 = vmatprep.subr.bf16.mxu1 %v5770_v11  ;;  %v5729_v29 = vsel %vm21619_vm10, %v12663_v7, %v12653_v27  ;;  %vm21620_vm7 = vmmov %vm21611_vm1  ;;  %v3453_v23 = vmul.f32 %v21634_v31, %v3356_v44  ;;  %v21635_v7 = vld [vmem:[#allocation126_spill] sm:$0xff]  ;;  %v3461_v11 = vmul.f32 %v21634_v31, %v3360_v34  ;;  %v21642_v34 = vld [vmem:[#allocation149_spill] sm:$0xff] }
 0x5da   : > { %v5764_v55 = vpack.c.bf16 %v5729_v29, %v5728_v59  ;;  %v12676_v38 = vpop.permute.xlu1 %12675  ;;  %v5734_v58 = vsel %vm21620_vm7, %v12647_v21, %v12667_v53  ;;  %vm21621_vm9 = vmmov %vm21611_vm1  ;;  %v5730_v46 = vsel %vm21611_vm1, %v12667_v53, %v12657_v9  ;;  %v3454_v62 = vmul.f32 %v21635_v7, %v3358_v49  ;;  %v21638_v59 = vld [vmem:[#allocation79_spill] sm:$0xff] }
 0x5db   : > { %5829 = vmatpush1.bf16.msra.mxu1 %v5769_v63  ;;  %v5735_v6 = vsel %vm21621_vm9, %v12648_v32, %v12668_v17  ;;  %v12678_v1 = vunpack.i.h.bf16 %v12676_v38  ;;  %v12677_v8 = vunpack.i.l.bf16 %v12676_v38  ;;  %v12671_v60 = vpop.permute.xlu0 %12670  ;;  %vm21622_vm15 = vmmov %vm21611_vm1  ;;  %v3462_v4 = vmul.f32 %v21635_v7, %v3362_v30 }
 0x5dc   : > { %5869 = vmatprep.subr.bf16.mxu0 %v5764_v55  ;;  %v5731_v35 = vsel %vm21622_vm15, %v12668_v17, %v12658_v24  ;;  %v5771_v51 = vpack.c.bf16 %v5735_v6, %v5734_v58  ;;  %v12673_v39 = vunpack.i.h.bf16 %v12671_v60  ;;  %v12672_v14 = vunpack.i.l.bf16 %v12671_v60  ;;  %vm21623_vm12 = vmmov %vm21611_vm1  ;;  %v21639_v17 = vld [vmem:[#allocation83_spill] sm:$0xff]  ;;  %v21640_v55 = vld [vmem:[#allocation132_spill] sm:$0xff] }
 0x5dd   : > { %5870 = vmatpush1.bf16.msra.mxu0 %v5763_v33  ;;  %v5772_v40 = vpack.c.bf16 %v5731_v35, %v5730_v46  ;;  %v5754_v61 = vsel %vm21623_vm12, %v12677_v8, %v12567_v57  ;;  %vm21624_vm10 = vmmov %vm21611_vm1  ;;  %v21641_v60 = vld [vmem:[#allocation80_spill] sm:$0xff] }
 0x5de   : > { %11669 = vmatmul.mubr.msk.bf16.vlgmr.msra.gmra.mrb[76].mxu1 %vm3275_vm5, %v18286_v5  ;;  %v5755_v12 = vsel %vm21624_vm10, %v12678_v1, %v12568_v28  ;;  %vm21625_vm7 = vmmov %vm21611_vm1  ;;  %v5752_v52 = vsel %vm21611_vm1, %v12672_v14, %v12552_v13 }
 0x5df   : > { %5944 = vmatprep.mubr.bf16.mxu1 %v21266_v42  ;;  %v5724_v54 = vsel %vm21625_vm7, %v12652_v36, %v12672_v14  ;;  %vm21626_vm9 = vmmov %vm21611_vm1  ;;  %5871 = vmatprep.subr.bf16.mxu0 %v5772_v40  ;;  %v5774_v13 = vpack.c.bf16 %v5755_v12, %v5754_v61 }
 0x5e0   : > { %v5725_v41 = vsel %vm21626_vm9, %v12653_v27, %v12673_v39  ;;  %vm21627_vm15 = vmmov %vm21611_vm1 }
 0x5e1   : > { %v5753_v57 = vsel %vm21627_vm15, %v12673_v39, %v12553_v48  ;;  %v5765_v37 = vpack.c.bf16 %v5725_v41, %v5724_v54  ;;  %5872 = vmatpush1.bf16.msra.mxu0 %v5771_v51  ;;  %vm21628_vm12 = vmmov %vm21611_vm1 }
 0x5e2   : > { %v5766_v28 = vpack.c.bf16 %v5753_v57, %v5752_v52  ;;  %v5726_v10 = vsel %vm21628_vm12, %v12657_v9, %v12677_v8  ;;  %vm21629_vm10 = vmmov %vm21611_vm1  ;;  %11672 = vmatprep.subr.msk.mxu0 %vm21187_vm0, %v21630_v56 }
 0x5e3   : > { %v5727_v20 = vsel %vm21629_vm10, %v12658_v24, %v12678_v1 }
 0x5e4   : > { %5912 = vmatprep.subr.bf16.mxu1 %v5766_v28  ;;  %11670 = vmatmul.mubr.msk.bf16.vlgmr.msra.gmra.mrb[80].mxu0 %vm3275_vm5, %v18286_v5  ;;  %v5773_v48 = vpack.c.bf16 %v5727_v20, %v5726_v10 }
 0x5e5   : > { %5913 = vmatpush1.bf16.msra.mxu1 %v5765_v37 }
 0x5e6   : > { %5914 = vmatprep.subr.bf16.mxu1 %v5774_v13  ;;  %v21643_v13 = vld [vmem:[#allocation137_spill] sm:$0xff] }
 0x5e9   : > { %5915 = vmatpush1.bf16.msra.mxu1 %v5773_v48  ;;  %v21644_v48 = vld [vmem:[#allocation138_spill] sm:$0xff] }
 0x5ea   : > { %11680 = vmatprep.subr.msk.mxu1 %vm21187_vm0, %v21630_v56  ;;  %11673 = vmatpush1.xpose.msk.msra.mxu0 %vm21193_vm11, %v21630_v56 }
 0x5eb   : > { %11674 = vmatprep.subr.msk.mxu0 %vm21190_vm3, %v21630_v56 }
 0x5ec   : > { %11671 = vmatmul.mubr.msk.bf16.vlgmr.msra.gmra.mrb[80].mxu1 %vm3275_vm5, %v18286_v5  ;;  %vm21710_vm5 = vcmask 31744  }
 0x5ed   : > { %vm21711_vm7 = vmmov %vm21710_vm5 }
 0x5ee   : > { %vm21714_vm9 = vmmov %vm21710_vm5 }
 0x5ef   : > { %vm21715_vm1 = vmmov %vm21710_vm5 }
 0x5f0   : > { %vm21716_vm15 = vmmov %vm21715_vm1 }
 0x5f1   : > { %vm21717_vm12 = vmmov %vm21715_vm1 }
 0x5f2   : > { %11681 = vmatpush1.xpose.msk.msra.mxu1 %vm21193_vm11, %v21630_v56  ;;  %vm21718_vm10 = vmmov %vm21715_vm1 }
 0x5f3   : > { %11682 = vmatprep.subr.msk.mxu1 %vm21190_vm3, %v21630_v56 }
 0x610   : > { %v3313_v25 = vpop.f32.mrb[12].mxu0 }
 0x611   : > { %v3315_v26 = vpop.f32.mrb[13].mxu0  ;;  %v3451_v9 = vmul.f32 %v21637_v3, %v3313_v25 }
 0x612   : > { %v3317_v18 = vpop.f32.mrb[14].mxu0  ;;  %v3452_v29 = vmul.f32 %v21638_v59, %v3315_v26  ;;  %v21645_v26 = vld [vmem:[#allocation111_spill] sm:$0xff] }
 0x613   : > { %v3319_v5 = vpop.f32.mrb[15].mxu0  ;;  %v3459_v1 = vmul.f32 %v21637_v3, %v3317_v18 }
 0x614   : > { %v3460_v41 = vmul.f32 %v21638_v59, %v3319_v5 }
 0x61a   : > { %v3442_v15 = vpop.f32.mrb[16].mxu1 }
 0x61b   : > { %v3444_v16 = vpop.f32.mrb[17].mxu1  ;;  %v3457_v10 = vmul.f32 %v21642_v34, %v3442_v15 }
 0x61c   : > { %v3446_v19 = vpop.f32.mrb[18].mxu1  ;;  %v3458_v18 = vmul.f32 %v21645_v26, %v3444_v16 }
 0x61d   : > { %v3399_v43 = vpop.f32.mrb[16].mxu0  ;;  %v3448_v27 = vpop.f32.mrb[19].mxu1 }
 0x61e   : > { %v3401_v2 = vpop.f32.mrb[17].mxu0  ;;  %v3455_v30 = vmul.f32 %v21643_v13, %v3399_v43  ;;  %v3466_v43 = vmul.f32 %v21645_v26, %v3448_v27 }
 0x61f   : > { %v3403_v47 = vpop.f32.mrb[18].mxu0  ;;  %v3456_v25 = vmul.f32 %v21644_v48, %v3401_v2  ;;  %v21649_v2 = vld [vmem:[#allocation140_spill] sm:$0xff] }
 0x620   : > { %v3405_v36 = vpop.f32.mrb[19].mxu0 }
 0x626   : > { %v3640_v24 = vpop.f32.mrb[20].mxu0 }
 0x627   : > { %v3778_v53 = vmul.f32 %v21639_v17, %v3640_v24  ;;  %v3642_v58 = vpop.f32.mrb[21].mxu0  ;;  %v21647_v24 = vld [vmem:[#allocation139_spill] sm:$0xff] }
 0x628   : > { %v3683_v63 = vpop.f32.mrb[20].mxu1  ;;  %v3779_v46 = vmul.f32 %v21641_v60, %v3642_v58  ;;  %v3644_v51 = vpop.f32.mrb[22].mxu0 }
 0x629   : > { %v3780_v0 = vmul.f32 %v21636_v45, %v3683_v63  ;;  %v3685_v33 = vpop.f32.mrb[21].mxu1  ;;  %v3794_v14 = vadd.f32 %v3778_v53, %v3451_v9  ;;  %v3786_v61 = vmul.f32 %v21639_v17, %v3644_v51  ;;  %v3646_v54 = vpop.f32.mrb[23].mxu0  ;;  %v3464_v51 = vmul.f32 %v21644_v48, %v3405_v36 }
 0x62a   : > { %v3781_v38 = vmul.f32 %v21640_v55, %v3685_v33  ;;  %v3687_v6 = vpop.f32.mrb[22].mxu1  ;;  %v3795_v52 = vadd.f32 %v3779_v46, %v3452_v29  ;;  %v3787_v44 = vmul.f32 %v21641_v60, %v3646_v54  ;;  %v21648_v33 = vld [vmem:[#allocation152_spill] sm:$0xff] }
 0x62b   : > { %v3796_v8 = vadd.f32 %v3780_v0, %v3453_v23  ;;  %v3788_v35 = vmul.f32 %v21636_v45, %v3687_v6  ;;  %v3689_v39 = vpop.f32.mrb[23].mxu1  ;;  %v3802_v37 = vadd.f32 %v3786_v61, %v3459_v1  ;;  %v21646_v23 = vld [vmem:[#allocation151_spill] sm:$0xff]  ;;  %v3465_v0 = vmul.f32 %v21642_v34, %v3446_v19 }
 0x62c   : > { %v3797_v40 = vadd.f32 %v3781_v38, %v3454_v62  ;;  %v3789_v12 = vmul.f32 %v21640_v55, %v3689_v39  ;;  %v3803_v49 = vadd.f32 %v3787_v44, %v3460_v41 }
 0x62d   : > { %v3804_v57 = vadd.f32 %v3788_v35, %v3461_v11  ;;  %v3463_v11 = vmul.f32 %v21643_v13, %v3403_v47 }
 0x62e   : > { %v3805_v28 = vadd.f32 %v3789_v12, %v3462_v4 }
 0x630   : > { %v3769_v20 = vpop.f32.mrb[24].mxu1 }
 0x631   : > { %v3784_v63 = vmul.f32 %v21646_v23, %v3769_v20  ;;  %v3726_v62 = vpop.f32.mrb[24].mxu0  ;;  %v3771_v5 = vpop.f32.mrb[25].mxu1  ;;  %v21650_v20 = vld [vmem:[#allocation133_spill] sm:$0xff] }
 0x632   : > { %v3782_v4 = vmul.f32 %v21647_v24, %v3726_v62  ;;  %v3785_v9 = vmul.f32 %v21648_v33, %v3771_v5  ;;  %v3728_v15 = vpop.f32.mrb[25].mxu0  ;;  %v3773_v29 = vpop.f32.mrb[26].mxu1 }
 0x633   : > { %v3800_v53 = vadd.f32 %v3784_v63, %v3457_v10  ;;  %v3783_v38 = vmul.f32 %v21649_v2, %v3728_v15  ;;  %v3792_v16 = vmul.f32 %v21646_v23, %v3773_v29  ;;  %v3730_v58 = vpop.f32.mrb[26].mxu0  ;;  %v3775_v6 = vpop.f32.mrb[27].mxu1  ;;  %v21653_v15 = vld [vmem:[#allocation85_spill] sm:$0xff] }
 0x634   : > { %v3798_v1 = vadd.f32 %v3782_v4, %v3455_v30  ;;  %v3801_v46 = vadd.f32 %v3785_v9, %v3458_v18  ;;  %v3790_v47 = vmul.f32 %v21647_v24, %v3730_v58  ;;  %v3793_v19 = vmul.f32 %v21648_v33, %v3775_v6  ;;  %v3732_v35 = vpop.f32.mrb[27].mxu0  ;;  %v21651_v30 = vld [vmem:[#allocation86_spill] sm:$0xff]  ;;  %v21662_v33 = vld [vmem:[#allocation55_spill] sm:$0xff] }
 0x635   : > { %v3799_v39 = vadd.f32 %v3783_v38, %v3456_v25  ;;  %v3808_v61 = vadd.f32 %v3792_v16, %v3465_v0  ;;  %v3791_v27 = vmul.f32 %v21649_v2, %v3732_v35  ;;  %v21652_v4 = vld [vmem:[#allocation134_spill] sm:$0xff] }
 0x636   : > { %v3806_v12 = vadd.f32 %v3790_v47, %v3463_v11  ;;  %v3809_v54 = vadd.f32 %v3793_v19, %v3466_v43 }
 0x637   : > { %v3807_v41 = vadd.f32 %v3791_v27, %v3464_v51 }
 0x639   : > { %v3967_v10 = vpop.f32.mrb[28].mxu0 }
 0x63a   : > { %v4010_v44 = vpop.f32.mrb[28].mxu1  ;;  %v4105_v18 = vmul.f32 %v21651_v30, %v3967_v10  ;;  %v3969_v5 = vpop.f32.mrb[29].mxu0 }
 0x63b   : > { %v4107_v63 = vmul.f32 %v21650_v20, %v4010_v44  ;;  %v4012_v62 = vpop.f32.mrb[29].mxu1  ;;  %v4106_v29 = vmul.f32 %v21653_v15, %v3969_v5  ;;  %v3971_v25 = vpop.f32.mrb[30].mxu0 }
 0x63c   : > { %v4108_v9 = vmul.f32 %v21652_v4, %v4012_v62  ;;  %v4014_v36 = vpop.f32.mrb[30].mxu1  ;;  %v4121_v38 = vadd.f32 %v4105_v18, %v3794_v14  ;;  %v4113_v43 = vmul.f32 %v21651_v30, %v3971_v25  ;;  %v3973_v58 = vpop.f32.mrb[31].mxu0 }
 0x63d   : > { %v4123_v0 = vadd.f32 %v4107_v63, %v3796_v8  ;;  %v4115_v11 = vmul.f32 %v21650_v20, %v4014_v36  ;;  %v4016_v16 = vpop.f32.mrb[31].mxu1  ;;  %v4122_v47 = vadd.f32 %v4106_v29, %v3795_v52  ;;  %v4114_v35 = vmul.f32 %v21653_v15, %v3973_v58  ;;  %v21654_v8 = vld [vmem:[#allocation115_spill] sm:$0xff]  ;;  %v21655_v63 = vld [vmem:[#allocation68_spill] sm:$0xff] }
 0x63e   : > { %v4124_v6 = vadd.f32 %v4108_v9, %v3797_v40  ;;  %v4116_v19 = vmul.f32 %v21652_v4, %v4016_v16  ;;  %v4129_v27 = vadd.f32 %v4113_v43, %v3802_v37  ;;  %v21656_v20 = vld [vmem:[#allocation51_spill] sm:$0xff] }
 0x63f   : > { %v4131_v51 = vadd.f32 %v4115_v11, %v3804_v57  ;;  %v4130_v10 = vadd.f32 %v4114_v35, %v3803_v49  ;;  %v21657_v40 = vld [vmem:[#allocation43_spill] sm:$0xff] }
 0x640   : > { %v4132_v44 = vadd.f32 %v4116_v19, %v3805_v28 }
 0x642   : > { %v4096_v62 = vpop.f32.mrb[32].mxu1 }
 0x643   : > { %v4053_v5 = vpop.f32.mrb[32].mxu0  ;;  %v4111_v14 = vmul.f32 %v21654_v8, %v4096_v62  ;;  %v4098_v36 = vpop.f32.mrb[33].mxu1 }
 0x644   : > { %v4109_v18 = vmul.f32 %v21655_v63, %v4053_v5  ;;  %v4055_v25 = vpop.f32.mrb[33].mxu0  ;;  %v4112_v30 = vmul.f32 %v21656_v20, %v4098_v36  ;;  %v4100_v9 = vpop.f32.mrb[34].mxu1 }
 0x645   : > { %v4110_v52 = vmul.f32 %v21657_v40, %v4055_v25  ;;  %v4057_v29 = vpop.f32.mrb[34].mxu0  ;;  %v4127_v16 = vadd.f32 %v4111_v14, %v3800_v53  ;;  %v4119_v57 = vmul.f32 %v21654_v8, %v4100_v9  ;;  %v4102_v28 = vpop.f32.mrb[35].mxu1  ;;  %v21658_v53 = vld [vmem:[#allocation135_spill] sm:$0xff]  ;;  %v21660_v8 = vld [vmem:[#allocation136_spill] sm:$0xff] }
 0x646   : > { %v4125_v58 = vadd.f32 %v4109_v18, %v3798_v1  ;;  %v4117_v37 = vmul.f32 %v21655_v63, %v4057_v29  ;;  %v4059_v49 = vpop.f32.mrb[35].mxu0  ;;  %v4128_v11 = vadd.f32 %v4112_v30, %v3801_v46  ;;  %v4120_v19 = vmul.f32 %v21656_v20, %v4102_v28  ;;  %v21659_v14 = vld [vmem:[#allocation91_spill] sm:$0xff]  ;;  %v21661_v46 = vld [vmem:[#allocation88_spill] sm:$0xff] }
 0x647   : > { %v4126_v43 = vadd.f32 %v4110_v52, %v3799_v39  ;;  %v4118_v35 = vmul.f32 %v21657_v40, %v4059_v49  ;;  %v4135_v62 = vadd.f32 %v4119_v57, %v3808_v61 }
 0x648   : > { %v4133_v5 = vadd.f32 %v4117_v37, %v3806_v12  ;;  %v4136_v36 = vadd.f32 %v4120_v19, %v3809_v54 }
 0x649   : > { %v4134_v25 = vadd.f32 %v4118_v35, %v3807_v41 }
 0x64b   : > { %v4337_v4 = vpop.f32.mrb[36].mxu1 }
 0x64c   : > { %v4434_v1 = vmul.f32 %v21658_v53, %v4337_v4  ;;  %v4339_v9 = vpop.f32.mrb[37].mxu1 }
 0x64d   : > { %v4294_v15 = vpop.f32.mrb[36].mxu0  ;;  %v4435_v63 = vmul.f32 %v21660_v8, %v4339_v9  ;;  %v4341_v30 = vpop.f32.mrb[38].mxu1 }
 0x64e   : > { %v4432_v18 = vmul.f32 %v21659_v14, %v4294_v15  ;;  %v4296_v29 = vpop.f32.mrb[37].mxu0  ;;  %v4442_v28 = vmul.f32 %v21658_v53, %v4341_v30  ;;  %v4343_v12 = vpop.f32.mrb[39].mxu1  ;;  %v4450_v41 = vadd.f32 %v4434_v1, %v4123_v0  ;;  %v21663_v53 = vld [vmem:[#allocation143_spill] sm:$0xff]  ;;  %v21664_v0 = vld [vmem:[#allocation118_spill] sm:$0xff]  ;;  %v21665_v1 = vld [vmem:[#allocation144_spill] sm:$0xff] }
 0x64f   : > { %v4433_v39 = vmul.f32 %v21661_v46, %v4296_v29  ;;  %v4298_v52 = vpop.f32.mrb[38].mxu0  ;;  %v4443_v4 = vmul.f32 %v21660_v8, %v4343_v12  ;;  %v4451_v37 = vadd.f32 %v4435_v63, %v4124_v6 }
 0x650   : > { %v4440_v61 = vmul.f32 %v21659_v14, %v4298_v52  ;;  %v4300_v54 = vpop.f32.mrb[39].mxu0  ;;  %v4448_v57 = vadd.f32 %v4432_v18, %v4121_v38  ;;  %v4458_v19 = vadd.f32 %v4442_v28, %v4131_v51 }
 0x651   : > { %v4441_v15 = vmul.f32 %v21661_v46, %v4300_v54  ;;  %v4449_v49 = vadd.f32 %v4433_v39, %v4122_v47  ;;  %v4459_v9 = vadd.f32 %v4443_v4, %v4132_v44 }
 0x652   : > { %v4456_v35 = vadd.f32 %v4440_v61, %v4129_v27 }
 0x653   : > { %v4457_v29 = vadd.f32 %v4441_v15, %v4130_v10 }
 0x657   : > { %v4423_v20 = vpop.f32.mrb[40].mxu1 }
 0x658   : > { %v4438_v30 = vmul.f32 %v21662_v33, %v4423_v20  ;;  %v4425_v14 = vpop.f32.mrb[41].mxu1 }
 0x659   : > { %v4439_v38 = vmul.f32 %v21664_v0, %v4425_v14  ;;  %v4427_v12 = vpop.f32.mrb[42].mxu1 }
 0x65a   : > { %v4380_v40 = vpop.f32.mrb[40].mxu0  ;;  %v4446_v6 = vmul.f32 %v21662_v33, %v4427_v12  ;;  %v4429_v51 = vpop.f32.mrb[43].mxu1  ;;  %v4454_v44 = vadd.f32 %v4438_v30, %v4127_v16 }
 0x65b   : > { %v4436_v52 = vmul.f32 %v21663_v53, %v4380_v40  ;;  %v4382_v26 = vpop.f32.mrb[41].mxu0  ;;  %v4447_v20 = vmul.f32 %v21664_v0, %v4429_v51  ;;  %v4455_v40 = vadd.f32 %v4439_v38, %v4128_v11 }
 0x65c   : > { %v4437_v18 = vmul.f32 %v21665_v1, %v4382_v26  ;;  %v4384_v54 = vpop.f32.mrb[42].mxu0  ;;  %v4462_v28 = vadd.f32 %v4446_v6, %v4135_v62 }
 0x65d   : > { %v4444_v47 = vmul.f32 %v21663_v53, %v4384_v54  ;;  %v4386_v27 = vpop.f32.mrb[43].mxu0  ;;  %v4452_v10 = vadd.f32 %v4436_v52, %v4125_v58  ;;  %v4463_v61 = vadd.f32 %v4447_v20, %v4136_v36 }
 0x65e   : > { %v4445_v63 = vmul.f32 %v21665_v1, %v4386_v27  ;;  %v4453_v39 = vadd.f32 %v4437_v18, %v4126_v43 }
 0x65f   : > { %v4460_v14 = vadd.f32 %v4444_v47, %v4133_v5 }
 0x660   : > { %v4461_v26 = vadd.f32 %v4445_v63, %v4134_v25  ;;  %v4568_v4 = vpop.f32.mrb[44].mxu1  ;;  %v21666_v63 = vld [vmem:[#allocation56_spill] sm:$0xff] }
 0x661   : > { %v4665_v8 = vadd.f32 %v4568_v4, %v4450_v41  ;;  %v4570_v33 = vpop.f32.mrb[45].mxu1  ;;  %v21667_v4 = vld [vmem:[#allocation95_spill] sm:$0xff] }
 0x662   : > { %v4525_v15 = vpop.f32.mrb[44].mxu0  ;;  %v4666_v53 = vadd.f32 %v4570_v33, %v4451_v37  ;;  %v4572_v16 = vpop.f32.mrb[46].mxu1 }
 0x663   : > { %v4663_v12 = vadd.f32 %v4525_v15, %v4448_v57  ;;  %v4527_v54 = vpop.f32.mrb[45].mxu0  ;;  %v4673_v30 = vadd.f32 %v4572_v16, %v4458_v19  ;;  %v4574_v51 = vpop.f32.mrb[47].mxu1 }
 0x664   : > { %v4664_v46 = vadd.f32 %v4527_v54, %v4449_v49  ;;  %v4529_v58 = vpop.f32.mrb[46].mxu0  ;;  %v4674_v11 = vadd.f32 %v4574_v51, %v4459_v9 }
 0x665   : > { %v4671_v52 = vadd.f32 %v4529_v58, %v4456_v35  ;;  %v4531_v27 = vpop.f32.mrb[47].mxu0 }
 0x666   : > { %v4672_v43 = vadd.f32 %v4531_v27, %v4457_v29 }
 0x66a   : > { %v4611_v5 = vpop.f32.mrb[48].mxu0 }
 0x66b   : > { %v4654_v62 = vpop.f32.mrb[48].mxu1  ;;  %v4667_v25 = vadd.f32 %v4611_v5, %v4452_v10  ;;  %v4613_v41 = vpop.f32.mrb[49].mxu0 }
 0x66c   : > { %v18439_v36 = vadd.f32 %v4654_v62, %v4454_v44  ;;  %v4656_v38 = vpop.f32.mrb[49].mxu1  ;;  %v4668_v18 = vadd.f32 %v4613_v41, %v4453_v39  ;;  %v4615_v37 = vpop.f32.mrb[50].mxu0  ;;  %v21669_v39 = vld [vmem:[#allocation94_spill] sm:$0xff] }
 0x66d   : > { %v18441_v57 = vadd.f32 %v4656_v38, %v4455_v40  ;;  %v4658_v33 = vpop.f32.mrb[50].mxu1  ;;  %v4675_v19 = vadd.f32 %v4615_v37, %v4460_v14  ;;  %v4617_v6 = vpop.f32.mrb[51].mxu0  ;;  %v21668_v40 = vld [vmem:[#allocation38_spill] sm:$0xff] }
 0x66e   : > { %v18443_v49 = vadd.f32 %v4658_v33, %v4462_v28  ;;  %v4660_v35 = vpop.f32.mrb[51].mxu1  ;;  %v4676_v9 = vadd.f32 %v4617_v6, %v4461_v26 }
 0x66f   : > { %v4678_v47 = vadd.f32 %v4660_v35, %v4463_v61 }
 0x672   : > { %v4836_v20 = vpop.f32.mrb[52].mxu0 }
 0x673   : > { %v4879_v29 = vpop.f32.mrb[52].mxu1  ;;  %v4974_v10 = vmul.f32 %v21667_v4, %v4836_v20  ;;  %v4838_v54 = vpop.f32.mrb[53].mxu0 }
 0x674   : > { %v4976_v44 = vmul.f32 %v21666_v63, %v4879_v29  ;;  %v4881_v15 = vpop.f32.mrb[53].mxu1  ;;  %v4975_v58 = vmul.f32 %v21669_v39, %v4838_v54  ;;  %v4840_v28 = vpop.f32.mrb[54].mxu0 }
 0x675   : > { %v4977_v16 = vmul.f32 %v21668_v40, %v4881_v15  ;;  %v4883_v51 = vpop.f32.mrb[54].mxu1  ;;  %v4990_v14 = vadd.f32 %v4974_v10, %v4663_v12  ;;  %v4982_v26 = vmul.f32 %v21667_v4, %v4840_v28  ;;  %v4842_v5 = vpop.f32.mrb[55].mxu0  ;;  %v21671_v10 = vld [vmem:[#allocation101_spill] sm:$0xff]  ;;  %v21681_v4 = vld [vmem:[#allocation142_spill] sm:$0xff] }
 0x676   : > { %v18449_v27 = vadd.f32 %v4976_v44, %v4665_v8  ;;  %v4984_v61 = vmul.f32 %v21666_v63, %v4883_v51  ;;  %v4885_v62 = vpop.f32.mrb[55].mxu1  ;;  %v4991_v41 = vadd.f32 %v4975_v58, %v4664_v46  ;;  %v4983_v37 = vmul.f32 %v21669_v39, %v4842_v5  ;;  %v21670_v8 = vld [vmem:[#allocation78_spill] sm:$0xff] }
 0x677   : > { %v4993_v38 = vadd.f32 %v4977_v16, %v4666_v53  ;;  %v4985_v33 = vmul.f32 %v21668_v40, %v4885_v62  ;;  %v4998_v6 = vadd.f32 %v4982_v26, %v4671_v52  ;;  %v21673_v26 = vld [vmem:[#allocation53_spill] sm:$0xff]  ;;  %v21680_v39 = vld [vmem:[#allocation66_spill] sm:$0xff] }
 0x678   : > { %v5000_v35 = vadd.f32 %v4984_v61, %v4673_v30  ;;  %v4999_v20 = vadd.f32 %v4983_v37, %v4672_v43  ;;  %v21674_v37 = vld [vmem:[#allocation104_spill] sm:$0xff] }
 0x679   : > { %v5001_v29 = vadd.f32 %v4985_v33, %v4674_v11  ;;  %v21672_v11 = vld [vmem:[#allocation76_spill] sm:$0xff] }
 0x67a   : > { %v4922_v15 = vpop.f32.mrb[56].mxu0 }
 0x67b   : > { %v4978_v44 = vmul.f32 %v21670_v8, %v4922_v15  ;;  %v4924_v12 = vpop.f32.mrb[57].mxu0 }
 0x67c   : > { %v4979_v54 = vmul.f32 %v21671_v10, %v4924_v12  ;;  %v4926_v51 = vpop.f32.mrb[58].mxu0 }
 0x67d   : > { %v4994_v28 = vadd.f32 %v4978_v44, %v4667_v25  ;;  %v4986_v63 = vmul.f32 %v21670_v8, %v4926_v51  ;;  %v4928_v53 = vpop.f32.mrb[59].mxu0  ;;  %v21675_v44 = vld [vmem:[#allocation75_spill] sm:$0xff] }
 0x67e   : > { %v4995_v46 = vadd.f32 %v4979_v54, %v4668_v18  ;;  %v4987_v16 = vmul.f32 %v21671_v10, %v4928_v53 }
 0x67f   : > { %v5002_v58 = vadd.f32 %v4986_v63, %v4675_v19 }
 0x680   : > { %v5003_v62 = vadd.f32 %v4987_v16, %v4676_v9 }
 0x682   : > { %v5163_v30 = vpop.f32.mrb[60].mxu0 }
 0x683   : > { %v5301_v43 = vmul.f32 %v21672_v11, %v5163_v30  ;;  %v5165_v61 = vpop.f32.mrb[61].mxu0 }
 0x684   : > { %v4965_v52 = vpop.f32.mrb[56].mxu1  ;;  %v5302_v15 = vmul.f32 %v21674_v37, %v5165_v61  ;;  %v5167_v12 = vpop.f32.mrb[62].mxu0 }
 0x685   : > { %v4980_v5 = vmul.f32 %v21673_v26, %v4965_v52  ;;  %v4967_v33 = vpop.f32.mrb[57].mxu1  ;;  %v5317_v25 = vadd.f32 %v5301_v43, %v4990_v14  ;;  %v5309_v18 = vmul.f32 %v21672_v11, %v5167_v12  ;;  %v5169_v54 = vpop.f32.mrb[63].mxu0  ;;  %v21676_v11 = vld [vmem:[#allocation106_spill] sm:$0xff] }
 0x686   : > { %v4981_v51 = vmul.f32 %v21675_v44, %v4967_v33  ;;  %v4969_v8 = vpop.f32.mrb[58].mxu1  ;;  %v5318_v9 = vadd.f32 %v5302_v15, %v4991_v41  ;;  %v5310_v16 = vmul.f32 %v21674_v37, %v5169_v54  ;;  %v21677_v41 = vld [vmem:[#allocation64_spill] sm:$0xff] }
 0x687   : > { %v4996_v19 = vadd.f32 %v4980_v5, %v18439_v36  ;;  %v4988_v63 = vmul.f32 %v21673_v26, %v4969_v8  ;;  %v4971_v53 = vpop.f32.mrb[59].mxu1  ;;  %v5325_v52 = vadd.f32 %v5309_v18, %v4998_v6  ;;  %v21678_v15 = vld [vmem:[#allocation108_spill] sm:$0xff] }
 0x688   : > { %v4997_v30 = vadd.f32 %v4981_v51, %v18441_v57  ;;  %v4989_v61 = vmul.f32 %v21675_v44, %v4971_v53  ;;  %v5326_v43 = vadd.f32 %v5310_v16, %v4999_v20  ;;  %v21679_v57 = vld [vmem:[#allocation99_spill] sm:$0xff] }
 0x689   : > { %v5004_v14 = vadd.f32 %v4988_v63, %v18443_v49 }
 0x68a   : > { %v5005_v33 = vadd.f32 %v4989_v61, %v4678_v47  ;;  %v5249_v10 = vpop.f32.mrb[64].mxu0 }
 0x68b   : > { %v5305_v40 = vmul.f32 %v21676_v11, %v5249_v10  ;;  %v5251_v36 = vpop.f32.mrb[65].mxu0 }
 0x68c   : > { %v5206_v12 = vpop.f32.mrb[60].mxu1  ;;  %v5306_v26 = vmul.f32 %v21678_v15, %v5251_v36  ;;  %v5253_v54 = vpop.f32.mrb[66].mxu0 }
 0x68d   : > { %v5303_v5 = vmul.f32 %v21677_v41, %v5206_v12  ;;  %v5208_v8 = vpop.f32.mrb[61].mxu1  ;;  %v5321_v37 = vadd.f32 %v5305_v40, %v4994_v28  ;;  %v5313_v18 = vmul.f32 %v21676_v11, %v5253_v54  ;;  %v5255_v49 = vpop.f32.mrb[67].mxu0 }
 0x68e   : > { %v5304_v6 = vmul.f32 %v21679_v57, %v5208_v8  ;;  %v5210_v51 = vpop.f32.mrb[62].mxu1  ;;  %v5322_v20 = vadd.f32 %v5306_v26, %v4995_v46  ;;  %v5314_v53 = vmul.f32 %v21678_v15, %v5255_v49  ;;  %v21682_v26 = vld [vmem:[#allocation105_spill] sm:$0xff]  ;;  %v21683_v49 = vld [vmem:[#allocation63_spill] sm:$0xff] }
 0x68f   : > { %v5319_v47 = vadd.f32 %v5303_v5, %v18449_v27  ;;  %v5311_v63 = vmul.f32 %v21677_v41, %v5210_v51  ;;  %v5212_v10 = vpop.f32.mrb[63].mxu1  ;;  %v5329_v61 = vadd.f32 %v5313_v18, %v5002_v58 }
 0x690   : > { %v5320_v16 = vadd.f32 %v5304_v6, %v4993_v38  ;;  %v5312_v12 = vmul.f32 %v21679_v57, %v5212_v10  ;;  %v5330_v40 = vadd.f32 %v5314_v53, %v5003_v62 }
 0x691   : > { %v5327_v36 = vadd.f32 %v5311_v63, %v5000_v35 }
 0x692   : > { %v5328_v28 = vadd.f32 %v5312_v12, %v5001_v29  ;;  %v5490_v8 = vpop.f32.mrb[68].mxu0 }
 0x693   : > { %v5628_v54 = vmul.f32 %v21680_v39, %v5490_v8  ;;  %v5492_v11 = vpop.f32.mrb[69].mxu0 }
 0x694   : > { %v5292_v44 = vpop.f32.mrb[64].mxu1  ;;  %v5629_v5 = vmul.f32 %v21682_v26, %v5492_v11  ;;  %v5494_v51 = vpop.f32.mrb[70].mxu0 }
 0x695   : > { %v5307_v27 = vmul.f32 %v21681_v4, %v5292_v44  ;;  %v5294_v46 = vpop.f32.mrb[65].mxu1  ;;  %v5644_v41 = vadd.f32 %v5628_v54, %v5317_v25  ;;  %v5636_v6 = vmul.f32 %v21680_v39, %v5494_v51  ;;  %v5496_v35 = vpop.f32.mrb[71].mxu0  ;;  %v21685_v39 = vld [vmem:[#allocation121_spill] sm:$0xff] }
 0x696   : > { %v5308_v38 = vmul.f32 %v21683_v49, %v5294_v46  ;;  %v5296_v58 = vpop.f32.mrb[66].mxu1  ;;  %v5645_v29 = vadd.f32 %v5629_v5, %v5318_v9  ;;  %v5637_v10 = vmul.f32 %v21682_v26, %v5496_v35  ;;  %v21684_v46 = vld [vmem:[#allocation145_spill] sm:$0xff]  ;;  %v21686_v9 = vld [vmem:[#allocation146_spill] sm:$0xff] }
 0x697   : > { %v5323_v62 = vadd.f32 %v5307_v27, %v4996_v19  ;;  %v5315_v18 = vmul.f32 %v21681_v4, %v5296_v58  ;;  %v5298_v63 = vpop.f32.mrb[67].mxu1  ;;  %v5652_v44 = vadd.f32 %v5636_v6, %v5325_v52  ;;  %v21687_v35 = vld [vmem:[#allocation122_spill] sm:$0xff] }
 0x698   : > { %v5324_v53 = vadd.f32 %v5308_v38, %v4997_v30  ;;  %v5316_v12 = vmul.f32 %v21683_v49, %v5298_v63  ;;  %v5653_v8 = vadd.f32 %v5637_v10, %v5326_v43 }
 0x699   : > { %v5331_v11 = vadd.f32 %v5315_v18, %v5004_v14 }
 0x69a   : > { %v5332_v25 = vadd.f32 %v5316_v12, %v5005_v33 }
 0x69d   : > { %v5533_v54 = vpop.f32.mrb[68].mxu1 }
 0x69e   : > { %v5630_v15 = vmul.f32 %v21684_v46, %v5533_v54  ;;  %v5576_v57 = vpop.f32.mrb[72].mxu0  ;;  %v5535_v51 = vpop.f32.mrb[69].mxu1 }
 0x69f   : > { %v5632_v19 = vmul.f32 %v21685_v39, %v5576_v57  ;;  %v5631_v27 = vmul.f32 %v21686_v9, %v5535_v51  ;;  %v5578_v5 = vpop.f32.mrb[73].mxu0  ;;  %v5537_v58 = vpop.f32.mrb[70].mxu1 }
 0x6a0   : > { %v5646_v4 = vadd.f32 %v5630_v15, %v5319_v47  ;;  %v5633_v30 = vmul.f32 %v21687_v35, %v5578_v5  ;;  %v5638_v52 = vmul.f32 %v21684_v46, %v5537_v58  ;;  %v5580_v38 = vpop.f32.mrb[74].mxu0  ;;  %v5539_v14 = vpop.f32.mrb[71].mxu1  ;;  %v21689_v5 = vld [vmem:[#allocation30_spill] sm:$0xff] }
 0x6a1   : > { %v18492_v43 = vadd.f32 %v5632_v19, %v5321_v37  ;;  %v5647_v33 = vadd.f32 %v5631_v27, %v5320_v16  ;;  %v5640_v6 = vmul.f32 %v21685_v39, %v5580_v38  ;;  %v5639_v18 = vmul.f32 %v21686_v9, %v5539_v14  ;;  %v5582_v63 = vpop.f32.mrb[75].mxu0  ;;  %v18503_v51 = vpop.permute.xlu0 %5991  ;;  %v21688_v16 = vld [vmem:[#allocation34_spill] sm:$0xff] }
 0x6a2   : > { %v18496_v57 = vadd.f32 %v5633_v30, %v5322_v20  ;;  %v5654_v10 = vadd.f32 %v5638_v52, %v5327_v36  ;;  %v5641_v12 = vmul.f32 %v21687_v35, %v5582_v63  ;;  %v21690_v20 = vld [vmem:[#allocation67_spill] sm:$0xff]  ;;  %v21691_v36 = vld [vmem:[#allocation58_spill] sm:$0xff]  ;;  %v18519_v46 = vpop.permute.xlu1 %5996 }
 0x6a3   : > { %v18499_v15 = vadd.f32 %v5640_v6, %v5329_v61  ;;  %v5655_v47 = vadd.f32 %v5639_v18, %v5328_v28 }
 0x6a4   : > { %v18501_v54 = vadd.f32 %v5641_v12, %v5330_v40 }
 0x6a6   : > { %v5817_v19 = vpop.f32.mrb[76].mxu0 }
 0x6a7   : > { %v5955_v58 = vmul.f32 %v21689_v5, %v5817_v19  ;;  %v5819_v14 = vpop.f32.mrb[77].mxu0 }
 0x6a8   : > { %v5956_v52 = vmul.f32 %v21691_v36, %v5819_v14  ;;  %v5821_v61 = vpop.f32.mrb[78].mxu0 }
 0x6a9   : > { %v5619_v37 = vpop.f32.mrb[72].mxu1  ;;  %v5971_v40 = vadd.f32 %v5955_v58, %v5644_v41  ;;  %v5963_v18 = vmul.f32 %v21689_v5, %v5821_v61  ;;  %v5823_v35 = vpop.f32.mrb[79].mxu0 }
 0x6aa   : > { %v5634_v27 = vmul.f32 %v21688_v16, %v5619_v37  ;;  %v5621_v38 = vpop.f32.mrb[73].mxu1  ;;  %v5972_v19 = vadd.f32 %v5956_v52, %v5645_v29 }
 0x6ab   : > { %v5635_v30 = vmul.f32 %v21690_v20, %v5621_v38  ;;  %v5623_v63 = vpop.f32.mrb[74].mxu1  ;;  %v5964_v38 = vmul.f32 %v21691_v36, %v5823_v35  ;;  %v5979_v14 = vadd.f32 %v5963_v18, %v5652_v44  ;;  %v18522_v41 = vadd.f32 %v18503_v51, %v5971_v40 }
 0x6ac   : > { %v18509_v6 = vadd.f32 %v5634_v27, %v5323_v62  ;;  %v5642_v28 = vmul.f32 %v21688_v16, %v5623_v63  ;;  %v5625_v12 = vpop.f32.mrb[75].mxu1  ;;  %v18527_v58 = vadd.f32 %v18503_v51, %v5972_v19 }
 0x6ad   : > { %v18513_v37 = vadd.f32 %v5635_v30, %v5324_v53  ;;  %v5643_v39 = vmul.f32 %v21690_v20, %v5625_v12  ;;  %v5980_v27 = vadd.f32 %v5964_v38, %v5653_v8  ;;  %v18540_v8 = vadd.f32 %v18519_v46, %v5979_v14 }
 0x6ae   : > { %v18517_v9 = vadd.f32 %v5642_v28, %v5331_v11  ;;  %6079 = vmatprep.mubr.f32.mxu0 %v18527_v58  ;;  %v6316_v44 = vmul.f32 %v18527_v58, %v18527_v58  ;;  %v21692_v11 = vld [vmem:[#allocation148_spill] sm:$0xff] }
 0x6af   : > { %v18524_v62 = vadd.f32 %v5643_v39, %v5332_v25  ;;  %v18531_v29 = vadd.f32 %v18519_v46, %v5980_v27  ;;  %6080 = vmatmul.mubr.f32.vlgmr.msra.gmra.mrb[10].mxu0 %v18522_v41  ;;  %v6315_v39 = vmul.f32 %v18522_v41, %v18522_v41  ;;  %v21693_v25 = vld [vmem:[#allocation150_spill] sm:$0xff]  ;;  %v6323_v27 = vmul.f32 %v18540_v8, %v18540_v8 }
 0x6b0   : > { %6395 = vmatprep.mubr.f32.mxu1 %v6316_v44  ;;  %11675 = vmatpush1.xpose.msk.msra.mxu0 %vm21196_vm6, %v21630_v56 }
 0x6b1   : > { %v5860_v53 = vpop.f32.mrb[76].mxu1  ;;  %6084 = vmatprep.mubr.f32.mxu0 %v18531_v29  ;;  %v6324_v61 = vmul.f32 %v18531_v29, %v18531_v29  ;;  %6396 = vmatmul.mubr.f32.vlgmr.msra.gmra.mrb[10].mxu1 %v6315_v39  ;;  %v21696_v39 = vld [vmem:[#allocation119_spill] sm:$0xff] }
 0x6b2   : > { %v5957_v35 = vmul.f32 %v21692_v11, %v5860_v53  ;;  %v5862_v30 = vpop.f32.mrb[77].mxu1  ;;  %11683 = vmatpush1.xpose.msk.msra.mxu1 %vm21196_vm6, %v21630_v56  ;;  %11676 = vmatprep.subr.msk.mxu0 %vm21199_vm13, %v21630_v56 }
 0x6b3   : > { %v5958_v52 = vmul.f32 %v21693_v25, %v5862_v30  ;;  %v5864_v63 = vpop.f32.mrb[78].mxu1  ;;  %6400 = vmatprep.mubr.f32.mxu1 %v6324_v61  ;;  %6085 = vmatmul.mubr.f32.gmra.mrb[84].mxu0 %v18540_v8 }
 0x6b4   : > { %v5973_v40 = vadd.f32 %v5957_v35, %v5646_v4  ;;  %v5965_v28 = vmul.f32 %v21692_v11, %v5864_v63  ;;  %v5866_v18 = vpop.f32.mrb[79].mxu1  ;;  %11684 = vmatprep.subr.msk.mxu1 %vm21199_vm13, %v21630_v56 }
 0x6b5   : > { %v5974_v19 = vadd.f32 %v5958_v52, %v5647_v33  ;;  %v5966_v38 = vmul.f32 %v21693_v25, %v5866_v18  ;;  %6401 = vmatmul.mubr.f32.gmra.mrb[84].mxu1 %v6323_v27  ;;  %v21712_v25 = vld [vmem:[#allocation31_spill] sm:$0xff] }
 0x6b6   : > { %v18555_v14 = vadd.f32 %v18503_v51, %v5973_v40  ;;  %v5981_v4 = vadd.f32 %v5965_v28, %v5654_v10  ;;  %v21697_v40 = vld [vmem:[#allocation129_spill] sm:$0xff] }
 0x6b7   : > { %v5982_v33 = vadd.f32 %v5966_v38, %v5655_v47  ;;  %v18564_v44 = vadd.f32 %v18503_v51, %v5974_v19  ;;  %v5903_v35 = vpop.f32.mrb[80].mxu0 }
 0x6b8   : > { %v6317_v47 = vmul.f32 %v18555_v14, %v18555_v14  ;;  %v5959_v52 = vmul.f32 %v21696_v39, %v5903_v35  ;;  %v5905_v63 = vpop.f32.mrb[81].mxu0  ;;  %v18580_v61 = vadd.f32 %v18519_v46, %v5981_v4 }
 0x6b9   : > { %6154 = vmatprep.mubr.f32.mxu0 %v18564_v44  ;;  %v18571_v10 = vadd.f32 %v18519_v46, %v5982_v33  ;;  %v6318_v30 = vmul.f32 %v18564_v44, %v18564_v44  ;;  %v5960_v28 = vmul.f32 %v21697_v40, %v5905_v63  ;;  %v5907_v18 = vpop.f32.mrb[82].mxu0 }
 0x6ba   : > { %6155 = vmatmul.mubr.f32.vlgmr.msra.gmra.mrb[10].mxu0 %v18555_v14  ;;  %v5975_v38 = vadd.f32 %v5959_v52, %v18492_v43  ;;  %v5967_v27 = vmul.f32 %v21696_v39, %v5907_v18  ;;  %v5909_v33 = vpop.f32.mrb[83].mxu0 }
 0x6bb   : > { %6159 = vmatprep.mubr.f32.mxu0 %v18571_v10  ;;  %6470 = vmatprep.mubr.f32.mxu1 %v6318_v30  ;;  %v6326_v19 = vmul.f32 %v18571_v10, %v18571_v10  ;;  %v5976_v4 = vadd.f32 %v5960_v28, %v18496_v57  ;;  %v5968_v63 = vmul.f32 %v21697_v40, %v5909_v33 }
 0x6bc   : > { %6471 = vmatmul.mubr.f32.vlgmr.msra.gmra.mrb[10].mxu1 %v6317_v47  ;;  %11677 = vmatpush1.xpose.msk.msra.mxu0 %vm15529_vm2, %v21630_v56  ;;  %v18597_v30 = vadd.f32 %v18503_v51, %v5975_v38  ;;  %v5983_v43 = vadd.f32 %v5967_v27, %v18499_v15  ;;  %v6325_v47 = vmul.f32 %v18580_v61, %v18580_v61  ;;  %v21700_v15 = vld [vmem:[#allocation100_spill] sm:$0xff] }
 0x6bd   : > { %6475 = vmatprep.mubr.f32.mxu1 %v6326_v19  ;;  %11685 = vmatpush1.xpose.msk.msra.mxu1 %vm15529_vm2, %v21630_v56  ;;  %v5984_v57 = vadd.f32 %v5968_v63, %v18501_v54  ;;  %v18608_v18 = vadd.f32 %v18503_v51, %v5976_v4  ;;  %v21701_v27 = vld [vmem:[#allocation84_spill] sm:$0xff] }
 0x6be   : > { %6160 = vmatmul.mubr.f32.gmra.mrb[84].mxu0 %v18580_v61  ;;  %11678 = vmatprep.subr.msk.mxu0 %vm15674_vm4, %v21630_v56  ;;  %v6319_v4 = vmul.f32 %v18597_v30, %v18597_v30  ;;  %v18627_v52 = vadd.f32 %v18519_v46, %v5983_v43 }
 0x6bf   : > { %v5946_v28 = vpop.f32.mrb[80].mxu1  ;;  %11686 = vmatprep.subr.msk.mxu1 %vm15674_vm4, %v21630_v56  ;;  %6229 = vmatprep.mubr.f32.mxu0 %v18608_v18  ;;  %v18617_v53 = vadd.f32 %v18519_v46, %v5984_v57  ;;  %v6320_v54 = vmul.f32 %v18608_v18, %v18608_v18 }
 0x6c0   : > { %6476 = vmatmul.mubr.f32.gmra.mrb[84].mxu1 %v6325_v47  ;;  %v5961_v19 = vmul.f32 %v21700_v15, %v5946_v28  ;;  %v5948_v38 = vpop.f32.mrb[81].mxu1 }
 0x6c1   : > { %v5962_v33 = vmul.f32 %v21701_v27, %v5948_v38  ;;  %v5950_v35 = vpop.f32.mrb[82].mxu1  ;;  %6545 = vmatprep.mubr.f32.mxu1 %v6320_v54  ;;  %v6328_v12 = vmul.f32 %v18617_v53, %v18617_v53  ;;  %v21704_v54 = vld [vmem:[#allocation87_spill] sm:$0xff] }
 0x6c2   : > { %v5977_v63 = vadd.f32 %v5961_v19, %v18509_v6  ;;  %6230 = vmatmul.mubr.f32.vlgmr.msra.gmra.mrb[10].mxu0 %v18597_v30  ;;  %v5969_v47 = vmul.f32 %v21700_v15, %v5950_v35  ;;  %v5952_v28 = vpop.f32.mrb[83].mxu1 }
 0x6c3   : > { %v5978_v38 = vadd.f32 %v5962_v33, %v18513_v37  ;;  %6234 = vmatprep.mubr.f32.mxu0 %v18617_v53  ;;  %v5970_v57 = vmul.f32 %v21701_v27, %v5952_v28  ;;  %11679 = vmatpush1.xpose.msk.msra.mxu0 %vm16091_vm8, %v21630_v56  ;;  %v21703_v33 = vld [vmem:[#allocation36_spill] sm:$0xff]  ;;  %v21706_v28 = vld [vmem:[#allocation39_spill] sm:$0xff] }
 0x6c4   : > { %v5985_v6 = vadd.f32 %v5969_v47, %v18517_v9  ;;  %6546 = vmatmul.mubr.f32.vlgmr.msra.gmra.mrb[10].mxu1 %v6319_v4  ;;  %v18646_v43 = vadd.f32 %v18503_v51, %v5977_v63  ;;  %v6327_v9 = vmul.f32 %v18627_v52, %v18627_v52  ;;  %11688 = vmatprep.subr.msk.mxu0 %vm20504_vm14, %v21704_v54  ;;  %v21705_v47 = vld [vmem:[#allocation41_spill] sm:$0xff] }
 0x6c5   : > { %v5986_v35 = vadd.f32 %v5970_v57, %v18524_v62  ;;  %6550 = vmatprep.mubr.f32.mxu1 %v6328_v12  ;;  %v18640_v37 = vadd.f32 %v18503_v51, %v5978_v38  ;;  %11687 = vmatpush1.xpose.msk.msra.mxu1 %vm16091_vm8, %v21630_v56  ;;  %v21707_v38 = vld [vmem:[#allocation42_spill] sm:$0xff] }
 0x6c6   : > { %6235 = vmatmul.mubr.f32.gmra.mrb[84].mxu0 %v18627_v52  ;;  %11692 = vmatprep.subr.msk.mxu1 %vm20504_vm14, %v21703_v33  ;;  %v6321_v4 = vmul.f32 %v18646_v43, %v18646_v43  ;;  %v18667_v63 = vadd.f32 %v18519_v46, %v5985_v6  ;;  %v21709_v6 = vmov 0.0  }
 0x6c7   : > { %6304 = vmatprep.mubr.f32.mxu0 %v18640_v37  ;;  %v18655_v62 = vadd.f32 %v18519_v46, %v5986_v35  ;;  %v6322_v12 = vmul.f32 %v18640_v37, %v18640_v37  ;;  %v21708_v46 = vld [vmem:[#allocation114_spill] sm:$0xff] }
 0x6c8   : > { %6551 = vmatmul.mubr.f32.gmra.mrb[84].mxu1 %v6327_v9  ;;  %v6329_v57 = vmul.f32 %v18667_v63, %v18667_v63 }
 0x6c9   : > { %6620 = vmatprep.mubr.f32.mxu1 %v6322_v12  ;;  %v6330_v51 = vmul.f32 %v18655_v62, %v18655_v62 }
 0x6ca   : > { %6305 = vmatmul.mubr.f32.vlgmr.msra.gmra.mrb[10].mxu0 %v18646_v43 }
 0x6cb   : > { %6309 = vmatprep.mubr.f32.mxu0 %v18655_v62  ;;  %11689 = vmatpush1.msk.msra.mxu0 %vm20504_vm14, %v21705_v47 }
 0x6cc   : > { %6621 = vmatmul.mubr.f32.vlgmr.msra.gmra.mrb[10].mxu1 %v6321_v4  ;;  %11696 = vmatprep.subr.msk.mxu0 %vm20504_vm14, %v21706_v28 }
 0x6cd   : > { %6625 = vmatprep.mubr.f32.mxu1 %v6330_v51  ;;  %11693 = vmatpush1.msk.msra.mxu1 %vm20504_vm14, %v21707_v38 }
 0x6ce   : > { %6310 = vmatmul.mubr.f32.gmra.mrb[84].mxu0 %v18667_v63  ;;  %11700 = vmatprep.subr.msk.mxu1 %vm20504_vm14, %v21708_v46 }
 0x6cf   : > { %6713 = vmatprep.mubr.f32.mxu0 %v21709_v6 }
 0x6d0   : > { %6626 = vmatmul.mubr.f32.gmra.mrb[84].mxu1 %v6329_v57 }
 0x6d1   : > { %6790 = vmatprep.mubr.f32.mxu1 %v21709_v6 }
 0x79d   : > { %v6306_v35 = vpop.f32.mrb[10].mxu0 }
 0x79e   : > { %v6631_v9 = vmul.f32 0.00390625, %v6306_v35  ;;  %v6308_v12 = vpop.f32.mrb[11].mxu0  ;;  %v21713_v35 = vld [vmem:[#allocation40_spill] sm:$0xff] }
 0x79f   : > { %v6622_v51 = vpop.f32.mrb[10].mxu1 }
 0x7a0   : > { %v6633_v4 = vmul.f32 0.00390625, %v6622_v51  ;;  %v6635_v19 = vmul.f32 %v6631_v9, %v6631_v9  ;;  %v6624_v27 = vpop.f32.mrb[11].mxu1  ;;  %11690 = vmatmul.mubr.msk.f32.vlgmr.msra.gmra.mrb[86].mxu0 %vm21710_vm5, %v6631_v9  ;;  %11694 = vmatmul.mubr.msk.f32.vlgmr.msra.gmra.mrb[86].mxu1 %vm21711_vm7, %v6631_v9  ;;  %vm21719_vm5 = vmmov %vm21715_vm1 }
 0x7a1   : > { %v6311_v15 = vpop.f32.mrb[84].mxu0  ;;  %6719 = vmatprep.mubr.f32.mxu0 %v21709_v6  ;;  %6796 = vmatprep.mubr.f32.mxu1 %v21709_v6  ;;  %vm21720_vm7 = vmmov %vm21715_vm1 }
 0x7a2   : > { %v6637_v40 = vsub.f32 %v6633_v4, %v6635_v19  ;;  %v6632_v57 = vmul.f32 0.00390625, %v6311_v15  ;;  %v6313_v39 = vpop.f32.mrb[85].mxu0  ;;  %11701 = vmatpush1.msk.msra.mxu1 %vm20504_vm14, %v21712_v25  ;;  %11697 = vmatpush1.msk.msra.mxu0 %vm20504_vm14, %v21713_v35 }
 0x7a3   : > { %v6627_v12 = vpop.f32.mrb[84].mxu1  ;;  %11708 = vmatprep.subr.msk.mxu1 %vm20504_vm14, %v21703_v33  ;;  %11704 = vmatprep.subr.msk.mxu0 %vm20504_vm14, %v21704_v54 }
 0x7a4   : > { %v6639_v27 = vadd.f32 1e-05, %v6637_v40  ;;  %v6634_v51 = vmul.f32 0.00390625, %v6627_v12  ;;  %v6636_v11 = vmul.f32 %v6632_v57, %v6632_v57  ;;  %v6629_v36 = vpop.f32.mrb[85].mxu1  ;;  %11691 = vmatmul.mubr.msk.f32.gmra.mrb[88].mxu0 %vm21714_vm9, %v6632_v57  ;;  %11695 = vmatmul.mubr.msk.f32.gmra.mrb[88].mxu1 %vm21715_vm1, %v6632_v57  ;;  %vm21721_vm9 = vmmov %vm21715_vm1 }
 0x7a5   : > { %6867 = vmatprep.mubr.f32.mxu0 %v21709_v6  ;;  %6944 = vmatprep.mubr.f32.mxu1 %v21709_v6 }
 0x7a6   : > { %13053 = vrsqrt.f32 %v6639_v27  ;;  %v6638_v39 = vsub.f32 %v6634_v51, %v6636_v11 }
 0x7a8   : > { %v6640_v15 = vadd.f32 1e-05, %v6638_v39  ;;  %11698 = vmatmul.mubr.msk.f32.vlgmr.msra.gmra.mrb[90].mxu0 %vm21716_vm15, %v6631_v9  ;;  %11702 = vmatmul.mubr.msk.f32.vlgmr.msra.gmra.mrb[90].mxu1 %vm21717_vm12, %v6631_v9  ;;  %vm21722_vm15 = vmmov %vm21715_vm1 }
 0x7a9   : > { %6873 = vmatprep.mubr.f32.mxu0 %v21709_v6  ;;  %6950 = vmatprep.mubr.f32.mxu1 %v21709_v6  ;;  %vm21723_vm12 = vmmov %vm21715_vm1 }
 0x7aa   : > { %13055 = vrsqrt.f32 %v6640_v15  ;;  %11709 = vmatpush1.msk.msra.mxu1 %vm20504_vm14, %v21707_v38  ;;  %11705 = vmatpush1.msk.msra.mxu0 %vm20504_vm14, %v21705_v47 }
 0x7ab   : > { %11716 = vmatprep.subr.msk.mxu1 %vm20504_vm14, %v21708_v46  ;;  %11712 = vmatprep.subr.msk.mxu0 %vm20504_vm14, %v21706_v28 }
 0x7ac   : > { %11699 = vmatmul.mubr.msk.f32.gmra.mrb[92].mxu0 %vm21718_vm10, %v6632_v57  ;;  %11703 = vmatmul.mubr.msk.f32.gmra.mrb[92].mxu1 %vm21719_vm5, %v6632_v57  ;;  %vm21724_vm10 = vmmov %vm21715_vm1 }
 0x7ad   : > { %7027 = vmatprep.mubr.f32.mxu0 %v21709_v6  ;;  %7104 = vmatprep.mubr.f32.mxu1 %v21709_v6  ;;  %vm21725_vm5 = vmmov %vm21715_vm1 }
 0x7b0   : > { %v13054_v36 = vpop.eup %13053 }
 0x7b1   : > { %11706 = vmatmul.mubr.msk.f32.vlgmr.msra.gmra.mrb[94].mxu0 %vm21720_vm7, %v13054_v36  ;;  %11710 = vmatmul.mubr.msk.f32.vlgmr.msra.gmra.mrb[94].mxu1 %vm21721_vm9, %v13054_v36  ;;  %vm21726_vm7 = vmmov %vm21715_vm1 }
 0x7b2   : > { %7033 = vmatprep.mubr.f32.mxu0 %v21709_v6  ;;  %7110 = vmatprep.mubr.f32.mxu1 %v21709_v6 }
 0x7b3   : > { %11717 = vmatpush1.msk.msra.mxu1 %vm20504_vm14, %v21712_v25  ;;  %11713 = vmatpush1.msk.msra.mxu0 %vm20504_vm14, %v21713_v35 }
 0x7b4   : > { %v13056_v11 = vpop.eup %13055 }
 0x7b5   : > { %11707 = vmatmul.mubr.msk.f32.gmra.mrb[96].mxu0 %vm21715_vm1, %v13056_v11  ;;  %11711 = vmatmul.mubr.msk.f32.gmra.mrb[96].mxu1 %vm21722_vm15, %v13056_v11 }
 0x7b6   : > { %7181 = vmatprep.mubr.f32.mxu0 %v21709_v6  ;;  %7258 = vmatprep.mubr.f32.mxu1 %v21709_v6 }
 0x7b9   : > { %11714 = vmatmul.mubr.msk.f32.vlgmr.msra.gmra.mrb[98].mxu0 %vm21723_vm12, %v13054_v36  ;;  %11718 = vmatmul.mubr.msk.f32.vlgmr.msra.gmra.mrb[98].mxu1 %vm21724_vm10, %v13054_v36 }
 0x7ba   : > { %7187 = vmatprep.mubr.f32.mxu0 %v21709_v6  ;;  %7264 = vmatprep.mubr.f32.mxu1 %v21709_v6 }
 0x7bd   : > { %11715 = vmatmul.mubr.msk.f32.gmra.mrb[100].mxu0 %vm21725_vm5, %v13056_v11  ;;  %11719 = vmatmul.mubr.msk.f32.gmra.mrb[100].mxu1 %vm21726_vm7, %v13056_v11 }
 0x7be   : > { %7450 = vmatprep.mubr.bf16.mxu0 %v21266_v42  ;;  %7493 = vmatprep.mubr.bf16.mxu1 %v21266_v42 }
 0x873   : > { %v6715_v40 = vpop.f32.mrb[86].mxu0  ;;  %v6792_v19 = vpop.f32.mrb[86].mxu1 }
 0x874   : > { %v6717_v9 = vpop.f32.mrb[87].mxu0  ;;  %v6794_v4 = vpop.f32.mrb[87].mxu1  ;;  %v7271_v38 = vsub.f32 %v18522_v41, %v6715_v40  ;;  %v7273_v28 = vsub.f32 %v18555_v14, %v6792_v19 }
 0x875   : > { %v7272_v47 = vsub.f32 %v18527_v58, %v6717_v9  ;;  %v7274_v33 = vsub.f32 %v18564_v44, %v6794_v4 }
 0x877   : > { %v6721_v57 = vpop.f32.mrb[88].mxu0  ;;  %v6798_v12 = vpop.f32.mrb[88].mxu1 }
 0x878   : > { %v6723_v27 = vpop.f32.mrb[89].mxu0  ;;  %v6800_v51 = vpop.f32.mrb[89].mxu1  ;;  %v7279_v54 = vsub.f32 %v18540_v8, %v6721_v57  ;;  %v7281_v5 = vsub.f32 %v18580_v61, %v6798_v12 }
 0x879   : > { %v7280_v26 = vsub.f32 %v18531_v29, %v6723_v27  ;;  %v7282_v49 = vsub.f32 %v18571_v10, %v6800_v51 }
 0x87b   : > { %v18735_v39 = vpop.f32.mrb[90].mxu0  ;;  %v18737_v15 = vpop.f32.mrb[90].mxu1 }
 0x87c   : > { %v18739_v36 = vpop.f32.mrb[91].mxu0  ;;  %v18741_v25 = vpop.f32.mrb[91].mxu1  ;;  %v7275_v14 = vsub.f32 %v18597_v30, %v18735_v39  ;;  %v7277_v58 = vsub.f32 %v18646_v43, %v18737_v15 }
 0x87d   : > { %v7276_v61 = vsub.f32 %v18608_v18, %v18739_v36  ;;  %v7278_v29 = vsub.f32 %v18640_v37, %v18741_v25 }
 0x87f   : > { %v18743_v11 = vpop.f32.mrb[92].mxu0  ;;  %v18745_v35 = vpop.f32.mrb[92].mxu1 }
 0x880   : > { %v18747_v6 = vpop.f32.mrb[93].mxu0  ;;  %v18749_v46 = vpop.f32.mrb[93].mxu1 }
 0x881   : > { %v7286_v30 = vsub.f32 %v18655_v62, %v18749_v46 }
 0x884   : > { %v7029_v20 = vpop.f32.mrb[94].mxu0  ;;  %v7106_v16 = vpop.f32.mrb[94].mxu1 }
 0x885   : > { %v7287_v0 = vmul.f32 %v7271_v38, %v7029_v20  ;;  %v7289_v1 = vmul.f32 %v7273_v28, %v7106_v16  ;;  %v7031_v23 = vpop.f32.mrb[95].mxu0  ;;  %v7108_v41 = vpop.f32.mrb[95].mxu1  ;;  %v7283_v16 = vsub.f32 %v18627_v52, %v18743_v11  ;;  %v7285_v20 = vsub.f32 %v18667_v63, %v18745_v35 }
 0x886   : > { %v7288_v44 = vmul.f32 %v7272_v47, %v7031_v23  ;;  %v7290_v8 = vmul.f32 %v7274_v33, %v7108_v41  ;;  %v7284_v23 = vsub.f32 %v18617_v53, %v18747_v6 }
 0x887   : > { %v7319_v40 = vmul.f32 0.01, %v7287_v0  ;;  %v7321_v10 = vmul.f32 0.01, %v7289_v1  ;;  %vm7303_vm9 = vcmp.gt.f32.partialorder %v7287_v0, 0.0  ;;  %vm7305_vm1 = vcmp.gt.f32.partialorder %v7289_v1, 0.0 }
 0x888   : > { %vm7304_vm15 = vcmp.gt.f32.partialorder %v7288_v44, 0.0  ;;  %v7320_v18 = vmul.f32 0.01, %v7288_v44  ;;  %v7035_v43 = vpop.f32.mrb[96].mxu0  ;;  %v7112_v25 = vpop.f32.mrb[96].mxu1  ;;  %vm7306_vm12 = vcmp.gt.f32.partialorder %v7290_v8, 0.0 }
 0x889   : > { %v7322_v37 = vmul.f32 0.01, %v7290_v8  ;;  %v7295_v33 = vmul.f32 %v7279_v54, %v7035_v43  ;;  %v7297_v47 = vmul.f32 %v7281_v5, %v7112_v25  ;;  %v7037_v52 = vpop.f32.mrb[97].mxu0  ;;  %v7114_v28 = vpop.f32.mrb[97].mxu1  ;;  %v18775_v38 = vsel %vm7303_vm9, %v7287_v0, %v7319_v40 }
 0x88a   : > { %v18777_v63 = vsel %vm7305_vm1, %v7289_v1, %v7321_v10  ;;  %v7296_v35 = vmul.f32 %v7280_v26, %v7037_v52  ;;  %v7298_v19 = vmul.f32 %v7282_v49, %v7114_v28  ;;  %v18780_v9 = vsel %vm7304_vm15, %v7288_v44, %v7320_v18 }
 0x88b   : > { %vm7311_vm10 = vcmp.gt.f32.partialorder %v7295_v33, 0.0  ;;  %v7327_v53 = vmul.f32 0.01, %v7295_v33  ;;  %vm7313_vm5 = vcmp.gt.f32.partialorder %v7297_v47, 0.0  ;;  %v7329_v62 = vmul.f32 0.01, %v7297_v47 }
 0x88c   : > { %vm7312_vm7 = vcmp.gt.f32.partialorder %v7296_v35, 0.0  ;;  %v7328_v46 = vmul.f32 0.01, %v7296_v35  ;;  %vm7314_vm14 = vcmp.gt.f32.partialorder %v7298_v19, 0.0  ;;  %v7330_v6 = vmul.f32 0.01, %v7298_v19 }
 0x88d   : > { %v18783_v5 = vsel %vm7306_vm12, %v7290_v8, %v7322_v37  ;;  %v18785_v0 = vsel %vm7311_vm10, %v7295_v33, %v7327_v53  ;;  %v18787_v1 = vsel %vm7313_vm5, %v7297_v47, %v7329_v62  ;;  %v7183_v26 = vpop.f32.mrb[98].mxu0  ;;  %v7260_v49 = vpop.f32.mrb[98].mxu1 }
 0x88e   : > { %v18789_v54 = vsel %vm7312_vm7, %v7296_v35, %v7328_v46  ;;  %v18791_v4 = vsel %vm7314_vm14, %v7298_v19, %v7330_v6  ;;  %v7291_v57 = vmul.f32 %v7275_v14, %v7183_v26  ;;  %v7293_v12 = vmul.f32 %v7277_v58, %v7260_v49  ;;  %v7185_v27 = vpop.f32.mrb[99].mxu0  ;;  %v7262_v51 = vpop.f32.mrb[99].mxu1 }
 0x88f   : > { %v7292_v39 = vmul.f32 %v7276_v61, %v7185_v27  ;;  %v7294_v15 = vmul.f32 %v7278_v29, %v7262_v51  ;;  %v18795_v11 = vpack.i.bf16 %v18785_v0, %v18775_v38  ;;  %v18799_v44 = vpack.i.bf16 %v18789_v54, %v18780_v9 }
 0x890   : > { %v7266_v36 = vpop.f32.mrb[100].mxu1  ;;  %v7189_v41 = vpop.f32.mrb[100].mxu0  ;;  %vm7307_vm9 = vcmp.gt.f32.partialorder %v7291_v57, 0.0  ;;  %v7323_v8 = vmul.f32 0.01, %v7291_v57  ;;  %vm7309_vm14 = vcmp.gt.f32.partialorder %v7293_v12, 0.0  ;;  %v8441_v27 = vpack.c.bf16 %v18791_v4, %v18783_v5 }
 0x891   : > { %v7325_v40 = vmul.f32 0.01, %v7293_v12  ;;  %vm7308_vm1 = vcmp.gt.f32.partialorder %v7292_v39, 0.0  ;;  %v7324_v14 = vmul.f32 0.01, %v7292_v39  ;;  %vm7310_vm15 = vcmp.gt.f32.partialorder %v7294_v15, 0.0  ;;  %12682 = vrot.lane.b32.xlu1 %v18795_v11, %s21217_s11  ;;  %12687 = vrot.lane.b32.xlu0 %v18799_v44, %s21217_s11 }
 0x892   : > { %v7326_v58 = vmul.f32 0.01, %v7294_v15  ;;  %v18805_v61 = vsel %vm7307_vm9, %v7291_v57, %v7323_v8  ;;  %v7301_v10 = vmul.f32 %v7285_v20, %v7266_v36  ;;  %v7299_v18 = vmul.f32 %v7283_v16, %v7189_v41  ;;  %v7268_v43 = vpop.f32.mrb[101].mxu1  ;;  %v7191_v25 = vpop.f32.mrb[101].mxu0 }
 0x893   : > { %v18807_v29 = vsel %vm7309_vm14, %v7293_v12, %v7325_v40  ;;  %v18809_v37 = vsel %vm7308_vm1, %v7292_v39, %v7324_v14  ;;  %v7302_v47 = vmul.f32 %v7286_v30, %v7268_v43  ;;  %v7300_v52 = vmul.f32 %v7284_v23, %v7191_v25 }
 0x894   : > { %v18811_v33 = vsel %vm7310_vm15, %v7294_v15, %v7326_v58  ;;  %vm7317_vm12 = vcmp.gt.f32.partialorder %v7301_v10, 0.0  ;;  %v7333_v28 = vmul.f32 0.01, %v7301_v10  ;;  %vm7315_vm10 = vcmp.gt.f32.partialorder %v7299_v18, 0.0 }
 0x895   : > { %v7331_v35 = vmul.f32 0.01, %v7299_v18  ;;  %vm7318_vm5 = vcmp.gt.f32.partialorder %v7302_v47, 0.0  ;;  %v7334_v19 = vmul.f32 0.01, %v7302_v47  ;;  %vm7316_vm7 = vcmp.gt.f32.partialorder %v7300_v52, 0.0 }
 0x896   : > { %v7332_v53 = vmul.f32 0.01, %v7300_v52  ;;  %v18813_v62 = vsel %vm7317_vm12, %v7301_v10, %v7333_v28  ;;  %v18819_v16 = vpack.i.bf16 %v18787_v1, %v18777_v63  ;;  %v18823_v30 = vpack.i.bf16 %v18791_v4, %v18783_v5 }
 0x897   : > { %v18815_v20 = vsel %vm7315_vm10, %v7299_v18, %v7331_v35  ;;  %v18825_v23 = vsel %vm7318_vm5, %v7302_v47, %v7334_v19  ;;  %v18835_v26 = vpack.i.bf16 %v18813_v62, %v18807_v29  ;;  %v8439_v12 = vpack.c.bf16 %v18789_v54, %v18780_v9 }
 0x898   : > { %v18827_v46 = vsel %vm7316_vm7, %v7300_v52, %v7332_v53  ;;  %v18831_v6 = vpack.i.bf16 %v18815_v20, %v18805_v61  ;;  %12692 = vrot.lane.b32.xlu0 %v18819_v16, %s21217_s11  ;;  %v18841_v49 = vpack.i.bf16 %v18825_v23, %v18811_v33  ;;  %v8438_v51 = vpack.c.bf16 %v18785_v0, %v18775_v38 }
 0x899   : > { %v18845_v57 = vpack.i.bf16 %v18827_v46, %v18809_v37  ;;  %vm21727_vm9 = vcmp.lt.s32.totalorder %v13883_v22, 17  ;;  %vm7414_vm12 = vcmask 130048   ;;  %v21787_v9 = vpack.c.bf16 %v18827_v46, %v18809_v37 }
 0x89a   : > { %12697 = vrot.lane.b32.xlu1 %v18841_v49, %s21217_s11  ;;  %vm21728_vm14 = vmmov %vm21727_vm9 }
 0x89b   : > { %vm21729_vm1 = vmmov %vm21727_vm9 }
 0x89c   : > { %12707 = vrot.lane.b32.xlu0 %v18831_v6, %s21217_s11  ;;  %vm21730_vm15 = vmmov %vm21729_vm1 }
 0x89d   : > { %vm21731_vm10 = vmmov %vm21729_vm1 }
 0x89e   : > { %12702 = vrot.lane.b32.xlu1 %v18823_v30, %s21217_s11  ;;  %vm21732_vm5 = vmmov %vm21729_vm1 }
 0x89f   : > { %vm21733_vm7 = vmmov %vm21729_vm1 }
 0x8a0   : > { %12712 = vrot.lane.b32.xlu0 %v18835_v26, %s21217_s11 }
 0x8a2   : > { %12717 = vrot.lane.b32.xlu1 %v18845_v57, %s21217_s11  ;;  %s21949_s11 = sld [smem:[#allocation21_spill]] }
 0x8a4   : > { %12727 = vrot.lane.b32.xlu0 %v18799_v44, %s21220_s30 }
 0x8a6   : > { %12722 = vrot.lane.b32.xlu1 %v18795_v11, %s21220_s30 }
 0x8a8   : > { %12732 = vrot.lane.b32.xlu0 %v18819_v16, %s21220_s30  ;;  %s11818_s14 = sshll.u32 %s21949_s11, 3 }
 0x8aa   : > { %12737 = vrot.lane.b32.xlu1 %v18841_v49, %s21220_s30 }
 0x8ac   : > { %12747 = vrot.lane.b32.xlu0 %v18831_v6, %s21220_s30 }
 0x8ae   : > { %12742 = vrot.lane.b32.xlu1 %v18823_v30, %s21220_s30 }
 0x8b0   : > { %12752 = vrot.lane.b32.xlu0 %v18835_v26, %s21220_s30 }
 0x8b2   : > { %12757 = vrot.lane.b32.xlu1 %v18845_v57, %s21220_s30  ;;  %s11884_s30 = smul.u32 24, %s21948_s2 }
 0x8b4   : > { %12767 = vrot.lane.b32.xlu0 %v18799_v44, %s13344_s10  ;;  %s11331_s15 = sadd.s32 %s11884_s30, %s11818_s14 }
 0x8b6   : > { %12762 = vrot.lane.b32.xlu1 %v18795_v11, %s13344_s10 }
 0x8b8   : > { %12772 = vrot.lane.b32.xlu0 %v18819_v16, %s13344_s10 }
 0x8ba   : > { %12777 = vrot.lane.b32.xlu1 %v18841_v49, %s13344_s10 }
 0x8bc   : > { %12787 = vrot.lane.b32.xlu0 %v18831_v6, %s13344_s10 }
 0x8be   : > { %12782 = vrot.lane.b32.xlu1 %v18823_v30, %s13344_s10 }
 0x8c0   : > { %12792 = vrot.lane.b32.xlu0 %v18835_v26, %s13344_s10 }
 0x8c2   : > { %12797 = vrot.lane.b32.xlu1 %v18845_v57, %s13344_s10  ;;  %s11819_s10 = sshll.u32 %s11331_s15, 5 }
 0x8c4   : > { %12807 = vrot.lane.b32.xlu0 %v18799_v44, %s20655_s26 }
 0x8c6   : > { %12802 = vrot.lane.b32.xlu1 %v18795_v11, %s20655_s26 }
 0x8c8   : > { %12812 = vrot.lane.b32.xlu0 %v18819_v16, %s20655_s26 }
 0x8ca   : > { %12817 = vrot.lane.b32.xlu1 %v18841_v49, %s20655_s26 }
 0x8cc   : > { %12827 = vrot.lane.b32.xlu0 %v18831_v6, %s20655_s26 }
 0x8ce   : > { %12822 = vrot.lane.b32.xlu1 %v18823_v30, %s20655_s26 }
 0x8d0   : > { %12837 = vrot.lane.b32.xlu0 %v18835_v26, %s20655_s26 }
 0x8d2   : > { %12832 = vrot.lane.b32.xlu1 %v18845_v57, %s20655_s26  ;;  %s19908_s26 = scalar_lea.hbm %s21952_s25, %s11819_s10 }
 0x8d4   : > { %12847 = vrot.lane.b32.xlu0 %v18819_v16, %s13346_s3 }
 0x8d6   : > { %12842 = vrot.lane.b32.xlu1 %v18799_v44, %s13346_s3 }
 0x8d8   : > { %12857 = vrot.lane.b32.xlu0 %v18823_v30, %s13346_s3 }
 0x8da   : > { %12852 = vrot.lane.b32.xlu1 %v18795_v11, %s13346_s3 }
 0x8dc   : > { %12877 = vrot.lane.b32.xlu0 %v18845_v57, %s13346_s3 }
 0x8de   : > { %12862 = vrot.lane.b32.xlu1 %v18831_v6, %s13346_s3 }
 0x8e0   : > { %12882 = vrot.lane.b32.xlu0 %v18819_v16, %s13347_s8 }
 0x8e2   : > { %12867 = vrot.lane.b32.xlu1 %v18835_v26, %s13346_s3 }
 0x8e4   : > { %12892 = vrot.lane.b32.xlu0 %v18841_v49, %s13346_s3  ;;  %s11335_s3 = sshll.u32 %s477_s21, 4  ;;  %s19910_s3 = int_to_ptr.vmem [resolvable:$true] %s11335_s3 }
 0x8e5   : > { %s13193_s0 = scalar_lea.vmem %s19910_s3, 256 }
 0x8e6   : > { %12872 = vrot.lane.b32.xlu1 %v18799_v44, %s13347_s8  ;;  %p13194_p10 = scmp.ne.s32.totalorder %s19910_s3, %s13193_s0 }
 0x8e8   : > { %12897 = vrot.lane.b32.xlu0 %v18823_v30, %s13347_s8  ;;  %p13195_p8 = pnand %p13194_p10, %p21954_p7 }
 0x8ea   : > { %12887 = vrot.lane.b32.xlu1 %v18795_v11, %s13347_s8  ;;  %p13196_p12 = pneg %p13195_p8 }
 0x8ec   : > { %12917 = vrot.lane.b32.xlu0 %v18845_v57, %s13347_s8 }
 0x8ee   : > { %12902 = vrot.lane.b32.xlu1 %v18831_v6, %s13347_s8 }
 0x8f0   : > { %12922 = vrot.lane.b32.xlu0 %v18819_v16, %s20665_s29 }
 0x8f2   : > { %12907 = vrot.lane.b32.xlu1 %v18835_v26, %s13347_s8 }
 0x8f4   : > { %12932 = vrot.lane.b32.xlu0 %v18841_v49, %s13347_s8 }
 0x8f6   : > { %12912 = vrot.lane.b32.xlu1 %v18799_v44, %s20665_s29 }
 0x8f8   : > { %12937 = vrot.lane.b32.xlu0 %v18823_v30, %s20665_s29 }
 0x8fa   : > { %12927 = vrot.lane.b32.xlu1 %v18795_v11, %s20665_s29 }
 0x8fc   : > { %12957 = vrot.lane.b32.xlu0 %v18845_v57, %s20665_s29 }
 0x8fe   : > { %12942 = vrot.lane.b32.xlu1 %v18831_v6, %s20665_s29 }
 0x900   : > { %12962 = vrot.lane.b32.xlu0 %v18841_v49, %s20665_s29 }
 0x902   : > { %12947 = vrot.lane.b32.xlu1 %v18835_v26, %s20665_s29  ;;  %s21740_s29 = sld [smem:[#allocation173_spill]] }
 0x903   : > { %v12683_v40 = vpop.permute.xlu1 %12682  ;;  %v12688_v14 = vpop.permute.xlu0 %12687 }
 0x904   : > { %12967 = vrot.lane.b32.xlu0 %v18819_v16, %s20683_s9  ;;  %v12685_v58 = vunpack.i.h.bf16 %v12683_v40  ;;  %v12684_v10 = vunpack.i.l.bf16 %v12683_v40  ;;  %v12690_v18 = vunpack.i.h.bf16 %v12688_v14  ;;  %v12689_v43 = vunpack.i.l.bf16 %v12688_v14 }
 0x906   : > { %12952 = vrot.lane.b32.xlu1 %v18799_v44, %s20683_s9  ;;  %v7395_v25 = vsel %vm21727_vm9, %v12684_v10, %v12689_v43  ;;  %v7396_v47 = vsel %vm21728_vm14, %v12685_v58, %v12690_v18  ;;  %vm21734_vm9 = vmmov %vm21729_vm1 }
 0x907   : > { %v7402_v52 = vpack.c.bf16 %v7396_v47, %v7395_v25  ;;  %vm21735_vm14 = vmmov %vm21729_vm1 }
 0x908   : > { %12977 = vrot.lane.b32.xlu0 %v18823_v30, %s20683_s9 }
 0x909   : > { %7418 = vmatprep.subr.bf16.mxu0 %v7402_v52  ;;  %v9727_v52 = vld [vmem:[%s19979_s7 + $0x8] sm:$0xff] }
 0x90a   : > { %v12693_v28 = vpop.permute.xlu0 %12692  ;;  %12972 = vrot.lane.b32.xlu1 %v18795_v11, %s20683_s9 }
 0x90b   : > { %v12695_v16 = vunpack.i.h.bf16 %v12693_v28  ;;  %v12694_v40 = vunpack.i.l.bf16 %v12693_v28 }
 0x90c   : > { %12987 = vrot.lane.b32.xlu0 %v18845_v57, %s20683_s9  ;;  %v12698_v35 = vpop.permute.xlu1 %12697 }
 0x90d   : > { %v12700_v44 = vunpack.i.h.bf16 %v12698_v35  ;;  %v12699_v19 = vunpack.i.l.bf16 %v12698_v35 }
 0x90e   : > { %v12708_v53 = vpop.permute.xlu0 %12707  ;;  %12982 = vrot.lane.b32.xlu1 %v18831_v6, %s20683_s9  ;;  %v18994_v6 = vld [vmem:[#allocation11] sm:$0xff]  }
 0x90f   : > { %v7397_v30 = vsel %vm21729_vm1, %v12699_v19, %v12684_v10  ;;  %v7398_v14 = vsel %vm21730_vm15, %v12700_v44, %v12685_v58  ;;  %v7393_v58 = vsel %vm21731_vm10, %v12689_v43, %v12694_v40  ;;  %vm21736_vm15 = vmmov %vm21729_vm1 }
 0x910   : > { %v7401_v25 = vpack.c.bf16 %v7398_v14, %v7397_v30  ;;  %12997 = vrot.lane.b32.xlu0 %v18841_v49, %s20683_s9  ;;  %v12703_v11 = vpop.permute.xlu1 %12702  ;;  %v7394_v49 = vsel %vm21732_vm5, %v12690_v18, %v12695_v16  ;;  %v9726_v30 = vld [vmem:[%s19979_s7] sm:$0xff]  ;;  %v12710_v14 = vunpack.i.h.bf16 %v12708_v53  ;;  %vm21737_vm10 = vmmov %vm21729_vm1 }
 0x911   : > { %v12705_v57 = vunpack.i.h.bf16 %v12703_v11  ;;  %v12704_v47 = vunpack.i.l.bf16 %v12703_v11  ;;  %v12709_v11 = vunpack.i.l.bf16 %v12708_v53  ;;  %v7403_v36 = vpack.c.bf16 %v7394_v49, %v7393_v58  ;;  %vm21738_vm5 = vmmov %vm21729_vm1 }
 0x912   : > { %v12713_v28 = vpop.permute.xlu0 %12712  ;;  %7419 = vmatpush1.bf16.msra.mxu0 %v7401_v25  ;;  %12992 = vrot.lane.b32.xlu1 %v18835_v26, %s20683_s9  ;;  %s21947_s9 = sld [smem:[#allocation172_spill]] }
 0x913   : > { %v12715_v10 = vunpack.i.h.bf16 %v12713_v28  ;;  %v12714_v35 = vunpack.i.l.bf16 %v12713_v28  ;;  %v7391_v26 = vsel %vm21733_vm7, %v12694_v40, %v12704_v47  ;;  %v7392_v8 = vsel %vm21734_vm9, %v12695_v16, %v12705_v57  ;;  %vm21739_vm7 = vmmov %vm21729_vm1 }
 0x914   : > { %9735 = vperm.xlu0 %12679, %v9727_v52   ;;  %v12718_v25 = vpop.permute.xlu1 %12717  ;;  %v7404_v18 = vpack.c.bf16 %v7392_v8, %v7391_v26  ;;  %v7389_v53 = vsel %vm21729_vm1, %v12704_v47, %v12709_v11  ;;  %v7390_v16 = vsel %vm21737_vm10, %v12705_v57, %v12710_v14  ;;  %v11099_v47 = vld [vmem:[%s21740_s29] sm:$0x3]  ;;  %vm21741_vm9 = vmmov %vm21729_vm1  ;;  %s11319_s29 = scalar_lea.sflag [#allocation5], %s21953_s27 }
 0x915   : > { %v12720_v43 = vunpack.i.h.bf16 %v12718_v25  ;;  %v12719_v41 = vunpack.i.l.bf16 %v12718_v25  ;;  %11721 = vmatmul.mubr.msk.bf16.vlgmr.msra.gmra.mrb[104].mxu0 %vm7414_vm12, %v18994_v6  ;;  %v7383_v28 = vsel %vm21735_vm14, %v12714_v35, %v12699_v19  ;;  %v7384_v40 = vsel %vm21736_vm15, %v12715_v10, %v12700_v44  ;;  %vm21742_vm14 = vmmov %vm21729_vm1 }
 0x916   : > { %v12728_v52 = vpop.permute.xlu0 %12727  ;;  %9730 = vperm.xlu1 %12680, %v9726_v30   ;;  %7536 = vmatprep.mubr.bf16.mxu0 %v21266_v42  ;;  %v7408_v44 = vpack.c.bf16 %v7384_v40, %v7383_v28  ;;  %vm21743_vm1 = vcmp.lt.s32.totalorder %v13883_v22, 16 }
 0x917   : > { %v12730_v25 = vunpack.i.h.bf16 %v12728_v52  ;;  %v7386_v8 = vsel %vm21738_vm5, %v12720_v43, %v12715_v10  ;;  %v7385_v19 = vsel %vm21739_vm7, %v12719_v41, %v12714_v35  ;;  %7461 = vmatprep.subr.bf16.mxu1 %v7404_v18  ;;  %v7387_v30 = vsel %vm21741_vm9, %v12709_v11, %v12719_v41  ;;  %vm21744_vm15 = vmmov %vm21743_vm1 }
 0x918   : > { %v7407_v58 = vpack.c.bf16 %v7386_v8, %v7385_v19  ;;  %7462 = vmatpush1.bf16.msra.mxu1 %v7403_v36  ;;  %v12723_v49 = vpop.permute.xlu1 %12722  ;;  %v7388_v57 = vsel %vm21742_vm14, %v12710_v14, %v12720_v43  ;;  %v12729_v26 = vunpack.i.l.bf16 %v12728_v52  ;;  %v7405_v35 = vpack.c.bf16 %v7390_v16, %v7389_v53  ;;  %vm21745_vm10 = vmmov %vm21743_vm1 }
 0x919   : > { %v12725_v10 = vunpack.i.h.bf16 %v12723_v49  ;;  %v12724_v15 = vunpack.i.l.bf16 %v12723_v49  ;;  %v7406_v39 = vpack.c.bf16 %v7388_v57, %v7387_v30  ;;  %7547 = vmatprep.subr.bf16.mxu1 %v7408_v44  ;;  %vm21746_vm5 = vmmov %vm21743_vm1 }
 0x91a   : > { %v12733_v18 = vpop.permute.xlu0 %12732  ;;  %11102 = vperm.xlu1 %12680, %v11099_v47   ;;  %vm21747_vm7 = vmmov %vm21743_vm1 }
 0x91b   : > { %11722 = vmatmul.mubr.msk.bf16.vlgmr.msra.gmra.mrb[104].mxu1 %vm7414_vm12, %v18994_v6  ;;  %7504 = vmatprep.subr.bf16.mxu0 %v7406_v39  ;;  %v7666_v36 = vsel %vm21743_vm1, %v12724_v15, %v12729_v26  ;;  %v7667_v41 = vsel %vm21744_vm15, %v12725_v10, %v12730_v25  ;;  %v12735_v52 = vunpack.i.h.bf16 %v12733_v18  ;;  %v12734_v40 = vunpack.i.l.bf16 %v12733_v18  ;;  %vm21748_vm9 = vmmov %vm21743_vm1 }
 0x91c   : > { %7505 = vmatpush1.bf16.msra.mxu0 %v7405_v35  ;;  %7548 = vmatpush1.bf16.msra.mxu1 %v7407_v58  ;;  %v12738_v14 = vpop.permute.xlu1 %12737  ;;  %v7674_v11 = vpack.c.bf16 %v7667_v41, %v7666_v36  ;;  %vm21749_vm14 = vmmov %vm21743_vm1 }
 0x91d   : > { %v12740_v43 = vunpack.i.h.bf16 %v12738_v14  ;;  %v12739_v28 = vunpack.i.l.bf16 %v12738_v14  ;;  %7579 = vmatprep.mubr.bf16.mxu1 %v21266_v42  ;;  %v7664_v49 = vsel %vm21747_vm7, %v12729_v26, %v12734_v40  ;;  %vm21750_vm15 = vmmov %vm21743_vm1 }
 0x91e   : > { %v12748_v53 = vpop.permute.xlu0 %12747  ;;  %7689 = vmatprep.subr.bf16.mxu0 %v7674_v11  ;;  %vm21753_vm7 = vmmov %vm21743_vm1 }
 0x91f   : > { %v7668_v39 = vsel %vm21745_vm10, %v12739_v28, %v12724_v15  ;;  %v7669_v16 = vsel %vm21746_vm5, %v12740_v43, %v12725_v10  ;;  %11723 = vmatmul.mubr.msk.bf16.vlgmr.msra.gmra.mrb[108].mxu0 %vm7414_vm12, %v18994_v6  ;;  %v7665_v15 = vsel %vm21748_vm9, %v12730_v25, %v12735_v52  ;;  %v19051_v10 = vld [vmem:[#allocation11 + $0x8] sm:$0xff]   ;;  %v12750_v35 = vunpack.i.h.bf16 %v12748_v53  ;;  %vm21751_vm10 = vmmov %vm21743_vm1 }
 0x920   : > { %v7673_v8 = vpack.c.bf16 %v7669_v16, %v7668_v39  ;;  %v12743_v19 = vpop.permute.xlu1 %12742  ;;  %7721 = vmatprep.mubr.bf16.mxu0 %v21266_v42  ;;  %v12749_v18 = vunpack.i.l.bf16 %v12748_v53  ;;  %vm21752_vm5 = vmmov %vm21743_vm1 }
 0x921   : > { %v12745_v47 = vunpack.i.h.bf16 %v12743_v19  ;;  %v12744_v58 = vunpack.i.l.bf16 %v12743_v19  ;;  %vm21754_vm9 = vmmov %vm21743_vm1 }
 0x922   : > { %v12753_v44 = vpop.permute.xlu0 %12752  ;;  %7690 = vmatpush1.bf16.msra.mxu0 %v7673_v8 }
 0x923   : > { %v12755_v30 = vunpack.i.h.bf16 %v12753_v44  ;;  %v12754_v57 = vunpack.i.l.bf16 %v12753_v44  ;;  %11724 = vmatmul.mubr.msk.bf16.vlgmr.msra.gmra.mrb[108].mxu1 %vm7414_vm12, %v18994_v6  ;;  %v7662_v41 = vsel %vm21749_vm14, %v12734_v40, %v12744_v58  ;;  %v7663_v14 = vsel %vm21743_vm1, %v12735_v52, %v12745_v47  ;;  %vm21755_vm14 = vmmov %vm21743_vm1 }
 0x924   : > { %v12758_v36 = vpop.permute.xlu1 %12757  ;;  %7764 = vmatprep.mubr.bf16.mxu1 %v21266_v42  ;;  %v7676_v11 = vpack.c.bf16 %v7663_v14, %v7662_v41  ;;  %v7675_v6 = vpack.c.bf16 %v7665_v15, %v7664_v49  ;;  %v7661_v16 = vsel %vm21751_vm10, %v12745_v47, %v12750_v35  ;;  %v7660_v40 = vsel %vm21753_vm7, %v12744_v58, %v12749_v18 }
 0x925   : > { %v12760_v26 = vunpack.i.h.bf16 %v12758_v36  ;;  %v12759_v25 = vunpack.i.l.bf16 %v12758_v36  ;;  %v7654_v39 = vsel %vm21750_vm15, %v12754_v57, %v12739_v28  ;;  %v7655_v8 = vsel %vm21752_vm5, %v12755_v30, %v12740_v43  ;;  %vm21756_vm15 = vmmov %vm21743_vm1 }
 0x926   : > { %v12768_v53 = vpop.permute.xlu0 %12767  ;;  %7732 = vmatprep.subr.bf16.mxu1 %v7676_v11  ;;  %v7680_v49 = vpack.c.bf16 %v7655_v8, %v7654_v39  ;;  %vm21757_vm10 = vcmp.lt.s32.totalorder %v13883_v22, 15 }
 0x927   : > { %v12770_v52 = vunpack.i.h.bf16 %v12768_v53  ;;  %v7657_v19 = vsel %vm21754_vm9, %v12760_v26, %v12755_v30  ;;  %v7656_v44 = vsel %vm21755_vm14, %v12759_v25, %v12754_v57  ;;  %11726 = vmatmul.mubr.msk.bf16.vlgmr.msra.gmra.mrb[112].mxu0 %vm7414_vm12, %v19051_v10  ;;  %7733 = vmatpush1.bf16.msra.mxu1 %v7675_v6  ;;  %v7658_v43 = vsel %vm21743_vm1, %v12749_v18, %v12759_v25  ;;  %vm21758_vm5 = vmmov %vm21757_vm10 }
 0x928   : > { %v7679_v28 = vpack.c.bf16 %v7657_v19, %v7656_v44  ;;  %v12763_v47 = vpop.permute.xlu1 %12762  ;;  %v7659_v58 = vsel %vm21756_vm15, %v12750_v35, %v12760_v26  ;;  %v12769_v15 = vunpack.i.l.bf16 %v12768_v53  ;;  %7807 = vmatprep.mubr.bf16.mxu0 %v21266_v42  ;;  %v7677_v57 = vpack.c.bf16 %v7661_v16, %v7660_v40  ;;  %7818 = vmatprep.subr.bf16.mxu1 %v7680_v49  ;;  %vm21759_vm7 = vmmov %vm21758_vm5 }
 0x929   : > { %v12765_v36 = vunpack.i.h.bf16 %v12763_v47  ;;  %v12764_v30 = vunpack.i.l.bf16 %v12763_v47  ;;  %v7678_v41 = vpack.c.bf16 %v7659_v58, %v7658_v43  ;;  %vm21760_vm9 = vmmov %vm21758_vm5 }
 0x92a   : > { %v12773_v14 = vpop.permute.xlu0 %12772  ;;  %vm21761_vm14 = vmmov %vm21758_vm5 }
 0x92b   : > { %11727 = vmatmul.mubr.msk.bf16.vlgmr.msra.gmra.mrb[112].mxu1 %vm7414_vm12, %v19051_v10  ;;  %7775 = vmatprep.subr.bf16.mxu0 %v7678_v41  ;;  %v7937_v11 = vsel %vm21757_vm10, %v12764_v30, %v12769_v15  ;;  %v7938_v18 = vsel %vm21758_vm5, %v12765_v36, %v12770_v52  ;;  %v12775_v16 = vunpack.i.h.bf16 %v12773_v14  ;;  %v12774_v53 = vunpack.i.l.bf16 %v12773_v14  ;;  %vm21762_vm1 = vmmov %vm21758_vm5 }
 0x92c   : > { %7776 = vmatpush1.bf16.msra.mxu0 %v7677_v57  ;;  %7819 = vmatpush1.bf16.msra.mxu1 %v7679_v28  ;;  %v12778_v35 = vpop.permute.xlu1 %12777  ;;  %v7945_v26 = vpack.c.bf16 %v7938_v18, %v7937_v11  ;;  %vm21763_vm15 = vmmov %vm21762_vm1 }
 0x92d   : > { %v12780_v25 = vunpack.i.h.bf16 %v12778_v35  ;;  %v12779_v39 = vunpack.i.l.bf16 %v12778_v35  ;;  %7850 = vmatprep.mubr.bf16.mxu1 %v21266_v42  ;;  %v7935_v43 = vsel %vm21761_vm14, %v12769_v15, %v12774_v53  ;;  %v7936_v58 = vsel %vm21762_vm1, %v12770_v52, %v12775_v16  ;;  %vm21764_vm10 = vmmov %vm21762_vm1 }
 0x92e   : > { %v12788_v6 = vpop.permute.xlu0 %12787  ;;  %7960 = vmatprep.subr.bf16.mxu0 %v7945_v26  ;;  %vm21765_vm5 = vmmov %vm21762_vm1 }
 0x92f   : > { %v7939_v8 = vsel %vm21759_vm7, %v12779_v39, %v12764_v30  ;;  %v7940_v40 = vsel %vm21760_vm9, %v12780_v25, %v12765_v36  ;;  %11728 = vmatmul.mubr.msk.bf16.vlgmr.msra.gmra.mrb[116].mxu0 %vm7414_vm12, %v19051_v10  ;;  %v19097_v36 = vld [vmem:[#allocation11 + $0x10] sm:$0xff]   ;;  %v12790_v57 = vunpack.i.h.bf16 %v12788_v6  ;;  %v12789_v14 = vunpack.i.l.bf16 %v12788_v6  ;;  %vm21766_vm7 = vmmov %vm21762_vm1 }
 0x930   : > { %v7944_v19 = vpack.c.bf16 %v7940_v40, %v7939_v8  ;;  %v12783_v44 = vpop.permute.xlu1 %12782  ;;  %7992 = vmatprep.mubr.bf16.mxu0 %v21266_v42  ;;  %vm21767_vm9 = vmmov %vm21762_vm1 }
 0x931   : > { %v12785_v28 = vunpack.i.h.bf16 %v12783_v44  ;;  %v12784_v47 = vunpack.i.l.bf16 %v12783_v44  ;;  %vm21768_vm14 = vmmov %vm21762_vm1 }
 0x932   : > { %v12793_v49 = vpop.permute.xlu0 %12792  ;;  %7961 = vmatpush1.bf16.msra.mxu0 %v7944_v19 }
 0x933   : > { %v12795_v30 = vunpack.i.h.bf16 %v12793_v49  ;;  %v12794_v41 = vunpack.i.l.bf16 %v12793_v49  ;;  %11729 = vmatmul.mubr.msk.bf16.vlgmr.msra.gmra.mrb[116].mxu1 %vm7414_vm12, %v19051_v10  ;;  %v7933_v18 = vsel %vm21763_vm15, %v12774_v53, %v12784_v47  ;;  %v7934_v35 = vsel %vm21764_vm10, %v12775_v16, %v12785_v28  ;;  %vm21769_vm15 = vmmov %vm21762_vm1 }
 0x934   : > { %v12798_v11 = vpop.permute.xlu1 %12797  ;;  %8035 = vmatprep.mubr.bf16.mxu1 %v21266_v42  ;;  %v7947_v26 = vpack.c.bf16 %v7934_v35, %v7933_v18  ;;  %v7946_v10 = vpack.c.bf16 %v7936_v58, %v7935_v43  ;;  %v7932_v40 = vsel %vm21766_vm7, %v12785_v28, %v12790_v57  ;;  %v7931_v53 = vsel %vm21768_vm14, %v12784_v47, %v12789_v14  ;;  %vm21770_vm10 = vmmov %vm21762_vm1 }
 0x935   : > { %v12800_v15 = vunpack.i.h.bf16 %v12798_v11  ;;  %v12799_v52 = vunpack.i.l.bf16 %v12798_v11  ;;  %v7925_v8 = vsel %vm21765_vm5, %v12794_v41, %v12779_v39  ;;  %v7926_v19 = vsel %vm21767_vm9, %v12795_v30, %v12780_v25  ;;  %vm21771_vm5 = vmmov %vm21762_vm1 }
 0x936   : > { %v12808_v6 = vpop.permute.xlu0 %12807  ;;  %8003 = vmatprep.subr.bf16.mxu1 %v7947_v26  ;;  %v7951_v43 = vpack.c.bf16 %v7926_v19, %v7925_v8  ;;  %vm21772_vm7 = vcmp.lt.s32.totalorder %v13883_v22, 1 }
 0x937   : > { %v12810_v16 = vunpack.i.h.bf16 %v12808_v6  ;;  %v7928_v44 = vsel %vm21762_vm1, %v12800_v15, %v12795_v30  ;;  %v7927_v49 = vsel %vm21769_vm15, %v12799_v52, %v12794_v41  ;;  %11731 = vmatmul.mubr.msk.bf16.vlgmr.msra.gmra.mrb[120].mxu0 %vm7414_vm12, %v19097_v36  ;;  %8004 = vmatpush1.bf16.msra.mxu1 %v7946_v10  ;;  %v7929_v25 = vsel %vm21770_vm10, %v12789_v14, %v12799_v52  ;;  %vm21773_vm9 = vmmov %vm21772_vm7 }
 0x938   : > { %v7950_v39 = vpack.c.bf16 %v7928_v44, %v7927_v49  ;;  %v12803_v28 = vpop.permute.xlu1 %12802  ;;  %v7930_v47 = vsel %vm21771_vm5, %v12790_v57, %v12800_v15  ;;  %v12809_v58 = vunpack.i.l.bf16 %v12808_v6  ;;  %8078 = vmatprep.mubr.bf16.mxu0 %v21266_v42  ;;  %v7948_v41 = vpack.c.bf16 %v7932_v40, %v7931_v53  ;;  %8089 = vmatprep.subr.bf16.mxu1 %v7951_v43  ;;  %vm21774_vm14 = vmmov %vm21772_vm7 }
 0x939   : > { %v12805_v11 = vunpack.i.h.bf16 %v12803_v28  ;;  %v12804_v30 = vunpack.i.l.bf16 %v12803_v28  ;;  %v7949_v18 = vpack.c.bf16 %v7930_v47, %v7929_v25  ;;  %vm21775_vm1 = vmmov %vm21772_vm7 }
 0x93a   : > { %v12813_v35 = vpop.permute.xlu0 %12812  ;;  %vm21776_vm15 = vmmov %vm21775_vm1 }
 0x93b   : > { %11732 = vmatmul.mubr.msk.bf16.vlgmr.msra.gmra.mrb[120].mxu1 %vm7414_vm12, %v19097_v36  ;;  %8046 = vmatprep.subr.bf16.mxu0 %v7949_v18  ;;  %v8208_v26 = vsel %vm21772_vm7, %v12804_v30, %v12809_v58  ;;  %v8209_v14 = vsel %vm21773_vm9, %v12805_v11, %v12810_v16  ;;  %v12815_v40 = vunpack.i.h.bf16 %v12813_v35  ;;  %v12814_v6 = vunpack.i.l.bf16 %v12813_v35  ;;  %vm21777_vm10 = vmmov %vm21775_vm1 }
 0x93c   : > { %8047 = vmatpush1.bf16.msra.mxu0 %v7948_v41  ;;  %8090 = vmatpush1.bf16.msra.mxu1 %v7950_v39  ;;  %v12818_v57 = vpop.permute.xlu1 %12817  ;;  %v8216_v15 = vpack.c.bf16 %v8209_v14, %v8208_v26  ;;  %vm21778_vm5 = vmmov %vm21775_vm1 }
 0x93d   : > { %v12820_v52 = vunpack.i.h.bf16 %v12818_v57  ;;  %v12819_v8 = vunpack.i.l.bf16 %v12818_v57  ;;  %8121 = vmatprep.mubr.bf16.mxu1 %v21266_v42  ;;  %v8206_v25 = vsel %vm21776_vm15, %v12809_v58, %v12814_v6  ;;  %v8207_v47 = vsel %vm21777_vm10, %v12810_v16, %v12815_v40  ;;  %vm21779_vm7 = vmmov %vm21775_vm1 }
 0x93e   : > { %v12828_v10 = vpop.permute.xlu0 %12827  ;;  %8231 = vmatprep.subr.bf16.mxu0 %v8216_v15  ;;  %vm21780_vm9 = vmmov %vm21775_vm1 }
 0x93f   : > { %v8210_v19 = vsel %vm21774_vm14, %v12819_v8, %v12804_v30  ;;  %v8211_v53 = vsel %vm21775_vm1, %v12820_v52, %v12805_v11  ;;  %11733 = vmatmul.mubr.msk.bf16.vlgmr.msra.gmra.mrb[124].mxu0 %vm7414_vm12, %v19097_v36  ;;  %v13013_v11 = vld [vmem:[#allocation11 + $0x18] sm:$0xff]   ;;  %v12830_v41 = vunpack.i.h.bf16 %v12828_v10  ;;  %v12829_v35 = vunpack.i.l.bf16 %v12828_v10  ;;  %vm21781_vm14 = vmmov %vm21775_vm1 }
 0x940   : > { %v8215_v44 = vpack.c.bf16 %v8211_v53, %v8210_v19  ;;  %v12823_v49 = vpop.permute.xlu1 %12822  ;;  %8263 = vmatprep.mubr.bf16.mxu0 %v21266_v42  ;;  %v8217_v53 = vpack.c.bf16 %v8207_v47, %v8206_v25  ;;  %vm21782_vm15 = vmmov %vm21775_vm1 }
 0x941   : > { %v12825_v39 = vunpack.i.h.bf16 %v12823_v49  ;;  %v12824_v28 = vunpack.i.l.bf16 %v12823_v49  ;;  %vm21783_vm10 = vmmov %vm21775_vm1 }
 0x942   : > { %v12838_v43 = vpop.permute.xlu0 %12837  ;;  %8232 = vmatpush1.bf16.msra.mxu0 %v8215_v44 }
 0x943   : > { %v12840_v30 = vunpack.i.h.bf16 %v12838_v43  ;;  %v12839_v18 = vunpack.i.l.bf16 %v12838_v43  ;;  %11734 = vmatmul.mubr.msk.bf16.vlgmr.msra.gmra.mrb[124].mxu1 %vm7414_vm12, %v19097_v36  ;;  %v8204_v14 = vsel %vm21778_vm5, %v12814_v6, %v12824_v28  ;;  %v8205_v57 = vsel %vm21779_vm7, %v12815_v40, %v12825_v39  ;;  %vm21784_vm5 = vmmov %vm21775_vm1 }
 0x944   : > { %v12833_v26 = vpop.permute.xlu1 %12832  ;;  %8306 = vmatprep.mubr.bf16.mxu1 %v21266_v42  ;;  %v8218_v16 = vpack.c.bf16 %v8205_v57, %v8204_v14  ;;  %v8203_v36 = vsel %vm21781_vm14, %v12825_v39, %v12830_v41  ;;  %v8202_v40 = vsel %vm21782_vm15, %v12824_v28, %v12829_v35  ;;  %vm21785_vm7 = vmmov %vm21775_vm1  ;;  %vm21789_vm14 = vcmp.lt.s32.totalorder %v13883_v22, 127 }
 0x945   : > { %v12835_v58 = vunpack.i.h.bf16 %v12833_v26  ;;  %v12834_v15 = vunpack.i.l.bf16 %v12833_v26  ;;  %v8196_v19 = vsel %vm21780_vm9, %v12839_v18, %v12819_v8  ;;  %v8197_v6 = vsel %vm21775_vm1, %v12840_v30, %v12820_v52  ;;  %vm21786_vm9 = vmmov %vm21775_vm1 }
 0x946   : > { %v19152_v10 = vpop.permute.xlu0 %12847  ;;  %8274 = vmatprep.subr.bf16.mxu1 %v8218_v16  ;;  %v8222_v43 = vpack.c.bf16 %v8197_v6, %v8196_v19  ;;  %v8219_v47 = vpack.c.bf16 %v8203_v36, %v8202_v40  ;;  %vm21790_vm1 = vmmov %vm21789_vm14 }
 0x947   : > { %v8199_v44 = vsel %vm21783_vm10, %v12835_v58, %v12840_v30  ;;  %v8198_v49 = vsel %vm21784_vm5, %v12834_v15, %v12839_v18  ;;  %11736 = vmatmul.mubr.msk.bf16.vlgmr.msra.gmra.mrb[128].mxu0 %vm7414_vm12, %v13013_v11  ;;  %8275 = vmatpush1.bf16.msra.mxu1 %v8217_v53  ;;  %v8200_v25 = vsel %vm21785_vm7, %v12829_v35, %v12834_v15  ;;  %v12850_v5 = vunpack.i.h.bf16 %v19152_v10  ;;  %vm21793_vm15 = vmmov %vm21790_vm1 }
 0x948   : > { %v8221_v8 = vpack.c.bf16 %v8199_v44, %v8198_v49  ;;  %v12843_v39 = vpop.permute.xlu1 %12842  ;;  %v8201_v52 = vsel %vm21786_vm9, %v12830_v41, %v12835_v58  ;;  %8349 = vmatprep.mubr.bf16.mxu0 %v21266_v42  ;;  %8360 = vmatprep.subr.bf16.mxu1 %v8222_v43  ;;  %v12849_v54 = vunpack.i.l.bf16 %v19152_v10  ;;  %vm21794_vm10 = vmmov %vm21790_vm1  ;;  %v21797_v43 = vpack.c.bf16 %v18813_v62, %v18807_v29 }
 0x949   : > { %v8220_v28 = vpack.c.bf16 %v8201_v52, %v8200_v25  ;;  %v12845_v35 = vunpack.i.h.bf16 %v12843_v39  ;;  %v12844_v26 = vunpack.i.l.bf16 %v12843_v39  ;;  %vm21795_vm5 = vmmov %vm21790_vm1 }
 0x94a   : > { %v19168_v30 = vpop.permute.xlu0 %12857  ;;  %vm21796_vm7 = vmmov %vm21790_vm1 }
 0x94b   : > { %11737 = vmatmul.mubr.msk.bf16.vlgmr.msra.gmra.mrb[128].mxu1 %vm7414_vm12, %v13013_v11  ;;  %8317 = vmatprep.subr.bf16.mxu0 %v8220_v28  ;;  %v8684_v37 = vsel %vm21789_vm14, %v12844_v26, %v12849_v54  ;;  %v8685_v46 = vsel %vm21790_vm1, %v12845_v35, %v12850_v5  ;;  %v12860_v57 = vunpack.i.h.bf16 %v19168_v30  ;;  %v12859_v58 = vunpack.i.l.bf16 %v19168_v30  ;;  %vm21798_vm9 = vmmov %vm21790_vm1 }
 0x94c   : > { %8318 = vmatpush1.bf16.msra.mxu0 %v8219_v47  ;;  %8361 = vmatpush1.bf16.msra.mxu1 %v8221_v8  ;;  %v19171_v18 = vpop.permute.xlu1 %12852  ;;  %v8694_v16 = vpack.c.bf16 %v8685_v46, %v8684_v37  ;;  %vm21799_vm14 = vmmov %vm21790_vm1 }
 0x94d   : > { %8454 = vmatprep.subr.bf16.mxu0 %v8439_v12  ;;  %8497 = vmatprep.subr.bf16.mxu1 %v8441_v27  ;;  %v13014_v12 = vld [vmem:[#allocation11 + $0x20] sm:$0xff]   ;;  %v21788_v27 = vpack.c.bf16 %v18787_v1, %v18777_v63  ;;  %v12855_v1 = vunpack.i.h.bf16 %v19171_v18  ;;  %v12854_v15 = vunpack.i.l.bf16 %v19171_v18  ;;  %v8682_v18 = vsel %vm21790_vm1, %v12849_v54, %v12859_v58 }
 0x94e   : > { %v19179_v41 = vpop.permute.xlu0 %12877  ;;  %8392 = vmatprep.mubr.bf16.mxu1 %v21266_v42 }
 0x94f   : > { %11738 = vmatmul.mubr.msk.bf16.vlgmr.msra.gmra.mrb[132].mxu0 %vm7414_vm12, %v13013_v11  ;;  %v12880_v6 = vunpack.i.h.bf16 %v19179_v41  ;;  %v12879_v40 = vunpack.i.l.bf16 %v19179_v41 }
 0x950   : > { %8455 = vmatpush1.bf16.msra.mxu0 %v8438_v51  ;;  %v19186_v14 = vpop.permute.xlu1 %12862  ;;  %8486 = vmatprep.mubr.bf16.mxu0 %v21266_v42 }
 0x951   : > { %8540 = vmatprep.subr.bf16.mxu0 %v21787_v9  ;;  %v12865_v38 = vunpack.i.h.bf16 %v19186_v14  ;;  %v12864_v0 = vunpack.i.l.bf16 %v19186_v14 }
 0x952   : > { %v19194_v4 = vpop.permute.xlu0 %12882 }
 0x953   : > { %11739 = vmatmul.mubr.msk.bf16.vlgmr.msra.gmra.mrb[132].mxu1 %vm7414_vm12, %v13013_v11  ;;  %v21791_v11 = vpack.c.bf16 %v18825_v23, %v18811_v33  ;;  %v21792_v33 = vpack.c.bf16 %v18815_v20, %v18805_v61  ;;  %v8680_v36 = vsel %vm21793_vm15, %v12859_v58, %v12864_v0  ;;  %v8681_v10 = vsel %vm21794_vm10, %v12860_v57, %v12865_v38  ;;  %vm21800_vm15 = vmmov %vm21790_vm1 }
 0x954   : > { %8498 = vmatpush1.bf16.msra.mxu1 %v21788_v27  ;;  %v19202_v51 = vpop.permute.xlu1 %12867  ;;  %8529 = vmatprep.mubr.bf16.mxu1 %v21266_v42  ;;  %v8686_v61 = vsel %vm21795_vm5, %v12854_v15, %v12844_v26  ;;  %v8687_v20 = vsel %vm21796_vm7, %v12855_v1, %v12845_v35  ;;  %v8696_v49 = vpack.c.bf16 %v8681_v10, %v8680_v36  ;;  %vm21801_vm10 = vmmov %vm21790_vm1  ;;  %v12885_v54 = vunpack.i.h.bf16 %v19194_v4 }
 0x955   : > { %8583 = vmatprep.subr.bf16.mxu1 %v21791_v11  ;;  %v12870_v19 = vunpack.i.h.bf16 %v19202_v51  ;;  %v12869_v53 = vunpack.i.l.bf16 %v19202_v51  ;;  %v8693_v47 = vpack.c.bf16 %v8687_v20, %v8686_v61  ;;  %v8683_v29 = vsel %vm21800_vm15, %v12850_v5, %v12860_v57  ;;  %vm21802_vm5 = vmmov %vm21790_vm1  ;;  %v19277_v57 = vld [vmem:[#allocation11 + $0x28] sm:$0xff]  }
 0x956   : > { %v19214_v63 = vpop.permute.xlu0 %12892  ;;  %v8695_v5 = vpack.c.bf16 %v8683_v29, %v8682_v18  ;;  %v12884_v27 = vunpack.i.l.bf16 %v19194_v4  ;;  %vm21803_vm7 = vmmov %vm21790_vm1 }
 0x957   : > { %11741 = vmatmul.mubr.msk.bf16.vlgmr.msra.gmra.mrb[136].mxu0 %vm7414_vm12, %v13014_v12  ;;  %v12895_v8 = vunpack.i.h.bf16 %v19214_v63  ;;  %v12894_v39 = vunpack.i.l.bf16 %v19214_v63  ;;  %v8676_v52 = vsel %vm21798_vm9, %v12879_v40, %v12869_v53  ;;  %v8677_v28 = vsel %vm21799_vm14, %v12880_v6, %v12870_v19  ;;  %vm21804_vm9 = vmmov %vm21790_vm1 }
 0x958   : > { %8541 = vmatpush1.bf16.msra.mxu0 %v21792_v33  ;;  %v19224_v23 = vpop.permute.xlu1 %12872  ;;  %8572 = vmatprep.mubr.bf16.mxu0 %v21266_v42  ;;  %v8698_v62 = vpack.c.bf16 %v8677_v28, %v8676_v52  ;;  %v8679_v37 = vsel %vm21803_vm7, %v12865_v38, %v12880_v6  ;;  %v8678_v46 = vsel %vm21804_vm9, %v12864_v0, %v12879_v40  ;;  %vm21805_vm14 = vcmp.lt.s32.totalorder %v13883_v22, 113  ;;  %vm21807_vm15 = vmmov %vm21802_vm5 }
 0x959   : > { %8709 = vmatprep.subr.bf16.mxu0 %v8694_v16  ;;  %v12875_v41 = vunpack.i.h.bf16 %v19224_v23  ;;  %v12874_v35 = vunpack.i.l.bf16 %v19224_v23  ;;  %v8688_v14 = vsel %vm21801_vm10, %v12894_v39, %v12854_v15  ;;  %v8689_v9 = vsel %vm21802_vm5, %v12895_v8, %v12855_v1  ;;  %vm21806_vm1 = vmmov %vm21805_vm14 }
 0x95a   : > { %v19233_v44 = vpop.permute.xlu0 %12897  ;;  %v8700_v11 = vpack.c.bf16 %v8689_v9, %v8688_v14  ;;  %v8675_v0 = vsel %vm21807_vm15, %v12870_v19, %v12895_v8  ;;  %vm21808_vm10 = vmmov %vm21802_vm5 }
 0x95b   : > { %11742 = vmatmul.mubr.msk.bf16.vlgmr.msra.gmra.mrb[136].mxu1 %vm7414_vm12, %v13014_v12  ;;  %v8955_v4 = vsel %vm21805_vm14, %v12874_v35, %v12884_v27  ;;  %v8956_v38 = vsel %vm21806_vm1, %v12875_v41, %v12885_v54  ;;  %v12900_v15 = vunpack.i.h.bf16 %v19233_v44  ;;  %v12899_v16 = vunpack.i.l.bf16 %v19233_v44  ;;  %vm21809_vm5 = vmmov %vm21806_vm1 }
 0x95c   : > { %8584 = vmatpush1.bf16.msra.mxu1 %v21797_v43  ;;  %v19245_v25 = vpop.permute.xlu1 %12887  ;;  %8615 = vmatprep.mubr.bf16.mxu1 %v21266_v42  ;;  %v8674_v23 = vsel %vm21808_vm10, %v12869_v53, %v12894_v39  ;;  %v8965_v6 = vpack.c.bf16 %v8956_v38, %v8955_v4  ;;  %vm21810_vm7 = vmmov %vm21806_vm1 }
 0x95d   : > { %8752 = vmatprep.subr.bf16.mxu1 %v8696_v49  ;;  %v12890_v36 = vunpack.i.h.bf16 %v19245_v25  ;;  %v12889_v10 = vunpack.i.l.bf16 %v19245_v25  ;;  %v8699_v20 = vpack.c.bf16 %v8675_v0, %v8674_v23  ;;  %vm21811_vm9 = vmmov %vm21806_vm1 }
 0x95e   : > { %v19252_v30 = vpop.permute.xlu0 %12917  ;;  %vm21812_vm14 = vmmov %vm21806_vm1 }
 0x95f   : > { %11743 = vmatmul.mubr.msk.bf16.vlgmr.msra.gmra.mrb[140].mxu0 %vm7414_vm12, %v13014_v12  ;;  %v12920_v49 = vunpack.i.h.bf16 %v19252_v30  ;;  %v12919_v8 = vunpack.i.l.bf16 %v19252_v30  ;;  %v8957_v43 = vsel %vm21811_vm9, %v12889_v10, %v12874_v35  ;;  %v8958_v25 = vsel %vm21812_vm14, %v12890_v36, %v12875_v41  ;;  %vm21813_vm15 = vmmov %vm21806_vm1 }
 0x960   : > { %8710 = vmatpush1.bf16.msra.mxu0 %v8693_v47  ;;  %v19261_v26 = vpop.permute.xlu1 %12902  ;;  %8741 = vmatprep.mubr.bf16.mxu0 %v21266_v42  ;;  %vm21814_vm10 = vmmov %vm21806_vm1 }
 0x961   : > { %8795 = vmatprep.subr.bf16.mxu0 %v8698_v62  ;;  %v12905_v58 = vunpack.i.h.bf16 %v19261_v26  ;;  %v12904_v63 = vunpack.i.l.bf16 %v19261_v26  ;;  %v8964_v62 = vpack.c.bf16 %v8958_v25, %v8957_v43  ;;  %v8953_v35 = vsel %vm21814_vm10, %v12884_v27, %v12899_v16  ;;  %vm21817_vm9 = vmmov %vm21806_vm1 }
 0x962   : > { %v19270_v51 = vpop.permute.xlu0 %12922  ;;  %vm21818_vm14 = vmmov %vm21806_vm1 }
 0x963   : > { %11744 = vmatmul.mubr.msk.bf16.vlgmr.msra.gmra.mrb[140].mxu1 %vm7414_vm12, %v13014_v12  ;;  %v8697_v12 = vpack.c.bf16 %v8679_v37, %v8678_v46  ;;  %v8951_v44 = vsel %vm21809_vm5, %v12899_v16, %v12904_v63  ;;  %v8952_v53 = vsel %vm21810_vm7, %v12900_v15, %v12905_v58  ;;  %vm21815_vm5 = vmmov %vm21806_vm1  ;;  %v8950_v38 = vsel %vm21818_vm14, %v12905_v58, %v12920_v49 }
 0x964   : > { %8753 = vmatpush1.bf16.msra.mxu1 %v8695_v5  ;;  %v19281_v1 = vpop.permute.xlu1 %12907  ;;  %8784 = vmatprep.mubr.bf16.mxu1 %v21266_v42  ;;  %v8967_v52 = vpack.c.bf16 %v8952_v53, %v8951_v44  ;;  %v8954_v26 = vsel %vm21815_vm5, %v12885_v54, %v12900_v15  ;;  %vm21816_vm7 = vmmov %vm21806_vm1  ;;  %v13016_v15 = vld [vmem:[#allocation11 + $0x30] sm:$0xff]  }
 0x965   : > { %8838 = vmatprep.subr.bf16.mxu1 %v8700_v11  ;;  %v12910_v40 = vunpack.i.h.bf16 %v19281_v1  ;;  %v12909_v19 = vunpack.i.l.bf16 %v19281_v1  ;;  %v8966_v54 = vpack.c.bf16 %v8954_v26, %v8953_v35  ;;  %v12925_v11 = vunpack.i.h.bf16 %v19270_v51  ;;  %vm21821_vm5 = vmmov %vm21806_vm1 }
 0x966   : > { %v19292_v33 = vpop.permute.xlu0 %12932  ;;  %v12924_v1 = vunpack.i.l.bf16 %v19270_v51 }
 0x967   : > { %11746 = vmatmul.mubr.msk.bf16.vlgmr.msra.gmra.mrb[144].mxu0 %vm7414_vm12, %v19277_v57  ;;  %v12935_v28 = vunpack.i.h.bf16 %v19292_v33  ;;  %v12934_v47 = vunpack.i.l.bf16 %v19292_v33  ;;  %v8947_v30 = vsel %vm21806_vm1, %v12919_v8, %v12909_v19  ;;  %v8948_v29 = vsel %vm21813_vm15, %v12920_v49, %v12910_v40 }
 0x968   : > { %8796 = vmatpush1.bf16.msra.mxu0 %v8697_v12  ;;  %v19302_v61 = vpop.permute.xlu1 %12912  ;;  %8827 = vmatprep.mubr.bf16.mxu0 %v21266_v42  ;;  %v8969_v14 = vpack.c.bf16 %v8948_v29, %v8947_v30  ;;  %v8949_v12 = vsel %vm21806_vm1, %v12904_v63, %v12919_v8  ;;  %vm21819_vm15 = vcmp.lt.s32.totalorder %v13883_v22, 112 }
 0x969   : > { %8980 = vmatprep.subr.bf16.mxu0 %v8965_v6  ;;  %v12915_v9 = vunpack.i.h.bf16 %v19302_v61  ;;  %v12914_v5 = vunpack.i.l.bf16 %v19302_v61  ;;  %v8959_v46 = vsel %vm21816_vm7, %v12934_v47, %v12889_v10  ;;  %v8960_v27 = vsel %vm21817_vm9, %v12935_v28, %v12890_v36  ;;  %vm21820_vm10 = vmmov %vm21819_vm15 }
 0x96a   : > { %v19311_v39 = vpop.permute.xlu0 %12937  ;;  %v8971_v0 = vpack.c.bf16 %v8960_v27, %v8959_v46  ;;  %v8968_v63 = vpack.c.bf16 %v8950_v38, %v8949_v12  ;;  %vm21822_vm7 = vmmov %vm21806_vm1 }
 0x96b   : > { %11747 = vmatmul.mubr.msk.bf16.vlgmr.msra.gmra.mrb[144].mxu1 %vm7414_vm12, %v19277_v57  ;;  %v9226_v51 = vsel %vm21819_vm15, %v12914_v5, %v12924_v1  ;;  %v9227_v58 = vsel %vm21820_vm10, %v12915_v9, %v12925_v11  ;;  %v12940_v36 = vunpack.i.h.bf16 %v19311_v39  ;;  %v12939_v10 = vunpack.i.l.bf16 %v19311_v39  ;;  %vm21823_vm9 = vmmov %vm21820_vm10 }
 0x96c   : > { %8839 = vmatpush1.bf16.msra.mxu1 %v8699_v20  ;;  %v19321_v18 = vpop.permute.xlu1 %12927  ;;  %8870 = vmatprep.mubr.bf16.mxu1 %v21266_v42  ;;  %v8945_v6 = vsel %vm21822_vm7, %v12909_v19, %v12934_v47  ;;  %v9236_v20 = vpack.c.bf16 %v9227_v58, %v9226_v51  ;;  %vm21824_vm14 = vmmov %vm21823_vm9 }
 0x96d   : > { %9023 = vmatprep.subr.bf16.mxu1 %v8967_v52  ;;  %v12930_v61 = vunpack.i.h.bf16 %v19321_v18  ;;  %v12929_v44 = vunpack.i.l.bf16 %v19321_v18  ;;  %vm21825_vm1 = vmmov %vm21823_vm9 }
 0x96e   : > { %v19328_v41 = vpop.permute.xlu0 %12957  ;;  %vm21826_vm15 = vmmov %vm21825_vm1 }
 0x96f   : > { %11748 = vmatmul.mubr.msk.bf16.vlgmr.msra.gmra.mrb[148].mxu0 %vm7414_vm12, %v19277_v57  ;;  %v12960_v25 = vunpack.i.h.bf16 %v19328_v41  ;;  %v12959_v52 = vunpack.i.l.bf16 %v19328_v41  ;;  %v9229_v47 = vsel %vm21826_vm15, %v12930_v61, %v12915_v9  ;;  %vm21827_vm10 = vmmov %vm21825_vm1 }
 0x970   : > { %8981 = vmatpush1.bf16.msra.mxu0 %v8964_v62  ;;  %v19338_v37 = vpop.permute.xlu1 %12942  ;;  %9012 = vmatprep.mubr.bf16.mxu0 %v21266_v42  ;;  %vm21829_vm7 = vmmov %vm21825_vm1 }
 0x971   : > { %9066 = vmatprep.subr.bf16.mxu0 %v8969_v14  ;;  %v12945_v16 = vunpack.i.h.bf16 %v19338_v37  ;;  %v12944_v33 = vunpack.i.l.bf16 %v19338_v37  ;;  %v9224_v9 = vsel %vm21829_vm7, %v12924_v1, %v12939_v10  ;;  %vm21832_vm15 = vmmov %vm21825_vm1 }
 0x972   : > { %v19347_v4 = vpop.permute.xlu0 %12962 }
 0x973   : > { %11749 = vmatmul.mubr.msk.bf16.vlgmr.msra.gmra.mrb[148].mxu1 %vm7414_vm12, %v19277_v57  ;;  %v8946_v57 = vsel %vm21821_vm5, %v12910_v40, %v12935_v28  ;;  %v9222_v39 = vsel %vm21823_vm9, %v12939_v10, %v12944_v33  ;;  %v9223_v19 = vsel %vm21824_vm14, %v12940_v36, %v12945_v16  ;;  %v9228_v28 = vsel %vm21825_vm1, %v12929_v44, %v12914_v5  ;;  %vm21828_vm5 = vmmov %vm21825_vm1 }
 0x974   : > { %9024 = vmatpush1.bf16.msra.mxu1 %v8966_v54  ;;  %v19357_v23 = vpop.permute.xlu1 %12947  ;;  %9055 = vmatprep.mubr.bf16.mxu1 %v21266_v42  ;;  %v8970_v43 = vpack.c.bf16 %v8946_v57, %v8945_v6  ;;  %v9238_v18 = vpack.c.bf16 %v9223_v19, %v9222_v39  ;;  %v12965_v30 = vunpack.i.h.bf16 %v19347_v4  ;;  %v12964_v29 = vunpack.i.l.bf16 %v19347_v4  ;;  %vm21830_vm9 = vmmov %vm21825_vm1 }
 0x975   : > { %9109 = vmatprep.subr.bf16.mxu1 %v8971_v0  ;;  %v12950_v49 = vunpack.i.h.bf16 %v19357_v23  ;;  %v12949_v40 = vunpack.i.l.bf16 %v19357_v23  ;;  %v9235_v14 = vpack.c.bf16 %v9229_v47, %v9228_v28  ;;  %v9225_v5 = vsel %vm21830_vm9, %v12925_v11, %v12940_v36  ;;  %vm21831_vm14 = vmmov %vm21825_vm1 }
 0x976   : > { %v19372_v53 = vpop.permute.xlu0 %12967  ;;  %v9230_v4 = vsel %vm21831_vm14, %v12964_v29, %v12929_v44  ;;  %v9231_v38 = vsel %vm21825_vm1, %v12965_v30, %v12930_v61  ;;  %v9237_v11 = vpack.c.bf16 %v9225_v5, %v9224_v9  ;;  %v9221_v0 = vsel %vm21832_vm15, %v12945_v16, %v12960_v25  ;;  %vm21836_vm9 = vmmov %vm21825_vm1 }
 0x977   : > { %11751 = vmatmul.mubr.msk.bf16.vlgmr.msra.gmra.mrb[152].mxu0 %vm7414_vm12, %v13016_v15  ;;  %v9218_v35 = vsel %vm21827_vm10, %v12959_v52, %v12949_v40  ;;  %v9219_v41 = vsel %vm21828_vm5, %v12960_v25, %v12950_v49  ;;  %v12970_v1 = vunpack.i.h.bf16 %v19372_v53  ;;  %v12969_v12 = vunpack.i.l.bf16 %v19372_v53  ;;  %vm21833_vm10 = vmmov %vm21825_vm1 }
 0x978   : > { %9067 = vmatpush1.bf16.msra.mxu0 %v8968_v63  ;;  %v19377_v8 = vpop.permute.xlu1 %12952  ;;  %9098 = vmatprep.mubr.bf16.mxu0 %v21266_v42  ;;  %v9240_v37 = vpack.c.bf16 %v9219_v41, %v9218_v35  ;;  %v9220_v23 = vsel %vm21833_vm10, %v12944_v33, %v12959_v52  ;;  %v9242_v58 = vpack.c.bf16 %v9231_v38, %v9230_v4  ;;  %v13017_v63 = vld [vmem:[#allocation11 + $0x38] sm:$0xff]   ;;  %vm21834_vm5 = vcmp.lt.s32.totalorder %v13883_v22, 111  ;;  %vm21837_vm14 = vmmov %vm21825_vm1 }
 0x979   : > { %9251 = vmatprep.subr.bf16.mxu0 %v9236_v20  ;;  %v12955_v46 = vunpack.i.h.bf16 %v19377_v8  ;;  %v12954_v27 = vunpack.i.l.bf16 %v19377_v8  ;;  %vm21835_vm7 = vmmov %vm21834_vm5  ;;  %v9239_v33 = vpack.c.bf16 %v9221_v0, %v9220_v23  ;;  %v9216_v53 = vsel %vm21837_vm14, %v12949_v40, %v12964_v29 }
 0x97a   : > { %v19400_v26 = vpop.permute.xlu0 %12977  ;;  %vm21838_vm1 = vmmov %vm21834_vm5 }
 0x97b   : > { %11752 = vmatmul.mubr.msk.bf16.vlgmr.msra.gmra.mrb[152].mxu1 %vm7414_vm12, %v13016_v15  ;;  %v9497_v10 = vsel %vm21834_vm5, %v12954_v27, %v12969_v12  ;;  %v9498_v6 = vsel %vm21835_vm7, %v12955_v46, %v12970_v1  ;;  %v12980_v61 = vunpack.i.h.bf16 %v19400_v26  ;;  %v12979_v44 = vunpack.i.l.bf16 %v19400_v26  ;;  %vm21839_vm15 = vmmov %vm21838_vm1 }
 0x97c   : > { %9110 = vmatpush1.bf16.msra.mxu1 %v8970_v43  ;;  %v19393_v62 = vpop.permute.xlu1 %12972  ;;  %9141 = vmatprep.mubr.bf16.mxu1 %v21266_v42  ;;  %v9507_v39 = vpack.c.bf16 %v9498_v6, %v9497_v10  ;;  %vm21840_vm10 = vmmov %vm21838_vm1 }
 0x97d   : > { %9294 = vmatprep.subr.bf16.mxu1 %v9238_v18  ;;  %v12975_v20 = vunpack.i.h.bf16 %v19393_v62  ;;  %v12974_v8 = vunpack.i.l.bf16 %v19393_v62  ;;  %vm21841_vm5 = vmmov %vm21838_vm1  ;;  %v9496_v5 = vsel %vm21838_vm1, %v12970_v1, %v12980_v61  ;;  %v13018_v1 = vld [vmem:[#allocation11 + $0x40] sm:$0xff]  }
 0x97e   : > { %v12988_v51 = vpop.permute.xlu0 %12987  ;;  %vm21842_vm7 = vmmov %vm21838_vm1 }
 0x97f   : > { %11753 = vmatmul.mubr.msk.bf16.vlgmr.msra.gmra.mrb[156].mxu0 %vm7414_vm12, %v13016_v15  ;;  %v12990_v28 = vunpack.i.h.bf16 %v12988_v51  ;;  %v12989_v47 = vunpack.i.l.bf16 %v12988_v51  ;;  %v9499_v18 = vsel %vm21840_vm10, %v12974_v8, %v12954_v27  ;;  %vm21844_vm14 = vmmov %vm21838_vm1 }
 0x980   : > { %9252 = vmatpush1.bf16.msra.mxu0 %v9235_v14  ;;  %v19409_v54 = vpop.permute.xlu1 %12982  ;;  %9283 = vmatprep.mubr.bf16.mxu0 %v21266_v42  ;;  %v9495_v9 = vsel %vm21844_vm14, %v12969_v12, %v12979_v44  ;;  %vm21846_vm10 = vmmov %vm21838_vm1 }
 0x981   : > { %9337 = vmatprep.subr.bf16.mxu0 %v9240_v37  ;;  %v12985_v57 = vunpack.i.h.bf16 %v19409_v54  ;;  %v12984_v36 = vunpack.i.l.bf16 %v19409_v54  ;;  %v9508_v54 = vpack.c.bf16 %v9496_v5, %v9495_v9  ;;  %vm21850_vm14 = vmmov %vm21838_vm1 }
 0x982   : > { %v12998_v52 = vpop.permute.xlu0 %12997 }
 0x983   : > { %11754 = vmatmul.mubr.msk.bf16.vlgmr.msra.gmra.mrb[156].mxu1 %vm7414_vm12, %v13016_v15  ;;  %v9217_v15 = vsel %vm21836_vm9, %v12950_v49, %v12965_v30  ;;  %v9493_v49 = vsel %vm21838_vm1, %v12979_v44, %v12984_v36  ;;  %v9494_v25 = vsel %vm21839_vm15, %v12980_v61, %v12985_v57  ;;  %v9500_v30 = vsel %vm21841_vm5, %v12975_v20, %v12955_v46  ;;  %vm21843_vm9 = vmmov %vm21838_vm1 }
 0x984   : > { %9295 = vmatpush1.bf16.msra.mxu1 %v9237_v11  ;;  %9326 = vmatprep.mubr.bf16.mxu1 %v21266_v42  ;;  %v12993_v16 = vpop.permute.xlu1 %12992  ;;  %v9241_v40 = vpack.c.bf16 %v9217_v15, %v9216_v53  ;;  %v9509_v29 = vpack.c.bf16 %v9494_v25, %v9493_v49  ;;  %v13000_v62 = vunpack.i.h.bf16 %v12998_v52  ;;  %v12999_v35 = vunpack.i.l.bf16 %v12998_v52  ;;  %vm21845_vm15 = vmmov %vm21838_vm1 }
 0x985   : > { %9380 = vmatprep.subr.bf16.mxu1 %v9242_v58  ;;  %v12995_v19 = vunpack.i.h.bf16 %v12993_v16  ;;  %v12994_v43 = vunpack.i.l.bf16 %v12993_v16  ;;  %v9506_v14 = vpack.c.bf16 %v9500_v30, %v9499_v18  ;;  %vm21847_vm5 = vmmov %vm21838_vm1 }
 0x986   : > { %v9501_v46 = vsel %vm21845_vm15, %v12999_v35, %v12974_v8  ;;  %v9502_v27 = vsel %vm21846_vm10, %v13000_v62, %v12975_v20  ;;  %v9492_v4 = vsel %vm21847_vm5, %v12985_v57, %v12990_v28 }
 0x987   : > { %11756 = vmatmul.mubr.msk.bf16.vlgmr.msra.gmra.mrb[160].mxu0 %vm7414_vm12, %v13017_v63  ;;  %v9489_v41 = vsel %vm21842_vm7, %v12989_v47, %v12994_v43  ;;  %v9490_v26 = vsel %vm21843_vm9, %v12990_v28, %v12995_v19  ;;  %vm21848_vm7 = vmmov %vm21838_vm1  ;;  %v9513_v11 = vpack.c.bf16 %v9502_v27, %v9501_v46  ;;  %v9487_v23 = vsel %vm21850_vm14, %v12994_v43, %v12999_v35 }
 0x988   : > { %9338 = vmatpush1.bf16.msra.mxu0 %v9239_v33  ;;  %9369 = vmatprep.mubr.bf16.mxu0 %v21266_v42  ;;  %v9511_v37 = vpack.c.bf16 %v9490_v26, %v9489_v41  ;;  %v9491_v38 = vsel %vm21848_vm7, %v12984_v36, %v12989_v47  ;;  %vm21849_vm9 = vmmov %vm21838_vm1 }
 0x989   : > { %9522 = vmatprep.subr.bf16.mxu0 %v9507_v39  ;;  %v9510_v12 = vpack.c.bf16 %v9492_v4, %v9491_v38  ;;  %v9488_v0 = vsel %vm21849_vm9, %v12995_v19, %v13000_v62 }
 0x98a   : > { %v9512_v51 = vpack.c.bf16 %v9488_v0, %v9487_v23 }
 0x98b   : > { %11757 = vmatmul.mubr.msk.bf16.vlgmr.msra.gmra.mrb[160].mxu1 %vm7414_vm12, %v13017_v63 }
 0x98c   : > { %9381 = vmatpush1.bf16.msra.mxu1 %v9241_v40  ;;  %9412 = vmatprep.mubr.bf16.mxu1 %v21266_v42 }
 0x98d   : > { %9565 = vmatprep.subr.bf16.mxu1 %v9509_v29 }
 0x98f   : > { %11758 = vmatmul.mubr.msk.bf16.vlgmr.msra.gmra.mrb[164].mxu0 %vm7414_vm12, %v13017_v63 }
 0x990   : > { %9523 = vmatpush1.bf16.msra.mxu0 %v9506_v14  ;;  %9554 = vmatprep.mubr.bf16.mxu0 %v21266_v42 }
 0x991   : > { %9608 = vmatprep.subr.bf16.mxu0 %v9511_v37 }
 0x993   : > { %11759 = vmatmul.mubr.msk.bf16.vlgmr.msra.gmra.mrb[164].mxu1 %vm7414_vm12, %v13017_v63 }
 0x994   : > { %9566 = vmatpush1.bf16.msra.mxu1 %v9508_v54  ;;  %9597 = vmatprep.mubr.bf16.mxu1 %v21266_v42 }
 0x995   : > { %9651 = vmatprep.subr.bf16.mxu1 %v9513_v11 }
 0x997   : > { %11761 = vmatmul.mubr.msk.bf16.vlgmr.msra.gmra.mrb[168].mxu0 %vm7414_vm12, %v13018_v1 }
 0x998   : > { %9609 = vmatpush1.bf16.msra.mxu0 %v9510_v12  ;;  %9640 = vmatprep.mubr.bf16.mxu0 %v21266_v42 }
 0x999   : > { %11765 = vmatprep.subr.msk.mxu0 %vm21187_vm0, %v21630_v56 }
 0x99b   : > { %11762 = vmatmul.mubr.msk.bf16.vlgmr.msra.gmra.mrb[168].mxu1 %vm7414_vm12, %v13018_v1 }
 0x99c   : > { %9652 = vmatpush1.bf16.msra.mxu1 %v9512_v51  ;;  %9683 = vmatprep.mubr.bf16.mxu1 %v21266_v42 }
 0x99d   : > { %11773 = vmatprep.subr.msk.mxu1 %vm21187_vm0, %v21630_v56 }
 0x99f   : > { %11763 = vmatmul.mubr.msk.bf16.vlgmr.msra.gmra.mrb[172].mxu0 %vm7414_vm12, %v13018_v1 }
 0x9a1   : > { %11766 = vmatpush1.xpose.msk.msra.mxu0 %vm21193_vm11, %v21630_v56 }
 0x9a2   : > { %11767 = vmatprep.subr.msk.mxu0 %vm21190_vm3, %v21630_v56 }
 0x9a3   : > { %11764 = vmatmul.mubr.msk.bf16.vlgmr.msra.gmra.mrb[172].mxu1 %vm7414_vm12, %v13018_v1 }
 0x9a5   : > { %11774 = vmatpush1.xpose.msk.msra.mxu1 %vm21193_vm11, %v21630_v56 }
 0x9a6   : > { %11775 = vmatprep.subr.msk.mxu1 %vm21190_vm3, %v21630_v56 }
 0x9e8   : > { %v7452_v22 = vpop.f32.mrb[104].mxu0 }
 0x9e9   : > { %v7454_v32 = vpop.f32.mrb[105].mxu0  ;;  %v7590_v50 = vmul.f32 %v21637_v3, %v7452_v22 }
 0x9ea   : > { %v7456_v58 = vpop.f32.mrb[106].mxu0  ;;  %v7591_v43 = vmul.f32 %v21638_v59, %v7454_v32 }
 0x9eb   : > { %v7458_v63 = vpop.f32.mrb[107].mxu0  ;;  %v7598_v52 = vmul.f32 %v21637_v3, %v7456_v58 }
 0x9ec   : > { %v7599_v18 = vmul.f32 %v21638_v59, %v7458_v63 }
 0x9ee   : > { %v7495_v57 = vpop.f32.mrb[104].mxu1 }
 0x9ef   : > { %v7497_v36 = vpop.f32.mrb[105].mxu1  ;;  %v7592_v35 = vmul.f32 %v21634_v31, %v7495_v57 }
 0x9f0   : > { %v7499_v10 = vpop.f32.mrb[106].mxu1  ;;  %v7593_v9 = vmul.f32 %v21635_v7, %v7497_v36 }
 0x9f1   : > { %v7501_v6 = vpop.f32.mrb[107].mxu1 }
 0x9f2   : > { %v7538_v16 = vpop.f32.mrb[108].mxu0 }
 0x9f3   : > { %v7540_v33 = vpop.f32.mrb[109].mxu0  ;;  %v7594_v11 = vmul.f32 %v21643_v13, %v7538_v16  ;;  %v21851_v16 = vld [vmem:[#allocation151_spill] sm:$0xff] }
 0x9f4   : > { %v7542_v15 = vpop.f32.mrb[110].mxu0  ;;  %v7595_v23 = vmul.f32 %v21644_v48, %v7540_v33 }
 0x9f5   : > { %v7544_v61 = vpop.f32.mrb[111].mxu0 }
 0x9f6   : > { %v7581_v44 = vpop.f32.mrb[108].mxu1 }
 0x9f7   : > { %v7583_v53 = vpop.f32.mrb[109].mxu1 }
 0x9f8   : > { %v7585_v21 = vpop.f32.mrb[110].mxu1 }
 0x9f9   : > { %v7587_v20 = vpop.f32.mrb[111].mxu1 }
 0x9fa   : > { %v7723_v8 = vpop.f32.mrb[112].mxu0 }
 0x9fb   : > { %v7861_v39 = vmul.f32 %v21639_v17, %v7723_v8  ;;  %v7725_v19 = vpop.f32.mrb[113].mxu0 }
 0x9fc   : > { %v7862_v49 = vmul.f32 %v21641_v60, %v7725_v19  ;;  %v7727_v25 = vpop.f32.mrb[114].mxu0 }
 0x9fd   : > { %v7877_v40 = vadd.f32 %v7861_v39, %v7590_v50  ;;  %v7869_v28 = vmul.f32 %v21639_v17, %v7727_v25  ;;  %v7729_v47 = vpop.f32.mrb[115].mxu0  ;;  %v7600_v17 = vmul.f32 %v21634_v31, %v7499_v10  ;;  %v7596_v10 = vmul.f32 %v21642_v34, %v7581_v44  ;;  %v21852_v50 = vld [vmem:[#allocation111_spill] sm:$0xff] }
 0x9fe   : > { %v7878_v30 = vadd.f32 %v7862_v49, %v7591_v43  ;;  %v7870_v29 = vmul.f32 %v21641_v60, %v7729_v47  ;;  %v7766_v62 = vpop.f32.mrb[112].mxu1  ;;  %v7601_v60 = vmul.f32 %v21635_v7, %v7501_v6  ;;  %v7597_v39 = vmul.f32 %v21852_v50, %v7583_v53  ;;  %v21854_v47 = vld [vmem:[#allocation86_spill] sm:$0xff] }
 0x9ff   : > { %v7885_v41 = vadd.f32 %v7869_v28, %v7598_v52  ;;  %v7863_v26 = vmul.f32 %v21636_v45, %v7766_v62  ;;  %v7768_v14 = vpop.f32.mrb[113].mxu1  ;;  %v21855_v62 = vld [vmem:[#allocation85_spill] sm:$0xff] }
 0xa00   : > { %v7886_v5 = vadd.f32 %v7870_v29, %v7599_v18  ;;  %v7864_v3 = vmul.f32 %v21640_v55, %v7768_v14  ;;  %v7770_v37 = vpop.f32.mrb[114].mxu1 }
 0xa01   : > { %v7879_v46 = vadd.f32 %v7863_v26, %v7592_v35  ;;  %v7871_v59 = vmul.f32 %v21636_v45, %v7770_v37  ;;  %v7772_v27 = vpop.f32.mrb[115].mxu1  ;;  %v7602_v45 = vmul.f32 %v21643_v13, %v7542_v15  ;;  %v21853_v13 = vld [vmem:[#allocation152_spill] sm:$0xff] }
 0xa02   : > { %v7880_v54 = vadd.f32 %v7864_v3, %v7593_v9  ;;  %v7872_v4 = vmul.f32 %v21640_v55, %v7772_v27  ;;  %v7809_v38 = vpop.f32.mrb[116].mxu0  ;;  %v7603_v55 = vmul.f32 %v21644_v48, %v7544_v61 }
 0xa03   : > { %v7887_v1 = vadd.f32 %v7871_v59, %v7600_v17  ;;  %v7865_v12 = vmul.f32 %v21647_v24, %v7809_v38  ;;  %v7811_v0 = vpop.f32.mrb[117].mxu0  ;;  %v21856_v17 = vld [vmem:[#allocation133_spill] sm:$0xff] }
 0xa04   : > { %v7888_v51 = vadd.f32 %v7872_v4, %v7601_v60  ;;  %v7866_v31 = vmul.f32 %v21649_v2, %v7811_v0  ;;  %v7813_v22 = vpop.f32.mrb[118].mxu0  ;;  %v21857_v4 = vld [vmem:[#allocation134_spill] sm:$0xff] }
 0xa05   : > { %v7881_v32 = vadd.f32 %v7865_v12, %v7594_v11  ;;  %v7873_v7 = vmul.f32 %v21647_v24, %v7813_v22  ;;  %v7815_v58 = vpop.f32.mrb[119].mxu0  ;;  %v7604_v24 = vmul.f32 %v21642_v34, %v7585_v21 }
 0xa06   : > { %v7882_v63 = vadd.f32 %v7866_v31, %v7595_v23  ;;  %v7874_v57 = vmul.f32 %v21649_v2, %v7815_v58  ;;  %v7852_v36 = vpop.f32.mrb[116].mxu1  ;;  %v7605_v2 = vmul.f32 %v21852_v50, %v7587_v20  ;;  %v21860_v50 = vld [vmem:[#allocation115_spill] sm:$0xff] }
 0xa07   : > { %v7889_v6 = vadd.f32 %v7873_v7, %v7602_v45  ;;  %v7867_v33 = vmul.f32 %v21851_v16, %v7852_v36  ;;  %v7854_v8 = vpop.f32.mrb[117].mxu1  ;;  %v21858_v45 = vld [vmem:[#allocation68_spill] sm:$0xff] }
 0xa08   : > { %v7890_v19 = vadd.f32 %v7874_v57, %v7603_v55  ;;  %v7868_v15 = vmul.f32 %v21853_v13, %v7854_v8  ;;  %v7856_v43 = vpop.f32.mrb[118].mxu1  ;;  %v21859_v55 = vld [vmem:[#allocation43_spill] sm:$0xff] }
 0xa09   : > { %v7883_v49 = vadd.f32 %v7867_v33, %v7596_v10  ;;  %v7875_v48 = vmul.f32 %v21851_v16, %v7856_v43  ;;  %v7858_v61 = vpop.f32.mrb[119].mxu1 }
 0xa0a   : > { %v7884_v25 = vadd.f32 %v7868_v15, %v7597_v39  ;;  %v7876_v44 = vmul.f32 %v21853_v13, %v7858_v61  ;;  %v7994_v52 = vpop.f32.mrb[120].mxu0  ;;  %v21861_v15 = vld [vmem:[#allocation51_spill] sm:$0xff] }
 0xa0b   : > { %v7891_v28 = vadd.f32 %v7875_v48, %v7604_v24  ;;  %v8132_v18 = vmul.f32 %v21854_v47, %v7994_v52  ;;  %v7996_v53 = vpop.f32.mrb[121].mxu0  ;;  %v21862_v52 = vld [vmem:[#allocation91_spill] sm:$0xff] }
 0xa0c   : > { %v7892_v29 = vadd.f32 %v7876_v44, %v7605_v2  ;;  %v8133_v35 = vmul.f32 %v21855_v62, %v7996_v53  ;;  %v7998_v26 = vpop.f32.mrb[122].mxu0  ;;  %v21863_v53 = vld [vmem:[#allocation88_spill] sm:$0xff] }
 0xa0d   : > { %v8148_v14 = vadd.f32 %v8132_v18, %v7877_v40  ;;  %v8140_v34 = vmul.f32 %v21854_v47, %v7998_v26  ;;  %v8000_v21 = vpop.f32.mrb[123].mxu0 }
 0xa0e   : > { %v8149_v9 = vadd.f32 %v8133_v35, %v7878_v30  ;;  %v8141_v3 = vmul.f32 %v21855_v62, %v8000_v21  ;;  %v8037_v20 = vpop.f32.mrb[120].mxu1 }
 0xa0f   : > { %v8156_v37 = vadd.f32 %v8140_v34, %v7885_v41  ;;  %v8134_v59 = vmul.f32 %v21856_v17, %v8037_v20  ;;  %v8039_v27 = vpop.f32.mrb[121].mxu1 }
 0xa10   : > { %v8157_v60 = vadd.f32 %v8141_v3, %v7886_v5  ;;  %v8135_v38 = vmul.f32 %v21857_v4, %v8039_v27  ;;  %v8041_v11 = vpop.f32.mrb[122].mxu1 }
 0xa11   : > { %v8150_v12 = vadd.f32 %v8134_v59, %v7879_v46  ;;  %v8142_v0 = vmul.f32 %v21856_v17, %v8041_v11  ;;  %v8043_v23 = vpop.f32.mrb[123].mxu1 }
 0xa12   : > { %v8151_v40 = vadd.f32 %v8135_v38, %v7880_v54  ;;  %v8143_v31 = vmul.f32 %v21857_v4, %v8043_v23  ;;  %v8080_v22 = vpop.f32.mrb[124].mxu0 }
 0xa13   : > { %v8158_v30 = vadd.f32 %v8142_v0, %v7887_v1  ;;  %v8136_v7 = vmul.f32 %v21858_v45, %v8080_v22  ;;  %v8082_v58 = vpop.f32.mrb[125].mxu0  ;;  %v21866_v22 = vld [vmem:[#allocation143_spill] sm:$0xff] }
 0xa14   : > { %v8159_v41 = vadd.f32 %v8143_v31, %v7888_v51  ;;  %v8137_v57 = vmul.f32 %v21859_v55, %v8082_v58  ;;  %v8084_v36 = vpop.f32.mrb[126].mxu0  ;;  %v21867_v58 = vld [vmem:[#allocation144_spill] sm:$0xff] }
 0xa15   : > { %v8152_v5 = vadd.f32 %v8136_v7, %v7881_v32  ;;  %v8144_v10 = vmul.f32 %v21858_v45, %v8084_v36  ;;  %v8086_v16 = vpop.f32.mrb[127].mxu0 }
 0xa16   : > { %v8153_v46 = vadd.f32 %v8137_v57, %v7882_v63  ;;  %v8145_v33 = vmul.f32 %v21859_v55, %v8086_v16  ;;  %v8123_v8 = vpop.f32.mrb[124].mxu1 }
 0xa17   : > { %v8160_v54 = vadd.f32 %v8144_v10, %v7889_v6  ;;  %v8138_v39 = vmul.f32 %v21860_v50, %v8123_v8  ;;  %v8125_v13 = vpop.f32.mrb[125].mxu1  ;;  %v21868_v8 = vld [vmem:[#allocation55_spill] sm:$0xff] }
 0xa18   : > { %v8161_v1 = vadd.f32 %v8145_v33, %v7890_v19  ;;  %v8139_v43 = vmul.f32 %v21861_v15, %v8125_v13  ;;  %v8127_v24 = vpop.f32.mrb[126].mxu1  ;;  %v21869_v13 = vld [vmem:[#allocation118_spill] sm:$0xff] }
 0xa19   : > { %v8154_v51 = vadd.f32 %v8138_v39, %v7883_v49  ;;  %v8146_v48 = vmul.f32 %v21860_v50, %v8127_v24  ;;  %v8129_v61 = vpop.f32.mrb[127].mxu1 }
 0xa1a   : > { %v8155_v32 = vadd.f32 %v8139_v43, %v7884_v25  ;;  %v8147_v2 = vmul.f32 %v21861_v15, %v8129_v61  ;;  %v8265_v44 = vpop.f32.mrb[128].mxu0  ;;  %v21864_v25 = vld [vmem:[#allocation135_spill] sm:$0xff] }
 0xa1b   : > { %v8162_v63 = vadd.f32 %v8146_v48, %v7891_v28  ;;  %v8403_v47 = vmul.f32 %v21862_v52, %v8265_v44  ;;  %v8267_v18 = vpop.f32.mrb[129].mxu0  ;;  %v21865_v28 = vld [vmem:[#allocation136_spill] sm:$0xff] }
 0xa1c   : > { %v8163_v6 = vadd.f32 %v8147_v2, %v7892_v29  ;;  %v8404_v62 = vmul.f32 %v21863_v53, %v8267_v18  ;;  %v8269_v35 = vpop.f32.mrb[130].mxu0 }
 0xa1d   : > { %v8411_v19 = vmul.f32 %v21862_v52, %v8269_v35  ;;  %v8271_v26 = vpop.f32.mrb[131].mxu0  ;;  %v8419_v34 = vadd.f32 %v8403_v47, %v8148_v14 }
 0xa1e   : > { %v8412_v49 = vmul.f32 %v21863_v53, %v8271_v26  ;;  %v8308_v21 = vpop.f32.mrb[128].mxu1  ;;  %v8420_v3 = vadd.f32 %v8404_v62, %v8149_v9 }
 0xa1f   : > { %v8405_v20 = vmul.f32 %v21864_v25, %v8308_v21  ;;  %v8310_v17 = vpop.f32.mrb[129].mxu1  ;;  %v8427_v59 = vadd.f32 %v8411_v19, %v8156_v37 }
 0xa20   : > { %v8406_v27 = vmul.f32 %v21865_v28, %v8310_v17  ;;  %v8312_v4 = vpop.f32.mrb[130].mxu1  ;;  %v8428_v38 = vadd.f32 %v8412_v49, %v8157_v60 }
 0xa21   : > { %v8413_v29 = vmul.f32 %v21864_v25, %v8312_v4  ;;  %v8314_v11 = vpop.f32.mrb[131].mxu1  ;;  %v8421_v0 = vadd.f32 %v8405_v20, %v8150_v12 }
 0xa22   : > { %v8414_v23 = vmul.f32 %v21865_v28, %v8314_v11  ;;  %v8351_v31 = vpop.f32.mrb[132].mxu0  ;;  %v8422_v14 = vadd.f32 %v8406_v27, %v8151_v40 }
 0xa23   : > { %v8407_v45 = vmul.f32 %v21866_v22, %v8351_v31  ;;  %v8353_v7 = vpop.f32.mrb[133].mxu0  ;;  %v8429_v9 = vadd.f32 %v8413_v29, %v8158_v30 }
 0xa24   : > { %v8408_v55 = vmul.f32 %v21867_v58, %v8353_v7  ;;  %v8355_v57 = vpop.f32.mrb[134].mxu0  ;;  %v8430_v37 = vadd.f32 %v8414_v23, %v8159_v41 }
 0xa25   : > { %v8415_v36 = vmul.f32 %v21866_v22, %v8355_v57  ;;  %v8357_v10 = vpop.f32.mrb[135].mxu0  ;;  %v8423_v60 = vadd.f32 %v8407_v45, %v8152_v5  ;;  %v21870_v22 = vld [vmem:[#allocation95_spill] sm:$0xff] }
 0xa26   : > { %v8416_v16 = vmul.f32 %v21867_v58, %v8357_v10  ;;  %v8394_v33 = vpop.f32.mrb[132].mxu1  ;;  %v8424_v12 = vadd.f32 %v8408_v55, %v8153_v46 }
 0xa27   : > { %v8409_v50 = vmul.f32 %v21868_v8, %v8394_v33  ;;  %v8396_v39 = vpop.f32.mrb[133].mxu1  ;;  %v8431_v40 = vadd.f32 %v8415_v36, %v8160_v54 }
 0xa28   : > { %v8410_v15 = vmul.f32 %v21869_v13, %v8396_v39  ;;  %v8398_v43 = vpop.f32.mrb[134].mxu1  ;;  %v8432_v30 = vadd.f32 %v8416_v16, %v8161_v1 }
 0xa29   : > { %v8417_v24 = vmul.f32 %v21868_v8, %v8398_v43  ;;  %v8400_v48 = vpop.f32.mrb[135].mxu1  ;;  %v8425_v41 = vadd.f32 %v8409_v50, %v8154_v51 }
 0xa2a   : > { %v8418_v61 = vmul.f32 %v21869_v13, %v8400_v48  ;;  %v8488_v2 = vpop.f32.mrb[136].mxu0  ;;  %v8426_v5 = vadd.f32 %v8410_v15, %v8155_v32 }
 0xa2b   : > { %v8626_v44 = vadd.f32 %v8488_v2, %v8419_v34  ;;  %v8490_v52 = vpop.f32.mrb[137].mxu0  ;;  %v8433_v47 = vadd.f32 %v8417_v24, %v8162_v63 }
 0xa2c   : > { %v8627_v46 = vadd.f32 %v8490_v52, %v8420_v3  ;;  %v8492_v18 = vpop.f32.mrb[138].mxu0  ;;  %v8434_v53 = vadd.f32 %v8418_v61, %v8163_v6 }
 0xa2d   : > { %v8634_v62 = vadd.f32 %v8492_v18, %v8427_v59  ;;  %v8494_v54 = vpop.f32.mrb[139].mxu0 }
 0xa2e   : > { %v8635_v35 = vadd.f32 %v8494_v54, %v8428_v38  ;;  %v8531_v19 = vpop.f32.mrb[136].mxu1 }
 0xa2f   : > { %v8628_v26 = vadd.f32 %v8531_v19, %v8421_v0  ;;  %v8533_v1 = vpop.f32.mrb[137].mxu1 }
 0xa30   : > { %v8629_v49 = vadd.f32 %v8533_v1, %v8422_v14  ;;  %v8535_v21 = vpop.f32.mrb[138].mxu1 }
 0xa31   : > { %v8636_v25 = vadd.f32 %v8535_v21, %v8429_v9  ;;  %v8537_v51 = vpop.f32.mrb[139].mxu1  ;;  %v21871_v9 = vld [vmem:[#allocation94_spill] sm:$0xff]  ;;  %v21876_v21 = vld [vmem:[#allocation53_spill] sm:$0xff] }
 0xa32   : > { %v8637_v20 = vadd.f32 %v8537_v51, %v8430_v37  ;;  %v8574_v17 = vpop.f32.mrb[140].mxu0 }
 0xa33   : > { %v8630_v28 = vadd.f32 %v8574_v17, %v8423_v60  ;;  %v8576_v32 = vpop.f32.mrb[141].mxu0 }
 0xa34   : > { %v8631_v34 = vadd.f32 %v8576_v32, %v8424_v12  ;;  %v8578_v27 = vpop.f32.mrb[142].mxu0  ;;  %v21872_v12 = vld [vmem:[#allocation56_spill] sm:$0xff]  ;;  %v21877_v32 = vld [vmem:[#allocation75_spill] sm:$0xff] }
 0xa35   : > { %v8638_v63 = vadd.f32 %v8578_v27, %v8431_v40  ;;  %v8580_v3 = vpop.f32.mrb[143].mxu0  ;;  %v21873_v40 = vld [vmem:[#allocation38_spill] sm:$0xff] }
 0xa36   : > { %v8639_v4 = vadd.f32 %v8580_v3, %v8432_v30  ;;  %v8617_v6 = vpop.f32.mrb[140].mxu1 }
 0xa37   : > { %v8632_v59 = vadd.f32 %v8617_v6, %v8425_v41  ;;  %v8619_v29 = vpop.f32.mrb[141].mxu1 }
 0xa38   : > { %v8633_v38 = vadd.f32 %v8619_v29, %v8426_v5  ;;  %v8621_v11 = vpop.f32.mrb[142].mxu1  ;;  %v21874_v5 = vld [vmem:[#allocation78_spill] sm:$0xff] }
 0xa39   : > { %v8640_v0 = vadd.f32 %v8621_v11, %v8433_v47  ;;  %v8623_v23 = vpop.f32.mrb[143].mxu1 }
 0xa3a   : > { %v8641_v31 = vadd.f32 %v8623_v23, %v8434_v53  ;;  %v8743_v14 = vpop.f32.mrb[144].mxu0 }
 0xa3b   : > { %v8881_v45 = vmul.f32 %v21870_v22, %v8743_v14  ;;  %v8745_v7 = vpop.f32.mrb[145].mxu0  ;;  %v21878_v14 = vld [vmem:[#allocation76_spill] sm:$0xff] }
 0xa3c   : > { %v8882_v58 = vmul.f32 %v21871_v9, %v8745_v7  ;;  %v8747_v55 = vpop.f32.mrb[146].mxu0  ;;  %v21879_v7 = vld [vmem:[#allocation104_spill] sm:$0xff] }
 0xa3d   : > { %v8897_v57 = vadd.f32 %v8881_v45, %v8626_v44  ;;  %v8889_v37 = vmul.f32 %v21870_v22, %v8747_v55  ;;  %v8749_v36 = vpop.f32.mrb[147].mxu0 }
 0xa3e   : > { %v8898_v10 = vadd.f32 %v8882_v58, %v8627_v46  ;;  %v8890_v60 = vmul.f32 %v21871_v9, %v8749_v36  ;;  %v8786_v16 = vpop.f32.mrb[144].mxu1  ;;  %v21875_v46 = vld [vmem:[#allocation101_spill] sm:$0xff] }
 0xa3f   : > { %v8905_v33 = vadd.f32 %v8889_v37, %v8634_v62  ;;  %v8883_v8 = vmul.f32 %v21872_v12, %v8786_v16  ;;  %v8788_v50 = vpop.f32.mrb[145].mxu1  ;;  %v21880_v16 = vld [vmem:[#allocation64_spill] sm:$0xff] }
 0xa40   : > { %v8906_v39 = vadd.f32 %v8890_v60, %v8635_v35  ;;  %v8884_v13 = vmul.f32 %v21873_v40, %v8788_v50  ;;  %v8790_v15 = vpop.f32.mrb[146].mxu1  ;;  %v21881_v50 = vld [vmem:[#allocation99_spill] sm:$0xff] }
 0xa41   : > { %v8899_v43 = vadd.f32 %v8883_v8, %v8628_v26  ;;  %v8891_v30 = vmul.f32 %v21872_v12, %v8790_v15  ;;  %v8792_v24 = vpop.f32.mrb[147].mxu1 }
 0xa42   : > { %v8900_v48 = vadd.f32 %v8884_v13, %v8629_v49  ;;  %v8892_v41 = vmul.f32 %v21873_v40, %v8792_v24  ;;  %v8829_v61 = vpop.f32.mrb[148].mxu0 }
 0xa43   : > { %v8907_v2 = vadd.f32 %v8891_v30, %v8636_v25  ;;  %v8885_v44 = vmul.f32 %v21874_v5, %v8829_v61  ;;  %v8831_v52 = vpop.f32.mrb[149].mxu0  ;;  %v21882_v61 = vld [vmem:[#allocation106_spill] sm:$0xff] }
 0xa44   : > { %v8908_v47 = vadd.f32 %v8892_v41, %v8637_v20  ;;  %v8886_v18 = vmul.f32 %v21875_v46, %v8831_v52  ;;  %v8833_v53 = vpop.f32.mrb[150].mxu0  ;;  %v21883_v52 = vld [vmem:[#allocation108_spill] sm:$0xff] }
 0xa45   : > { %v8901_v62 = vadd.f32 %v8885_v44, %v8630_v28  ;;  %v8893_v54 = vmul.f32 %v21874_v5, %v8833_v53  ;;  %v8835_v35 = vpop.f32.mrb[151].mxu0 }
 0xa46   : > { %v8902_v19 = vadd.f32 %v8886_v18, %v8631_v34  ;;  %v8894_v26 = vmul.f32 %v21875_v46, %v8835_v35  ;;  %v8872_v1 = vpop.f32.mrb[148].mxu1 }
 0xa47   : > { %v8909_v49 = vadd.f32 %v8893_v54, %v8638_v63  ;;  %v8887_v51 = vmul.f32 %v21876_v21, %v8872_v1  ;;  %v8874_v17 = vpop.f32.mrb[149].mxu1  ;;  %v21884_v1 = vld [vmem:[#allocation142_spill] sm:$0xff] }
 0xa48   : > { %v8910_v25 = vadd.f32 %v8894_v26, %v8639_v4  ;;  %v8888_v27 = vmul.f32 %v21877_v32, %v8874_v17  ;;  %v8876_v3 = vpop.f32.mrb[150].mxu1  ;;  %v21885_v17 = vld [vmem:[#allocation63_spill] sm:$0xff] }
 0xa49   : > { %v8903_v20 = vadd.f32 %v8887_v51, %v8632_v59  ;;  %v8895_v6 = vmul.f32 %v21876_v21, %v8876_v3  ;;  %v8878_v29 = vpop.f32.mrb[151].mxu1 }
 0xa4a   : > { %v8904_v28 = vadd.f32 %v8888_v27, %v8633_v38  ;;  %v8896_v11 = vmul.f32 %v21877_v32, %v8878_v29  ;;  %v9014_v23 = vpop.f32.mrb[152].mxu0 }
 0xa4b   : > { %v8911_v34 = vadd.f32 %v8895_v6, %v8640_v0  ;;  %v9152_v22 = vmul.f32 %v21878_v14, %v9014_v23  ;;  %v9016_v45 = vpop.f32.mrb[153].mxu0  ;;  %v21886_v23 = vld [vmem:[#allocation66_spill] sm:$0xff] }
 0xa4c   : > { %v8912_v63 = vadd.f32 %v8896_v11, %v8641_v31  ;;  %v9153_v9 = vmul.f32 %v21879_v7, %v9016_v45  ;;  %v9018_v58 = vpop.f32.mrb[154].mxu0  ;;  %v21887_v45 = vld [vmem:[#allocation105_spill] sm:$0xff] }
 0xa4d   : > { %v9168_v4 = vadd.f32 %v9152_v22, %v8897_v57  ;;  %v9160_v55 = vmul.f32 %v21878_v14, %v9018_v58  ;;  %v9020_v37 = vpop.f32.mrb[155].mxu0 }
 0xa4e   : > { %v9169_v59 = vadd.f32 %v9153_v9, %v8898_v10  ;;  %v9161_v36 = vmul.f32 %v21879_v7, %v9020_v37  ;;  %v9057_v60 = vpop.f32.mrb[152].mxu1 }
 0xa4f   : > { %v9176_v38 = vadd.f32 %v9160_v55, %v8905_v33  ;;  %v9154_v12 = vmul.f32 %v21880_v16, %v9057_v60  ;;  %v9059_v8 = vpop.f32.mrb[153].mxu1  ;;  %v21888_v60 = vld [vmem:[#allocation145_spill] sm:$0xff] }
 0xa50   : > { %v9177_v0 = vadd.f32 %v9161_v36, %v8906_v39  ;;  %v9155_v40 = vmul.f32 %v21881_v50, %v9059_v8  ;;  %v9061_v13 = vpop.f32.mrb[154].mxu1  ;;  %v21889_v8 = vld [vmem:[#allocation146_spill] sm:$0xff] }
 0xa51   : > { %v9170_v31 = vadd.f32 %v9154_v12, %v8899_v43  ;;  %v9162_v15 = vmul.f32 %v21880_v16, %v9061_v13  ;;  %v9063_v30 = vpop.f32.mrb[155].mxu1 }
 0xa52   : > { %v9171_v57 = vadd.f32 %v9155_v40, %v8900_v48  ;;  %v9163_v24 = vmul.f32 %v21881_v50, %v9063_v30  ;;  %v9100_v41 = vpop.f32.mrb[156].mxu0 }
 0xa53   : > { %v9178_v10 = vadd.f32 %v9162_v15, %v8907_v2  ;;  %v9156_v5 = vmul.f32 %v21882_v61, %v9100_v41  ;;  %v9102_v44 = vpop.f32.mrb[157].mxu0  ;;  %v21890_v41 = vld [vmem:[#allocation121_spill] sm:$0xff] }
 0xa54   : > { %v9179_v33 = vadd.f32 %v9163_v24, %v8908_v47  ;;  %v9157_v46 = vmul.f32 %v21883_v52, %v9102_v44  ;;  %v9104_v18 = vpop.f32.mrb[158].mxu0  ;;  %v21891_v44 = vld [vmem:[#allocation122_spill] sm:$0xff] }
 0xa55   : > { %v9172_v39 = vadd.f32 %v9156_v5, %v8901_v62  ;;  %v9164_v53 = vmul.f32 %v21882_v61, %v9104_v18  ;;  %v9106_v54 = vpop.f32.mrb[159].mxu0 }
 0xa56   : > { %v9173_v43 = vadd.f32 %v9157_v46, %v8902_v19  ;;  %v9165_v35 = vmul.f32 %v21883_v52, %v9106_v54  ;;  %v9143_v26 = vpop.f32.mrb[156].mxu1 }
 0xa57   : > { %v9180_v48 = vadd.f32 %v9164_v53, %v8909_v49  ;;  %v9158_v21 = vmul.f32 %v21884_v1, %v9143_v26  ;;  %v9145_v51 = vpop.f32.mrb[157].mxu1  ;;  %v21892_v26 = vld [vmem:[#allocation34_spill] sm:$0xff] }
 0xa58   : > { %v9181_v2 = vadd.f32 %v9165_v35, %v8910_v25  ;;  %v9159_v32 = vmul.f32 %v21885_v17, %v9145_v51  ;;  %v9147_v27 = vpop.f32.mrb[158].mxu1 }
 0xa59   : > { %v9174_v47 = vadd.f32 %v9158_v21, %v8903_v20  ;;  %v9166_v3 = vmul.f32 %v21884_v1, %v9147_v27  ;;  %v9149_v6 = vpop.f32.mrb[159].mxu1 }
 0xa5a   : > { %v9175_v62 = vadd.f32 %v9159_v32, %v8904_v28  ;;  %v9167_v29 = vmul.f32 %v21885_v17, %v9149_v6  ;;  %v9285_v11 = vpop.f32.mrb[160].mxu0 }
 0xa5b   : > { %v9182_v19 = vadd.f32 %v9166_v3, %v8911_v34  ;;  %v9423_v14 = vmul.f32 %v21886_v23, %v9285_v11  ;;  %v9287_v22 = vpop.f32.mrb[161].mxu0 }
 0xa5c   : > { %v9183_v49 = vadd.f32 %v9167_v29, %v8912_v63  ;;  %v9424_v7 = vmul.f32 %v21887_v45, %v9287_v22  ;;  %v9289_v9 = vpop.f32.mrb[162].mxu0  ;;  %v21894_v29 = vld [vmem:[#allocation30_spill] sm:$0xff] }
 0xa5d   : > { %v9439_v25 = vadd.f32 %v9423_v14, %v9168_v4  ;;  %v9431_v58 = vmul.f32 %v21886_v23, %v9289_v9  ;;  %v9291_v55 = vpop.f32.mrb[163].mxu0  ;;  %v21895_v14 = vld [vmem:[#allocation58_spill] sm:$0xff] }
 0xa5e   : > { %v9440_v20 = vadd.f32 %v9424_v7, %v9169_v59  ;;  %v9432_v37 = vmul.f32 %v21887_v45, %v9291_v55  ;;  %v9328_v36 = vpop.f32.mrb[160].mxu1 }
 0xa5f   : > { %v9447_v28 = vadd.f32 %v9431_v58, %v9176_v38  ;;  %v9425_v16 = vmul.f32 %v21888_v60, %v9328_v36  ;;  %v9330_v12 = vpop.f32.mrb[161].mxu1  ;;  %v19627_v58 = vpop.permute.xlu1 %9730 }
 0xa60   : > { %v9448_v34 = vadd.f32 %v9432_v37, %v9177_v0  ;;  %v9426_v50 = vmul.f32 %v21889_v8, %v9330_v12  ;;  %v9332_v40 = vpop.f32.mrb[162].mxu1 }
 0xa61   : > { %v9441_v63 = vadd.f32 %v9425_v16, %v9170_v31  ;;  %v9433_v13 = vmul.f32 %v21888_v60, %v9332_v40  ;;  %v9334_v15 = vpop.f32.mrb[163].mxu1  ;;  %v21896_v60 = vld [vmem:[#allocation148_spill] sm:$0xff] }
 0xa62   : > { %v9442_v4 = vadd.f32 %v9426_v50, %v9171_v57  ;;  %v9434_v30 = vmul.f32 %v21889_v8, %v9334_v15  ;;  %v9371_v24 = vpop.f32.mrb[164].mxu0  ;;  %v21897_v8 = vld [vmem:[#allocation150_spill] sm:$0xff] }
 0xa63   : > { %v9449_v59 = vadd.f32 %v9433_v13, %v9178_v10  ;;  %v9427_v61 = vmul.f32 %v21890_v41, %v9371_v24  ;;  %v9373_v5 = vpop.f32.mrb[165].mxu0  ;;  %v19638_v13 = vpop.permute.xlu0 %9735 }
 0xa64   : > { %v9450_v38 = vadd.f32 %v9434_v30, %v9179_v33  ;;  %v9428_v52 = vmul.f32 %v21891_v44, %v9373_v5  ;;  %v9375_v46 = vpop.f32.mrb[166].mxu0  ;;  %v21893_v33 = vld [vmem:[#allocation67_spill] sm:$0xff] }
 0xa65   : > { %v9443_v0 = vadd.f32 %v9427_v61, %v9172_v39  ;;  %v9435_v18 = vmul.f32 %v21890_v41, %v9375_v46  ;;  %v9377_v53 = vpop.f32.mrb[167].mxu0 }
 0xa66   : > { %v19605_v31 = vadd.f32 %v9428_v52, %v9173_v43  ;;  %v9436_v54 = vmul.f32 %v21891_v44, %v9377_v53  ;;  %v9414_v57 = vpop.f32.mrb[164].mxu1  ;;  %v21898_v44 = vld [vmem:[#allocation119_spill] sm:$0xff]  ;;  %v21899_v53 = vld [vmem:[#allocation129_spill] sm:$0xff] }
 0xa67   : > { %v19608_v35 = vadd.f32 %v9435_v18, %v9180_v48  ;;  %v9429_v10 = vmul.f32 %v21892_v26, %v9414_v57  ;;  %v9416_v1 = vpop.f32.mrb[165].mxu1 }
 0xa68   : > { %v19611_v21 = vadd.f32 %v9436_v54, %v9181_v2  ;;  %v9430_v51 = vmul.f32 %v21893_v33, %v9416_v1  ;;  %v9418_v17 = vpop.f32.mrb[166].mxu1 }
 0xa69   : > { %v19614_v32 = vadd.f32 %v9429_v10, %v9174_v47  ;;  %v9437_v39 = vmul.f32 %v21892_v26, %v9418_v17  ;;  %v9420_v27 = vpop.f32.mrb[167].mxu1 }
 0xa6a   : > { %v19617_v43 = vadd.f32 %v9430_v51, %v9175_v62  ;;  %v9438_v3 = vmul.f32 %v21893_v33, %v9420_v27  ;;  %v9556_v6 = vpop.f32.mrb[168].mxu0 }
 0xa6b   : > { %v19620_v48 = vadd.f32 %v9437_v39, %v9182_v19  ;;  %v9694_v11 = vmul.f32 %v21894_v29, %v9556_v6  ;;  %v9558_v23 = vpop.f32.mrb[169].mxu0 }
 0xa6c   : > { %v19623_v2 = vadd.f32 %v9438_v3, %v9183_v49  ;;  %v9695_v22 = vmul.f32 %v21895_v14, %v9558_v23  ;;  %v9560_v45 = vpop.f32.mrb[170].mxu0  ;;  %v21901_v3 = vld [vmem:[#allocation100_spill] sm:$0xff] }
 0xa6d   : > { %v9710_v47 = vadd.f32 %v9694_v11, %v9439_v25  ;;  %v9702_v7 = vmul.f32 %v21894_v29, %v9560_v45  ;;  %v9562_v9 = vpop.f32.mrb[171].mxu0  ;;  %v21902_v23 = vld [vmem:[#allocation84_spill] sm:$0xff] }
 0xa6e   : > { %v9711_v62 = vadd.f32 %v9695_v22, %v9440_v20  ;;  %v9703_v55 = vmul.f32 %v21895_v14, %v9562_v9  ;;  %v9599_v37 = vpop.f32.mrb[168].mxu1 }
 0xa6f   : > { %v19631_v19 = vadd.f32 %v19627_v58, %v9710_v47  ;;  %v9718_v36 = vadd.f32 %v9702_v7, %v9447_v28  ;;  %v9696_v49 = vmul.f32 %v21896_v60, %v9599_v37  ;;  %v9601_v16 = vpop.f32.mrb[169].mxu1 }
 0xa70   : > { %v9719_v12 = vadd.f32 %v9703_v55, %v9448_v34  ;;  %v9697_v50 = vmul.f32 %v21897_v8, %v9601_v16  ;;  %v9603_v25 = vpop.f32.mrb[170].mxu1  ;;  %v19636_v40 = vadd.f32 %v19627_v58, %v9711_v62 }
 0xa71   : > { %v9712_v20 = vadd.f32 %v9696_v49, %v9441_v63  ;;  %v9704_v15 = vmul.f32 %v21896_v60, %v9603_v25  ;;  %v9605_v30 = vpop.f32.mrb[171].mxu1  ;;  %v10054_v63 = vmul.f32 %v19631_v19, %v19631_v19 }
 0xa72   : > { %v9713_v24 = vadd.f32 %v9697_v50, %v9442_v4  ;;  %v9705_v41 = vmul.f32 %v21897_v8, %v9605_v30  ;;  %v9642_v28 = vpop.f32.mrb[172].mxu0  ;;  %9818 = vmatprep.mubr.f32.mxu0 %v19636_v40  ;;  %v19644_v34 = vadd.f32 %v19638_v13, %v9719_v12  ;;  %v10055_v61 = vmul.f32 %v19636_v40, %v19636_v40 }
 0xa73   : > { %v9720_v5 = vadd.f32 %v9704_v15, %v9449_v59  ;;  %v9698_v52 = vmul.f32 %v21898_v44, %v9642_v28  ;;  %v9644_v46 = vpop.f32.mrb[173].mxu0  ;;  %9819 = vmatmul.mubr.f32.vlgmr.msra.gmra.mrb[102].mxu0 %v19631_v19  ;;  %v19653_v4 = vadd.f32 %v19638_v13, %v9718_v36 }
 0xa74   : > { %v9721_v18 = vadd.f32 %v9705_v41, %v9450_v38  ;;  %v9699_v54 = vmul.f32 %v21899_v53, %v9644_v46  ;;  %v9646_v57 = vpop.f32.mrb[174].mxu0  ;;  %9823 = vmatprep.mubr.f32.mxu0 %v19644_v34  ;;  %10134 = vmatprep.mubr.f32.mxu1 %v10055_v61  ;;  %v10063_v59 = vmul.f32 %v19644_v34, %v19644_v34  ;;  %v21907_v41 = vld [vmem:[#allocation87_spill] sm:$0xff] }
 0xa75   : > { %v9714_v26 = vadd.f32 %v9698_v52, %v9443_v0  ;;  %v9706_v10 = vmul.f32 %v21898_v44, %v9646_v57  ;;  %v9648_v1 = vpop.f32.mrb[175].mxu0  ;;  %10135 = vmatmul.mubr.f32.vlgmr.msra.gmra.mrb[102].mxu1 %v10054_v63  ;;  %11768 = vmatpush1.xpose.msk.msra.mxu0 %vm21196_vm6, %v21630_v56  ;;  %v19666_v39 = vadd.f32 %v19627_v58, %v9713_v24  ;;  %v21911_v63 = vld [vmem:[#allocation41_spill] sm:$0xff]  ;;  %v21919_v57 = vmov 0.0  }
 0xa76   : > { %v9715_v38 = vadd.f32 %v9699_v54, %v19605_v31  ;;  %v9707_v51 = vmul.f32 %v21899_v53, %v9648_v1  ;;  %v9685_v17 = vpop.f32.mrb[172].mxu1  ;;  %10139 = vmatprep.mubr.f32.mxu1 %v10063_v59  ;;  %11776 = vmatpush1.xpose.msk.msra.mxu1 %vm21196_vm6, %v21630_v56  ;;  %v19672_v0 = vadd.f32 %v19627_v58, %v9712_v20  ;;  %v21915_v53 = vld [vmem:[#allocation42_spill] sm:$0xff]  ;;  %vm21920_vm6 = vcmask 31744  }
 0xa77   : > { %v9722_v27 = vadd.f32 %v9706_v10, %v19608_v35  ;;  %v9700_v6 = vmul.f32 %v21901_v3, %v9685_v17  ;;  %v9687_v29 = vpop.f32.mrb[173].mxu1  ;;  %9824 = vmatmul.mubr.f32.gmra.mrb[176].mxu0 %v19653_v4  ;;  %v10062_v31 = vmul.f32 %v19653_v4, %v19653_v4  ;;  %v10057_v45 = vmul.f32 %v19666_v39, %v19666_v39  ;;  %v21917_v54 = vld [vmem:[#allocation114_spill] sm:$0xff]  ;;  %vm21928_vm7 = vmmov %vm21920_vm6 }
 0xa78   : > { %v9723_v11 = vadd.f32 %v9707_v51, %v19611_v21  ;;  %v9701_v14 = vmul.f32 %v21902_v23, %v9687_v29  ;;  %v9689_v22 = vpop.f32.mrb[174].mxu1  ;;  %9893 = vmatprep.mubr.f32.mxu0 %v19666_v39  ;;  %v19685_v35 = vadd.f32 %v19638_v13, %v9721_v18  ;;  %11769 = vmatprep.subr.msk.mxu0 %vm21199_vm13, %v21630_v56  ;;  %v21913_v18 = vld [vmem:[#allocation39_spill] sm:$0xff]  ;;  %v21922_v29 = vld [vmem:[#allocation40_spill] sm:$0xff]  ;;  %vm21929_vm9 = vmmov %vm21920_vm6 }
 0xa79   : > { %v9716_v47 = vadd.f32 %v9700_v6, %v19614_v32  ;;  %v9708_v7 = vmul.f32 %v21901_v3, %v9689_v22  ;;  %v9691_v9 = vpop.f32.mrb[175].mxu1  ;;  %10140 = vmatmul.mubr.f32.gmra.mrb[176].mxu1 %v10062_v31  ;;  %v10056_v37 = vmul.f32 %v19672_v0, %v19672_v0  ;;  %v19699_v32 = vadd.f32 %v19638_v13, %v9720_v5  ;;  %v21909_v5 = vld [vmem:[#allocation36_spill] sm:$0xff]  ;;  %v21924_v31 = vld [vmem:[#allocation31_spill] sm:$0xff]  ;;  %vm21930_vm14 = vmmov %vm21920_vm6 }
 0xa7a   : > { %v9717_v62 = vadd.f32 %v9701_v14, %v19617_v43  ;;  %v9709_v21 = vmul.f32 %v21902_v23, %v9691_v9  ;;  %10209 = vmatprep.mubr.f32.mxu1 %v10057_v45  ;;  %11777 = vmatprep.subr.msk.mxu1 %vm21199_vm13, %v21630_v56  ;;  %v10065_v60 = vmul.f32 %v19685_v35, %v19685_v35  ;;  %vm21921_vm13 = vmmov %vm21920_vm6 }
 0xa7b   : > { %v9724_v36 = vadd.f32 %v9708_v7, %v19620_v48  ;;  %9894 = vmatmul.mubr.f32.vlgmr.msra.gmra.mrb[102].mxu0 %v19672_v0  ;;  %v19712_v48 = vadd.f32 %v19627_v58, %v9715_v38  ;;  %v10064_v12 = vmul.f32 %v19699_v32, %v19699_v32  ;;  %v19733_v50 = vadd.f32 %v19638_v13, %v9723_v11 }
 0xa7c   : > { %v9725_v43 = vadd.f32 %v9709_v21, %v19623_v2  ;;  %9898 = vmatprep.mubr.f32.mxu0 %v19685_v35  ;;  %11770 = vmatpush1.xpose.msk.msra.mxu0 %vm15529_vm2, %v21630_v56  ;;  %v19721_v2 = vadd.f32 %v19627_v58, %v9714_v26  ;;  %v19739_v20 = vadd.f32 %v19638_v13, %v9722_v27 }
 0xa7d   : > { %10210 = vmatmul.mubr.f32.vlgmr.msra.gmra.mrb[102].mxu1 %v10056_v37  ;;  %11771 = vmatprep.subr.msk.mxu0 %vm15674_vm4, %v21630_v56  ;;  %v10059_v8 = vmul.f32 %v19712_v48, %v19712_v48  ;;  %v10067_v15 = vmul.f32 %v19733_v50, %v19733_v50  ;;  %v19748_v24 = vadd.f32 %v19627_v58, %v9717_v62 }
 0xa7e   : > { %10214 = vmatprep.mubr.f32.mxu1 %v10065_v60  ;;  %11778 = vmatpush1.xpose.msk.msra.mxu1 %vm15529_vm2, %v21630_v56  ;;  %v10058_v25 = vmul.f32 %v19721_v2, %v19721_v2  ;;  %vm21908_vm2 = vcmask 1043456   ;;  %v19756_v28 = vadd.f32 %v19627_v58, %v9716_v47  ;;  %v10066_v61 = vmul.f32 %v19739_v20, %v19739_v20 }
 0xa7f   : > { %9899 = vmatmul.mubr.f32.gmra.mrb[176].mxu0 %v19699_v32  ;;  %11779 = vmatprep.subr.msk.mxu1 %vm15674_vm4, %v21630_v56  ;;  %vm21910_vm4 = vmmov %vm21908_vm2  ;;  %v10061_v44 = vmul.f32 %v19748_v24, %v19748_v24  ;;  %v19767_v52 = vadd.f32 %v19638_v13, %v9725_v43  ;;  %v19773_v58 = vadd.f32 %v19638_v13, %v9724_v36 }
 0xa80   : > { %9968 = vmatprep.mubr.f32.mxu0 %v19712_v48  ;;  %vm21914_vm0 = vmmov %vm21908_vm2 }
 0xa81   : > { %10215 = vmatmul.mubr.f32.gmra.mrb[176].mxu1 %v10064_v12  ;;  %v10069_v46 = vmul.f32 %v19767_v52, %v19767_v52  ;;  %vm21916_vm3 = vmmov %vm21914_vm0  ;;  %v10068_v13 = vmul.f32 %v19773_v58, %v19773_v58 }
 0xa82   : > { %10284 = vmatprep.mubr.f32.mxu1 %v10059_v8  ;;  %vm21918_vm11 = vmmov %vm21914_vm0 }
 0xa83   : > { %9969 = vmatmul.mubr.f32.vlgmr.msra.gmra.mrb[102].mxu0 %v19721_v2  ;;  %vm21923_vm1 = vmmov %vm21914_vm0 }
 0xa84   : > { %9973 = vmatprep.mubr.f32.mxu0 %v19733_v50  ;;  %11772 = vmatpush1.xpose.msk.msra.mxu0 %vm16091_vm8, %v21630_v56  ;;  %vm21925_vm15 = vmmov %vm21914_vm0 }
 0xa85   : > { %10285 = vmatmul.mubr.f32.vlgmr.msra.gmra.mrb[102].mxu1 %v10058_v25  ;;  %11781 = vmatprep.subr.msk.mxu0 %vm21908_vm2, %v21907_v41  ;;  %vm21926_vm10 = vmmov %vm21914_vm0 }
 0xa86   : > { %10289 = vmatprep.mubr.f32.mxu1 %v10067_v15  ;;  %11780 = vmatpush1.xpose.msk.msra.mxu1 %vm16091_vm8, %v21630_v56  ;;  %v10060_v56 = vmul.f32 %v19756_v28, %v19756_v28  ;;  %vm21912_vm8 = vmmov %vm21908_vm2 }
 0xa87   : > { %9974 = vmatmul.mubr.f32.gmra.mrb[176].mxu0 %v19739_v20  ;;  %11785 = vmatprep.subr.msk.mxu1 %vm21910_vm4, %v21909_v5  ;;  %vm21927_vm5 = vmmov %vm21914_vm0 }
 0xa88   : > { %10043 = vmatprep.mubr.f32.mxu0 %v19748_v24  ;;  %vm21931_vm2 = vmmov %vm21920_vm6 }
 0xa89   : > { %10290 = vmatmul.mubr.f32.gmra.mrb[176].mxu1 %v10066_v61  ;;  %vm21932_vm4 = vmmov %vm21914_vm0 }
 0xa8a   : > { %10359 = vmatprep.mubr.f32.mxu1 %v10061_v44 }
 0xa8b   : > { %10044 = vmatmul.mubr.f32.vlgmr.msra.gmra.mrb[102].mxu0 %v19756_v28 }
 0xa8c   : > { %10048 = vmatprep.mubr.f32.mxu0 %v19767_v52  ;;  %11782 = vmatpush1.msk.msra.mxu0 %vm21912_vm8, %v21911_v63  ;;  %vm21933_vm8 = vmmov %vm21914_vm0 }
 0xa8d   : > { %10360 = vmatmul.mubr.f32.vlgmr.msra.gmra.mrb[102].mxu1 %v10060_v56  ;;  %11789 = vmatprep.subr.msk.mxu0 %vm21914_vm0, %v21913_v18 }
 0xa8e   : > { %10364 = vmatprep.mubr.f32.mxu1 %v10069_v46  ;;  %11786 = vmatpush1.msk.msra.mxu1 %vm21916_vm3, %v21915_v53  ;;  %vm21934_vm3 = vmmov %vm21914_vm0 }
 0xa8f   : > { %10049 = vmatmul.mubr.f32.gmra.mrb[176].mxu0 %v19773_v58  ;;  %11793 = vmatprep.subr.msk.mxu1 %vm21918_vm11, %v21917_v54  ;;  %vm21935_vm11 = vmmov %vm21931_vm2 }
 0xa90   : > { %10452 = vmatprep.mubr.f32.mxu0 %v21919_v57 }
 0xa91   : > { %10365 = vmatmul.mubr.f32.gmra.mrb[176].mxu1 %v10068_v13 }
 0xa92   : > { %10529 = vmatprep.mubr.f32.mxu1 %v21919_v57 }
 0xb5e   : > { %v10045_v59 = vpop.f32.mrb[102].mxu0 }
 0xb5f   : > { %v10370_v26 = vmul.f32 0.00390625, %v10045_v59  ;;  %v10047_v10 = vpop.f32.mrb[103].mxu0 }
 0xb60   : > { %v10361_v1 = vpop.f32.mrb[102].mxu1 }
 0xb61   : > { %v10372_v33 = vmul.f32 0.00390625, %v10361_v1  ;;  %v10374_v38 = vmul.f32 %v10370_v26, %v10370_v26  ;;  %v10363_v51 = vpop.f32.mrb[103].mxu1  ;;  %11783 = vmatmul.mubr.msk.f32.vlgmr.msra.gmra.mrb[178].mxu0 %vm21920_vm6, %v10370_v26  ;;  %11787 = vmatmul.mubr.msk.f32.vlgmr.msra.gmra.mrb[178].mxu1 %vm21921_vm13, %v10370_v26  ;;  %vm21936_vm6 = vmmov %vm21931_vm2 }
 0xb62   : > { %v10050_v17 = vpop.f32.mrb[176].mxu0  ;;  %10458 = vmatprep.mubr.f32.mxu0 %v21919_v57  ;;  %10535 = vmatprep.mubr.f32.mxu1 %v21919_v57  ;;  %vm21937_vm13 = vmmov %vm21931_vm2 }
 0xb63   : > { %v10376_v27 = vsub.f32 %v10372_v33, %v10374_v38  ;;  %v10371_v3 = vmul.f32 0.00390625, %v10050_v17  ;;  %v10052_v6 = vpop.f32.mrb[177].mxu0  ;;  %11790 = vmatpush1.msk.msra.mxu0 %vm21923_vm1, %v21922_v29  ;;  %11794 = vmatpush1.msk.msra.mxu1 %vm21925_vm15, %v21924_v31  ;;  %vm21938_vm1 = vmmov %vm21931_vm2 }
 0xb64   : > { %v10366_v11 = vpop.f32.mrb[176].mxu1  ;;  %11797 = vmatprep.subr.msk.mxu0 %vm21926_vm10, %v21907_v41  ;;  %11801 = vmatprep.subr.msk.mxu1 %vm21927_vm5, %v21909_v5  ;;  %vm21939_vm15 = vmmov %vm21914_vm0 }
 0xb65   : > { %v10378_v23 = vadd.f32 1e-05, %v10376_v27  ;;  %v10373_v14 = vmul.f32 0.00390625, %v10366_v11  ;;  %v10375_v22 = vmul.f32 %v10371_v3, %v10371_v3  ;;  %v10368_v45 = vpop.f32.mrb[177].mxu1  ;;  %11784 = vmatmul.mubr.msk.f32.gmra.mrb[180].mxu0 %vm21928_vm7, %v10371_v3  ;;  %11788 = vmatmul.mubr.msk.f32.gmra.mrb[180].mxu1 %vm21929_vm9, %v10371_v3  ;;  %vm21940_vm10 = vmmov %vm21914_vm0 }
 0xb66   : > { %10606 = vmatprep.mubr.f32.mxu0 %v21919_v57  ;;  %10683 = vmatprep.mubr.f32.mxu1 %v21919_v57  ;;  %vm21941_vm5 = vmmov %vm21938_vm1 }
 0xb67   : > { %13057 = vrsqrt.f32 %v10378_v23  ;;  %v10377_v47 = vsub.f32 %v10373_v14, %v10375_v22  ;;  %vm21942_vm7 = vmmov %vm21938_vm1 }
 0xb68   : > { %vm21943_vm9 = vmmov %vm21938_vm1 }
 0xb69   : > { %v10379_v7 = vadd.f32 1e-05, %v10377_v47  ;;  %11791 = vmatmul.mubr.msk.f32.vlgmr.msra.gmra.mrb[182].mxu0 %vm21930_vm14, %v10370_v26  ;;  %11795 = vmatmul.mubr.msk.f32.vlgmr.msra.gmra.mrb[182].mxu1 %vm21931_vm2, %v10370_v26  ;;  %vm21944_vm14 = vmmov %vm21938_vm1 }
 0xb6a   : > { %10612 = vmatprep.mubr.f32.mxu0 %v21919_v57  ;;  %10689 = vmatprep.mubr.f32.mxu1 %v21919_v57  ;;  %vm21945_vm2 = vmmov %vm21938_vm1 }
 0xb6b   : > { %13059 = vrsqrt.f32 %v10379_v7  ;;  %11798 = vmatpush1.msk.msra.mxu0 %vm21932_vm4, %v21911_v63  ;;  %11802 = vmatpush1.msk.msra.mxu1 %vm21933_vm8, %v21915_v53  ;;  %vm21946_vm4 = vmmov %vm21938_vm1 }
 0xb6c   : > { %11805 = vmatprep.subr.msk.mxu0 %vm21914_vm0, %v21913_v18  ;;  %11809 = vmatprep.subr.msk.mxu1 %vm21934_vm3, %v21917_v54 }
 0xb6d   : > { %11792 = vmatmul.mubr.msk.f32.gmra.mrb[184].mxu0 %vm21935_vm11, %v10371_v3  ;;  %11796 = vmatmul.mubr.msk.f32.gmra.mrb[184].mxu1 %vm21936_vm6, %v10371_v3 }
 0xb6e   : > { %10766 = vmatprep.mubr.f32.mxu0 %v21919_v57  ;;  %10843 = vmatprep.mubr.f32.mxu1 %v21919_v57 }
 0xb71   : > { %v13058_v9 = vpop.eup %13057 }
 0xb72   : > { %11799 = vmatmul.mubr.msk.f32.vlgmr.msra.gmra.mrb[186].mxu0 %vm21937_vm13, %v13058_v9  ;;  %11803 = vmatmul.mubr.msk.f32.vlgmr.msra.gmra.mrb[186].mxu1 %vm21938_vm1, %v13058_v9 }
 0xb73   : > { %10772 = vmatprep.mubr.f32.mxu0 %v21919_v57  ;;  %10849 = vmatprep.mubr.f32.mxu1 %v21919_v57 }
 0xb74   : > { %11806 = vmatpush1.msk.msra.mxu0 %vm21939_vm15, %v21922_v29  ;;  %11810 = vmatpush1.msk.msra.mxu1 %vm21940_vm10, %v21924_v31 }
 0xb75   : > { %v13060_v62 = vpop.eup %13059 }
 0xb76   : > { %11800 = vmatmul.mubr.msk.f32.gmra.mrb[188].mxu0 %vm21941_vm5, %v13060_v62  ;;  %11804 = vmatmul.mubr.msk.f32.gmra.mrb[188].mxu1 %vm21942_vm7, %v13060_v62 }
 0xb77   : > { %10920 = vmatprep.mubr.f32.mxu0 %v21919_v57  ;;  %10997 = vmatprep.mubr.f32.mxu1 %v21919_v57 }
 0xb7a   : > { %11807 = vmatmul.mubr.msk.f32.vlgmr.msra.gmra.mrb[190].mxu0 %vm21943_vm9, %v13058_v9  ;;  %11811 = vmatmul.mubr.msk.f32.vlgmr.msra.gmra.mrb[190].mxu1 %vm21944_vm14, %v13058_v9 }
 0xb7b   : > { %10926 = vmatprep.mubr.f32.mxu0 %v21919_v57  ;;  %11003 = vmatprep.mubr.f32.mxu1 %v21919_v57 }
 0xb7e   : > { %11808 = vmatmul.mubr.msk.f32.gmra.mrb[192].mxu0 %vm21945_vm2, %v13060_v62  ;;  %11812 = vmatmul.mubr.msk.f32.gmra.mrb[192].mxu1 %vm21946_vm4, %v13060_v62 }
 0xb7f   : > { %11140 = vmatprep.mubr.bf16.mxu0 %v21266_v42  ;;  %11181 = vmatprep.mubr.bf16.mxu1 %v21266_v42 }
 0xc34   : > { %v10454_v21 = vpop.f32.mrb[178].mxu0  ;;  %v10531_v55 = vpop.f32.mrb[178].mxu1 }
 0xc35   : > { %v10456_v37 = vpop.f32.mrb[179].mxu0  ;;  %v10533_v36 = vpop.f32.mrb[179].mxu1  ;;  %v11010_v44 = vsub.f32 %v19631_v19, %v10454_v21  ;;  %v11012_v56 = vsub.f32 %v19672_v0, %v10531_v55 }
 0xc36   : > { %v11011_v46 = vsub.f32 %v19636_v40, %v10456_v37  ;;  %v11013_v63 = vsub.f32 %v19666_v39, %v10533_v36 }
 0xc38   : > { %v10460_v43 = vpop.f32.mrb[180].mxu0  ;;  %v10537_v60 = vpop.f32.mrb[180].mxu1 }
 0xc39   : > { %v10462_v49 = vpop.f32.mrb[181].mxu0  ;;  %v10539_v16 = vpop.f32.mrb[181].mxu1  ;;  %v11018_v18 = vsub.f32 %v19653_v4, %v10460_v43  ;;  %v11020_v54 = vsub.f32 %v19699_v32, %v10537_v60 }
 0xc3a   : > { %v11019_v57 = vsub.f32 %v19644_v34, %v10462_v49  ;;  %v11021_v19 = vsub.f32 %v19685_v35, %v10539_v16 }
 0xc3c   : > { %v19843_v12 = vpop.f32.mrb[182].mxu0  ;;  %v19845_v8 = vpop.f32.mrb[182].mxu1 }
 0xc3d   : > { %v19847_v25 = vpop.f32.mrb[183].mxu0  ;;  %v19849_v15 = vpop.f32.mrb[183].mxu1  ;;  %v11014_v0 = vsub.f32 %v19721_v2, %v19843_v12  ;;  %v11016_v4 = vsub.f32 %v19756_v28, %v19845_v8 }
 0xc3e   : > { %v11015_v39 = vsub.f32 %v19712_v48, %v19847_v25  ;;  %v11017_v34 = vsub.f32 %v19748_v24, %v19849_v15 }
 0xc40   : > { %v19851_v30 = vpop.f32.mrb[184].mxu0  ;;  %v19853_v41 = vpop.f32.mrb[184].mxu1 }
 0xc41   : > { %v19855_v61 = vpop.f32.mrb[185].mxu0  ;;  %v19857_v5 = vpop.f32.mrb[185].mxu1  ;;  %v11022_v38 = vsub.f32 %v19739_v20, %v19851_v30  ;;  %v11024_v35 = vsub.f32 %v19773_v58, %v19853_v41 }
 0xc42   : > { %v11023_v2 = vsub.f32 %v19733_v50, %v19855_v61  ;;  %v11025_v28 = vsub.f32 %v19767_v52, %v19857_v5 }
 0xc45   : > { %v10768_v53 = vpop.f32.mrb[186].mxu0  ;;  %v10845_v13 = vpop.f32.mrb[186].mxu1 }
 0xc46   : > { %v11026_v59 = vmul.f32 %v11010_v44, %v10768_v53  ;;  %v11028_v26 = vmul.f32 %v11012_v56, %v10845_v13  ;;  %v10770_v10 = vpop.f32.mrb[187].mxu0  ;;  %v10847_v1 = vpop.f32.mrb[187].mxu1 }
 0xc47   : > { %v11027_v40 = vmul.f32 %v11011_v46, %v10770_v10  ;;  %v11029_v33 = vmul.f32 %v11013_v63, %v10847_v1 }
 0xc48   : > { %v11058_v32 = vmul.f32 0.01, %v11026_v59  ;;  %vm11042_vm8 = vcmp.gt.f32.partialorder %v11026_v59, 0.0  ;;  %vm11044_vm0 = vcmp.gt.f32.partialorder %v11028_v26, 0.0  ;;  %v11060_v51 = vmul.f32 0.01, %v11028_v26 }
 0xc49   : > { %vm11043_vm3 = vcmp.gt.f32.partialorder %v11027_v40, 0.0  ;;  %v10774_v48 = vpop.f32.mrb[188].mxu0  ;;  %v10851_v17 = vpop.f32.mrb[188].mxu1  ;;  %v11059_v24 = vmul.f32 0.01, %v11027_v40  ;;  %vm11045_vm11 = vcmp.gt.f32.partialorder %v11029_v33, 0.0 }
 0xc4a   : > { %v11034_v27 = vmul.f32 %v11018_v18, %v10774_v48  ;;  %v11036_v3 = vmul.f32 %v11020_v54, %v10851_v17  ;;  %v10776_v20 = vpop.f32.mrb[189].mxu0  ;;  %v10853_v6 = vpop.f32.mrb[189].mxu1  ;;  %v11074_v29 = vsel %vm11042_vm8, %v11026_v59, %v11058_v32  ;;  %v11061_v58 = vmul.f32 0.01, %v11029_v33 }
 0xc4b   : > { %v11035_v31 = vmul.f32 %v11019_v57, %v10776_v20  ;;  %v11037_v11 = vmul.f32 %v11021_v19, %v10853_v6  ;;  %v11076_v52 = vsel %vm11044_vm0, %v11028_v26, %v11060_v51  ;;  %v11075_v62 = vsel %vm11043_vm3, %v11027_v40, %v11059_v24 }
 0xc4c   : > { %vm11050_vm6 = vcmp.gt.f32.partialorder %v11034_v27, 0.0  ;;  %v11066_v50 = vmul.f32 0.01, %v11034_v27  ;;  %vm11052_vm13 = vcmp.gt.f32.partialorder %v11036_v3, 0.0  ;;  %v11068_v23 = vmul.f32 0.01, %v11036_v3 }
 0xc4d   : > { %vm11051_vm1 = vcmp.gt.f32.partialorder %v11035_v31, 0.0  ;;  %v11067_v14 = vmul.f32 0.01, %v11035_v31  ;;  %v11069_v22 = vmul.f32 0.01, %v11037_v11  ;;  %vm11053_vm15 = vcmp.gt.f32.partialorder %v11037_v11, 0.0 }
 0xc4e   : > { %v11082_v45 = vsel %vm11050_vm6, %v11034_v27, %v11066_v50  ;;  %v11084_v47 = vsel %vm11052_vm13, %v11036_v3, %v11068_v23  ;;  %v10922_v7 = vpop.f32.mrb[190].mxu0  ;;  %v10999_v9 = vpop.f32.mrb[190].mxu1  ;;  %v11077_v15 = vsel %vm11045_vm11, %v11029_v33, %v11061_v58  ;;  %v13353_v48 = vmov 1983009808   ;;  %v21950_v50 = vld [vmem:[#allocation26_spill] sm:$0xff] }
 0xc4f   : > { %v11091_v21 = vpack.c.bf16 %v11082_v45, %v11074_v29  ;;  %v11093_v55 = vpack.c.bf16 %v11084_v47, %v11076_v52  ;;  %v11030_v37 = vmul.f32 %v11014_v0, %v10922_v7  ;;  %v11032_v36 = vmul.f32 %v11016_v4, %v10999_v9  ;;  %v10924_v43 = vpop.f32.mrb[191].mxu0  ;;  %v11001_v60 = vpop.f32.mrb[191].mxu1  ;;  %v11090_v4 = vld [vmem:[%s21947_s9] sm:$0x1]  ;;  %s13197_s9 = sshll.u32 %s13354_s28, 4  ;;  %s13198_s9 = int_to_ptr.vmem [resolvable:$false] %s13197_s9 }
 0xc50   : > { %v11031_v49 = vmul.f32 %v11015_v39, %v10924_v43  ;;  %v11033_v16 = vmul.f32 %v11017_v34, %v11001_v60  ;;  %v11083_v25 = vsel %vm11051_vm1, %v11035_v31, %v11067_v14  ;;  %v11085_v41 = vsel %vm11053_vm15, %v11037_v11, %v11069_v22  ;;  %v11103_v27 = vpop.permute.xlu1 %11102  ;;  %s13199_s2 = scalar_lea.vmem %s13198_s9, 512  ;;  %p13200_p3 = scmp.lt.s32.totalorder %s19910_s3, %s13198_s9 }
 0xc51   : > { %v10928_v12 = vpop.f32.mrb[192].mxu0  ;;  %v11005_v8 = vpop.f32.mrb[192].mxu1  ;;  %vm11046_vm10 = vcmp.gt.f32.partialorder %v11030_v37, 0.0  ;;  %v11062_v30 = vmul.f32 0.01, %v11030_v37  ;;  %vm11048_vm5 = vcmp.gt.f32.partialorder %v11032_v36, 0.0  ;;  %v11092_v57 = vpack.c.bf16 %v11083_v25, %v11075_v62  ;;  %p13201_p1 = scmp.lt.s32.totalorder %s13199_s2, %s13193_s0 }
 0xc52   : > { %v11064_v61 = vmul.f32 0.01, %v11032_v36  ;;  %vm11047_vm7 = vcmp.gt.f32.partialorder %v11031_v49, 0.0  ;;  %v11063_v5 = vmul.f32 0.01, %v11031_v49  ;;  %vm11049_vm9 = vcmp.gt.f32.partialorder %v11033_v16, 0.0 }
 0xc53   : > { %v11078_v44 = vsel %vm11046_vm10, %v11030_v37, %v11062_v30  ;;  %v11065_v56 = vmul.f32 0.01, %v11033_v16  ;;  %v11038_v46 = vmul.f32 %v11022_v38, %v10928_v12  ;;  %v11040_v63 = vmul.f32 %v11024_v35, %v11005_v8  ;;  %v10930_v18 = vpop.f32.mrb[193].mxu0  ;;  %v11007_v53 = vpop.f32.mrb[193].mxu1  ;;  %11108 = vmatprep.subr.bf16.mxu0 %v11092_v57  ;;  %p13202_p11 = por %p13201_p1, %p13200_p3 }
 0xc54   : > { %v11039_v13 = vmul.f32 %v11023_v2, %v10930_v18  ;;  %v11041_v54 = vmul.f32 %v11025_v28, %v11007_v53  ;;  %v11094_v59 = vpack.c.bf16 %v11085_v41, %v11077_v15  ;;  %v11080_v0 = vsel %vm11048_vm5, %v11032_v36, %v11064_v61  ;;  %11109 = vmatpush1.bf16.msra.mxu0 %v11091_v21 }
 0xc55   : > { %vm11054_vm14 = vcmp.gt.f32.partialorder %v11038_v46, 0.0  ;;  %v11070_v26 = vmul.f32 0.01, %v11038_v46  ;;  %vm11056_vm2 = vcmp.gt.f32.partialorder %v11040_v63, 0.0  ;;  %v11072_v10 = vmul.f32 0.01, %v11040_v63  ;;  %p13203_p2 = pnand %p13202_p11, %p13196_p12 }
 0xc56   : > { %vm11055_vm4 = vcmp.gt.f32.partialorder %v11039_v13, 0.0  ;;  %v11071_v1 = vmul.f32 0.01, %v11039_v13  ;;  %vm11057_vm8 = vcmp.gt.f32.partialorder %v11041_v54, 0.0  ;;  %v11073_v19 = vmul.f32 0.01, %v11041_v54  ;;  %11149 = vmatprep.subr.bf16.mxu1 %v11094_v59 }
 0xc57   : > { %v11086_v40 = vsel %vm11054_vm14, %v11038_v46, %v11070_v26  ;;  %v11088_v33 = vsel %vm11056_vm2, %v11040_v63, %v11072_v10  ;;  %11150 = vmatpush1.bf16.msra.mxu1 %v11093_v55  ;;  %v11079_v32 = vsel %vm11047_vm7, %v11031_v49, %v11063_v5  ;;  %v11081_v2 = vsel %vm11049_vm9, %v11033_v16, %v11065_v56 }
 0xc58   : > { %v11095_v39 = vpack.c.bf16 %v11086_v40, %v11078_v44  ;;  %v11097_v34 = vpack.c.bf16 %v11088_v33, %v11080_v0  ;;  %v11087_v38 = vsel %vm11055_vm4, %v11039_v13, %v11071_v1  ;;  %v11089_v28 = vsel %vm11057_vm8, %v11041_v54, %v11073_v19  ;;  %11813 = vmatmul.mubr.msk.bf16.vlgmr.msra.gmra.mrb[196].mxu0 %vm7414_vm12, %v11090_v4 }
 0xc59   : > { %v11096_v35 = vpack.c.bf16 %v11087_v38, %v11079_v32  ;;  %v11098_v51 = vpack.c.bf16 %v11089_v28, %v11081_v2  ;;  %11222 = vmatprep.mubr.bf16.mxu0 %v21266_v42  ;;  %v11283_v17 = vunpack.c.l.s4 %v13353_v48 }
 0xc5a   : > { %11814 = vmatmul.mubr.msk.bf16.vlgmr.msra.gmra.mrb[196].mxu1 %vm7414_vm12, %v11090_v4 }
 0xc5b   : > { %11190 = vmatprep.subr.bf16.mxu0 %v11096_v35  ;;  %11231 = vmatprep.subr.bf16.mxu1 %v11098_v51  ;;  %v11284_v24 = vunpack.c.0.s8 %v11283_v17 }
 0xc5c   : > { %11191 = vmatpush1.bf16.msra.mxu0 %v11095_v39  ;;  %11232 = vmatpush1.bf16.msra.mxu1 %v11097_v34 }
 0xc5d   : > { %11263 = vmatprep.mubr.bf16.mxu1 %v21266_v42  ;;  %v11287_v23 = vsub.s32 %v11284_v24, %v21950_v50 }
 0xc60   : > { %11815 = vmatmul.mubr.msk.bf16.vlgmr.msra.gmra.mrb[200].mxu0 %vm7414_vm12, %v11090_v4 }
 0xc62   : > { %11816 = vmatmul.mubr.msk.bf16.vlgmr.msra.gmra.mrb[200].mxu1 %vm7414_vm12, %v11090_v4 }
 0xd2b   : > { %v11142_v3 = vpop.f32.mrb[196].mxu0 }
 0xd2c   : > { %v11143_v6 = vadd.f32 %v11142_v3, %v11103_v27  ;;  %v11144_v58 = vpop.f32.mrb[197].mxu0 }
 0xd2d   : > { %v11183_v20 = vpop.f32.mrb[196].mxu1  ;;  %v11145_v11 = vadd.f32 %v11144_v58, %v11103_v27  ;;  %v11146_v52 = vpop.f32.mrb[198].mxu0 }
 0xd2e   : > { %v11184_v29 = vadd.f32 %v11183_v20, %v11103_v27  ;;  %v11185_v31 = vpop.f32.mrb[197].mxu1  ;;  %v11147_v22 = vpop.f32.mrb[199].mxu0 }
 0xd2f   : > { %v11186_v42 = vadd.f32 %v11185_v31, %v11103_v27  ;;  %v11187_v14 = vpop.f32.mrb[198].mxu1  ;;  %v11280_v47 = vcombine.low %v11143_v6, %v11145_v11 }
 0xd30   : > { %v11188_v45 = vpop.f32.mrb[199].mxu1 }
 0xd31   : > { %v11281_v7 = vcombine.low %v11184_v29, %v11186_v42  ;;  %v11288_v9 = vrot.slane %v11280_v47, %v11287_v23 }
 0xd33   : > { %v11295_v62 = vrot.slane %v11281_v7, %v11287_v23  ;;  %v11224_v55 = vpop.f32.mrb[200].mxu0 }
 0xd34   : > { %v11225_v36 = vadd.f32 %v11224_v55, %v11103_v27  ;;  %v11226_v60 = vpop.f32.mrb[201].mxu0 }
 0xd35   : > { %v11296_v21 = vcombine.low %v11288_v9, %v11295_v62  ;;  %v11265_v37 = vpop.f32.mrb[200].mxu1  ;;  %v11227_v16 = vadd.f32 %v11226_v60, %v11103_v27  ;;  %v11228_v8 = vpop.f32.mrb[202].mxu0 }
 0xd36   : > { %v11266_v43 = vadd.f32 %v11265_v37, %v11103_v27  ;;  %v11267_v49 = vpop.f32.mrb[201].mxu1  ;;  %v11229_v15 = vpop.f32.mrb[203].mxu0 }
 0xd37   : > { %v11268_v12 = vadd.f32 %v11267_v49, %v11103_v27  ;;  %v11269_v25 = vpop.f32.mrb[202].mxu1  ;;  %11316 = vst [vmem:[%s477_s21] sm:$0xff] %v11296_v21  ;;  %v11297_v41 = vcombine.low %v11225_v36, %v11227_v16 }
 0xd38   : > { %v11270_v30 = vpop.f32.mrb[203].mxu1 }
 0xd39   : > { %v11298_v61 = vcombine.low %v11266_v43, %v11268_v12  ;;  %v11305_v5 = vrot.slane %v11297_v41, %v11287_v23 }
 0xd3b   : > { %v11312_v44 = vrot.slane %v11298_v61, %v11287_v23 }
 0xd3d   : > { %v11313_v56 = vcombine.low %v11305_v5, %v11312_v44 }
 0xd3f   : > { %11317 = vst [vmem:[%s477_s21 + $0x8] sm:$0xff] %v11313_v56 }
 0xd40   : > { %13206 = shalt.err (!%p13203_p2)
}
 0xd41   : > { %s13207_s11 = scalar_lea.hbm %s19908_s26, 256  ;;  %s13211_s21 = scalar_lea.hbm %s21952_s25, 1536 }
 0xd42   : > { %p13208_p4 = scmp.ne.s32.totalorder %s19908_s26, %s13207_s11  ;;  %p13212_p5 = scmp.lt.u32.totalorder %s19908_s26, %s21952_s25 }
 0xd43   : > { %p13213_p6 = scmp.lt.u32.totalorder %s13211_s21, %s13207_s11  ;;  %p13215_p10 = scmp.lt.u32.totalorder %s13207_s11, %s19908_s26 }
 0xd44   : > { %p13209_p13 = pnand %p13208_p4, %p21954_p7 }
 0xd45   : > { %p13214_p9 = por %p13213_p6, %p13212_p5 }
 0xd46   : > { %p13210_p0 = pneg %p13209_p13 }
 0xd47   : > { %p13216_p8 = por %p13215_p10, %p13214_p9 }
 0xd49   : > { %p13217_p12 = pnand %p13216_p8, %p13210_p0 }
 0xd4b   : > { %13220 = shalt.err (!%p13217_p12)
}
 0xd4c   : > { %11901 = dma.vmem_to_hbm [thread:$0]  (%p21954_p7), %s19910_s3, 256, %s19908_s26, %s11319_s29  }
 0xd4d PF: > { %s21955_s8 = sld [smem:[#allocation20_spill]]  ;;  %s21956_s12 = sld [smem:[#allocation25_spill]] }
 0xd4e   : > { %p11931_p3 = scmp.ge.s32.totalorder %s13331_s24, 2 }
 0xd53   : > { %s11347_s27 = sand.u32 1, %s21955_s8   ;;  %p21957_p1 = scmp.ne.s32.totalorder %s21956_s12, 0 }
 0xd54   : > { %s11348_s0 = scalar_lea.sflag [#allocation5], %s11347_s27 }
 0xd55   : > { %p11921_p11 = pnand %p11931_p3, %p21957_p1 }
 0xd57   : > { %13286 = dma.done.wait (!%p11921_p11), %s11348_s0, 256  }
 0xd58   : > { %13288 = vsyncadd (!%p11921_p11), %s11348_s0, 4294967040  ;;  %s32_s24 = sadd.s32 1, %s13331_s24   ;;  %s21958_s13 = sld [smem:[#allocation23_spill]] }
 0xd59   : > { %p29_p2 = scmp.ge.s32.totalorder %s32_s24, 8   ;;  %s21959_s26 = smov %s21975_s18 }
 0xd5a   : > { %s21960_s15 = smov %s13295_s16  ;;  %s21961_s16 = smov %s13299_s17 }
 0xd5b   : > { %s21962_s17 = smov %s13644_s6  ;;  %s21963_s18 = smov %s13307_s19 }
 0xd5c   : > { %s21964_s19 = smov %s13311_s20  ;;  %s21965_s20 = smov %s13641_s4 }
 0xd5d   : > { %s21966_s3 = smov %s13323_s22  ;;  %s21967_s21 = smov %s13327_s23 }
 0xd5e   : > { %s21968_s22 = smov %s21958_s13  ;;  %s21969_s23 = smov %s21959_s26 }
 0xd5f   :  { %31 = sbr.rel (!%p29_p2) target bundleno = 22 (0x16), region = 147 }
 0xd66   :  { %11353 = vsyncpa [#allocation4], 1 }
 0xd67   :  { %11355 = vsyncpa [#allocation4 + $0x1], 1 }
 0xd68   :  { %11356 = vsyncpa [#allocation8], 1 }
 0xd69   :  { %11358 = vsyncpa [#allocation8 + $0x1], 1 }
 0xd6a   :  { %11359 = vsyncpa [#allocation12], 1 }
 0xd6b   :  { %11360 = vsyncpa [#allocation5], 1 }
 0xd6c   :  { %11362 = vsyncpa [#allocation5 + $0x1], 1 }
 0xd6d   :  { %11363 = vsyncpa [#allocation6], 1 }
 0xd6e   :  { %11365 = vsyncpa [#allocation6 + $0x1], 1 }

</bundles_post_ra>
